<compile_context>
chip_gen: v6e
topology: v6e:2x2x1
jax: 0.10.0
libtpu: 0.0.40
codegen_flags: <defaults>
</compile_context>

<pallas_src>
import numpy as np
import jax
import jax.numpy as jnp
from jax.experimental import pallas as pl
from jax.experimental.pallas import tpu as pltpu


# ----------------------------------------------------------------------------
# Fused kernel: conv1+bn1+relu -> conv2(9 shifted dots)+bn2+relu
#               -> conv3+bn3 -> residual add -> relu
# ----------------------------------------------------------------------------
def fused_bottleneck_kernel(x_ref, w1_ref, b1_ref, w2_ref, b2_ref,
                            w3_ref, b3_ref, hidx_ref, widx_ref,
                            o_ref, y1p_ref):
    """One grid step processes B images (NHWC).

    x_ref    : (B, H, W, Cin)   f32  input block (also the residual)
    w1_ref   : (Cin, Cm)        bf16 conv1 1x1 weight, BN1 scale folded in
    b1_ref   : (1, Cm)          f32  BN1 bias
    w2_ref   : (9, Cm, Cm)      bf16 conv2 3x3 taps (tap t = 3*dy+dx), BN2 folded
    b2_ref   : (1, Cm)          f32  BN2 bias
    w3_ref   : (Cm, Cin)        bf16 conv3 1x1 weight, BN3 scale folded in
    b3_ref   : (1, Cin)         f32  BN3 bias
    hidx_ref : (M, 1)           i32  h coordinate of each flattened row
    widx_ref : (M, 1)           i32  w coordinate of each flattened row
    o_ref    : (B, H, W, Cin)   f32  output block
    y1p_ref  : (M + 2*halo, Cm) bf16 VMEM halo scratch for row-shifted taps
    """
    B, H, W, Cin = x_ref.shape
    Cm = w1_ref.shape[1]
    M = B * H * W
    halo = (y1p_ref.shape[0] - M) // 2

    # ---- conv1 (1x1) + bn1 + relu : bf16 MXU dot, f32 accumulate ----------
    x_bf = x_ref[...].astype(jnp.bfloat16).reshape(M, Cin)
    y1 = jnp.dot(x_bf, w1_ref[...], preferred_element_type=jnp.float32)
    y1 = jnp.maximum(y1 + b1_ref[...], 0.0).astype(jnp.bfloat16)

    # ---- stage y1 into the halo scratch (aligned interior store) ----------
    # Only the 2*halo boundary rows are cleared (a few KiB, not the whole
    # buffer); the interior is fully overwritten every step.
    zero_halo = jnp.zeros((halo, Cm), jnp.bfloat16)
    y1p_ref[pl.ds(0, halo), :] = zero_halo
    y1p_ref[pl.ds(halo + M, halo), :] = zero_halo
    y1p_ref[pl.ds(halo, M), :] = y1

    # ---- conv2 (3x3, SAME) as 9 accumulating MXU dots ---------------------
    # Tap (dy, dx) needs y1[m + off] with off = (dy-1)*W + (dx-1); rows whose
    # source pixel is outside the image are zeroed with a (M,1) row mask.
    h_idx = hidx_ref[...]
    w_idx = widx_ref[...]
    acc = jnp.zeros((M, Cm), jnp.float32)
    for dy in range(3):
        for dx in range(3):
            t = 3 * dy + dx
            off = (dy - 1) * W + (dx - 1)
            if off == 0:
                src = y1                       # center tap: no shift, no mask
            else:
                src = y1p_ref[pl.ds(halo + off, M), :]
                conds = []
                if dy == 0:
                    conds.append(h_idx >= 1)
                elif dy == 2:
                    conds.append(h_idx < H - 1)
                if dx == 0:
                    conds.append(w_idx >= 1)
                elif dx == 2:
                    conds.append(w_idx < W - 1)
                valid = conds[0]
                for c in conds[1:]:
                    valid = jnp.logical_and(valid, c)
                src = jnp.where(valid, src, jnp.zeros_like(src))
            acc = acc + jnp.dot(src, w2_ref[t],
                                preferred_element_type=jnp.float32)
    y2 = jnp.maximum(acc + b2_ref[...], 0.0).astype(jnp.bfloat16)

    # ---- conv3 (1x1) + bn3 + residual + relu (f32 bias / residual) --------
    y3 = jnp.dot(y2, w3_ref[...], preferred_element_type=jnp.float32)
    y3 = (y3 + b3_ref[...]).reshape(B, H, W, Cin)
    # Re-read the input ref here instead of keeping an f32 (M, Cin) copy live
    # across all three matmuls (shorter live range -> less VMEM pressure).
    o_ref[...] = jnp.maximum(y3 + x_ref[...], 0.0).astype(o_ref.dtype)


# ----------------------------------------------------------------------------
# Wrapper (NHWC end-to-end)
# ----------------------------------------------------------------------------
def center_back_forward(x_nhwc, params, block_b=8, vmem_limit_mb=56):
    """Fused bottleneck forward. x_nhwc: (N, H, W, Cin) f32 -> same shape.

    params = (w1, s1, b1, w2, s2, b2, w3, s3, b3) with
      w1: (Cin, Cm)    conv1 1x1 weight   (PyTorch (Cm,Cin,1,1) -> squeeze().T)
      w2: (3,3,Cm,Cm)  conv2 weight, HWIO (PyTorch (Cm,Cm,3,3) -> permute(2,3,1,0))
      w3: (Cm, Cin)    conv3 1x1 weight
      s*, b*: (1, C)   eval-mode BN folded to per-channel scale / bias.
    """
    (w1, s1, b1, w2, s2, b2, w3, s3, b3) = params
    x = x_nhwc.astype(jnp.float32)
    N, H, W, Cin = x.shape
    Cm = w1.shape[1]

    # Fold BN scales into conv weights; bf16 weights for the MXU.
    w1f = (w1 * s1).astype(jnp.bfloat16)                                   # (Cin, Cm)
    w2f = (w2 * s2.reshape(1, 1, 1, Cm)).reshape(9, Cm, Cm).astype(jnp.bfloat16)
    w3f = (w3 * s3).astype(jnp.bfloat16)                                   # (Cm, Cin)
    b1f = b1.reshape(1, Cm).astype(jnp.float32)
    b2f = b2.reshape(1, Cm).astype(jnp.float32)
    b3f = b3.reshape(1, Cin).astype(jnp.float32)

    # ---- block-size selection ---------------------------------------------
    # Keep grid length >= 2 so v7x's two TensorCores both get work; prefer an
    # exact divisor of N (no padded work); otherwise zero-pad the batch so we
    # never silently degrade to tiny blocks.  block_b=8 keeps M = B*H*W a
    # multiple of 8 (sublane aligned) at real dims.
    B = max(1, min(block_b, N))
    if N > 1 and B >= N:
        B = (N + 1) // 2
    for cand in range(B, 0, -1):
        if N % cand == 0 and 2 * cand >= B:
            B = cand
            break
    n_pad = (-N) % B
    if n_pad:
        x = jnp.concatenate([x, jnp.zeros((n_pad, H, W, Cin), x.dtype)], axis=0)
    grid_n = (N + n_pad) // B

    M = B * H * W
    halo = max(8, ((W + 1 + 7) // 8) * 8)   # >= W+1 row shift, sublane aligned

    # Static (h, w) coordinates of each flattened row of a block (conv2 border
    # masks) — computed on host, passed as tiny grid-invariant i32 inputs.
    m = np.arange(M, dtype=np.int32)
    h_idx = jnp.asarray(((m // W) % H).reshape(M, 1))
    w_idx = jnp.asarray((m % W).reshape(M, 1))

    out = pl.pallas_call(
        fused_bottleneck_kernel,
        out_shape=jax.ShapeDtypeStruct((N + n_pad, H, W, Cin), jnp.float32),
        grid=(grid_n,),
        in_specs=[
            pl.BlockSpec((B, H, W, Cin), lambda n: (n, 0, 0, 0)),
            pl.BlockSpec((Cin, Cm), lambda n: (0, 0)),
            pl.BlockSpec((1, Cm), lambda n: (0, 0)),
            pl.BlockSpec((9, Cm, Cm), lambda n: (0, 0, 0)),
            pl.BlockSpec((1, Cm), lambda n: (0, 0)),
            pl.BlockSpec((Cm, Cin), lambda n: (0, 0)),
            pl.BlockSpec((1, Cin), lambda n: (0, 0)),
            pl.BlockSpec((M, 1), lambda n: (0, 0)),
            pl.BlockSpec((M, 1), lambda n: (0, 0)),
        ],
        out_specs=pl.BlockSpec((B, H, W, Cin), lambda n: (n, 0, 0, 0)),
        scratch_shapes=[pltpu.VMEM((M + 2 * halo, Cm), jnp.bfloat16)],
        compiler_params=pltpu.CompilerParams(
            dimension_semantics=("parallel",),
            # 56 MiB: well above v5e's 16 MiB scoped default, below v7x's
            # 64 MiB physical per-TC (headroom for compiler-internal scratch).
            vmem_limit_bytes=vmem_limit_mb * 1024 * 1024,
        ),
    )(x, w1f, b1f, w2f, b2f, w3f, b3f, h_idx, w_idx)

    return out[:N] if n_pad else out


def center_back_forward_nchw(x_nchw, params, **kwargs):
    """PyTorch-interface adapter (NCHW in/out).  Prefer the NHWC entry point:
    these transposes are full read+write passes over the activations and
    roughly triple the HBM traffic of the fused kernel."""
    x = jnp.transpose(x_nchw, (0, 2, 3, 1))
    y = center_back_forward(x, params, **kwargs)
    return jnp.transpose(y, (0, 3, 1, 2))


# ----------------------------------------------------------------------------
# Pure-JAX reference (f32, highest precision), NHWC
# ----------------------------------------------------------------------------
def ref_forward_nhwc(x, params):
    (w1, s1, b1, w2, s2, b2, w3, s3, b3) = params
    y = jnp.einsum('nhwc,cd->nhwd', x, w1, precision='highest')
    y = jnp.maximum(y * s1 + b1, 0.0)
    y = jax.lax.conv_general_dilated(
        y, w2, window_strides=(1, 1), padding='SAME',
        dimension_numbers=('NHWC', 'HWIO', 'NHWC'), precision='highest')
    y = jnp.maximum(y * s2 + b2, 0.0)
    y = jnp.einsum('nhwd,dc->nhwc', y, w3, precision='highest')
    y = y * s3 + b3
    return jnp.maximum(y + x, 0.0)


def fold_bn(key, c, eps=1e-5):
    k1, k2, k3, k4 = jax.random.split(key, 4)
    gamma = 1.0 + 0.1 * jax.random.normal(k1, (c,), jnp.float32)
    beta = 0.1 * jax.random.normal(k2, (c,), jnp.float32)
    mean = 0.1 * jax.random.normal(k3, (c,), jnp.float32)
    var = jnp.abs(jax.random.normal(k4, (c,), jnp.float32)) + 0.5
    scale = gamma / jnp.sqrt(var + eps)
    bias = beta - mean * scale
    return scale.reshape(1, c), bias.reshape(1, c)


if __name__ == "__main__":
    # Small stand-in for the real block (Cin=2048, Cm=512, H=W=7): keep the 4x
    # bottleneck ratio and the real 7x7 spatial, with lane-dense (>=128)
    # channel counts so the bf16 / MXU / shifted-tap code path exercised here
    # is the same one used at full size.
    N, Cin, Cm, H, W = 4, 512, 128, 7, 7
    key = jax.random.PRNGKey(0)
    ks = jax.random.split(key, 8)

    x = jax.random.normal(ks[0], (N, H, W, Cin), jnp.float32)   # NHWC end-to-end

    # Deterministic synthetic weights (layouts documented in the wrapper).
    w1 = 0.1 * jax.random.normal(ks[1], (Cin, Cm), jnp.float32)        # 1x1 Cin->Cm
    w2 = 0.1 * jax.random.normal(ks[2], (3, 3, Cm, Cm), jnp.float32)   # 3x3 HWIO
    w3 = 0.1 * jax.random.normal(ks[3], (Cm, Cin), jnp.float32)        # 1x1 Cm->Cin
    s1, b1 = fold_bn(ks[4], Cm)
    s2, b2 = fold_bn(ks[5], Cm)
    s3, b3 = fold_bn(ks[6], Cin)
    params = (w1, s1, b1, w2, s2, b2, w3, s3, b3)

    out = jax.block_until_ready(center_back_forward(x, params, block_b=2))
    ref = jax.block_until_ready(ref_forward_nhwc(x, params))

    assert out.shape == (N, H, W, Cin)
    # Kernel runs its dots on the bf16 MXU path (f32 accumulate, f32 biases
    # and residual), so compare with a mixed-precision tolerance against the
    # f32 'highest'-precision reference.
    err = float(jnp.max(jnp.abs(out - ref)))
    scale = float(jnp.max(jnp.abs(ref)))
    assert err <= 2e-2 * scale + 1e-3, \
        f"mismatch vs reference: max_err={err}, max_ref={scale}"

    print("KERNEL_OK")
</pallas_src>

<mosaic_0001>
module attributes {stable_mosaic.version = 11 : i64} {
  func.func @fused_bottleneck_kernel(%arg0: i32, %arg1: memref<2x7x7x512xf32, #tpu.memory_space<vmem>>, %arg2: memref<512x128xbf16, #tpu.memory_space<vmem>>, %arg3: memref<1x128xf32, #tpu.memory_space<vmem>>, %arg4: memref<9x128x128xbf16, #tpu.memory_space<vmem>>, %arg5: memref<1x128xf32, #tpu.memory_space<vmem>>, %arg6: memref<128x512xbf16, #tpu.memory_space<vmem>>, %arg7: memref<1x512xf32, #tpu.memory_space<vmem>>, %arg8: memref<98x1xi32, #tpu.memory_space<vmem>>, %arg9: memref<98x1xi32, #tpu.memory_space<vmem>>, %arg10: memref<2x7x7x512xf32, #tpu.memory_space<vmem>>, %arg11: memref<114x128xbf16, #tpu.memory_space<vmem>>) attributes {dimension_semantics = [#tpu.dimension_semantics<parallel>], iteration_bounds = array<i64: 2>, scalar_prefetch = 0 : i64, scratch_operands = 1 : i64, tpu.core_type = #tpu.core_type<tc>, window_params = [{transform_indices = @transform_0, window_bounds = array<i64: 2, 7, 7, 512>}, {pipeline_mode = #tpu.pipeline_mode<synchronous>, transform_indices = @transform_1, window_bounds = array<i64: 512, 128>}, {pipeline_mode = #tpu.pipeline_mode<synchronous>, transform_indices = @transform_2, window_bounds = array<i64: 1, 128>}, {pipeline_mode = #tpu.pipeline_mode<synchronous>, transform_indices = @transform_3, window_bounds = array<i64: 9, 128, 128>}, {pipeline_mode = #tpu.pipeline_mode<synchronous>, transform_indices = @transform_4, window_bounds = array<i64: 1, 128>}, {pipeline_mode = #tpu.pipeline_mode<synchronous>, transform_indices = @transform_5, window_bounds = array<i64: 128, 512>}, {pipeline_mode = #tpu.pipeline_mode<synchronous>, transform_indices = @transform_6, window_bounds = array<i64: 1, 512>}, {pipeline_mode = #tpu.pipeline_mode<synchronous>, transform_indices = @transform_7, window_bounds = array<i64: 98, 1>}, {pipeline_mode = #tpu.pipeline_mode<synchronous>, transform_indices = @transform_8, window_bounds = array<i64: 98, 1>}, {transform_indices = @transform_9, window_bounds = array<i64: 2, 7, 7, 512>}]} {
    %c0 = arith.constant 0 : index
    %c0_0 = arith.constant 0 : index
    %c0_1 = arith.constant 0 : index
    %c0_2 = arith.constant 0 : index
    %0 = vector.load %arg1[%c0, %c0_0, %c0_1, %c0_2] : memref<2x7x7x512xf32, #tpu.memory_space<vmem>>, vector<2x7x7x512xf32>
    %1 = arith.truncf %0 : vector<2x7x7x512xf32> to vector<2x7x7x512xbf16>
    %2 = vector.shape_cast %1 : vector<2x7x7x512xbf16> to vector<98x512xbf16>
    %c0_3 = arith.constant 0 : index
    %c0_4 = arith.constant 0 : index
    %3 = vector.load %arg2[%c0_3, %c0_4] : memref<512x128xbf16, #tpu.memory_space<vmem>>, vector<512x128xbf16>
    %cst = arith.constant dense<0.000000e+00> : vector<98x128xf32>
    %4 = tpu.matmul %2, %3, %cst {dimension_numbers = #tpu.dot_dimension_numbers<[1], [0], [0], [1], [0, 0, 1, 1], [], []>} : vector<98x512xbf16>, vector<512x128xbf16>, vector<98x128xf32> -> vector<98x128xf32>
    %c0_5 = arith.constant 0 : index
    %c0_6 = arith.constant 0 : index
    %5 = vector.load %arg3[%c0_5, %c0_6] : memref<1x128xf32, #tpu.memory_space<vmem>>, vector<1x128xf32>
    %6 = vector.broadcast %5 : vector<1x128xf32> to vector<98x128xf32>
    %7 = arith.addf %4, %6 : vector<98x128xf32>
    %cst_7 = arith.constant 0.000000e+00 : f32
    %8 = vector.broadcast %cst_7 : f32 to vector<98x128xf32>
    %9 = arith.maximumf %7, %8 : vector<98x128xf32>
    %10 = arith.truncf %9 : vector<98x128xf32> to vector<98x128xbf16>
    %cst_8 = arith.constant 0.000000e+00 : bf16
    %11 = vector.broadcast %cst_8 : bf16 to vector<8x128xbf16>
    %c0_9 = arith.constant 0 : index
    %c0_10 = arith.constant 0 : index
    %12 = vector.load %arg11[%c0_9, %c0_10] : memref<114x128xbf16, #tpu.memory_space<vmem>>, vector<8x128xbf16>
    tpu.vector_store %arg11[%c0_9, %c0_10], %11 {strides = array<i32>} : memref<114x128xbf16, #tpu.memory_space<vmem>>, vector<8x128xbf16>,
    %c106 = arith.constant 106 : index
    %c0_11 = arith.constant 0 : index
    %13 = vector.load %arg11[%c106, %c0_11] : memref<114x128xbf16, #tpu.memory_space<vmem>>, vector<8x128xbf16>
    tpu.vector_store %arg11[%c106, %c0_11], %11 {strides = array<i32>} : memref<114x128xbf16, #tpu.memory_space<vmem>>, vector<8x128xbf16>,
    %c8 = arith.constant 8 : index
    %c0_12 = arith.constant 0 : index
    %14 = vector.load %arg11[%c8, %c0_12] : memref<114x128xbf16, #tpu.memory_space<vmem>>, vector<98x128xbf16>
    tpu.vector_store %arg11[%c8, %c0_12], %10 {strides = array<i32>} : memref<114x128xbf16, #tpu.memory_space<vmem>>, vector<98x128xbf16>,
    %c0_13 = arith.constant 0 : index
    %c0_14 = arith.constant 0 : index
    %15 = vector.load %arg8[%c0_13, %c0_14] : memref<98x1xi32, #tpu.memory_space<vmem>>, vector<98x1xi32>
    %c0_15 = arith.constant 0 : index
    %c0_16 = arith.constant 0 : index
    %16 = vector.load %arg9[%c0_15, %c0_16] : memref<98x1xi32, #tpu.memory_space<vmem>>, vector<98x1xi32>
    %cst_17 = arith.constant 0.000000e+00 : f32
    %17 = vector.broadcast %cst_17 : f32 to vector<98x128xf32>
    %c0_18 = arith.constant 0 : index
    %c0_19 = arith.constant 0 : index
    %18 = vector.load %arg11[%c0_18, %c0_19] : memref<114x128xbf16, #tpu.memory_space<vmem>>, vector<98x128xbf16>
    %c1_i32 = arith.constant 1 : i32
    %19 = vector.broadcast %c1_i32 : i32 to vector<98x1xi32>
    %20 = arith.cmpi sge, %15, %19 : vector<98x1xi32>
    %c1_i32_20 = arith.constant 1 : i32
    %21 = vector.broadcast %c1_i32_20 : i32 to vector<98x1xi32>
    %22 = arith.cmpi sge, %16, %21 : vector<98x1xi32>
    %23 = arith.andi %20, %22 : vector<98x1xi1>
    %cst_21 = arith.constant 0.000000e+00 : bf16
    %24 = vector.broadcast %cst_21 : bf16 to vector<98x128xbf16>
    %25 = vector.shape_cast %23 : vector<98x1xi1> to vector<98x1xi1>
    %26 = vector.broadcast %25 : vector<98x1xi1> to vector<98x128xi1>
    %27 = arith.select %26, %18, %24 : vector<98x128xi1>, vector<98x128xbf16>
    %c0_22 = arith.constant 0 : index
    %c0_23 = arith.constant 0 : index
    %c0_24 = arith.constant 0 : index
    %28 = vector.load %arg4[%c0_22, %c0_23, %c0_24] : memref<9x128x128xbf16, #tpu.memory_space<vmem>>, vector<1x128x128xbf16>
    %29 = vector.shape_cast %28 : vector<1x128x128xbf16> to vector<128x128xbf16>
    %cst_25 = arith.constant dense<0.000000e+00> : vector<98x128xf32>
    %30 = tpu.matmul %27, %29, %cst_25 {dimension_numbers = #tpu.dot_dimension_numbers<[1], [0], [0], [1], [0, 0, 1, 1], [], []>} : vector<98x128xbf16>, vector<128x128xbf16>, vector<98x128xf32> -> vector<98x128xf32>
    %31 = arith.addf %17, %30 : vector<98x128xf32>
    %c1 = arith.constant 1 : index
    %c0_26 = arith.constant 0 : index
    %32 = vector.load %arg11[%c1, %c0_26] : memref<114x128xbf16, #tpu.memory_space<vmem>>, vector<98x128xbf16>
    %c1_i32_27 = arith.constant 1 : i32
    %33 = vector.broadcast %c1_i32_27 : i32 to vector<98x1xi32>
    %34 = arith.cmpi sge, %15, %33 : vector<98x1xi32>
    %cst_28 = arith.constant 0.000000e+00 : bf16
    %35 = vector.broadcast %cst_28 : bf16 to vector<98x128xbf16>
    %36 = vector.shape_cast %34 : vector<98x1xi1> to vector<98x1xi1>
    %37 = vector.broadcast %36 : vector<98x1xi1> to vector<98x128xi1>
    %38 = arith.select %37, %32, %35 : vector<98x128xi1>, vector<98x128xbf16>
    %c1_29 = arith.constant 1 : index
    %c0_30 = arith.constant 0 : index
    %c0_31 = arith.constant 0 : index
    %39 = vector.load %arg4[%c1_29, %c0_30, %c0_31] : memref<9x128x128xbf16, #tpu.memory_space<vmem>>, vector<1x128x128xbf16>
    %40 = vector.shape_cast %39 : vector<1x128x128xbf16> to vector<128x128xbf16>
    %cst_32 = arith.constant dense<0.000000e+00> : vector<98x128xf32>
    %41 = tpu.matmul %38, %40, %cst_32 {dimension_numbers = #tpu.dot_dimension_numbers<[1], [0], [0], [1], [0, 0, 1, 1], [], []>} : vector<98x128xbf16>, vector<128x128xbf16>, vector<98x128xf32> -> vector<98x128xf32>
    %42 = arith.addf %31, %41 : vector<98x128xf32>
    %c2 = arith.constant 2 : index
    %c0_33 = arith.constant 0 : index
    %43 = vector.load %arg11[%c2, %c0_33] : memref<114x128xbf16, #tpu.memory_space<vmem>>, vector<98x128xbf16>
    %c1_i32_34 = arith.constant 1 : i32
    %44 = vector.broadcast %c1_i32_34 : i32 to vector<98x1xi32>
    %45 = arith.cmpi sge, %15, %44 : vector<98x1xi32>
    %c6_i32 = arith.constant 6 : i32
    %46 = vector.broadcast %c6_i32 : i32 to vector<98x1xi32>
    %47 = arith.cmpi slt, %16, %46 : vector<98x1xi32>
    %48 = arith.andi %45, %47 : vector<98x1xi1>
    %cst_35 = arith.constant 0.000000e+00 : bf16
    %49 = vector.broadcast %cst_35 : bf16 to vector<98x128xbf16>
    %50 = vector.shape_cast %48 : vector<98x1xi1> to vector<98x1xi1>
    %51 = vector.broadcast %50 : vector<98x1xi1> to vector<98x128xi1>
    %52 = arith.select %51, %43, %49 : vector<98x128xi1>, vector<98x128xbf16>
    %c2_36 = arith.constant 2 : index
    %c0_37 = arith.constant 0 : index
    %c0_38 = arith.constant 0 : index
    %53 = vector.load %arg4[%c2_36, %c0_37, %c0_38] : memref<9x128x128xbf16, #tpu.memory_space<vmem>>, vector<1x128x128xbf16>
    %54 = vector.shape_cast %53 : vector<1x128x128xbf16> to vector<128x128xbf16>
    %cst_39 = arith.constant dense<0.000000e+00> : vector<98x128xf32>
    %55 = tpu.matmul %52, %54, %cst_39 {dimension_numbers = #tpu.dot_dimension_numbers<[1], [0], [0], [1], [0, 0, 1, 1], [], []>} : vector<98x128xbf16>, vector<128x128xbf16>, vector<98x128xf32> -> vector<98x128xf32>
    %56 = arith.addf %42, %55 : vector<98x128xf32>
    %c7 = arith.constant 7 : index
    %c0_40 = arith.constant 0 : index
    %57 = vector.load %arg11[%c7, %c0_40] : memref<114x128xbf16, #tpu.memory_space<vmem>>, vector<98x128xbf16>
    %c1_i32_41 = arith.constant 1 : i32
    %58 = vector.broadcast %c1_i32_41 : i32 to vector<98x1xi32>
    %59 = arith.cmpi sge, %16, %58 : vector<98x1xi32>
    %cst_42 = arith.constant 0.000000e+00 : bf16
    %60 = vector.broadcast %cst_42 : bf16 to vector<98x128xbf16>
    %61 = vector.shape_cast %59 : vector<98x1xi1> to vector<98x1xi1>
    %62 = vector.broadcast %61 : vector<98x1xi1> to vector<98x128xi1>
    %63 = arith.select %62, %57, %60 : vector<98x128xi1>, vector<98x128xbf16>
    %c3 = arith.constant 3 : index
    %c0_43 = arith.constant 0 : index
    %c0_44 = arith.constant 0 : index
    %64 = vector.load %arg4[%c3, %c0_43, %c0_44] : memref<9x128x128xbf16, #tpu.memory_space<vmem>>, vector<1x128x128xbf16>
    %65 = vector.shape_cast %64 : vector<1x128x128xbf16> to vector<128x128xbf16>
    %cst_45 = arith.constant dense<0.000000e+00> : vector<98x128xf32>
    %66 = tpu.matmul %63, %65, %cst_45 {dimension_numbers = #tpu.dot_dimension_numbers<[1], [0], [0], [1], [0, 0, 1, 1], [], []>} : vector<98x128xbf16>, vector<128x128xbf16>, vector<98x128xf32> -> vector<98x128xf32>
    %67 = arith.addf %56, %66 : vector<98x128xf32>
    %c4 = arith.constant 4 : index
    %c0_46 = arith.constant 0 : index
    %c0_47 = arith.constant 0 : index
    %68 = vector.load %arg4[%c4, %c0_46, %c0_47] : memref<9x128x128xbf16, #tpu.memory_space<vmem>>, vector<1x128x128xbf16>
    %69 = vector.shape_cast %68 : vector<1x128x128xbf16> to vector<128x128xbf16>
    %cst_48 = arith.constant dense<0.000000e+00> : vector<98x128xf32>
    %70 = tpu.matmul %10, %69, %cst_48 {dimension_numbers = #tpu.dot_dimension_numbers<[1], [0], [0], [1], [0, 0, 1, 1], [], []>} : vector<98x128xbf16>, vector<128x128xbf16>, vector<98x128xf32> -> vector<98x128xf32>
    %71 = arith.addf %67, %70 : vector<98x128xf32>
    %c9 = arith.constant 9 : index
    %c0_49 = arith.constant 0 : index
    %72 = vector.load %arg11[%c9, %c0_49] : memref<114x128xbf16, #tpu.memory_space<vmem>>, vector<98x128xbf16>
    %c6_i32_50 = arith.constant 6 : i32
    %73 = vector.broadcast %c6_i32_50 : i32 to vector<98x1xi32>
    %74 = arith.cmpi slt, %16, %73 : vector<98x1xi32>
    %cst_51 = arith.constant 0.000000e+00 : bf16
    %75 = vector.broadcast %cst_51 : bf16 to vector<98x128xbf16>
    %76 = vector.shape_cast %74 : vector<98x1xi1> to vector<98x1xi1>
    %77 = vector.broadcast %76 : vector<98x1xi1> to vector<98x128xi1>
    %78 = arith.select %77, %72, %75 : vector<98x128xi1>, vector<98x128xbf16>
    %c5 = arith.constant 5 : index
    %c0_52 = arith.constant 0 : index
    %c0_53 = arith.constant 0 : index
    %79 = vector.load %arg4[%c5, %c0_52, %c0_53] : memref<9x128x128xbf16, #tpu.memory_space<vmem>>, vector<1x128x128xbf16>
    %80 = vector.shape_cast %79 : vector<1x128x128xbf16> to vector<128x128xbf16>
    %cst_54 = arith.constant dense<0.000000e+00> : vector<98x128xf32>
    %81 = tpu.matmul %78, %80, %cst_54 {dimension_numbers = #tpu.dot_dimension_numbers<[1], [0], [0], [1], [0, 0, 1, 1], [], []>} : vector<98x128xbf16>, vector<128x128xbf16>, vector<98x128xf32> -> vector<98x128xf32>
    %82 = arith.addf %71, %81 : vector<98x128xf32>
    %c14 = arith.constant 14 : index
    %c0_55 = arith.constant 0 : index
    %83 = vector.load %arg11[%c14, %c0_55] : memref<114x128xbf16, #tpu.memory_space<vmem>>, vector<98x128xbf16>
    %c6_i32_56 = arith.constant 6 : i32
    %84 = vector.broadcast %c6_i32_56 : i32 to vector<98x1xi32>
    %85 = arith.cmpi slt, %15, %84 : vector<98x1xi32>
    %c1_i32_57 = arith.constant 1 : i32
    %86 = vector.broadcast %c1_i32_57 : i32 to vector<98x1xi32>
    %87 = arith.cmpi sge, %16, %86 : vector<98x1xi32>
    %88 = arith.andi %85, %87 : vector<98x1xi1>
    %cst_58 = arith.constant 0.000000e+00 : bf16
    %89 = vector.broadcast %cst_58 : bf16 to vector<98x128xbf16>
    %90 = vector.shape_cast %88 : vector<98x1xi1> to vector<98x1xi1>
    %91 = vector.broadcast %90 : vector<98x1xi1> to vector<98x128xi1>
    %92 = arith.select %91, %83, %89 : vector<98x128xi1>, vector<98x128xbf16>
    %c6 = arith.constant 6 : index
    %c0_59 = arith.constant 0 : index
    %c0_60 = arith.constant 0 : index
    %93 = vector.load %arg4[%c6, %c0_59, %c0_60] : memref<9x128x128xbf16, #tpu.memory_space<vmem>>, vector<1x128x128xbf16>
    %94 = vector.shape_cast %93 : vector<1x128x128xbf16> to vector<128x128xbf16>
    %cst_61 = arith.constant dense<0.000000e+00> : vector<98x128xf32>
    %95 = tpu.matmul %92, %94, %cst_61 {dimension_numbers = #tpu.dot_dimension_numbers<[1], [0], [0], [1], [0, 0, 1, 1], [], []>} : vector<98x128xbf16>, vector<128x128xbf16>, vector<98x128xf32> -> vector<98x128xf32>
    %96 = arith.addf %82, %95 : vector<98x128xf32>
    %c15 = arith.constant 15 : index
    %c0_62 = arith.constant 0 : index
    %97 = vector.load %arg11[%c15, %c0_62] : memref<114x128xbf16, #tpu.memory_space<vmem>>, vector<98x128xbf16>
    %c6_i32_63 = arith.constant 6 : i32
    %98 = vector.broadcast %c6_i32_63 : i32 to vector<98x1xi32>
    %99 = arith.cmpi slt, %15, %98 : vector<98x1xi32>
    %cst_64 = arith.constant 0.000000e+00 : bf16
    %100 = vector.broadcast %cst_64 : bf16 to vector<98x128xbf16>
    %101 = vector.shape_cast %99 : vector<98x1xi1> to vector<98x1xi1>
    %102 = vector.broadcast %101 : vector<98x1xi1> to vector<98x128xi1>
    %103 = arith.select %102, %97, %100 : vector<98x128xi1>, vector<98x128xbf16>
    %c7_65 = arith.constant 7 : index
    %c0_66 = arith.constant 0 : index
    %c0_67 = arith.constant 0 : index
    %104 = vector.load %arg4[%c7_65, %c0_66, %c0_67] : memref<9x128x128xbf16, #tpu.memory_space<vmem>>, vector<1x128x128xbf16>
    %105 = vector.shape_cast %104 : vector<1x128x128xbf16> to vector<128x128xbf16>
    %cst_68 = arith.constant dense<0.000000e+00> : vector<98x128xf32>
    %106 = tpu.matmul %103, %105, %cst_68 {dimension_numbers = #tpu.dot_dimension_numbers<[1], [0], [0], [1], [0, 0, 1, 1], [], []>} : vector<98x128xbf16>, vector<128x128xbf16>, vector<98x128xf32> -> vector<98x128xf32>
    %107 = arith.addf %96, %106 : vector<98x128xf32>
    %c16 = arith.constant 16 : index
    %c0_69 = arith.constant 0 : index
    %108 = vector.load %arg11[%c16, %c0_69] : memref<114x128xbf16, #tpu.memory_space<vmem>>, vector<98x128xbf16>
    %c6_i32_70 = arith.constant 6 : i32
    %109 = vector.broadcast %c6_i32_70 : i32 to vector<98x1xi32>
    %110 = arith.cmpi slt, %15, %109 : vector<98x1xi32>
    %c6_i32_71 = arith.constant 6 : i32
    %111 = vector.broadcast %c6_i32_71 : i32 to vector<98x1xi32>
    %112 = arith.cmpi slt, %16, %111 : vector<98x1xi32>
    %113 = arith.andi %110, %112 : vector<98x1xi1>
    %cst_72 = arith.constant 0.000000e+00 : bf16
    %114 = vector.broadcast %cst_72 : bf16 to vector<98x128xbf16>
    %115 = vector.shape_cast %113 : vector<98x1xi1> to vector<98x1xi1>
    %116 = vector.broadcast %115 : vector<98x1xi1> to vector<98x128xi1>
    %117 = arith.select %116, %108, %114 : vector<98x128xi1>, vector<98x128xbf16>
    %c8_73 = arith.constant 8 : index
    %c0_74 = arith.constant 0 : index
    %c0_75 = arith.constant 0 : index
    %118 = vector.load %arg4[%c8_73, %c0_74, %c0_75] : memref<9x128x128xbf16, #tpu.memory_space<vmem>>, vector<1x128x128xbf16>
    %119 = vector.shape_cast %118 : vector<1x128x128xbf16> to vector<128x128xbf16>
    %cst_76 = arith.constant dense<0.000000e+00> : vector<98x128xf32>
    %120 = tpu.matmul %117, %119, %cst_76 {dimension_numbers = #tpu.dot_dimension_numbers<[1], [0], [0], [1], [0, 0, 1, 1], [], []>} : vector<98x128xbf16>, vector<128x128xbf16>, vector<98x128xf32> -> vector<98x128xf32>
    %121 = arith.addf %107, %120 : vector<98x128xf32>
    %c0_77 = arith.constant 0 : index
    %c0_78 = arith.constant 0 : index
    %122 = vector.load %arg5[%c0_77, %c0_78] : memref<1x128xf32, #tpu.memory_space<vmem>>, vector<1x128xf32>
    %123 = vector.broadcast %122 : vector<1x128xf32> to vector<98x128xf32>
    %124 = arith.addf %121, %123 : vector<98x128xf32>
    %cst_79 = arith.constant 0.000000e+00 : f32
    %125 = vector.broadcast %cst_79 : f32 to vector<98x128xf32>
    %126 = arith.maximumf %124, %125 : vector<98x128xf32>
    %127 = arith.truncf %126 : vector<98x128xf32> to vector<98x128xbf16>
    %c0_80 = arith.constant 0 : index
    %c0_81 = arith.constant 0 : index
    %128 = vector.load %arg6[%c0_80, %c0_81] : memref<128x512xbf16, #tpu.memory_space<vmem>>, vector<128x512xbf16>
    %cst_82 = arith.constant dense<0.000000e+00> : vector<98x512xf32>
    %129 = tpu.matmul %127, %128, %cst_82 {dimension_numbers = #tpu.dot_dimension_numbers<[1], [0], [0], [1], [0, 0, 1, 1], [], []>} : vector<98x128xbf16>, vector<128x512xbf16>, vector<98x512xf32> -> vector<98x512xf32>
    %c0_83 = arith.constant 0 : index
    %c0_84 = arith.constant 0 : index
    %130 = vector.load %arg7[%c0_83, %c0_84] : memref<1x512xf32, #tpu.memory_space<vmem>>, vector<1x512xf32>
    %131 = vector.broadcast %130 : vector<1x512xf32> to vector<98x512xf32>
    %132 = arith.addf %129, %131 : vector<98x512xf32>
    %133 = vector.shape_cast %132 : vector<98x512xf32> to vector<2x7x7x512xf32>
    %c0_85 = arith.constant 0 : index
    %c0_86 = arith.constant 0 : index
    %c0_87 = arith.constant 0 : index
    %c0_88 = arith.constant 0 : index
    %134 = vector.load %arg1[%c0_85, %c0_86, %c0_87, %c0_88] : memref<2x7x7x512xf32, #tpu.memory_space<vmem>>, vector<2x7x7x512xf32>
    %135 = arith.addf %133, %134 : vector<2x7x7x512xf32>
    %cst_89 = arith.constant 0.000000e+00 : f32
    %136 = vector.broadcast %cst_89 : f32 to vector<2x7x7x512xf32>
    %137 = arith.maximumf %135, %136 : vector<2x7x7x512xf32>
    %c0_90 = arith.constant 0 : index
    %c0_91 = arith.constant 0 : index
    %c0_92 = arith.constant 0 : index
    %c0_93 = arith.constant 0 : index
    %138 = vector.load %arg10[%c0_90, %c0_91, %c0_92, %c0_93] : memref<2x7x7x512xf32, #tpu.memory_space<vmem>>, vector<2x7x7x512xf32>
    tpu.vector_store %arg10[%c0_90, %c0_91, %c0_92, %c0_93], %137 {strides = array<i32>} : memref<2x7x7x512xf32, #tpu.memory_space<vmem>>, vector<2x7x7x512xf32>,
    return
  }
  func.func @transform_0(%arg0: i32) -> (i32, i32, i32, i32) {
    %c0_i32 = arith.constant 0 : i32
    %c0_i32_0 = arith.constant 0 : i32
    %c0_i32_1 = arith.constant 0 : i32
    %c0_i32_2 = arith.constant 0 : i32
    return %arg0, %c0_i32, %c0_i32_0, %c0_i32_1 : i32, i32, i32, i32
  }
  func.func @transform_1(%arg0: i32) -> (i32, i32) {
    %c0_i32 = arith.constant 0 : i32
    %c0_i32_0 = arith.constant 0 : i32
    %c0_i32_1 = arith.constant 0 : i32
    return %c0_i32, %c0_i32_0 : i32, i32
  }
  func.func @transform_2(%arg0: i32) -> (i32, i32) {
    %c0_i32 = arith.constant 0 : i32
    %c0_i32_0 = arith.constant 0 : i32
    %c0_i32_1 = arith.constant 0 : i32
    return %c0_i32, %c0_i32_0 : i32, i32
  }
  func.func @transform_3(%arg0: i32) -> (i32, i32, i32) {
    %c0_i32 = arith.constant 0 : i32
    %c0_i32_0 = arith.constant 0 : i32
    %c0_i32_1 = arith.constant 0 : i32
    %c0_i32_2 = arith.constant 0 : i32
    return %c0_i32, %c0_i32_0, %c0_i32_1 : i32, i32, i32
  }
  func.func @transform_4(%arg0: i32) -> (i32, i32) {
    %c0_i32 = arith.constant 0 : i32
    %c0_i32_0 = arith.constant 0 : i32
    %c0_i32_1 = arith.constant 0 : i32
    return %c0_i32, %c0_i32_0 : i32, i32
  }
  func.func @transform_5(%arg0: i32) -> (i32, i32) {
    %c0_i32 = arith.constant 0 : i32
    %c0_i32_0 = arith.constant 0 : i32
    %c0_i32_1 = arith.constant 0 : i32
    return %c0_i32, %c0_i32_0 : i32, i32
  }
  func.func @transform_6(%arg0: i32) -> (i32, i32) {
    %c0_i32 = arith.constant 0 : i32
    %c0_i32_0 = arith.constant 0 : i32
    %c0_i32_1 = arith.constant 0 : i32
    return %c0_i32, %c0_i32_0 : i32, i32
  }
  func.func @transform_7(%arg0: i32) -> (i32, i32) {
    %c0_i32 = arith.constant 0 : i32
    %c0_i32_0 = arith.constant 0 : i32
    %c0_i32_1 = arith.constant 0 : i32
    return %c0_i32, %c0_i32_0 : i32, i32
  }
  func.func @transform_8(%arg0: i32) -> (i32, i32) {
    %c0_i32 = arith.constant 0 : i32
    %c0_i32_0 = arith.constant 0 : i32
    %c0_i32_1 = arith.constant 0 : i32
    return %c0_i32, %c0_i32_0 : i32, i32
  }
  func.func @transform_9(%arg0: i32) -> (i32, i32, i32, i32) {
    %c0_i32 = arith.constant 0 : i32
    %c0_i32_0 = arith.constant 0 : i32
    %c0_i32_1 = arith.constant 0 : i32
    %c0_i32_2 = arith.constant 0 : i32
    return %arg0, %c0_i32, %c0_i32_0, %c0_i32_1 : i32, i32, i32, i32
  }
}

</mosaic_0001>

<bundles_post_ra>
// kernel: tpu_custom_call.1
= control target key start
LH: loop header
LB: loop body
LE: loop exit
PB: predicated region body
PF: predicated region fallthrough
CT: control target
= control target key end

     0   :  { %s11257_s30 = smov 0   ;;  %s16300_s0 = inlined_call_operand.vmem [shape: f32[4,7,7,512], index: 0, kind: input, shape index: {}]   ;;  %s16301_s1 = inlined_call_operand.vmem [shape: bf16[512,128], index: 1, kind: input, shape index: {}]   ;;  %s16302_s2 = inlined_call_operand.vmem [shape: f32[1,128], index: 2, kind: input, shape index: {}]   ;;  %s16303_s3 = inlined_call_operand.vmem [shape: bf16[9,128,128], index: 3, kind: input, shape index: {}]   ;;  %s16304_s4 = inlined_call_operand.vmem [shape: f32[1,128], index: 4, kind: input, shape index: {}]   ;;  %s16305_s5 = inlined_call_operand.vmem [shape: bf16[128,512], index: 5, kind: input, shape index: {}]   ;;  %s16306_s6 = inlined_call_operand.vmem [shape: f32[1,512], index: 6, kind: input, shape index: {}]   ;;  %s16307_s7 = inlined_call_operand.vmem [shape: s32[98,1], index: 7, kind: input, shape index: {}]   ;;  %s16308_s8 = inlined_call_operand.vmem [shape: s32[98,1], index: 8, kind: input, shape index: {}]   ;;  %s16309_s9 = inlined_call_operand.vmem [shape: f32[4,7,7,512], index: 9, kind: output, shape index: {}]  }
   0x1 LB: > { %s9811_s10 = sadd.s32 4294967295, %s11201_s30   ;;  %p9815_p0 = scmp.ge.s32.totalorder %s11201_s30, 1  ;;  %s11201_s30 = sphi %s11257_s30, %s19_s30  }
   0x2   : > { %p289_p1 = scmp.lt.s32.totalorder %s11201_s30, 3 }
   0x4   : > { %p290_p2 = pnand %p9815_p0, %p289_p1 }
   0x6   : > { %293 = sbr.rel (%p290_p2) target bundleno = 1231 (0x4cf), region = 56 }
   0xb   : > { %v11268_v0 = vld [vmem:[%s16307_s7 + $0x10] sm:$0xff]  ;;  %v11273_v1 = vld [vmem:[%s16307_s7] sm:$0xff]  ;;  %v16330_v2 = vmov 0   ;;  %v10936_v5 = vld [vmem:[%s16301_s1 + $0x78] sm:$0xff]   ;;  %s11330_s12 = sshll.u32 %s9811_s10, 1  ;;  %v517_v25 = vlaneseq }
   0xc   : > { %16474 = vst [vmem:[#allocation3_spill] sm:$0xff] %v11268_v0  ;;  %16475 = vst [vmem:[#allocation4_spill] sm:$0xff] %v11273_v1  ;;  %10935 = vset.pattern.permute.xlu1 %v16330_v2  ;;  %10934 = vset.pattern.permute.xlu0 %v16330_v2  ;;  %vm2157_vm0 = vcmp.ge.s32.totalorder %v11268_v0, 1  ;;  %vm2155_vm1 = vcmp.ge.s32.totalorder %v11273_v1, 1  ;;  %v10937_v6 = vld [vmem:[%s16301_s1 + $0x38] sm:$0xff]   ;;  %v11302_v8 = vld [vmem:[%s16307_s7 + $0x8] sm:$0xff] }
   0xd   : > { %2054 = vst [vmem:[#allocation2] sm:$0xf] %v16330_v2  ;;  %2055 = vst [vmem:[#allocation2 + $0x34] sm:$0xe] %v16330_v2  ;;  %v2304_v3 = vsel %vm2157_vm0, 1, %v16330_v2  ;;  %v2302_v4 = vsel %vm2155_vm1, 1, %v16330_v2  ;;  %10905 = vmatprep.subr.bf16.mxu1 %v10936_v5  ;;  %10258 = vmatprep.subr.bf16.mxu0 %v10936_v5 }
   0xe   : > { %2056 = vst [vmem:[#allocation2 + $0x38] sm:$0x1] %v16330_v2  ;;  %2322 = vperm.xlu1 %10935, %v2304_v3   ;;  %2316 = vperm.xlu0 %10934, %v2302_v4   ;;  %v11297_v7 = vld [vmem:[%s16307_s7 + $0x18] sm:$0xff]  ;;  %16476 = vst [vmem:[#allocation5_spill] sm:$0xff] %v11302_v8  ;;  %vm2156_vm3 = vcmp.ge.s32.totalorder %v11302_v8, 1  ;;  %v10938_v11 = vld [vmem:[%s16301_s1 + $0x70] sm:$0xff]  }
   0xf   : > { %vm2158_vm2 = vcmp.ge.s32.totalorder %v11297_v7, 1  ;;  %10913 = vmatpush3.bf16.msra.mxu1 %v10937_v6  ;;  %v2303_v10 = vsel %vm2156_vm3, 1, %v16330_v2  ;;  %v10939_v12 = vld [vmem:[%s16301_s1 + $0x30] sm:$0xff]   ;;  %10259 = vmatpush3.bf16.msra.mxu0 %v10937_v6  ;;  %v11321_v13 = vld [vmem:[%s16307_s7 + $0x28] sm:$0xff]  ;;  %v11326_v14 = vld [vmem:[%s16307_s7 + $0x20] sm:$0xff]  ;;  %p328_p3 = scmp.lt.s32.totalorder %s11330_s12, 3 }
  0x10   : > { %v2305_v9 = vsel %vm2158_vm2, 1, %v16330_v2  ;;  %vm2160_vm4 = vcmp.ge.s32.totalorder %v11321_v13, 1  ;;  %vm2159_vm5 = vcmp.ge.s32.totalorder %v11326_v14, 1  ;;  %10906 = vmatprep.subr.bf16.mxu1 %v10938_v11  ;;  %v10940_v17 = vld [vmem:[%s16301_s1 + $0x68] sm:$0xff]   ;;  %10260 = vmatprep.subr.bf16.mxu0 %v10938_v11  ;;  %v11349_v19 = vld [vmem:[%s16307_s7 + $0x38] sm:$0xff]  ;;  %v11354_v20 = vld [vmem:[%s16307_s7 + $0x30] sm:$0xff] }
  0x11   : > { %v2307_v15 = vsel %vm2160_vm4, 1, %v16330_v2  ;;  %v2306_v16 = vsel %vm2159_vm5, 1, %v16330_v2  ;;  %v10941_v18 = vld [vmem:[%s16301_s1 + $0x28] sm:$0xff]   ;;  %vm16323_vm6 = vcmp.ge.s32.totalorder %v11349_v19, 1  ;;  %vm2161_vm7 = vcmp.ge.s32.totalorder %v11354_v20, 1  ;;  %v10942_v23 = vld [vmem:[%s16301_s1 + $0x60] sm:$0xff]  }
  0x12   : > { %2325 = vperm.xlu1 %10935, %v2305_v9   ;;  %2319 = vperm.xlu0 %10934, %v2303_v10   ;;  %v2309_v21 = vsel %vm16323_vm6, 1, %v16330_v2  ;;  %v2308_v22 = vsel %vm2161_vm7, 1, %v16330_v2  ;;  %v10943_v24 = vld [vmem:[%s16301_s1 + $0x20] sm:$0xff]   ;;  %v11374_v26 = vld [vmem:[%s16307_s7 + $0x48] sm:$0xff]  ;;  %v10944_v28 = vld [vmem:[%s16301_s1 + $0x58] sm:$0xff]   ;;  %s17096_s12 = smov (!%p328_p3, %s11330_s12), 3 }
  0x13   : > { %10914 = vmatpush3.bf16.msra.mxu1 %v10939_v12  ;;  %10261 = vmatpush3.bf16.msra.mxu0 %v10939_v12  ;;  %v11379_v27 = vld [vmem:[%s16307_s7 + $0x40] sm:$0xff]  ;;  %vm16316_vm8 = vcmp.ge.s32.totalorder %v11374_v26, 1  ;;  %v11394_v29 = vld [vmem:[%s16307_s7 + $0x58] sm:$0xff]  ;;  %v11399_v30 = vld [vmem:[%s16307_s7 + $0x50] sm:$0xff]  ;;  %v11401_v31 = vshrl.u32 %v517_v25, 7  ;;  %s10921_s23 = smul.u32 224, %s17096_s12 }
  0x14   : > { %10907 = vmatprep.subr.bf16.mxu1 %v10940_v17  ;;  %10262 = vmatprep.subr.bf16.mxu0 %v10940_v17  ;;  %vm2163_vm9 = vcmp.ge.s32.totalorder %v11379_v27, 1  ;;  %v2311_v32 = vsel %vm16316_vm8, 1, %v16330_v2  ;;  %v11204_v34 = vmov 1966171168   ;;  %v10945_v36 = vld [vmem:[%s16301_s1 + $0x18] sm:$0xff]   ;;  %vm16310_vm10 = vcmp.ge.s32.totalorder %v11394_v29, 1 }
  0x15   : > { %16477 = vst [vmem:[#allocation6_spill] sm:$0xff] %v11401_v31  ;;  %v2310_v33 = vsel %vm2163_vm9, 1, %v16330_v2  ;;  %v515_v35 = vunpack.c.l.s4 %v11204_v34  ;;  %vm16312_vm11 = vcmp.ge.s32.totalorder %v11399_v30, 1  ;;  %v10946_v37 = vld [vmem:[%s16301_s1 + $0x50] sm:$0xff]   ;;  %v11420_v38 = vld [vmem:[%s16308_s8] sm:$0xff]  ;;  %v2313_v40 = vsel %vm16310_vm10, 1, %v16330_v2  ;;  %s11467_s15 = scalar_lea.vmem %s16300_s0, %s10921_s23  ;;  %s15681_s21 = scalar_lea.vmem %s16309_s9, %s10921_s23 }
  0x16   : > { %2331 = vperm.xlu1 %10935, %v2307_v15   ;;  %2328 = vperm.xlu0 %10934, %v2306_v16   ;;  %v11425_v39 = vld [vmem:[%s16307_s7 + $0x60] sm:$0x3]  ;;  %vm16313_vm12 = vcmp.lt.s32.totalorder %v11420_v38, 6  ;;  %v2312_v41 = vsel %vm16312_vm11, 1, %v16330_v2  ;;  %v10947_v42 = vld [vmem:[%s16301_s1 + $0x10] sm:$0xff]   ;;  %v10948_v46 = vld [vmem:[%s16301_s1 + $0x48] sm:$0xff]  }
  0x17   : > { %10915 = vmatpush3.bf16.msra.mxu1 %v10941_v18  ;;  %10263 = vmatpush3.bf16.msra.mxu0 %v10941_v18  ;;  %vm16311_vm13 = vcmp.ge.s32.totalorder %v11425_v39, 1  ;;  %vm2976_vm14 = vmand %vm2155_vm1, %vm16313_vm12  ;;  %v516_v44 = vunpack.c.0.s8 %v515_v35  ;;  %v11453_v47 = vld [vmem:[%s16308_s8 + $0x10] sm:$0xff]  ;;  %vm2168_vm15 = vcmp.ge.s32.totalorder %v11420_v38, 1  ;;  %v11460_v48 = vld [vmem:[%s16308_s8 + $0x8] sm:$0xff]  ;;  %v16497_v20 = vmov 0 }
  0x18   : > { %10908 = vmatprep.subr.bf16.mxu1 %v10942_v23  ;;  %10264 = vmatprep.subr.bf16.mxu0 %v10942_v23  ;;  %v2314_v43 = vsel %vm16311_vm13, 1, %v16330_v2  ;;  %v2989_v45 = vsel %vm2976_vm14, 1, %v16330_v2  ;;  %vm16314_vm10 = vcmp.lt.s32.totalorder %v11453_v47, 6  ;;  %v10949_v49 = vld [vmem:[%s16301_s1 + $0x8] sm:$0xff]   ;;  %vm16315_vm13 = vcmp.lt.s32.totalorder %v11460_v48, 6  ;;  %v10950_v52 = vld [vmem:[%s16301_s1 + $0x40] sm:$0xff]  }
  0x19   : > { %vm2978_vm14 = vmand %vm2157_vm0, %vm16314_vm10  ;;  %vm2169_vm11 = vcmp.ge.s32.totalorder %v11460_v48, 1  ;;  %vm2170_vm12 = vcmp.ge.s32.totalorder %v11453_v47, 1  ;;  %v11482_v50 = vsel %vm2168_vm15, 1, %v16330_v2  ;;  %v11493_v53 = vsub.s32 %v516_v44, %v11401_v31  ;;  %v380_v57 = vld [vmem:[%s11467_s15 + $0x120] sm:$0x7f]  ;;  %v11511_v59 = vld [vmem:[%s16308_s8 + $0x18] sm:$0xff] }
  0x1a   : > { %2337 = vperm.xlu1 %10935, %v2309_v21   ;;  %2334 = vperm.xlu0 %10934, %v2308_v22   ;;  %v2991_v51 = vsel %vm2978_vm14, 1, %v16330_v2  ;;  %vm2977_vm10 = vmand %vm2156_vm3, %vm16315_vm13  ;;  %v11498_v54 = vsel %vm2169_vm11, 1, %v16330_v2  ;;  %v11503_v55 = vsel %vm2170_vm12, 1, %v16330_v2  ;;  %v381_v58 = vld [vmem:[%s11467_s15 + $0x128] sm:$0x7f]  ;;  %v10951_v3 = vld [vmem:[%s16301_s1] sm:$0xff]  }
  0x1b   : > { %10916 = vmatpush3.bf16.msra.mxu1 %v10943_v24  ;;  %10265 = vmatpush3.bf16.msra.mxu0 %v10943_v24  ;;  %16478 = vst [vmem:[#allocation7_spill] sm:$0xff] %v11493_v53  ;;  %v2990_v56 = vsel %vm2977_vm10, 1, %v16330_v2  ;;  %v382_v60 = vld [vmem:[%s11467_s15 + $0x130] sm:$0x7f]  ;;  %v383_v61 = vld [vmem:[%s11467_s15 + $0x138] sm:$0x7f]  ;;  %v9838_v63 = vpack.c.bf16 %v381_v58, %v380_v57  ;;  %vm2181_vm14 = vmand %vm2155_vm1, %vm2168_vm15 }
  0x1c   : > { %10909 = vmatprep.subr.bf16.mxu1 %v10944_v28  ;;  %10266 = vmatprep.subr.bf16.mxu0 %v10944_v28  ;;  %v384_v62 = vld [vmem:[%s11467_s15 + $0x140] sm:$0x7f]  ;;  %v385_v4 = vld [vmem:[%s11467_s15 + $0x148] sm:$0x7f]  ;;  %v386_v5 = vld [vmem:[%s11467_s15 + $0x150] sm:$0x7f]  ;;  %v9839_v9 = vpack.c.bf16 %v383_v61, %v382_v60 }
  0x1d   : > { %v387_v6 = vld [vmem:[%s11467_s15 + $0x158] sm:$0x7f]  ;;  %v388_v10 = vld [vmem:[%s11467_s15 + $0x160] sm:$0x7f]  ;;  %v389_v11 = vld [vmem:[%s11467_s15 + $0x168] sm:$0x7f]  ;;  %v826_v15 = vrot.slane %v9838_v63, %v11493_v53  ;;  %v9840_v16 = vpack.c.bf16 %v385_v4, %v384_v62 }
  0x1e   : > { %2343 = vperm.xlu1 %10935, %v2311_v32   ;;  %2340 = vperm.xlu0 %10934, %v2310_v33   ;;  %v390_v12 = vld [vmem:[%s11467_s15 + $0x170] sm:$0x7f]  ;;  %v9841_v17 = vpack.c.bf16 %v387_v6, %v386_v5  ;;  %v391_v18 = vld [vmem:[%s11467_s15 + $0x178] sm:$0x7f]  ;;  %v833_v21 = vrot.slane %v9839_v9, %v11493_v53  ;;  %v9842_v22 = vpack.c.bf16 %v389_v11, %v388_v10  ;;  %vm16322_vm10 = vcmp.lt.s32.totalorder %v11511_v59, 6  ;;  %vm2182_vm1 = vmand %vm2156_vm3, %vm2169_vm11 }
  0x1f   : > { %10917 = vmatpush3.bf16.msra.mxu1 %v10945_v36  ;;  %10267 = vmatpush3.bf16.msra.mxu0 %v10945_v36  ;;  %vm16318_vm13 = vcmp.ge.s32.totalorder %v11511_v59, 1  ;;  %v860_v23 = vrot.slane %v9840_v16, %v11493_v53  ;;  %v9843_v25 = vpack.c.bf16 %v391_v18, %v390_v12  ;;  %vm2979_vm8 = vmand %vm2158_vm2, %vm16322_vm10  ;;  %v2194_v28 = vsel %vm2181_vm14, 1, %v16330_v2  ;;  %v10952_v32 = vld [vmem:[%s16301_s1 + $0xf8] sm:$0xff]   ;;  %v11583_v63 = vld [vmem:[%s16308_s8 + $0x28] sm:$0xff] }
  0x20   : > { %10910 = vmatprep.subr.bf16.mxu1 %v10946_v37  ;;  %10268 = vmatprep.subr.bf16.mxu0 %v10946_v37  ;;  %v867_v24 = vrot.slane %v9841_v17, %v11493_v53  ;;  %v834_v33 = vcombine.low %v826_v15, %v833_v21  ;;  %v835_v34 = vcombine.high %v826_v15, %v833_v21  ;;  %v2992_v36 = vsel %vm2979_vm8, 1, %v16330_v2  ;;  %vm11593_vm14 = vmand %vm2157_vm0, %vm2170_vm12  ;;  %v392_v10 = vld [vmem:[%s11467_s15 + $0x180] sm:$0x7f]  ;;  %v393_v17 = vld [vmem:[%s11467_s15 + $0x188] sm:$0x7f] }
  0x21   : > { %v894_v35 = vrot.slane %v9842_v22, %v11493_v53  ;;  %v394_v18 = vld [vmem:[%s11467_s15 + $0x190] sm:$0x7f]  ;;  %vm16317_vm0 = vcmp.lt.s32.totalorder %v11583_v63, 6  ;;  %v10957_v13 = vld [vmem:[%s16301_s1 + $0xa8] sm:$0xff]  }
  0x22   : > { %2349 = vperm.xlu1 %10935, %v2313_v40   ;;  %2346 = vperm.xlu0 %10934, %v2312_v41   ;;  %v868_v37 = vcombine.low %v860_v23, %v867_v24  ;;  %v869_v40 = vcombine.high %v860_v23, %v867_v24  ;;  %v901_v41 = vrot.slane %v9843_v25, %v11493_v53  ;;  %v395_v24 = vld [vmem:[%s11467_s15 + $0x198] sm:$0x7f]  ;;  %v396_v25 = vld [vmem:[%s11467_s15 + $0x1a0] sm:$0x7f] }
  0x23   : > { %10918 = vmatpush3.bf16.msra.mxu1 %v10947_v42  ;;  %10269 = vmatpush3.bf16.msra.mxu0 %v10947_v42  ;;  %v11554_v42 = vld [vmem:[%s16308_s8 + $0x20] sm:$0xff]  ;;  %v11562_v44 = vrot.slane %v834_v33, %v11493_v53  ;;  %v2196_v33 = vsel %vm11593_vm14, 1, %v16330_v2  ;;  %v9845_v57 = vpack.c.bf16 %v395_v24, %v394_v18  ;;  %vm11650_vm14 = vmand %vm2158_vm2, %vm16318_vm13 }
  0x24   : > { %10911 = vmatprep.subr.bf16.mxu1 %v10948_v46  ;;  %10270 = vmatprep.subr.bf16.mxu0 %v10948_v46  ;;  %v2195_v46 = vsel %vm2182_vm1, 1, %v16330_v2  ;;  %vm16320_vm3 = vcmp.lt.s32.totalorder %v11554_v42, 6  ;;  %vm2981_vm1 = vmand %vm2160_vm4, %vm16317_vm0 }
  0x25   : > { %vm11573_vm8 = vmand %vm2159_vm5, %vm16320_vm3  ;;  %v850_v58 = vcombine.high %v11562_v44, %v11562_v44  ;;  %v1052_v61 = vunpack.i.h.s16 %v11562_v44  ;;  %vm16337_vm3 = vcmp.lt.s32.totalorder %v11302_v8, 6  ;;  %v16501_v8 = vmov 0 }
  0x26   : > { %3003 = vperm.xlu1 %10935, %v2989_v45   ;;  %2352 = vperm.xlu0 %10934, %v2314_v43   ;;  %v11559_v43 = vsel %vm16318_vm13, 1, %v16330_v2  ;;  %v849_v45 = vrot.slane %v835_v34, %v11493_v53  ;;  %v2993_v16 = vsel %vm11573_vm8, 1, %v16330_v2  ;;  %v397_v34 = vld [vmem:[%s11467_s15 + $0x1a8] sm:$0x7f]  ;;  %vm16338_vm8 = vcmp.lt.s32.totalorder %v11273_v1, 6 }
  0x27   : > { %10919 = vmatpush3.bf16.msra.mxu1 %v10949_v49  ;;  %10271 = vmatpush3.bf16.msra.mxu0 %v10949_v49  ;;  %v876_v49 = vrot.slane %v868_v37, %v11493_v53  ;;  %v1056_v11 = vunpack.i.h.s16 %v850_v58  ;;  %vm11692_vm0 = vmand %vm16338_vm8, %vm2168_vm15 }
  0x28   : > { %10912 = vmatprep.subr.bf16.mxu1 %v10950_v52  ;;  %10272 = vmatprep.subr.bf16.mxu0 %v10950_v52  ;;  %v902_v52 = vcombine.low %v894_v35, %v901_v41  ;;  %v851_v60 = vcombine.high %v849_v45, %v849_v45  ;;  %v1054_v62 = vunpack.i.h.s16 %v849_v45  ;;  %v9866_v12 = vpack.i.b16 %v849_v45, %v1052_v61  ;;  %v399_v45 = vld [vmem:[%s11467_s15 + $0x1b8] sm:$0x7f] }
  0x2a   : > { %3009 = vperm.xlu1 %10935, %v2991_v51   ;;  %3006 = vperm.xlu0 %10934, %v2990_v56   ;;  %v883_v51 = vrot.slane %v869_v40, %v11493_v53  ;;  %v903_v56 = vcombine.high %v894_v35, %v901_v41  ;;  %v910_v5 = vrot.slane %v902_v52, %v11493_v53  ;;  %v398_v35 = vld [vmem:[%s11467_s15 + $0x1b0] sm:$0x7f]  ;;  %v2994_v41 = vsel %vm2981_vm1, 1, %v16330_v2 }
  0x2b   : > { %10920 = vmatpush3.bf16.msra.mxu1 %v10951_v3  ;;  %10273 = vmatpush3.bf16.msra.mxu0 %v10951_v3  ;;  %v884_v3 = vcombine.high %v876_v49, %v876_v49  ;;  %v9867_v15 = vpack.i.b16 %v850_v58, %v1054_v62  ;;  %v9847_v61 = vpack.c.bf16 %v399_v45, %v398_v35 }
  0x2c   : > { %10316 = vmatprep.subr.bf16.mxu1 %v10952_v32  ;;  %v885_v4 = vcombine.high %v883_v51, %v883_v51  ;;  %v11587_v6 = vrot.slane %v903_v56, %v11493_v53  ;;  %v1066_v21 = vunpack.i.h.s16 %v910_v5  ;;  %v9844_v56 = vpack.c.bf16 %v393_v17, %v392_v10 }
  0x2d   : > { %v1480_v23 = vcombine.low %v883_v51, %v884_v3  ;;  %v1478_v32 = vcombine.low %v9866_v12, %v9867_v15  ;;  %v969_v10 = vrot.slane %v9847_v61, %v11493_v53  ;;  %v10954_v61 = vld [vmem:[%s16301_s1 + $0xf0] sm:$0xff]  }
  0x2e   : > { %3012 = vperm.xlu0 %10934, %v2992_v36   ;;  %2208 = vperm.xlu1 %10935, %v2194_v28   ;;  %v9869_v22 = vpack.i.b16 %v910_v5, %v885_v4  ;;  %v9868_v28 = vpack.i.b16 %v851_v60, %v1056_v11  ;;  %v918_v36 = vcombine.high %v910_v5, %v910_v5  ;;  %v1068_v62 = vunpack.i.h.s16 %v11587_v6 }
  0x2f   : > { %v9870_v37 = vpack.i.b16 %v11587_v6, %v1066_v21  ;;  %v1502_v40 = vrot.slane %v1480_v23, %v11493_v53  ;;  %v1488_v52 = vrot.slane %v1478_v32, %v11493_v53  ;;  %v9846_v60 = vpack.c.bf16 %v397_v34, %v396_v25 }
  0x30   : > { %v1479_v51 = vcombine.low %v9868_v28, %v876_v49  ;;  %v928_v4 = vrot.slane %v9844_v56, %v11493_v53  ;;  %v935_v5 = vrot.slane %v9845_v57, %v11493_v53  ;;  %v1070_v9 = vunpack.i.h.s16 %v918_v36  ;;  %v11662_v56 = vld [vmem:[%s16308_s8 + $0x38] sm:$0xff] }
  0x31   : > { %v1481_v58 = vcombine.low %v9869_v22, %v9870_v37  ;;  %v962_v11 = vrot.slane %v9846_v60, %v11493_v53  ;;  %v9871_v12 = vpack.i.b16 %v918_v36, %v1068_v62  ;;  %v10953_v57 = vld [vmem:[%s16301_s1 + $0xb8] sm:$0xff]   ;;  %vm16321_vm1 = vcmp.lt.s32.totalorder %v11662_v56, 6 }
  0x32   : > { %2211 = vperm.xlu0 %10934, %v2195_v46   ;;  %3015 = vperm.xlu1 %10935, %v2993_v16   ;;  %v919_v46 = vcombine.high %v11587_v6, %v11587_v6  ;;  %v1495_v3 = vrot.slane %v1479_v51, %v11493_v53  ;;  %v936_v17 = vcombine.low %v928_v4, %v935_v5  ;;  %vm11714_vm13 = vmand %vm16323_vm6, %vm16321_vm1  ;;  %vm16332_vm6 = vcmp.lt.s32.totalorder %v11268_v0, 6  ;;  %v11860_v0 = vld [vmem:[%s16308_s8 + $0x58] sm:$0xff] }
  0x33   : > { %v1509_v49 = vrot.slane %v1481_v58, %v11493_v53  ;;  %v937_v6 = vcombine.high %v928_v4, %v935_v5  ;;  %v970_v22 = vcombine.low %v962_v11, %v969_v10  ;;  %v971_v23 = vcombine.high %v962_v11, %v969_v10  ;;  %v11686_v10 = vld [vmem:[%s16308_s8 + $0x40] sm:$0xff] }
  0x34   : > { %v1511_v15 = vcombine.high %v1488_v52, %v1495_v3  ;;  %v1510_v16 = vcombine.low %v1488_v52, %v1495_v3  ;;  %v944_v28 = vrot.slane %v936_v17, %v11493_v53  ;;  %v11657_v52 = vld [vmem:[%s16308_s8 + $0x30] sm:$0xff]  ;;  %v2197_v11 = vsel %vm11650_vm14, 1, %v16330_v2 }
  0x35   : > { %v1513_v18 = vcombine.high %v1502_v40, %v1509_v49  ;;  %v1512_v21 = vcombine.low %v1502_v40, %v1509_v49  ;;  %v951_v32 = vrot.slane %v937_v6, %v11493_v53  ;;  %v978_v35 = vrot.slane %v970_v22, %v11493_v53  ;;  %v346_v22 = vld [vmem:[%s11467_s15 + $0x10] sm:$0x7f] }
  0x36   : > { %3018 = vperm.xlu0 %10934, %v2994_v41   ;;  %2214 = vperm.xlu1 %10935, %v2196_v33   ;;  %v11631_v24 = vrot.slane %v1511_v15, %v11493_v53  ;;  %v11634_v25 = vrot.slane %v1510_v16, %v11493_v53  ;;  %v985_v36 = vrot.slane %v971_v23, %v11493_v53  ;;  %vm16319_vm2 = vcmp.lt.s32.totalorder %v11657_v52, 6  ;;  %v10956_v15 = vld [vmem:[%s16301_s1 + $0xe8] sm:$0xff]   ;;  %v347_v23 = vld [vmem:[%s11467_s15 + $0x18] sm:$0x7f] }
  0x37   : > { %v11639_v33 = vrot.slane %v1513_v18, %v11493_v53  ;;  %v11642_v34 = vrot.slane %v1512_v21, %v11493_v53  ;;  %v952_v37 = vcombine.high %v944_v28, %v944_v28  ;;  %v953_v40 = vcombine.high %v951_v32, %v951_v32  ;;  %vm2982_vm15 = vmand %vm2161_vm7, %vm16319_vm2  ;;  %v344_v18 = vld [vmem:[%s11467_s15] sm:$0x7f]  ;;  %v345_v21 = vld [vmem:[%s11467_s15 + $0x8] sm:$0x7f] }
  0x38   : > { %v9872_v41 = vpack.i.b16 %v919_v46, %v1070_v9  ;;  %v1547_v45 = vcombine.low %v944_v28, %v951_v32  ;;  %v986_v58 = vcombine.high %v978_v35, %v978_v35  ;;  %v1080_v60 = vunpack.i.h.s16 %v978_v35  ;;  %v10955_v9 = vld [vmem:[%s16301_s1 + $0xb0] sm:$0xff]   ;;  %v353_v32 = vld [vmem:[%s11467_s15 + $0x48] sm:$0x7f] }
  0x39   : > { %v1544_v46 = vcombine.low %v11631_v24, %v11639_v33  ;;  %v1542_v7 = vcombine.low %v11634_v25, %v11642_v34  ;;  %v1082_v62 = vunpack.i.h.s16 %v985_v36  ;;  %v9873_v3 = vpack.i.b16 %v978_v35, %v953_v40  ;;  %v348_v40 = vld [vmem:[%s11467_s15 + $0x20] sm:$0x7f] }
  0x3a   : > { %v1546_v4 = vcombine.low %v9871_v12, %v9872_v41  ;;  %v1563_v5 = vrot.slane %v1547_v45, %v11493_v53  ;;  %v9874_v49 = vpack.i.b16 %v985_v36, %v1080_v60  ;;  %v16485_v12 = vmov 0  ;;  %2217 = vperm.xlu0 %10934, %v2197_v11   ;;  %v349_v41 = vld [vmem:[%s11467_s15 + $0x28] sm:$0x7f] }
  0x3b   : > { %1922 = vmatprep.mubr.bf16.mxu1 %v1544_v46  ;;  %v16486_v12 = vsel %vm11692_vm0, 4294967295, %v16485_v12  ;;  %v9875_v16 = vpack.i.b16 %v986_v58, %v1082_v62  ;;  %v1548_v17 = vcombine.low %v952_v37, %v9873_v3  ;;  %vm2172_vm14 = vcmp.ge.s32.totalorder %v11554_v42, 1 }
  0x3c   : > { %16487 = vst [vmem:[#allocation8_spill] sm:$0xff] %v16486_v12  ;;  %1923 = vmatmul.mubr.bf16.vlgmr.msra.gmra.mxu1 %v1542_v7  ;;  %v1556_v6 = vrot.slane %v1546_v4, %v11493_v53  ;;  %v2995_v28 = vsel %vm2982_vm15, 1, %v16330_v2  ;;  %v987_v35 = vcombine.high %v985_v36, %v985_v36  ;;  %v1084_v37 = vunpack.i.h.s16 %v986_v58  ;;  %vm2185_vm15 = vmand %vm2159_vm5, %vm2172_vm14  ;;  %v351_v36 = vld [vmem:[%s11467_s15 + $0x38] sm:$0x7f] }
  0x3d   : > { %10317 = vmatpush3.bf16.msra.mxu1 %v10953_v57  ;;  %vm2173_vm2 = vcmp.ge.s32.totalorder %v11583_v63, 1  ;;  %v1549_v45 = vcombine.low %v9874_v49, %v9875_v16  ;;  %v1570_v51 = vrot.slane %v1548_v17, %v11493_v53  ;;  %v350_v57 = vld [vmem:[%s11467_s15 + $0x30] sm:$0x7f]  ;;  %3021 = vperm.xlu1 %10935, %v2995_v28   ;;  %v2996_v58 = vsel %vm11714_vm13, 1, %v16330_v2  ;;  %v10958_v28 = vld [vmem:[%s16301_s1 + $0xe0] sm:$0xff]  }
  0x3e   : > { %10318 = vmatprep.subr.bf16.mxu1 %v10954_v61  ;;  %v1579_v46 = vcombine.high %v1556_v6, %v1563_v5  ;;  %v1578_v7 = vcombine.low %v1556_v6, %v1563_v5  ;;  %v2198_v60 = vsel %vm2185_vm15, 1, %v16330_v2  ;;  %v9876_v61 = vpack.i.b16 %v987_v35, %v1084_v37  ;;  %vm2186_vm1 = vmand %vm2160_vm4, %vm2173_vm2  ;;  %3024 = vperm.xlu0 %10934, %v2996_v58  }
  0x3f   : > { %vm16344_vm10 = vcmp.lt.s32.totalorder %v11686_v10, 6  ;;  %v1577_v14 = vrot.slane %v1549_v45, %v11493_v53  ;;  %v2199_v4 = vsel %vm2186_vm1, 1, %v16330_v2  ;;  %v9820_v11 = vpack.c.bf16 %v345_v21, %v344_v18  ;;  %vm11810_vm1 = vmand %vm16337_vm3, %vm2169_vm11 }
  0x40   : > { %v11741_v62 = vrot.slane %v1579_v46, %v11493_v53  ;;  %v11744_v3 = vrot.slane %v1578_v7, %v11493_v53  ;;  %vm2984_vm4 = vmand %vm2163_vm9, %vm16344_vm10  ;;  %v1620_v5 = vrot.slane %v9876_v61, %v11493_v53  ;;  %v9821_v16 = vpack.c.bf16 %v347_v23, %v346_v22  ;;  %v354_v23 = vld [vmem:[%s11467_s15 + $0x50] sm:$0x7f] }
  0x41   : > { %10319 = vmatpush3.bf16.msra.mxu1 %v10955_v9  ;;  %v2997_v49 = vsel %vm2984_vm4, 1, %v16330_v2  ;;  %v1581_v17 = vcombine.high %v1570_v51, %v1577_v14  ;;  %v1580_v6 = vcombine.low %v1570_v51, %v1577_v14  ;;  %v352_v9 = vld [vmem:[%s11467_s15 + $0x40] sm:$0x7f]  ;;  %v9822_v35 = vpack.c.bf16 %v349_v41, %v348_v40  ;;  %2220 = vperm.xlu1 %10935, %v2198_v60   ;;  %v355_v51 = vld [vmem:[%s11467_s15 + $0x58] sm:$0x7f]  ;;  %v11782_v60 = vld [vmem:[%s16308_s8 + $0x48] sm:$0xff] }
  0x42   : > { %10320 = vmatprep.subr.bf16.mxu1 %v10956_v15  ;;  %v9823_v37 = vpack.c.bf16 %v351_v36, %v350_v57  ;;  %v1621_v45 = vcombine.high %v1620_v5, %v1620_v5  ;;  %v11762_v46 = vrot.slane %v1620_v5, %v11493_v53  ;;  %v520_v18 = vrot.slane %v9820_v11, %v11493_v53  ;;  %v10960_v11 = vld [vmem:[%s16301_s1 + $0xd8] sm:$0xff]  }
  0x43   : > { %v527_v15 = vrot.slane %v9821_v16, %v11493_v53  ;;  %v11767_v21 = vrot.slane %v1581_v17, %v11493_v53  ;;  %v11770_v22 = vrot.slane %v1580_v6, %v11493_v53  ;;  %2223 = vperm.xlu0 %10934, %v2199_v4   ;;  %v554_v40 = vrot.slane %v9822_v35, %v11493_v53  ;;  %v10959_v4 = vld [vmem:[%s16301_s1 + $0xa0] sm:$0xff]  }
  0x44   : > { %16490 = vst [vmem:[#allocation9_spill] sm:$0xff] %v11762_v46  ;;  %v561_v41 = vrot.slane %v9823_v37, %v11493_v53  ;;  %v11777_v7 = vrot.slane %v1621_v45, %v11493_v53  ;;  %v9824_v58 = vpack.c.bf16 %v353_v32, %v352_v9  ;;  %v9825_v6 = vpack.c.bf16 %v355_v51, %v354_v23  ;;  %v10962_v37 = vld [vmem:[%s16301_s1 + $0xd0] sm:$0xff]  }
  0x45   : > { %10321 = vmatpush3.bf16.msra.mxu1 %v10957_v13  ;;  %v528_v57 = vcombine.low %v520_v18, %v527_v15  ;;  %v529_v36 = vcombine.high %v520_v18, %v527_v15  ;;  %v1612_v61 = vcombine.low %v11741_v62, %v11767_v21  ;;  %v1610_v14 = vcombine.low %v11744_v3, %v11770_v22  ;;  %v11825_v51 = vld [vmem:[%s16308_s8 + $0x50] sm:$0xff] }
  0x46   : > { %10322 = vmatprep.subr.bf16.mxu1 %v10958_v28  ;;  %v562_v13 = vcombine.low %v554_v40, %v561_v41  ;;  %v563_v5 = vcombine.high %v554_v40, %v561_v41  ;;  %3027 = vperm.xlu1 %10935, %v2997_v49   ;;  %v11797_v9 = vrot.slane %v9824_v58, %v11493_v53  ;;  %v10961_v28 = vld [vmem:[%s16301_s1 + $0x98] sm:$0xff]   ;;  %vm16343_vm5 = vcmp.lt.s32.totalorder %v11782_v60, 6  ;;  %v361_v58 = vld [vmem:[%s11467_s15 + $0x88] sm:$0x7f] }
  0x47   : > { %v536_v16 = vrot.slane %v528_v57, %v11493_v53  ;;  %v543_v17 = vrot.slane %v529_v36, %v11493_v53  ;;  %1930 = vmatprep.mubr.bf16.mxu1 %v1612_v61  ;;  %vm2174_vm13 = vcmp.ge.s32.totalorder %v11657_v52, 1  ;;  %v16491_v49 = vmov 0  ;;  %v356_v61 = vld [vmem:[%s11467_s15 + $0x60] sm:$0x7f] }
  0x48   : > { %v570_v32 = vrot.slane %v562_v13, %v11493_v53  ;;  %v577_v35 = vrot.slane %v563_v5, %v11493_v53  ;;  %v16492_v49 = vsel %vm11810_vm1, 4294967295, %v16491_v49  ;;  %1931 = vmatmul.mubr.bf16.gmra.mxu1 %v1610_v14  ;;  %v595_v15 = vrot.slane %v9825_v6, %v11493_v53  ;;  %vm11832_vm4 = vmand %vm2161_vm7, %vm2174_vm13  ;;  %v357_v14 = vld [vmem:[%s11467_s15 + $0x68] sm:$0x7f]  ;;  %v359_v6 = vld [vmem:[%s11467_s15 + $0x78] sm:$0x7f] }
  0x49   : > { %16493 = vst [vmem:[#allocation10_spill] sm:$0xff] %v16492_v49  ;;  %v544_v45 = vcombine.high %v536_v16, %v536_v16  ;;  %v545_v18 = vcombine.high %v543_v17, %v543_v17  ;;  %v1206_v23 = vcombine.low %v536_v16, %v543_v17  ;;  %vm16494_vm15 = vcmp.ge.s32.totalorder %v11374_v26, 1  ;;  %10323 = vmatpush3.bf16.msra.mxu1 %v10959_v4  ;;  %v358_v17 = vld [vmem:[%s11467_s15 + $0x70] sm:$0x7f]  ;;  %vm11847_vm7 = vmand %vm16332_vm6, %vm2170_vm12 }
  0x4a   : > { %vm2985_vm11 = vmand %vm16494_vm15, %vm16343_vm5  ;;  %1938 = vmatprep.mubr.bf16.mxu1 %v11777_v7  ;;  %v578_v40 = vcombine.high %v570_v32, %v570_v32  ;;  %v579_v41 = vcombine.high %v577_v35, %v577_v35  ;;  %v996_v57 = vunpack.i.h.s16 %v570_v32  ;;  %v998_v36 = vunpack.i.h.s16 %v577_v35  ;;  %10324 = vmatprep.subr.bf16.mxu1 %v10960_v11  ;;  %v10963_v11 = vld [vmem:[%s16301_s1 + $0x90] sm:$0xff]  }
  0x4b   : > { %v596_v13 = vcombine.low %v11797_v9, %v595_v15  ;;  %v9849_v4 = vpack.i.b16 %v570_v32, %v545_v18  ;;  %v1216_v5 = vrot.slane %v1206_v23, %v11493_v53  ;;  %v2998_v16 = vsel %vm2985_vm11, 1, %v16330_v2 }
  0x4c   : > { %v16498_v20 = vsel %vm11847_vm7, 4294967295, %v16497_v20  ;;  %v1000_v32 = vunpack.i.h.s16 %v578_v40  ;;  %v9850_v18 = vpack.i.b16 %v577_v35, %v996_v57  ;;  %v9851_v23 = vpack.i.b16 %v578_v40, %v998_v36  ;;  %3030 = vperm.xlu0 %10934, %v2998_v16   ;;  %v10964_v57 = vld [vmem:[%s16301_s1 + $0xc8] sm:$0xff]   ;;  %v360_v36 = vld [vmem:[%s11467_s15 + $0x80] sm:$0x7f] }
  0x4d   : > { %16499 = vst [vmem:[#allocation11_spill] sm:$0xff] %v16498_v20  ;;  %v2200_v31 = vsel %vm11832_vm4, 1, %v16330_v2  ;;  %vm16500_vm12 = vcmp.lt.s32.totalorder %v11420_v38, 6  ;;  %v604_v35 = vrot.slane %v596_v13, %v11493_v53  ;;  %v1207_v40 = vcombine.low %v544_v45, %v9849_v4  ;;  %10325 = vmatpush3.bf16.msra.mxu1 %v10961_v28  ;;  %v362_v45 = vld [vmem:[%s11467_s15 + $0x90] sm:$0x7f] }
  0x4e   : > { %vm11866_vm15 = vmand %vm16338_vm8, %vm16500_vm12  ;;  %2226 = vperm.xlu1 %10935, %v2200_v31   ;;  %vm2175_vm11 = vcmp.ge.s32.totalorder %v11662_v56, 1  ;;  %vm16342_vm4 = vcmp.lt.s32.totalorder %v11825_v51, 6  ;;  %v9852_v16 = vpack.i.b16 %v579_v41, %v1000_v32  ;;  %v1208_v2 = vcombine.low %v9850_v18, %v9851_v23  ;;  %v363_v31 = vld [vmem:[%s11467_s15 + $0x98] sm:$0x7f]  ;;  %10326 = vmatprep.subr.bf16.mxu1 %v10962_v37 }
  0x4f   : > { %v16502_v8 = vsel %vm11866_vm15, 4294967295, %v16501_v8  ;;  %vm16504_vm12 = vcmp.ge.s32.totalorder %v11349_v19, 1  ;;  %v597_v13 = vcombine.high %v11797_v9, %v595_v15  ;;  %v9826_v4 = vpack.c.bf16 %v357_v14, %v356_v61  ;;  %v10965_v9 = vld [vmem:[%s16301_s1 + $0x88] sm:$0xff]  }
  0x50   : > { %16503 = vst [vmem:[#allocation12_spill] sm:$0xff] %v16502_v8  ;;  %vm2188_vm6 = vmand %vm16504_vm12, %vm2175_vm11  ;;  %v612_v8 = vcombine.high %v604_v35, %v604_v35  ;;  %v1223_v1 = vrot.slane %v1207_v40, %v11493_v53  ;;  %v16505_v20 = vmov 0   ;;  %vm16506_vm3 = vcmp.ge.s32.totalorder %v11399_v30, 1  ;;  %1939 = vmatmul.mubr.bf16.gmra.mxu1 %v11762_v46 }
  0x51   : > { %v2201_v49 = vsel %vm2188_vm6, 1, %v16505_v20  ;;  %vm2986_vm8 = vmand %vm16506_vm3, %vm16342_vm4  ;;  %v9827_v28 = vpack.c.bf16 %v359_v6, %v358_v17  ;;  %v1209_v41 = vcombine.low %v9852_v16, %v604_v35  ;;  %v1230_v19 = vrot.slane %v1208_v2, %v11493_v53  ;;  %v10966_v17 = vld [vmem:[%s16301_s1 + $0xc0] sm:$0xff]   ;;  %10327 = vmatpush3.bf16.msra.mxu1 %v10963_v11 }
  0x52   : > { %2229 = vperm.xlu0 %10934, %v2201_v49   ;;  %v2999_v37 = vsel %vm2986_vm8, 1, %v16505_v20  ;;  %v611_v15 = vrot.slane %v597_v13, %v11493_v53  ;;  %v1239_v61 = vcombine.high %v1216_v5, %v1223_v1  ;;  %v1238_v14 = vcombine.low %v1216_v5, %v1223_v1  ;;  %10328 = vmatprep.subr.bf16.mxu1 %v10964_v57  ;;  %v10967_v16 = vld [vmem:[%s16301_s1 + $0x80] sm:$0xff]  }
  0x53   : > { %3033 = vperm.xlu1 %10935, %v2999_v37   ;;  %v622_v2 = vrot.slane %v9826_v4, %v11493_v53  ;;  %vm16339_vm6 = vcmp.lt.s32.totalorder %v11860_v0, 6  ;;  %v1237_v49 = vrot.slane %v1209_v41, %v11493_v53  ;;  %v629_v32 = vrot.slane %v9827_v28, %v11493_v53 }
  0x54   : > { %v613_v6 = vcombine.high %v611_v15, %v611_v15  ;;  %v9828_v18 = vpack.c.bf16 %v361_v58, %v360_v36  ;;  %vm16507_vm3 = vcmp.ge.s32.totalorder %v11394_v29, 1  ;;  %v1255_v1 = vrot.slane %v1239_v61, %v11493_v53 }
  0x55   : > { %vm2987_vm8 = vmand %vm16507_vm3, %vm16339_vm6  ;;  %v11911_v5 = vrot.slane %v1238_v14, %v11493_v53  ;;  %v9829_v23 = vpack.c.bf16 %v363_v31, %v362_v45  ;;  %v1274_v35 = vcombine.low %v611_v15, %v612_v8  ;;  %v1241_v11 = vcombine.high %v1230_v19, %v1237_v49  ;;  %10329 = vmatpush3.bf16.msra.mxu1 %v10965_v9  ;;  %v11931_v9 = vld [vmem:[%s16308_s8 + $0x60] sm:$0x3] }
  0x56   : > { %v1240_v40 = vcombine.low %v1230_v19, %v1237_v49  ;;  %v630_v36 = vcombine.low %v622_v2, %v629_v32  ;;  %v631_v58 = vcombine.high %v622_v2, %v629_v32  ;;  %v656_v13 = vrot.slane %v9828_v18, %v11493_v53  ;;  %10330 = vmatprep.subr.bf16.mxu1 %v10966_v17 }
  0x57   : > { %v663_v4 = vrot.slane %v9829_v23, %v11493_v53  ;;  %v11919_v28 = vrot.slane %v1274_v35, %v11493_v53  ;;  %v3000_v41 = vsel %vm2987_vm8, 1, %v16505_v20  ;;  %v1269_v57 = vrot.slane %v1241_v11, %v11493_v53  ;;  %v364_v23 = vld [vmem:[%s11467_s15 + $0xa0] sm:$0x7f]  ;;  %v365_v35 = vld [vmem:[%s11467_s15 + $0xa8] sm:$0x7f] }
  0x58   : > { %v1262_v8 = vrot.slane %v1240_v40, %v11493_v53  ;;  %v638_v45 = vrot.slane %v630_v36, %v11493_v53  ;;  %v645_v31 = vrot.slane %v631_v58, %v11493_v53  ;;  %3036 = vperm.xlu0 %10934, %v3000_v41   ;;  %vm2176_vm12 = vcmp.ge.s32.totalorder %v11686_v10, 1  ;;  %v366_v11 = vld [vmem:[%s11467_s15 + $0xb0] sm:$0x7f]  ;;  %v367_v40 = vld [vmem:[%s11467_s15 + $0xb8] sm:$0x7f] }
  0x59   : > { %v664_v19 = vcombine.low %v656_v13, %v663_v4  ;;  %v665_v37 = vcombine.high %v656_v13, %v663_v4  ;;  %vm2177_vm3 = vcmp.ge.s32.totalorder %v11782_v60, 1  ;;  %v1272_v15 = vcombine.low %v1255_v1, %v1269_v57  ;;  %vm11939_vm8 = vmand %vm2163_vm9, %vm2176_vm12  ;;  %10331 = vmatpush3.bf16.msra.mxu1 %v10967_v16  ;;  %v368_v41 = vld [vmem:[%s11467_s15 + $0xc0] sm:$0x7f] }
  0x5a   : > { %v1270_v61 = vcombine.low %v11911_v5, %v1262_v8  ;;  %v1271_v14 = vcombine.high %v11911_v5, %v1262_v8  ;;  %v646_v17 = vcombine.high %v638_v45, %v638_v45  ;;  %v647_v49 = vcombine.high %v645_v31, %v645_v31  ;;  %v369_v8 = vld [vmem:[%s11467_s15 + $0xc8] sm:$0x7f] }
  0x5b   : > { %v11944_v32 = vrot.slane %v664_v19, %v11493_v53  ;;  %v11947_v18 = vrot.slane %v665_v37, %v11493_v53  ;;  %v1010_v5 = vunpack.i.h.s16 %v638_v45  ;;  %vm16510_vm6 = vcmp.ge.s32.totalorder %v11374_v26, 1  ;;  %1890 = vmatprep.mubr.bf16.mxu0 %v1272_v15  ;;  %v370_v19 = vld [vmem:[%s11467_s15 + $0xd0] sm:$0x7f]  ;;  %v371_v26 = vld [vmem:[%s11467_s15 + $0xd8] sm:$0x7f] }
  0x5c   : > { %vm11953_vm9 = vmand %vm16510_vm6, %vm2177_vm3  ;;  %v1012_v36 = vunpack.i.h.s16 %v645_v31  ;;  %v1014_v58 = vunpack.i.h.s16 %v646_v17  ;;  %v9853_v13 = vpack.i.b16 %v638_v45, %v613_v6  ;;  %v1273_v4 = vcombine.high %v1255_v1, %v1269_v57  ;;  %1891 = vmatmul.mubr.bf16.vlgmr.msra.gmra.mxu0 %v1270_v61  ;;  %v372_v15 = vld [vmem:[%s11467_s15 + $0xe0] sm:$0x7f]  ;;  %v373_v6 = vld [vmem:[%s11467_s15 + $0xe8] sm:$0x7f] }
  0x5d   : > { %v9854_v37 = vpack.i.b16 %v645_v31, %v1010_v5  ;;  %v1277_v46 = vcombine.low %v11944_v32, %v11947_v18  ;;  %v2202_v12 = vsel %vm11939_vm8, 1, %v16505_v20  ;;  %v2203_v16 = vsel %vm11953_vm9, 1, %v16505_v20 }
  0x5e   : > { %v9855_v1 = vpack.i.b16 %v646_v17, %v1012_v36  ;;  %v9856_v57 = vpack.i.b16 %v647_v49, %v1014_v58  ;;  %1978 = vmatprep.mubr.bf16.mxu1 %v1273_v4  ;;  %2232 = vperm.xlu1 %10935, %v2202_v12   ;;  %vm16348_vm6 = vcmp.lt.s32.totalorder %v11931_v9, 6  ;;  %v680_v45 = vcombine.high %v11944_v32, %v11944_v32 }
  0x5f   : > { %v1275_v31 = vcombine.low %v9853_v13, %v9854_v37  ;;  %v1305_v61 = vrot.slane %v1277_v46, %v11493_v53  ;;  %1979 = vmatmul.mubr.bf16.vlgmr.msra.gmra.mxu1 %v1271_v14  ;;  %2235 = vperm.xlu0 %10934, %v2203_v16   ;;  %vm16513_vm8 = vcmp.ge.s32.totalorder %v11425_v39, 1  ;;  %v681_v17 = vcombine.high %v11947_v18, %v11947_v18 }
  0x60   : > { %vm2988_vm9 = vmand %vm16513_vm8, %vm16348_vm6  ;;  %vm16352_vm4 = vcmp.ge.s32.totalorder %v11825_v51, 1  ;;  %v1276_v12 = vcombine.low %v9855_v1, %v9856_v57  ;;  %v9830_v49 = vpack.c.bf16 %v365_v35, %v364_v23  ;;  %v9831_v5 = vpack.c.bf16 %v367_v40, %v366_v11  ;;  %v374_v23 = vld [vmem:[%s11467_s15 + $0xf0] sm:$0x7f]  ;;  %v375_v35 = vld [vmem:[%s11467_s15 + $0xf8] sm:$0x7f] }
  0x61   : > { %v3001_v2 = vsel %vm2988_vm9, 1, %v16505_v20  ;;  %vm16514_vm5 = vcmp.ge.s32.totalorder %v11399_v30, 1  ;;  %v1291_v46 = vrot.slane %v1275_v31, %v11493_v53  ;;  %v9832_v14 = vpack.c.bf16 %v369_v8, %v368_v41 }
  0x62   : > { %vm2191_vm10 = vmand %vm16514_vm5, %vm16352_vm4  ;;  %v9833_v27 = vpack.c.bf16 %v371_v26, %v370_v19  ;;  %v1298_v18 = vrot.slane %v1276_v12, %v11493_v53  ;;  %3039 = vperm.xlu1 %10935, %v3001_v2   ;;  %v690_v58 = vrot.slane %v9830_v49, %v11493_v53  ;;  %v697_v13 = vrot.slane %v9831_v5, %v11493_v53  ;;  %v376_v2 = vld [vmem:[%s11467_s15 + $0x100] sm:$0x7f]  ;;  %v377_v49 = vld [vmem:[%s11467_s15 + $0x108] sm:$0x7f] }
  0x63   : > { %v2204_v36 = vsel %vm2191_vm10, 1, %v16505_v20  ;;  %v9834_v11 = vpack.c.bf16 %v373_v6, %v372_v15  ;;  %v1307_v40 = vcombine.high %v11919_v28, %v1291_v46  ;;  %v1306_v30 = vcombine.low %v11919_v28, %v1291_v46  ;;  %3394 = vperm.xlu0 %10934, %v11482_v50   ;;  %v378_v5 = vld [vmem:[%s11467_s15 + $0x110] sm:$0x7f]  ;;  %v379_v46 = vld [vmem:[%s11467_s15 + $0x118] sm:$0x7f] }
  0x64   : > { %v724_v4 = vrot.slane %v9832_v14, %v11493_v53  ;;  %v731_v41 = vrot.slane %v9833_v27, %v11493_v53  ;;  %v1309_v8 = vcombine.high %v1298_v18, %v1305_v61  ;;  %v1308_v19 = vcombine.low %v1298_v18, %v1305_v61 }
  0x65   : > { %v698_v26 = vcombine.low %v690_v58, %v697_v13  ;;  %v699_v37 = vcombine.high %v690_v58, %v697_v13  ;;  %v1323_v16 = vrot.slane %v1307_v40, %v11493_v53  ;;  %v1316_v15 = vrot.slane %v1306_v30, %v11493_v53 }
  0x66   : > { %v732_v6 = vcombine.low %v724_v4, %v731_v41  ;;  %v733_v28 = vcombine.high %v724_v4, %v731_v41  ;;  %v1337_v1 = vrot.slane %v1309_v8, %v11493_v53  ;;  %v1330_v57 = vrot.slane %v1308_v19, %v11493_v53  ;;  %3397 = vperm.xlu1 %10935, %v11498_v54  }
  0x67   : > { %v706_v50 = vrot.slane %v698_v26, %v11493_v53  ;;  %v713_v31 = vrot.slane %v699_v37, %v11493_v53  ;;  %3400 = vperm.xlu0 %10934, %v11503_v55   ;;  %v9835_v14 = vpack.c.bf16 %v375_v35, %v374_v23  ;;  %v758_v27 = vrot.slane %v9834_v11, %v11493_v53 }
  0x68   : > { %v740_v61 = vrot.slane %v732_v6, %v11493_v53  ;;  %v12012_v12 = vrot.slane %v733_v28, %v11493_v53  ;;  %v1340_v18 = vcombine.low %v1323_v16, %v1337_v1  ;;  %v1338_v58 = vcombine.low %v1316_v15, %v1330_v57 }
  0x69   : > { %v714_v13 = vcombine.high %v706_v50, %v706_v50  ;;  %v715_v40 = vcombine.high %v713_v31, %v713_v31  ;;  %v1024_v54 = vunpack.i.h.s16 %v706_v50  ;;  %v1026_v4 = vunpack.i.h.s16 %v713_v31 }
  0x6a   : > { %v748_v30 = vcombine.high %v740_v61, %v740_v61  ;;  %v9857_v41 = vpack.i.b16 %v706_v50, %v681_v17  ;;  %1898 = vmatprep.mubr.bf16.mxu0 %v1340_v18  ;;  %v1341_v19 = vcombine.high %v1323_v16, %v1337_v1  ;;  %v1339_v26 = vcombine.high %v1316_v15, %v1330_v57 }
  0x6b   : > { %v1028_v8 = vunpack.i.h.s16 %v714_v13  ;;  %2238 = vperm.xlu1 %10935, %v2204_v36   ;;  %v749_v55 = vcombine.high %v12012_v12, %v12012_v12  ;;  %1899 = vmatmul.mubr.bf16.gmra.mxu0 %v1338_v58  ;;  %v9858_v23 = vpack.i.b16 %v713_v31, %v1024_v54  ;;  %v9859_v35 = vpack.i.b16 %v714_v13, %v1026_v4 }
  0x6c   : > { %v1342_v11 = vcombine.low %v680_v45, %v9857_v41  ;;  %v1345_v37 = vcombine.low %v12012_v12, %v748_v30  ;;  %1986 = vmatprep.mubr.bf16.mxu1 %v1341_v19  ;;  %v765_v17 = vrot.slane %v9835_v14, %v11493_v53  ;;  %v9836_v28 = vpack.c.bf16 %v377_v49, %v376_v2 }
  0x6d   : > { %v9860_v6 = vpack.i.b16 %v715_v40, %v1028_v8  ;;  %v9837_v16 = vpack.c.bf16 %v379_v46, %v378_v5  ;;  %v1343_v15 = vcombine.low %v9858_v23, %v9859_v35  ;;  %1987 = vmatmul.mubr.bf16.gmra.mxu1 %v1339_v26  ;;  %vm16346_vm10 = vcmp.ge.s32.totalorder %v11860_v0, 1 }
  0x6e   : > { %v1352_v36 = vrot.slane %v1342_v11, %v11493_v53  ;;  %v1373_v1 = vrot.slane %v1345_v37, %v11493_v53  ;;  %v766_v50 = vcombine.low %v758_v27, %v765_v17  ;;  %v767_v32 = vcombine.high %v758_v27, %v765_v17 }
  0x6f   : > { %v1344_v57 = vcombine.low %v9860_v6, %v740_v61  ;;  %v792_v45 = vrot.slane %v9836_v28, %v11493_v53  ;;  %vm16515_vm5 = vcmp.ge.s32.totalorder %v11394_v29, 1  ;;  %3403 = vperm.xlu1 %10935, %v11559_v43   ;;  %v1359_v31 = vrot.slane %v1343_v15, %v11493_v53 }
  0x70   : > { %vm2192_vm8 = vmand %vm16515_vm5, %vm16346_vm10  ;;  %v799_v12 = vrot.slane %v9837_v16, %v11493_v53  ;;  %v3384_v61 = vsel %vm2172_vm14, 1, %v16505_v20  ;;  %v774_v5 = vrot.slane %v766_v50, %v11493_v53  ;;  %v781_v46 = vrot.slane %v767_v32, %v11493_v53 }
  0x71   : > { %v2205_v2 = vsel %vm2192_vm8, 1, %v16505_v20  ;;  %v1366_v49 = vrot.slane %v1344_v57, %v11493_v53  ;;  %vm16345_vm9 = vcmp.ge.s32.totalorder %v11931_v9, 1  ;;  %v1375_v29 = vcombine.high %v1352_v36, %v1359_v31 }
  0x72   : > { %2241 = vperm.xlu0 %10934, %v2205_v2   ;;  %v1374_v43 = vcombine.low %v1352_v36, %v1359_v31  ;;  %v800_v14 = vcombine.low %v792_v45, %v799_v12  ;;  %v801_v27 = vcombine.high %v792_v45, %v799_v12  ;;  %vm16516_vm5 = vcmp.ge.s32.totalorder %v11425_v39, 1 }
  0x73   : > { %vm12050_vm8 = vmand %vm16516_vm5, %vm16345_vm9  ;;  %v1377_v58 = vcombine.high %v1366_v49, %v1373_v1  ;;  %v1376_v13 = vcombine.low %v1366_v49, %v1373_v1  ;;  %v782_v40 = vcombine.high %v774_v5, %v774_v5  ;;  %v783_v30 = vcombine.high %v781_v46, %v781_v46 }
  0x74   : > { %v1391_v54 = vrot.slane %v1375_v29, %v11493_v53  ;;  %v1384_v4 = vrot.slane %v1374_v43, %v11493_v53  ;;  %v808_v41 = vrot.slane %v800_v14, %v11493_v53  ;;  %v815_v8 = vrot.slane %v801_v27, %v11493_v53 }
  0x75   : > { %v1405_v19 = vrot.slane %v1377_v58, %v11493_v53  ;;  %v1398_v39 = vrot.slane %v1376_v13, %v11493_v53  ;;  %v1038_v26 = vunpack.i.h.s16 %v774_v5  ;;  %v1040_v23 = vunpack.i.h.s16 %v781_v46 }
  0x76   : > { %3406 = vperm.xlu0 %10934, %v3384_v61   ;;  %v816_v35 = vcombine.high %v808_v41, %v808_v41  ;;  %v817_v11 = vcombine.high %v815_v8, %v815_v8  ;;  %v1042_v37 = vunpack.i.h.s16 %v782_v40  ;;  %v9861_v6 = vpack.i.b16 %v774_v5, %v749_v55 }
  0x77   : > { %v1408_v17 = vcombine.low %v1391_v54, %v1405_v19  ;;  %v1406_v28 = vcombine.low %v1384_v4, %v1398_v39  ;;  %v9862_v16 = vpack.i.b16 %v781_v46, %v1038_v26  ;;  %v9863_v15 = vpack.i.b16 %v782_v40, %v1040_v23 }
  0x78   : > { %v9864_v36 = vpack.i.b16 %v783_v30, %v1042_v37  ;;  %v9865_v1 = vpack.i.b16 %v11562_v44, %v817_v11  ;;  %v1412_v57 = vcombine.low %v808_v41, %v815_v8  ;;  %v1409_v50 = vcombine.high %v1391_v54, %v1405_v19 }
  0x79   : > { %1906 = vmatprep.mubr.bf16.mxu0 %v1408_v17  ;;  %v1410_v32 = vcombine.low %v9861_v6, %v9862_v16  ;;  %v1407_v45 = vcombine.high %v1384_v4, %v1398_v39  ;;  %v2206_v31 = vsel %vm12050_vm8, 1, %v16505_v20  ;;  %v3385_v55 = vsel %vm2173_vm2, 1, %v16505_v20 }
  0x7a   : > { %1907 = vmatmul.mubr.bf16.gmra.mxu0 %v1406_v28  ;;  %v1411_v12 = vcombine.low %v9863_v15, %v9864_v36  ;;  %v1413_v2 = vcombine.low %v816_v35, %v9865_v1  ;;  %v1434_v61 = vrot.slane %v1412_v57, %v11493_v53  ;;  %1994 = vmatprep.mubr.bf16.mxu1 %v1409_v50  ;;  %v3386_v29 = vsel %vm2174_vm13, 1, %v16505_v20 }
  0x7b   : > { %v1420_v44 = vrot.slane %v1410_v32, %v11493_v53  ;;  %1995 = vmatmul.mubr.bf16.gmra.mxu1 %v1407_v45  ;;  %2244 = vperm.xlu1 %10935, %v2206_v31   ;;  %v1545_v49 = vcombine.high %v11631_v24, %v11639_v33  ;;  %v3387_v43 = vsel %vm2175_vm11, 1, %v16505_v20  ;;  %v1613_v14 = vcombine.high %v11741_v62, %v11767_v21 }
  0x7c   : > { %v1427_v5 = vrot.slane %v1411_v12, %v11493_v53  ;;  %v1441_v46 = vrot.slane %v1413_v2, %v11493_v53  ;;  %3409 = vperm.xlu0 %10934, %v3385_v55   ;;  %v3388_v33 = vsel %vm2176_vm12, 1, %v16505_v20  ;;  %v1611_v13 = vcombine.high %v11744_v3, %v11770_v22  ;;  %v12152_v55 = vld [vmem:[%s16307_s7 + $0x20] sm:$0xff] }
  0x7d   : > { %v3389_v19 = vsel %vm2177_vm3, 1, %v16505_v20  ;;  %v3390_v3 = vsel %vm16352_vm4, 1, %v16505_v20  ;;  %v3391_v22 = vsel %vm16346_vm10, 1, %v16505_v20  ;;  %v3392_v39 = vsel %vm16345_vm9, 1, %v16505_v20 }
  0x7e   : > { %v1443_v27 = vcombine.high %v1420_v44, %v1427_v5  ;;  %v1445_v18 = vcombine.high %v1434_v61, %v1441_v46  ;;  %v1442_v58 = vcombine.low %v1420_v44, %v1427_v5  ;;  %v1444_v24 = vcombine.low %v1434_v61, %v1441_v46  ;;  %v16527_v44 = vld [vmem:[#allocation9_spill] sm:$0xff] }
  0x7f   : > { %3412 = vperm.xlu1 %10935, %v3386_v29   ;;  %v1543_v35 = vcombine.high %v11634_v25, %v11642_v34  ;;  %vm16519_vm5 = vcmp.lt.s32.totalorder %v11420_v38, 6  ;;  %vm16520_vm8 = vcmp.lt.s32.totalorder %v11460_v48, 6  ;;  %vm16521_vm9 = vcmp.lt.s32.totalorder %v11453_v47, 6  ;;  %v12178_v29 = vld [vmem:[%s16307_s7 + $0x28] sm:$0xff] }
  0x80   : > { %v1459_v40 = vrot.slane %v1443_v27, %v11493_v53  ;;  %v1473_v30 = vrot.slane %v1445_v18, %v11493_v53  ;;  %v1452_v54 = vrot.slane %v1442_v58, %v11493_v53  ;;  %v1466_v62 = vrot.slane %v1444_v24, %v11493_v53  ;;  %3415 = vperm.xlu0 %10934, %v3387_v43   ;;  %v16564_v53 = vld [vmem:[#allocation3_spill] sm:$0xff] }
  0x81   : > { %v4068_v11 = vsel %vm16519_vm5, 1, %v16505_v20  ;;  %v4069_v37 = vsel %vm16520_vm8, 1, %v16505_v20  ;;  %v4070_v25 = vsel %vm16521_vm9, 1, %v16505_v20  ;;  %vm16522_vm10 = vcmp.lt.s32.totalorder %v11511_v59, 6 }
  0x82   : > { %v1476_v21 = vcombine.low %v1459_v40, %v1473_v30  ;;  %v1474_v4 = vcombine.low %v1452_v54, %v1466_v62  ;;  %v1477_v41 = vcombine.high %v1459_v40, %v1473_v30  ;;  %v1475_v8 = vcombine.high %v1452_v54, %v1466_v62 }
  0x83   : > { %3418 = vperm.xlu1 %10935, %v3388_v33   ;;  %v4071_v38 = vsel %vm16522_vm10, 1, %v16505_v20  ;;  %v1637_v16 = vcombine.high %v11777_v7, %v11777_v7  ;;  %v4589_v36 = vsel %vm11692_vm0, 1, %v16505_v20  ;;  %v4590_v57 = vsel %vm11810_vm1, 1, %v16505_v20  ;;  %v12143_v7 = vld [vmem:[%s16307_s7 + $0x18] sm:$0xff] }
  0x84   : > { %1914 = vmatprep.mubr.bf16.mxu0 %v1476_v21  ;;  %2002 = vmatprep.mubr.bf16.mxu1 %v1477_v41  ;;  %vm16347_vm10 = vcmp.lt.s32.totalorder %v12143_v7, 6  ;;  %v4591_v31 = vsel %vm11847_vm7, 1, %v16505_v20  ;;  %vm16349_vm0 = vcmp.lt.s32.totalorder %v12152_v55, 6  ;;  %vm16526_vm1 = vcmp.lt.s32.totalorder %v11554_v42, 6  ;;  %v12203_v21 = vld [vmem:[%s16307_s7 + $0x30] sm:$0xff] }
  0x85   : > { %1915 = vmatmul.mubr.bf16.gmra.mxu0 %v1474_v4  ;;  %2003 = vmatmul.mubr.bf16.gmra.mxu1 %v1475_v8  ;;  %v4072_v12 = vsel %vm16526_vm1, 1, %v16505_v20  ;;  %vm16528_vm9 = vcmp.ge.s32.totalorder %v11511_v59, 1  ;;  %vm12168_vm5 = vmand %vm16349_vm0, %vm2172_vm14  ;;  %vm16531_vm1 = vcmp.lt.s32.totalorder %v11583_v63, 6  ;;  %vm2393_vm14 = vsmask.f32 256 }
  0x86   : > { %2010 = vmatprep.mubr.bf16.mxu1 %v1545_v49  ;;  %3421 = vperm.xlu0 %10934, %v3389_v19   ;;  %v1636_v49 = vcombine.high %v16527_v44, %v16527_v44  ;;  %vm4579_vm7 = vmand %vm16347_vm10, %vm16528_vm9  ;;  %v4073_v46 = vsel %vm16531_vm1, 1, %v16505_v20  ;;  %vm16350_vm9 = vcmp.lt.s32.totalorder %v12178_v29, 6  ;;  %vm2394_vm1 = vsmask.f32 4368 }
  0x87   : > { %3424 = vperm.xlu1 %10935, %v3390_v3   ;;  %v4592_v43 = vsel %vm4579_vm7, 1, %v16505_v20  ;;  %v4593_v40 = vsel %vm12168_vm5, 1, %v16505_v20  ;;  %vm16533_vm7 = vcmp.lt.s32.totalorder %v11662_v56, 6 }
  0x88   : > { %v4075_v62 = vsel %vm16533_vm7, 1, %v16505_v20 }
  0x89   : > { %v12102_v26 = vpop.permute.xlu1 %2322  ;;  %v12104_v23 = vpop.permute.xlu0 %2316 }
  0x8a   : > { %3427 = vperm.xlu0 %10934, %v3391_v22   ;;  %v12215_v22 = vld [vmem:[%s16307_s7 + $0x38] sm:$0xff] }
  0x8b   : > { %3430 = vperm.xlu1 %10935, %v3392_v39   ;;  %vm4570_vm7 = vcmp.lt.s32.totalorder %v12215_v22, 6 }
  0x8d   : > { %v12114_v6 = vpop.permute.xlu1 %2325  ;;  %v12116_v17 = vpop.permute.xlu0 %2319  ;;  %2011 = vmatmul.mubr.bf16.gmra.mxu1 %v1543_v35 }
  0x8e   : > { %2018 = vmatprep.mubr.bf16.mxu1 %v1613_v14  ;;  %4082 = vperm.xlu0 %10934, %v4068_v11  }
  0x8f   : > { %4085 = vperm.xlu1 %10935, %v4069_v37  }
  0x91   : > { %v12124_v34 = vpop.permute.xlu1 %2331  ;;  %v12126_v28 = vpop.permute.xlu0 %2328 }
  0x92   : > { %4088 = vperm.xlu0 %10934, %v4070_v25   ;;  %v16535_v25 = vmov 0 }
  0x93   : > { %4091 = vperm.xlu1 %10935, %v4071_v38  }
  0x95   : > { %v12136_v50 = vpop.permute.xlu1 %2337  ;;  %v12138_v32 = vpop.permute.xlu0 %2334  ;;  %2019 = vmatmul.mubr.bf16.gmra.mxu1 %v1611_v13 }
  0x96   : > { %2026 = vmatprep.mubr.bf16.mxu1 %v1637_v16  ;;  %4603 = vperm.xlu0 %10934, %v4589_v36  }
  0x97   : > { %4606 = vperm.xlu1 %10935, %v4590_v57  }
  0x99   : > { %v2344_v2 = vpop.permute.xlu1 %2343  ;;  %v2341_v61 = vpop.permute.xlu0 %2340 }
  0x9a   : > { %4609 = vperm.xlu0 %10934, %v4591_v31   ;;  %vm2363_vm8 = vcmp.eq.s32.totalorder %v2344_v2, 1  ;;  %vm2362_vm6 = vcmp.eq.s32.totalorder %v2341_v61, 1  ;;  %v12242_v2 = vld [vmem:[%s16307_s7 + $0x40] sm:$0xff] }
  0x9b   : > { %4094 = vperm.xlu1 %10935, %v4072_v12   ;;  %vm2376_vm10 = vmpackc.low %vm2363_vm8, %vm2363_vm8 }
  0x9c   : > { %v2389_v14 = vsel %vm2376_vm10, 65537, %v16505_v20  ;;  %vm2375_vm0 = vmpackc.low %vm2362_vm6, %vm2362_vm6 }
  0x9d   : > { %v2350_v27 = vpop.permute.xlu1 %2349  ;;  %v2347_v18 = vpop.permute.xlu0 %2346  ;;  %2027 = vmatmul.mubr.bf16.gmra.mxu1 %v1636_v49  ;;  %v2477_v58 = vshrl.u32 %v2389_v14, 16  ;;  %v2480_v24 = vshll.u32 %v2389_v14, 16  ;;  %v12184_v33 = vsel %vm2375_vm0, 65537, %v16505_v20  ;;  %vm4581_vm8 = vmand %vm16350_vm9, %vm2173_vm2  ;;  %vm16532_vm0 = vcmp.lt.s32.totalorder %v11657_v52, 6 }
  0x9e   : > { %4097 = vperm.xlu0 %10934, %v4073_v46   ;;  %v2468_v13 = vshrl.u32 %v12184_v33, 16  ;;  %vm2365_vm6 = vcmp.eq.s32.totalorder %v2350_v27, 1  ;;  %vm2364_vm10 = vcmp.eq.s32.totalorder %v2347_v18, 1  ;;  %v4074_v54 = vsel %vm16532_vm0, 1, %v16505_v20 }
  0x9f   : > { %4612 = vperm.xlu1 %10935, %v4592_v43   ;;  %v2479_v30 = vrot.slane %v2477_v58, 7  ;;  %vm16351_vm2 = vcmp.lt.s32.totalorder %v12203_v21, 6  ;;  %vm2378_vm5 = vmpackc.low %vm2365_vm6, %vm2365_vm6  ;;  %v4594_v19 = vsel %vm4581_vm8, 1, %v16505_v20  ;;  %vm16534_vm0 = vcmp.lt.s32.totalorder %v11686_v10, 6 }
  0xa0   : > { %v12206_v4 = vrot.slane %v2468_v13, 7  ;;  %v4076_v3 = vsel %vm16534_vm0, 1, %v16505_v20  ;;  %vm2377_vm9 = vmpackc.low %vm2364_vm10, %vm2364_vm10  ;;  %v2391_v11 = vsel %vm2378_vm5, 65537, %v16505_v20  ;;  %vm3080_vm0 = vcmask 1040384  }
  0xa1   : > { %v3004_v41 = vpop.permute.xlu1 %3003  ;;  %v2353_v8 = vpop.permute.xlu0 %2352  ;;  %v2482_v39 = vor.u32 %v2480_v24, %v2479_v30  ;;  %v2390_v37 = vsel %vm2377_vm9, 65537, %v16505_v20  ;;  %vm12223_vm8 = vmor %vm2393_vm14, %vm2394_vm1  ;;  %v2495_v38 = vshrl.u32 %v2391_v11, 16  ;;  %v2498_v16 = vshll.u32 %v2391_v11, 16  ;;  %v12329_v24 = vld [vmem:[%s16307_s7 + $0x50] sm:$0xff] }
  0xa2   : > { %4615 = vperm.xlu0 %10934, %v4593_v40   ;;  %v2475_v35 = vrot.slane %v12206_v4, 4  ;;  %v16536_v25 = vsel %vm12223_vm8, 4294967295, %v16535_v25  ;;  %v2486_v15 = vshrl.u32 %v2390_v37, 16  ;;  %v2489_v36 = vshll.u32 %v2390_v37, 16  ;;  %vm12231_vm6 = vmand %vm16351_vm2, %vm2174_vm13 }
  0xa3   : > { %4100 = vperm.xlu1 %10935, %v4074_v54   ;;  %16537 = vst [vmem:[#allocation8_spill] sm:$0xff] %v16536_v25  ;;  %vm3041_vm9 = vcmp.eq.s32.totalorder %v3004_v41, 1  ;;  %vm2366_vm14 = vcmp.eq.s32.totalorder %v2353_v8, 1  ;;  %v2484_v12 = vrot.slane %v2479_v30, 4  ;;  %vm4571_vm1 = vcmp.lt.s32.totalorder %v12242_v2, 6 }
  0xa4   : > { %v12237_v57 = vsel %vm12223_vm8, %v2475_v35, %v2482_v39  ;;  %v2497_v61 = vrot.slane %v2495_v38, 7  ;;  %v2488_v44 = vrot.slane %v2486_v15, 7  ;;  %vm3054_vm13 = vmpackc.low %vm3041_vm9, %vm3041_vm9  ;;  %v4595_v5 = vsel %vm12231_vm6, 1, %v16505_v20 }
  0xa5   : > { %16540 = vst [vmem:[#allocation10_spill] sm:$0xff] %v12237_v57  ;;  %v3010_v45 = vpop.permute.xlu1 %3009  ;;  %v3007_v31 = vpop.permute.xlu0 %3006  ;;  %v12246_v49 = vsel %vm3054_vm13, 65537, %v16505_v20  ;;  %vm2379_vm10 = vmpackc.low %vm2366_vm14, %vm2366_vm14  ;;  %vm3081_vm9 = vcmask 1044484  }
  0xa6   : > { %4103 = vperm.xlu0 %10934, %v4075_v62   ;;  %vm3043_vm5 = vcmp.eq.s32.totalorder %v3010_v45, 1  ;;  %vm3042_vm2 = vcmp.eq.s32.totalorder %v3007_v31, 1  ;;  %v2500_v46 = vor.u32 %v2498_v16, %v2497_v61  ;;  %v2491_v43 = vor.u32 %v2489_v36, %v2488_v44  ;;  %vm4583_vm6 = vmand %vm4570_vm7, %vm2175_vm11 }
  0xa7   : > { %4618 = vperm.xlu1 %10935, %v4594_v19   ;;  %v2493_v14 = vrot.slane %v2488_v44, 4  ;;  %vm3056_vm4 = vmpackc.low %vm3043_vm5, %vm3043_vm5  ;;  %v16353_v27 = vrot.slane %v12246_v49, 7  ;;  %v2392_v18 = vsel %vm2379_vm10, 65537, %v16505_v20  ;;  %v2502_v39 = vrot.slane %v2497_v61, 4 }
  0xa8   : > { %v3069_v58 = vsel %vm3056_vm4, 65537, %v16505_v20  ;;  %vm12254_vm14 = vmpackc.low %vm3042_vm2, %vm3042_vm2  ;;  %v12266_v30 = vsel %vm12223_vm8, %v2484_v12, %v2491_v43  ;;  %v2504_v62 = vshrl.u32 %v2392_v18, 16  ;;  %v2507_v41 = vshll.u32 %v2392_v18, 16  ;;  %v12300_v12 = vld [vmem:[%s16307_s7 + $0x48] sm:$0xff] }
  0xa9   : > { %v3013_v13 = vpop.permute.xlu0 %3012  ;;  %v12258_v40 = vpop.permute.xlu1 %2208  ;;  %16543 = vst [vmem:[#allocation11_spill] sm:$0xff] %v12266_v30  ;;  %v12270_v54 = vsel %vm12223_vm8, %v2493_v14, %v2500_v46  ;;  %vm16545_vm4 = vcmp.lt.s32.totalorder %v11782_v60, 6  ;;  %v3084_v19 = vrot.slane %v16353_v27, 4  ;;  %v3088_v11 = vrot.slane %v3069_v58, 7  ;;  %vm12279_vm11 = vmor %vm3080_vm0, %vm3081_vm9  ;;  %v10972_v27 = vld [vmem:[%s16303_s3 + $0x20] sm:$0xff]  }
  0xaa   : > { %16544 = vst [vmem:[#allocation9_spill] sm:$0xff] %v12270_v54  ;;  %4621 = vperm.xlu0 %10934, %v4595_v5   ;;  %v4077_v8 = vsel %vm16545_vm4, 1, %v16505_v20  ;;  %v2506_v35 = vrot.slane %v2504_v62, 7  ;;  %v3068_v38 = vsel %vm12254_vm14, 65537, %v16505_v20  ;;  %v4596_v16 = vsel %vm4583_vm6, 1, %v16505_v20  ;;  %vm12291_vm2 = vmand %vm4571_vm1, %vm2176_vm12 }
  0xab   : > { %4106 = vperm.xlu1 %10935, %v4076_v3   ;;  %v3085_v15 = vrot.slane %v3068_v38, 7  ;;  %vm3044_vm13 = vcmp.eq.s32.totalorder %v3013_v13, 1  ;;  %v3090_v31 = vrot.slane %v3088_v11, 4  ;;  %vm4572_vm12 = vcmp.lt.s32.totalorder %v12300_v12, 6  ;;  %v12353_v3 = vld [vmem:[%s16307_s7 + $0x58] sm:$0xff] }
  0xac   : > { %v2509_v45 = vor.u32 %v2507_v41, %v2506_v35  ;;  %vm3057_vm10 = vmpackc.low %vm3044_vm13, %vm3044_vm13  ;;  %v4597_v46 = vsel %vm12291_vm2, 1, %v16505_v20  ;;  %vm16552_vm0 = vcmp.lt.s32.totalorder %v11825_v51, 6  ;;  %vm4573_vm6 = vcmp.lt.s32.totalorder %v12329_v24, 6 }
  0xad   : > { %v12295_v36 = vpop.permute.xlu0 %2211  ;;  %v3016_v1 = vpop.permute.xlu1 %3015  ;;  %v12305_v61 = vsel %vm12279_vm11, %v3084_v19, %v3085_v15  ;;  %v3087_v44 = vrot.slane %v3085_v15, 4  ;;  %v3070_v5 = vsel %vm3057_vm10, 65537, %v16505_v20  ;;  %v4078_v18 = vsel %vm16552_vm0, 1, %v16505_v20  ;;  %vm4585_vm14 = vmand %vm4572_vm12, %vm2177_vm3 }
  0xae   : > { %vm3045_vm5 = vcmp.eq.s32.totalorder %v3016_v1, 1  ;;  %4109 = vperm.xlu0 %10934, %v4077_v8   ;;  %16550 = vst [vmem:[#allocation13_spill] sm:$0xff] %v12305_v61  ;;  %v12313_v43 = vsel %vm12223_vm8, %v2502_v39, %v2509_v45  ;;  %v3091_v14 = vrot.slane %v3070_v5, 7  ;;  %vm16553_vm3 = vcmp.lt.s32.totalorder %v11860_v0, 6  ;;  %v12359_v1 = vld [vmem:[%s16307_s7 + $0x60] sm:$0x3] }
  0xaf   : > { %4624 = vperm.xlu1 %10935, %v4596_v16   ;;  %16551 = vst [vmem:[#allocation14_spill] sm:$0xff] %v12313_v43  ;;  %v12320_v58 = vsel %vm12279_vm11, %v3087_v44, %v3088_v11  ;;  %vm3058_vm9 = vmpackc.low %vm3045_vm5, %vm3045_vm5  ;;  %v4079_v39 = vsel %vm16553_vm3, 1, %v16505_v20  ;;  %v4598_v35 = vsel %vm4585_vm14, 1, %v16505_v20  ;;  %vm16554_vm13 = vcmp.ge.s32.totalorder %v11825_v51, 1  ;;  %v10968_v45 = vld [vmem:[%s16303_s3 + $0x38] sm:$0xff]  }
  0xb0   : > { %v12334_v13 = vsel %vm12279_vm11, %v3090_v31, %v3091_v14  ;;  %v3093_v62 = vrot.slane %v3091_v14, 4  ;;  %v3071_v41 = vsel %vm3058_vm9, 65537, %v16505_v20  ;;  %vm4586_vm10 = vmand %vm4573_vm6, %vm16554_vm13  ;;  %vm4574_vm5 = vcmp.lt.s32.totalorder %v12353_v3, 6  ;;  %v10971_v14 = vld [vmem:[%s16303_s3 + $0x78] sm:$0xff]  }
  0xb1   : > { %v3019_v8 = vpop.permute.xlu0 %3018  ;;  %v3094_v19 = vrot.slane %v3071_v41, 7  ;;  %vm4575_vm0 = vcmp.lt.s32.totalorder %v12359_v1, 6  ;;  %v4599_v31 = vsel %vm4586_vm10, 1, %v16505_v20  ;;  %v12370_v5 = vpop.permute.xlu1 %2214  ;;  %vm16557_vm9 = vcmp.lt.s32.totalorder %v11931_v9, 6  ;;  %v10969_v41 = vld [vmem:[%s16303_s3 + $0x30] sm:$0xff]  }
  0xb2   : > { %4627 = vperm.xlu0 %10934, %v4597_v46   ;;  %vm3046_vm4 = vcmp.eq.s32.totalorder %v3019_v8, 1  ;;  %v4080_v46 = vsel %vm16557_vm9, 1, %v16505_v20  ;;  %vm16558_vm14 = vcmp.ge.s32.totalorder %v11860_v0, 1  ;;  %vm16559_vm3 = vcmp.ge.s32.totalorder %v11931_v9, 1 }
  0xb3   : > { %4112 = vperm.xlu1 %10935, %v4078_v18   ;;  %vm3059_vm2 = vmpackc.low %vm3046_vm4, %vm3046_vm4  ;;  %v12347_v11 = vsel %vm12279_vm11, %v3093_v62, %v3094_v19  ;;  %v3096_v38 = vrot.slane %v3094_v19, 4  ;;  %v16363_v18 = vmov 0.0   ;;  %v16619_v54 = vmov 0 }
  0xb4   : > { %16555 = vst [vmem:[#allocation15_spill] sm:$0xff] %v12347_v11  ;;  %v3072_v16 = vsel %vm3059_vm2, 65537, %v16505_v20  ;;  %vm4587_vm4 = vmand %vm4574_vm5, %vm16558_vm14  ;;  %10553 = vmatprep.subr.bf16.mxu1 %v16363_v18  ;;  %10509 = vmatprep.subr.bf16.mxu0 %v16363_v18 }
  0xb5   : > { %v3097_v15 = vrot.slane %v3072_v16, 7  ;;  %vm4588_vm2 = vmand %vm4575_vm0, %vm16559_vm3  ;;  %v12388_v62 = vpop.permute.xlu0 %2217  ;;  %10554 = vmatpush3.bf16.msra.mxu1 %v10968_v45  ;;  %v4600_v8 = vsel %vm4587_vm4, 1, %v16505_v20  ;;  %10510 = vmatpush3.bf16.msra.mxu0 %v10971_v14  ;;  %v10970_v16 = vld [vmem:[%s16303_s3 + $0x28] sm:$0xff]  }
  0xb6   : > { %4115 = vperm.xlu0 %10934, %v4079_v39   ;;  %10555 = vmatprep.subr.bf16.mxu1 %v16363_v18  ;;  %v4601_v19 = vsel %vm4588_vm2, 1, %v16505_v20  ;;  %v10973_v39 = vld [vmem:[%s16303_s3 + $0x70] sm:$0xff]   ;;  %v16560_v45 = vld [vmem:[#allocation4_spill] sm:$0xff]  ;;  %vm16565_vm2 = vcmp.lt.s32.totalorder %v16564_v53, 6 }
  0xb7   : > { %4630 = vperm.xlu1 %10935, %v4598_v35   ;;  %v12368_v44 = vsel %vm12279_vm11, %v3096_v38, %v3097_v15  ;;  %10511 = vmatprep.subr.bf16.mxu0 %v16363_v18  ;;  %vm16561_vm10 = vcmp.lt.s32.totalorder %v16560_v45, 6  ;;  %v10975_v14 = vld [vmem:[%s16303_s3 + $0x68] sm:$0xff]  }
  0xb8   : > { %16556 = vst [vmem:[#allocation16_spill] sm:$0xff] %v12368_v44  ;;  %v3022_v35 = vpop.permute.xlu1 %3021  ;;  %v4982_v44 = vsel %vm16565_vm2, 1, %v16505_v20 }
  0xb9   : > { %vm3047_vm13 = vcmp.eq.s32.totalorder %v3022_v35, 1  ;;  %v3025_v38 = vpop.permute.xlu0 %3024  ;;  %10556 = vmatpush3.bf16.msra.mxu1 %v10969_v41  ;;  %v16562_v41 = vld [vmem:[#allocation5_spill] sm:$0xff]  ;;  %10512 = vmatpush3.bf16.msra.mxu0 %v10973_v39 }
  0xba   : > { %4633 = vperm.xlu0 %10934, %v4599_v31   ;;  %v4980_v31 = vsel %vm16561_vm10, 1, %v16505_v20  ;;  %vm3060_vm9 = vmpackc.low %vm3047_vm13, %vm3047_vm13  ;;  %vm3048_vm14 = vcmp.eq.s32.totalorder %v3025_v38, 1  ;;  %10557 = vmatprep.subr.bf16.mxu1 %v16363_v18  ;;  %vm16563_vm4 = vcmp.lt.s32.totalorder %v16562_v41, 6  ;;  %vm16567_vm13 = vcmp.lt.s32.totalorder %v12143_v7, 6 }
  0xbb   : > { %4118 = vperm.xlu1 %10935, %v4080_v46   ;;  %v3099_v46 = vrot.slane %v3097_v15, 4  ;;  %v3073_v35 = vsel %vm3060_vm9, 65537, %v16505_v20  ;;  %vm3061_vm3 = vmpackc.low %vm3048_vm14, %vm3048_vm14  ;;  %10513 = vmatprep.subr.bf16.mxu0 %v16363_v18  ;;  %vm16569_vm9 = vcmp.lt.s32.totalorder %v12152_v55, 6  ;;  %vm16570_vm14 = vcmp.lt.s32.totalorder %v12178_v29, 6 }
  0xbc   : > { %v3074_v45 = vsel %vm3061_vm3, 65537, %v16505_v20  ;;  %v12415_v15 = vpop.permute.xlu1 %2220  ;;  %vm16571_vm3 = vcmp.lt.s32.totalorder %v12203_v21, 6 }
  0xbd   : > { %v3103_v38 = vrot.slane %v3074_v45, 7  ;;  %10558 = vmatpush3.bf16.msra.mxu1 %v10970_v16  ;;  %v4983_v16 = vsel %vm16567_vm13, 1, %v16505_v20  ;;  %10514 = vmatpush3.bf16.msra.mxu0 %v10975_v14  ;;  %v4984_v14 = vsel %vm16569_vm9, 1, %v16505_v20  ;;  %vm16573_vm9 = vcmp.lt.s32.totalorder %v11460_v48, 6  ;;  %v10980_v48 = vld [vmem:[%s16303_s3] sm:$0xff]  }
  0xbe   : > { %4636 = vperm.xlu0 %10934, %v4600_v8   ;;  %v4981_v8 = vsel %vm16563_vm4, 1, %v16505_v20  ;;  %10559 = vmatprep.subr.bf16.mxu1 %v16363_v18 }
  0xbf   : > { %4639 = vperm.xlu1 %10935, %v4601_v19   ;;  %v3100_v19 = vrot.slane %v3073_v35, 7  ;;  %10515 = vmatprep.subr.bf16.mxu0 %v16363_v18 }
  0xc1   : > { %v12426_v39 = vsel %vm12279_vm11, %v3099_v46, %v3100_v19  ;;  %v3102_v35 = vrot.slane %v3100_v19, 4  ;;  %v3028_v46 = vpop.permute.xlu1 %3027  ;;  %10560 = vmatpush3.bf16.msra.mxu1 %v10972_v27  ;;  %v10974_v19 = vld [vmem:[%s16303_s3 + $0x18] sm:$0xff]  }
  0xc2   : > { %4994 = vperm.xlu0 %10934, %v4980_v31   ;;  %16566 = vst [vmem:[#allocation4_spill] sm:$0xff] %v12426_v39  ;;  %v12432_v31 = vpop.permute.xlu0 %2223  ;;  %vm3049_vm10 = vcmp.eq.s32.totalorder %v3028_v46, 1  ;;  %10561 = vmatprep.subr.bf16.mxu1 %v16363_v18  ;;  %v10979_v27 = vld [vmem:[%s16303_s3 + $0x58] sm:$0xff]   ;;  %v4986_v39 = vsel %vm16571_vm3, 1, %v16505_v20 }
  0xc3   : > { %4997 = vperm.xlu1 %10935, %v4981_v8   ;;  %v10977_v8 = vld [vmem:[%s16303_s3 + $0x60] sm:$0xff]   ;;  %v12439_v45 = vsel %vm12279_vm11, %v3102_v35, %v3103_v38  ;;  %v4985_v35 = vsel %vm16570_vm14, 1, %v16505_v20  ;;  %vm3062_vm4 = vmpackc.low %vm3049_vm10, %vm3049_vm10  ;;  %vm16361_vm10 = vmmov 0   ;;  %vm16574_vm14 = vcmp.lt.s32.totalorder %v16562_v41, 6 }
  0xc4   : > { %16568 = vst [vmem:[#allocation5_spill] sm:$0xff] %v12439_v45  ;;  %v3105_v45 = vrot.slane %v3103_v38, 4  ;;  %10516 = vmatpush3.bf16.msra.mxu0 %v10977_v8  ;;  %v10976_v38 = vld [vmem:[%s16303_s3 + $0x10] sm:$0xff]   ;;  %10569 = vmatprep.mubr.msk.bf16.mxu1 %vm16361_vm10, %v16363_v18  ;;  %v5510_v41 = vsel %vm11866_vm15, 1, %v16505_v20  ;;  %vm16578_vm15 = vcmp.lt.s32.totalorder %v11453_v47, 6 }
  0xc5   : > { %10517 = vmatprep.subr.bf16.mxu0 %v16363_v18  ;;  %10562 = vmatpush3.bf16.msra.mxu1 %v10974_v19  ;;  %v4987_v19 = vsel %vm4570_vm7, 1, %v16505_v20 }
  0xc6   : > { %5000 = vperm.xlu0 %10934, %v4982_v44   ;;  %v3075_v44 = vsel %vm3062_vm4, 65537, %v16505_v20  ;;  %10563 = vmatprep.subr.bf16.mxu1 %v16363_v18  ;;  %vm5498_vm4 = vmand %vm16574_vm14, %vm16573_vm9  ;;  %vm16580_vm14 = vcmp.lt.s32.totalorder %v11511_v59, 6 }
  0xc7   : > { %5003 = vperm.xlu1 %10935, %v4983_v16   ;;  %v3106_v16 = vrot.slane %v3075_v44, 7  ;;  %v3031_v46 = vpop.permute.xlu0 %3030  ;;  %10525 = vmatprep.mubr.msk.bf16.mxu0 %vm16361_vm10, %v16363_v18  ;;  %v5511_v11 = vsel %vm5498_vm4, 1, %v16505_v20  ;;  %vm16581_vm4 = vcmp.lt.s32.totalorder %v12143_v7, 6 }
  0xc8   : > { %vm3050_vm2 = vcmp.eq.s32.totalorder %v3031_v46, 1  ;;  %10518 = vmatpush3.bf16.msra.mxu0 %v10979_v27 }
  0xc9   : > { %v12465_v8 = vsel %vm12279_vm11, %v3105_v45, %v3106_v16  ;;  %v12467_v44 = vpop.permute.xlu1 %2226  ;;  %vm3063_vm13 = vmpackc.low %vm3050_vm2, %vm3050_vm2  ;;  %v10981_v45 = vld [vmem:[%s16303_s3 + $0x50] sm:$0xff]   ;;  %10519 = vmatprep.subr.bf16.mxu0 %v16363_v18  ;;  %10564 = vmatpush3.bf16.msra.mxu1 %v10976_v38  ;;  %v10982_v38 = vld [vmem:[%s16303_s3 + $0x48] sm:$0xff]  }
  0xca   : > { %5006 = vperm.xlu0 %10934, %v4984_v14   ;;  %16572 = vst [vmem:[#allocation3_spill] sm:$0xff] %v12465_v8  ;;  %v3108_v14 = vrot.slane %v3106_v16, 4  ;;  %v10978_v16 = vld [vmem:[%s16303_s3 + $0x8] sm:$0xff]   ;;  %10565 = vmatprep.subr.bf16.mxu1 %v16363_v18 }
  0xcb   : > { %5009 = vperm.xlu1 %10935, %v4985_v35   ;;  %v3076_v35 = vsel %vm3063_vm13, 65537, %v16505_v20  ;;  %vm16579_vm13 = vcmp.lt.s32.totalorder %v16564_v53, 6 }
  0xcc   : > { %v3109_v27 = vrot.slane %v3076_v35, 7  ;;  %10520 = vmatpush3.bf16.msra.mxu0 %v10981_v45  ;;  %v4989_v45 = vsel %vm4572_vm12, 1, %v16505_v20  ;;  %vm5499_vm9 = vmand %vm16579_vm13, %vm16578_vm15  ;;  %vm16586_vm13 = vcmp.lt.s32.totalorder %v11554_v42, 6 }
  0xcd   : > { %v12492_v46 = vpop.permute.xlu0 %2229  ;;  %10521 = vmatprep.subr.bf16.mxu0 %v16363_v18  ;;  %10566 = vmatpush3.bf16.msra.mxu1 %v10978_v16  ;;  %v5512_v47 = vsel %vm5499_vm9, 1, %v16505_v20  ;;  %vm16587_vm9 = vcmp.lt.s32.totalorder %v12152_v55, 6 }
  0xce   : > { %5012 = vperm.xlu0 %10934, %v4986_v39   ;;  %16576 = vst [vmem:[#allocation12_spill] sm:$0xff] %v12492_v46  ;;  %v3034_v8 = vpop.permute.xlu1 %3033  ;;  %v12498_v39 = vsel %vm12279_vm11, %v3108_v14, %v3109_v27  ;;  %10567 = vmatprep.subr.bf16.mxu1 %v16363_v18 }
  0xcf   : > { %5015 = vperm.xlu1 %10935, %v4987_v19   ;;  %16577 = vst [vmem:[#allocation17_spill] sm:$0xff] %v12498_v39  ;;  %vm3051_vm3 = vcmp.eq.s32.totalorder %v3034_v8, 1  ;;  %v3111_v19 = vrot.slane %v3109_v27, 4  ;;  %v4988_v8 = vsel %vm4571_vm1, 1, %v16505_v20 }
  0xd0   : > { %vm3064_vm2 = vmpackc.low %vm3051_vm3, %vm3051_vm3  ;;  %10522 = vmatpush3.bf16.msra.mxu0 %v10982_v38  ;;  %v10983_v38 = vld [vmem:[%s16303_s3 + $0x40] sm:$0xff]  }
  0xd1   : > { %v3077_v35 = vsel %vm3064_vm2, 65537, %v16505_v20  ;;  %vm5500_vm3 = vmand %vm16581_vm4, %vm16580_vm14  ;;  %10523 = vmatprep.subr.bf16.mxu0 %v16363_v18  ;;  %10568 = vmatpush3.bf16.msra.mxu1 %v10980_v48  ;;  %vm16588_vm4 = vcmp.lt.s32.totalorder %v11583_v63, 6 }
  0xd2   : > { %5524 = vperm.xlu0 %10934, %v5510_v41   ;;  %v3112_v14 = vrot.slane %v3077_v35, 7  ;;  %10641 = vmatprep.subr.bf16.mxu1 %v16363_v18  ;;  %v5513_v59 = vsel %vm5500_vm3, 1, %v16505_v20  ;;  %vm5501_vm14 = vmand %vm16587_vm9, %vm16586_vm13  ;;  %vm16589_vm3 = vcmp.lt.s32.totalorder %v12178_v29, 6  ;;  %vm16590_vm13 = vcmp.lt.s32.totalorder %v11657_v52, 6 }
  0xd3   : > { %5527 = vperm.xlu1 %10935, %v5511_v11   ;;  %v3037_v27 = vpop.permute.xlu0 %3036  ;;  %vm16591_vm9 = vcmp.lt.s32.totalorder %v12203_v21, 6  ;;  %v4992_v29 = vsel %vm4575_vm0, 1, %v16505_v20 }
  0xd4   : > { %v12525_v11 = vsel %vm12279_vm11, %v3111_v19, %v3112_v14  ;;  %vm3052_vm2 = vcmp.eq.s32.totalorder %v3037_v27, 1  ;;  %v3114_v53 = vrot.slane %v3112_v14, 4  ;;  %v4990_v19 = vsel %vm4573_vm6, 1, %v16505_v20  ;;  %10524 = vmatpush3.bf16.msra.mxu0 %v10983_v38 }
  0xd5   : > { %16582 = vst [vmem:[#allocation18_spill] sm:$0xff] %v12525_v11  ;;  %vm3065_vm15 = vmpackc.low %vm3052_vm2, %vm3052_vm2  ;;  %10597 = vmatprep.subr.bf16.mxu0 %v16363_v18 }
  0xd6   : > { %5018 = vperm.xlu0 %10934, %v4988_v8   ;;  %v3078_v7 = vsel %vm3065_vm15, 65537, %v16505_v20  ;;  %v4991_v8 = vsel %vm4574_vm5, 1, %v16505_v20  ;;  %vm5502_vm2 = vmand %vm16589_vm3, %vm16588_vm4  ;;  %vm16594_vm3 = vcmp.lt.s32.totalorder %v11686_v10, 6 }
  0xd7   : > { %5021 = vperm.xlu1 %10935, %v4989_v45   ;;  %v3115_v16 = vrot.slane %v3078_v7, 7  ;;  %v5514_v45 = vsel %vm5501_vm14, 1, %v16505_v20  ;;  %v5515_v42 = vsel %vm5502_vm2, 1, %v16505_v20  ;;  %vm5503_vm4 = vmand %vm16591_vm9, %vm16590_vm13  ;;  %vm16600_vm9 = vcmp.lt.s32.totalorder %v11931_v9, 6 }
  0xd8   : > { %vm5505_vm2 = vmand %vm4571_vm1, %vm16594_vm3  ;;  %vm16599_vm1 = vcmp.lt.s32.totalorder %v11860_v0, 6 }
  0xd9   : > { %v12532_v41 = vpop.permute.xlu1 %2232  ;;  %v12542_v35 = vsel %vm12279_vm11, %v3114_v53, %v3115_v16  ;;  %v3117_v27 = vrot.slane %v3115_v16, 4  ;;  %v5518_v37 = vsel %vm5505_vm2, 1, %v16505_v20  ;;  %vm4680_vm2 = vcmask 1042432  }
  0xda   : > { %5530 = vperm.xlu0 %10934, %v5512_v47   ;;  %16583 = vst [vmem:[#allocation19_spill] sm:$0xff] %v12532_v41  ;;  %16584 = vst [vmem:[#allocation20_spill] sm:$0xff] %v12542_v35  ;;  %v12544_v48 = vpop.permute.xlu0 %2235 }
  0xdb   : > { %5533 = vperm.xlu1 %10935, %v5513_v59   ;;  %16585 = vst [vmem:[#allocation21_spill] sm:$0xff] %v12544_v48  ;;  %v5516_v59 = vsel %vm5503_vm4, 1, %v16505_v20 }
  0xdd   : > { %v3040_v14 = vpop.permute.xlu1 %3039 }
  0xde   : > { %5024 = vperm.xlu0 %10934, %v4990_v19   ;;  %vm3053_vm15 = vcmp.eq.s32.totalorder %v3040_v14, 1  ;;  %v12560_v55 = vpop.permute.xlu0 %3394 }
  0xdf   : > { %5027 = vperm.xlu1 %10935, %v4991_v8   ;;  %vm3066_vm10 = vmpackc.low %vm3053_vm15, %vm3053_vm15 }
  0xe0   : > { %v3079_v47 = vsel %vm3066_vm10, 65537, %v16505_v20  ;;  %vm16593_vm10 = vcmp.lt.s32.totalorder %v11662_v56, 6 }
  0xe1   : > { %v3118_v63 = vrot.slane %v3079_v47, 7  ;;  %v12575_v7 = vpop.permute.xlu1 %3397  ;;  %vm5504_vm14 = vmand %vm4570_vm7, %vm16593_vm10  ;;  %vm16596_vm7 = vcmp.lt.s32.totalorder %v11825_v51, 6 }
  0xe2   : > { %5536 = vperm.xlu0 %10934, %v5514_v45   ;;  %v12585_v52 = vpop.permute.xlu0 %3400  ;;  %v5517_v21 = vsel %vm5504_vm14, 1, %v16505_v20  ;;  %vm5507_vm13 = vmand %vm4573_vm6, %vm16596_vm7  ;;  %vm2356_vm7 = vcmp.eq.s32.totalorder %v12102_v26, 1 }
  0xe3   : > { %5539 = vperm.xlu1 %10935, %v5515_v42   ;;  %v12572_v53 = vsel %vm12279_vm11, %v3117_v27, %v3118_v63  ;;  %vm16595_vm11 = vcmp.lt.s32.totalorder %v11782_v60, 6  ;;  %v5520_v22 = vsel %vm5507_vm13, 1, %v16505_v20  ;;  %vm5509_vm6 = vmand %vm4575_vm0, %vm16600_vm9  ;;  %vm2354_vm13 = vcmp.eq.s32.totalorder %v12104_v23, 1 }
  0xe4   : > { %16592 = vst [vmem:[#allocation22_spill] sm:$0xff] %v12572_v53  ;;  %vm5506_vm15 = vmand %vm4572_vm12, %vm16595_vm11  ;;  %v5522_v12 = vsel %vm5509_vm6, 1, %v16505_v20  ;;  %vm4681_vm11 = vcmask 1046532   ;;  %vm2357_vm6 = vcmp.eq.s32.totalorder %v12114_v6, 1 }
  0xe5   : > { %v5519_v10 = vsel %vm5506_vm15, 1, %v16505_v20  ;;  %vm5508_vm12 = vmand %vm4574_vm5, %vm16599_vm1 }
  0xe6   : > { %5030 = vperm.xlu0 %10934, %v4992_v29   ;;  %v12597_v56 = vpop.permute.xlu1 %2238  ;;  %v5521_v60 = vsel %vm5508_vm12, 1, %v16505_v20  ;;  %vm12671_vm15 = vmor %vm4680_vm2, %vm4681_vm11  ;;  %vm2355_vm12 = vcmp.eq.s32.totalorder %v12116_v17, 1  ;;  %vm2361_vm2 = vcmp.eq.s32.totalorder %v12136_v50, 1  ;;  %vm2360_vm11 = vcmp.eq.s32.totalorder %v12138_v32, 1 }
  0xe7   : > { %5542 = vperm.xlu1 %10935, %v5516_v59   ;;  %16597 = vst [vmem:[#allocation23_spill] sm:$0xff] %v12597_v56  ;;  %v16620_v54 = vsel %vm12671_vm15, 4294967295, %v16619_v54  ;;  %vm2369_vm1 = vmpackc.low %vm2356_vm7, %vm2356_vm7 }
  0xe8   : > { %16621 = vst [vmem:[#allocation43_spill] sm:$0xff] %v16620_v54  ;;  %vm2367_vm9 = vmpackc.low %vm2354_vm13, %vm2354_vm13 }
  0xe9   : > { %vm12737_vm7 = vmpackc.low %vm2361_vm2, %vm2361_vm2  ;;  %vm2248_vm2 = vcmp.eq.s32.totalorder %v12370_v5, 1 }
  0xea   : > { %5545 = vperm.xlu0 %10934, %v5517_v21   ;;  %v12612_v51 = vpop.permute.xlu1 %3403  ;;  %vm2373_vm13 = vmpackc.low %vm2360_vm11, %vm2360_vm11  ;;  %v12762_v32 = vsel %vm12737_vm7, 65537, %v16505_v20  ;;  %vm3434_vm7 = vcmp.eq.s32.totalorder %v12585_v52, 1 }
  0xeb   : > { %5548 = vperm.xlu1 %10935, %v5518_v37  }
  0xed   : > { %v12601_v2 = vpop.permute.xlu0 %2241 }
  0xee   : > { %16598 = vst [vmem:[#allocation24_spill] sm:$0xff] %v12601_v2  ;;  %5551 = vperm.xlu0 %10934, %v5519_v10  }
  0xef   : > { %5554 = vperm.xlu1 %10935, %v5520_v22  }
  0xf1   : > { %v12615_v24 = vpop.permute.xlu0 %3406 }
  0xf2   : > { %5557 = vperm.xlu0 %10934, %v5521_v60  }
  0xf3   : > { %5560 = vperm.xlu1 %10935, %v5522_v12  }
  0xf6   : > { %v12617_v0 = vpop.permute.xlu1 %2244 }
  0xf7   : > { %16601 = vst [vmem:[#allocation25_spill] sm:$0xff] %v12617_v0  ;;  %v12619_v3 = vpop.permute.xlu0 %3409 }
  0xfa   : > { %v12621_v9 = vpop.permute.xlu1 %3412 }
  0xfb   : > { %v12623_v1 = vpop.permute.xlu0 %3415 }
  0xfc   : > { %v10298_v38 = vpop.f32.mrf.mxu1 }
  0xfe   : > { %v12625_v16 = vpop.permute.xlu1 %3418  ;;  %v10299_v8 = vpop.f32.mrf.mxu1 }
  0xff   : > { %16602 = vst [vmem:[#allocation26_spill] sm:$0xff] %v12625_v16  ;;  %v12631_v45 = vadd.f32 %v10299_v8, %v10298_v38 }
 0x100   : > { %v12637_v47 = vpop.f32.mrf.mxu1 }
 0x101   : > { %v12627_v19 = vpop.permute.xlu0 %3421 }
 0x102   : > { %16603 = vst [vmem:[#allocation27_spill] sm:$0xff] %v12627_v19  ;;  %v12629_v14 = vpop.permute.xlu1 %3424  ;;  %v12643_v59 = vpop.f32.mrf.mxu1 }
 0x103   : > { %16604 = vst [vmem:[#allocation28_spill] sm:$0xff] %v12629_v14 }
 0x105   : > { %v12633_v27 = vpop.permute.xlu0 %3427 }
 0x106   : > { %16605 = vst [vmem:[#allocation29_spill] sm:$0xff] %v12633_v27  ;;  %v12635_v42 = vpop.permute.xlu1 %3430 }
 0x107   : > { %16606 = vst [vmem:[#allocation30_spill] sm:$0xff] %v12635_v42 }
 0x108   : > { %v10304_v21 = vpop.f32.mrf.mxu1 }
 0x109   : > { %v12639_v63 = vpop.permute.xlu0 %4082 }
 0x10a   : > { %16607 = vst [vmem:[#allocation31_spill] sm:$0xff] %v12639_v63  ;;  %v12641_v29 = vpop.permute.xlu1 %4085  ;;  %v10305_v22 = vpop.f32.mrf.mxu1 }
 0x10b   : > { %16608 = vst [vmem:[#allocation32_spill] sm:$0xff] %v12641_v29  ;;  %v12653_v35 = vadd.f32 %v10305_v22, %v10304_v21 }
 0x10c   : > { %v12649_v60 = vpop.f32.mrf.mxu1 }
 0x10d   : > { %v12645_v37 = vpop.permute.xlu0 %4088  ;;  %16611 = vst [vmem:[#allocation35_spill] sm:$0xff] %v12649_v60  ;;  %16613 = vst [vmem:[#allocation37_spill] sm:$0xff] %v12653_v35 }
 0x10e   : > { %16609 = vst [vmem:[#allocation33_spill] sm:$0xff] %v12645_v37  ;;  %v12647_v10 = vpop.permute.xlu1 %4091  ;;  %v12651_v8 = vpop.f32.mrf.mxu1 }
 0x10f   : > { %16610 = vst [vmem:[#allocation34_spill] sm:$0xff] %v12647_v10  ;;  %16612 = vst [vmem:[#allocation36_spill] sm:$0xff] %v12651_v8 }
 0x110   : > { %v10310_v18 = vpop.f32.mrf.mxu1 }
 0x111   : > { %v4604_v12 = vpop.permute.xlu0 %4603 }
 0x112   : > { %v4607_v38 = vpop.permute.xlu1 %4606  ;;  %vm4641_vm5 = vcmp.eq.s32.totalorder %v4604_v12, 1  ;;  %v10311_v39 = vpop.f32.mrf.mxu1 }
 0x113   : > { %vm4642_vm0 = vcmp.eq.s32.totalorder %v4607_v38, 1  ;;  %vm4654_vm4 = vmpackc.low %vm4641_vm5, %vm4641_vm5 }
 0x114   : > { %v12658_v61 = vsel %vm4654_vm4, 65537, %v16505_v20  ;;  %vm4655_vm10 = vmpackc.low %vm4642_vm0, %vm4642_vm0  ;;  %v10313_v0 = vpop.f32.mrf.mxu1  ;;  %vm2359_vm4 = vcmp.eq.s32.totalorder %v12124_v34, 1 }
 0x115   : > { %v4610_v53 = vpop.permute.xlu0 %4609  ;;  %16615 = vst [vmem:[#allocation39_spill] sm:$0xff] %v12658_v61  ;;  %v16379_v43 = vrot.slane %v12658_v61, 5  ;;  %v4668_v12 = vsel %vm4655_vm10, 65537, %v16505_v20  ;;  %vm2368_vm5 = vmpackc.low %vm2355_vm12, %vm2355_vm12  ;;  %vm2358_vm10 = vcmp.eq.s32.totalorder %v12126_v28, 1  ;;  %vm2247_vm12 = vcmp.eq.s32.totalorder %v12295_v36, 1 }
 0x116   : > { %v12655_v11 = vpop.permute.xlu1 %4094  ;;  %vm4643_vm14 = vcmp.eq.s32.totalorder %v4610_v53, 1  ;;  %v4685_v53 = vrot.slane %v4668_v12, 5  ;;  %vm2370_vm0 = vmpackc.low %vm2357_vm6, %vm2357_vm6  ;;  %v2381_v6 = vsel %vm2368_vm5, 65537, %v16505_v20  ;;  %vm3432_vm6 = vcmp.eq.s32.totalorder %v12560_v55, 1 }
 0x117   : > { %16614 = vst [vmem:[#allocation38_spill] sm:$0xff] %v12655_v11  ;;  %vm4656_vm3 = vmpackc.low %vm4643_vm14, %vm4643_vm14  ;;  %v10314_v11 = vpop.f32.mrf.mxu1  ;;  %v4684_v10 = vrot.slane %v16379_v43, 4 }
 0x118   : > { %v12663_v38 = vsel %vm4656_vm3, 65537, %v16505_v20  ;;  %v4687_v37 = vrot.slane %v4685_v53, 4  ;;  %vm2372_vm14 = vmpackc.low %vm2359_vm4, %vm2359_vm4  ;;  %vm3433_vm4 = vcmp.eq.s32.totalorder %v12575_v7, 1 }
 0x119   : > { %16616 = vst [vmem:[#allocation40_spill] sm:$0xff] %v12663_v38  ;;  %v12665_v21 = vpop.permute.xlu0 %4097  ;;  %v16391_v0 = vrot.slane %v12663_v38, 5  ;;  %v12678_v30 = vsel %vm12671_vm15, %v4684_v10, %v4685_v53  ;;  %vm2371_vm3 = vmpackc.low %vm2358_vm10, %vm2358_vm10  ;;  %vm16652_vm10 = vmmov 0  }
 0x11a   : > { %16617 = vst [vmem:[#allocation41_spill] sm:$0xff] %v12665_v21  ;;  %v12667_v22 = vpop.permute.xlu1 %4612  ;;  %16622 = vst [vmem:[#allocation44_spill] sm:$0xff] %v12678_v30 }
 0x11b   : > { %16618 = vst [vmem:[#allocation42_spill] sm:$0xff] %v12667_v22  ;;  %v12688_v12 = vsel %vm12671_vm15, %v4687_v37, %v16391_v0  ;;  %v12690_v22 = vadd.f32 %v10311_v39, %v10310_v18  ;;  %v12706_v18 = vld [vmem:[%s16302_s2] ss:$0 sm:$0xff]  ;;  %vm2260_vm5 = vmpackc.low %vm2247_vm12, %vm2247_vm12 }
 0x11c   : > { %v10274_v11 = vpop.f32.mrf.mxu0  ;;  %16625 = vst [vmem:[#allocation47_spill] sm:$0xff] %v12688_v12  ;;  %vm12883_vm11 = vmpackc.low %vm3433_vm4, %vm3433_vm4 }
 0x11d   : > { %v12680_v29 = vpop.permute.xlu0 %4615  ;;  %16626 = vst [vmem:[#allocation48_spill] sm:$0xff] %v12690_v22  ;;  %v2405_v22 = vshrl.u32 %v2381_v6, 16  ;;  %vm12925_vm12 = vmpackc.low %vm2248_vm2, %vm2248_vm2 }
 0x11e   : > { %16623 = vst [vmem:[#allocation45_spill] sm:$0xff] %v12680_v29  ;;  %v12682_v21 = vpop.permute.xlu1 %4100  ;;  %v10275_v43 = vpop.f32.mrf.mxu0 }
 0x11f   : > { %16624 = vst [vmem:[#allocation46_spill] sm:$0xff] %v12682_v21  ;;  %v10332_v61 = vpop.f32.mrf.mxu1  ;;  %v10276_v38 = vadd.f32 %v10275_v43, %v10274_v11 }
 0x120   : > { %v10277_v30 = vpop.f32.mrf.mxu0 }
 0x121   : > { %v12692_v63 = vpop.permute.xlu0 %4103  ;;  %v10333_v53 = vpop.f32.mrf.mxu1  ;;  %v1893_v0 = vadd.f32 %v10276_v38, %v12706_v18 }
 0x122   : > { %16627 = vst [vmem:[#allocation49_spill] sm:$0xff] %v12692_v63  ;;  %v12694_v10 = vpop.permute.xlu1 %4618  ;;  %v10278_v42 = vpop.f32.mrf.mxu0  ;;  %v10334_v39 = vadd.f32 %v10333_v53, %v10332_v61  ;;  %v2382_v61 = vsel %vm2369_vm1, 65537, %v16505_v20  ;;  %v12718_v63 = vsel %vm2367_vm9, 65537, %v16505_v20  ;;  %vm2246_vm1 = vcmp.eq.s32.totalorder %v12258_v40, 1 }
 0x123   : > { %16628 = vst [vmem:[#allocation50_spill] sm:$0xff] %v12694_v10  ;;  %v10335_v2 = vpop.f32.mrf.mxu1  ;;  %v10279_v53 = vadd.f32 %v10278_v42, %v10277_v30  ;;  %v2383_v10 = vsel %vm2370_vm0, 65537, %v16505_v20  ;;  %v2417_v56 = vshll.u32 %v2382_v61, 16  ;;  %vm12804_vm9 = vmpackc.low %vm2246_vm1, %vm2246_vm1  ;;  %vm3122_vm1 = vcmp.ne.s16.totalorder %v12320_v58, 0 }
 0x124   : > { %v1981_v11 = vadd.f32 %v10334_v39, %v1893_v0  ;;  %v2414_v0 = vshrl.u32 %v2382_v61, 16  ;;  %v2384_v61 = vsel %vm2371_vm3, 65537, %v16505_v20  ;;  %vm3445_vm0 = vmpackc.low %vm3432_vm6, %vm3432_vm6 }
 0x125   : > { %v12696_v29 = vpop.permute.xlu0 %4621  ;;  %v10336_v37 = vpop.f32.mrf.mxu1  ;;  %v1896_v30 = vadd.f32 %v10279_v53, %v12706_v18  ;;  %v2423_v53 = vshrl.u32 %v2383_v10, 16  ;;  %v2432_v14 = vshrl.u32 %v2384_v61, 16  ;;  %vm12937_vm6 = vmpackc.low %vm3434_vm7, %vm3434_vm7  ;;  %vm3472_vm7 = vsmask.f32 7440 }
 0x126   : > { %16629 = vst [vmem:[#allocation51_spill] sm:$0xff] %v12696_v29  ;;  %v12698_v21 = vpop.permute.xlu1 %4106  ;;  %v2034_v23 = vmax.f32 %v1981_v11, 0.0  ;;  %v10337_v42 = vadd.f32 %v10336_v37, %v10335_v2  ;;  %v2397_v29 = vshrl.u32 %v12718_v63, 16  ;;  %v2416_v27 = vrot.slane %v2414_v0, 7 }
 0x127   : > { %16630 = vst [vmem:[#allocation52_spill] sm:$0xff] %v12698_v21 }
 0x128   : > { %v10215_v39 = vpack.c.bf16 %v2034_v23, %v2034_v23  ;;  %v1984_v34 = vadd.f32 %v10337_v42, %v1896_v30  ;;  %v2426_v30 = vshll.u32 %v2383_v10, 16  ;;  %v12753_v10 = vor.u32 %v2417_v56, %v2416_v27 }
 0x129   : > { %v12700_v54 = vpop.permute.xlu0 %4109  ;;  %v2421_v41 = vrot.slane %v2416_v27, 4  ;;  %v12765_v56 = vsel %vm2373_vm13, 65537, %v16505_v20  ;;  %vm2249_vm13 = vcmp.eq.s32.totalorder %v12388_v62, 1 }
 0x12a   : > { %16631 = vst [vmem:[#allocation53_spill] sm:$0xff] %v12700_v54  ;;  %v12710_v21 = vpop.permute.xlu1 %4624  ;;  %2103 = vst [vmem:[#allocation2 + $0x4] sm:$0xf] %v10215_v39  ;;  %v2035_v2 = vmax.f32 %v1984_v34, 0.0  ;;  %v2400_v34 = vshll.u32 %v12718_v63, 16 }
 0x12b   : > { %v10280_v12 = vpop.f32.mrf.mxu0  ;;  %16632 = vst [vmem:[#allocation54_spill] sm:$0xff] %v12710_v21  ;;  %vm12950_vm4 = vmpackc.low %vm2249_vm13, %vm2249_vm13 }
 0x12c   : > { %v12741_v50 = vpack.c.bf16 %v2035_v2, %v2034_v23 }
 0x12d   : > { %v10281_v43 = vpop.f32.mrf.mxu0  ;;  %v12713_v26 = vpop.permute.xlu0 %4627 }
 0x12e   : > { %16633 = vst [vmem:[#allocation55_spill] sm:$0xff] %v12713_v26  ;;  %v10338_v54 = vpop.f32.mrf.mxu1  ;;  %v12720_v17 = vpop.permute.xlu1 %4112  ;;  %v10282_v57 = vadd.f32 %v10281_v43, %v10280_v12  ;;  %v2385_v12 = vsel %vm2372_vm14, 65537, %v16505_v20  ;;  %16639 = vst [vmem:[#allocation59_spill] sm:$0xff] %v12741_v50 }
 0x12f   : > { %v10283_v21 = vpop.f32.mrf.mxu0  ;;  %16634 = vst [vmem:[#allocation56_spill] sm:$0xff] %v12720_v17  ;;  %v2441_v23 = vshrl.u32 %v2385_v12, 16  ;;  %v2444_v8 = vshll.u32 %v2385_v12, 16 }
 0x130   : > { %v10339_v38 = vpop.f32.mrf.mxu1  ;;  %v1901_v43 = vadd.f32 %v10282_v57, %v12706_v18 }
 0x131   : > { %v12726_v11 = vpop.permute.xlu0 %4115  ;;  %v10284_v17 = vpop.f32.mrf.mxu0  ;;  %v10340_v39 = vadd.f32 %v10339_v38, %v10338_v54  ;;  %v12755_v38 = vrot.slane %v2423_v53, 7  ;;  %v12774_v16 = vrot.slane %v2441_v23, 7 }
 0x132   : > { %v10341_v26 = vpop.f32.mrf.mxu1  ;;  %16635 = vst [vmem:[#allocation57_spill] sm:$0xff] %v12726_v11  ;;  %v12732_v37 = vpop.permute.xlu1 %4630  ;;  %v2399_v11 = vrot.slane %v2397_v29, 7  ;;  %v12746_v29 = vrot.slane %v2405_v22, 7  ;;  %v10285_v53 = vadd.f32 %v10284_v17, %v10283_v21  ;;  %v12779_v21 = vrot.slane %v2432_v14, 7 }
 0x133   : > { %16636 = vst [vmem:[#allocation58_spill] sm:$0xff] %v12732_v37  ;;  %v2408_v37 = vshll.u32 %v2381_v6, 16  ;;  %v12751_v57 = vadd.f32 %v10340_v39, %v1901_v43  ;;  %v2428_v6 = vor.u32 %v2426_v30, %v12755_v38  ;;  %v2435_v17 = vshll.u32 %v2384_v61, 16 }
 0x134   : > { %v10342_v28 = vpop.f32.mrf.mxu1  ;;  %v12770_v60 = vor.u32 %v2400_v34, %v2399_v11  ;;  %v2430_v23 = vrot.slane %v12755_v38, 4  ;;  %v12796_v61 = vor.u32 %v2444_v8, %v12774_v16  ;;  %v12808_v38 = vld [vmem:[#allocation2 + $0x4] sm:$0xf]  ;;  %v2448_v36 = vrot.slane %v12774_v16, 4 }
 0x135   : > { %v12743_v48 = vpop.permute.xlu0 %4633  ;;  %16641 = vst [vmem:[#allocation61_spill] sm:$0xff] %v12751_v57  ;;  %v16411_v63 = vmax.f32 %v12751_v57, 0.0  ;;  %v2410_v27 = vor.u32 %v2408_v37, %v12746_v29  ;;  %v10343_v35 = vadd.f32 %v10342_v28, %v10341_v26  ;;  %v2459_v37 = vshrl.u32 %v12762_v32, 16 }
 0x136   : > { %16640 = vst [vmem:[#allocation60_spill] sm:$0xff] %v12743_v48  ;;  %v2403_v48 = vrot.slane %v2399_v11, 4  ;;  %v12767_v39 = vpop.permute.xlu1 %4118  ;;  %v2450_v11 = vshrl.u32 %v12765_v56, 16  ;;  %v1904_v26 = vadd.f32 %v10285_v53, %v12706_v18  ;;  %vm2511_vm3 = vcmp.ne.s16.totalorder %v12770_v60, 0 }
 0x137   : > { %16642 = vst [vmem:[#allocation62_spill] sm:$0xff] %v12767_v39  ;;  %v10231_v30 = vpack.c.bf16 %v16411_v63, %v2035_v2  ;;  %v12785_v2 = vsel %vm12223_vm8, %v2421_v41, %v2428_v6  ;;  %v10999_v39 = vld [vmem:[%s16303_s3 + $0x80] sm:$0xff]  }
 0x138   : > { %v12792_v14 = vsel %vm12223_vm8, %v2403_v48, %v2410_v27  ;;  %v12812_v6 = vadd.f32 %v10343_v35, %v1904_v26  ;;  %v12817_v27 = vrot.slane %v2459_v37, 7  ;;  %v12819_v40 = vrot.slane %v2450_v11, 7 }
 0x139   : > { %v12777_v46 = vpop.permute.xlu0 %4636  ;;  %10253 = vst [vmem:[#allocation2 + $0x8] sm:$0xff] %v10231_v30   ;;  %v2453_v30 = vshll.u32 %v12765_v56, 16  ;;  %v10986_v56 = vld [vmem:[%s16303_s3 + $0xf8] sm:$0xff]   ;;  %v2471_v11 = vshll.u32 %v12184_v33, 16 }
 0x13a   : > { %v10286_v0 = vpop.f32.mrf.mxu0  ;;  %16643 = vst [vmem:[#allocation63_spill] sm:$0xff] %v12777_v46  ;;  %16646 = vst [vmem:[#allocation64_spill] sm:$0xff] %v12812_v6  ;;  %v12814_v53 = vpop.permute.xlu1 %4639  ;;  %v16414_v41 = vmax.f32 %v12812_v6, 0.0  ;;  %v2466_v16 = vrot.slane %v12817_v27, 4 }
 0x13b   : > { %v10344_v54 = vpop.f32.mrf.mxu1  ;;  %16647 = vst [vmem:[#allocation65_spill] sm:$0xff] %v12814_v53  ;;  %v2455_v37 = vor.u32 %v2453_v30, %v12819_v40  ;;  %v2473_v30 = vor.u32 %v2471_v11, %v12206_v4 }
 0x13c   : > { %v10287_v50 = vpop.f32.mrf.mxu0 }
 0x13d   : > { %v10345_v22 = vpop.f32.mrf.mxu1  ;;  %v10288_v42 = vadd.f32 %v10287_v50, %v10286_v0  ;;  %v2462_v50 = vshll.u32 %v12762_v32, 16  ;;  %v12799_v0 = vld [vmem:[#allocation2] sm:$0xf]  ;;  %v2437_v32 = vor.u32 %v2435_v17, %v12779_v21  ;;  %v12831_v17 = vpop.permute.xlu0 %4994 }
 0x13e   : > { %v10289_v43 = vpop.f32.mrf.mxu0  ;;  %v10346_v8 = vadd.f32 %v10345_v22, %v10344_v54  ;;  %v2272_v35 = vsel %vm12804_vm9, %v12799_v0, 0  ;;  %16649 = vst [vmem:[#allocation67_spill] sm:$0xff] %v12831_v17  ;;  %vm3123_vm9 = vcmp.ne.s16.totalorder %v12334_v13, 0 }
 0x13f   : > { %v10347_v19 = vpop.f32.mrf.mxu1  ;;  %v1909_v48 = vadd.f32 %v10288_v42, %v12706_v18  ;;  %v2273_v42 = vsel %vm2260_vm5, %v12808_v38, 0  ;;  %v2464_v17 = vor.u32 %v2462_v50, %v12817_v27  ;;  %v12852_v55 = vsel %vm12223_vm8, %v2430_v23, %v2437_v32  ;;  %v12860_v50 = vpop.permute.xlu1 %4997  ;;  %v10988_v23 = vld [vmem:[%s16303_s3 + $0xf0] sm:$0xff]  }
 0x140   : > { %v10290_v12 = vpop.f32.mrf.mxu0  ;;  %16650 = vst [vmem:[#allocation68_spill] sm:$0xff] %v12860_v50  ;;  %v16651_v27 = vmov 0.0   ;;  %v2457_v32 = vrot.slane %v12819_v40, 4  ;;  %vm3435_vm5 = vcmp.eq.s32.totalorder %v12612_v51, 1  ;;  %v16764_v50 = vld [vmem:[#allocation34_spill] sm:$0xff] }
 0x141   : > { %v10348_v34 = vpop.f32.mrf.mxu1  ;;  %v10291_v54 = vadd.f32 %v10290_v12, %v10289_v43  ;;  %v12828_v22 = vadd.f32 %v10346_v8, %v1909_v48  ;;  %v9953_v12 = vcombine.low %v2272_v35, %v2273_v42  ;;  %v16653_v42 = vrot.slane %v12246_v49, 7  ;;  %v12890_v11 = vpop.permute.xlu0 %5000  ;;  %vm12982_vm2 = vmpackc.low %vm3435_vm5, %vm3435_vm5 }
 0x142   : > { %v10349_v57 = vadd.f32 %v10348_v34, %v10347_v19  ;;  %16659 = vst [vmem:[#allocation70_spill] sm:$0xff] %v12890_v11 }
 0x143   : > { %16648 = vst [vmem:[#allocation66_spill] sm:$0xff] %v12828_v22  ;;  %v16413_v8 = vmax.f32 %v12828_v22, 0.0  ;;  %10570 = vmatmul.mubr.bf16.vlgmr.msra.gmra.mxu1 %v9953_v12  ;;  %v1912_v35 = vadd.f32 %v10291_v54, %v12706_v18  ;;  %v12869_v54 = vld [vmem:[#allocation2] sm:$0xe]  ;;  %vm12873_vm14 = vcmp.ne.s16.totalorder %v16653_v42, 0  ;;  %v12894_v42 = vsel %vm12223_vm8, %v2448_v36, %v2455_v37  ;;  %v10989_v37 = vld [vmem:[%s16303_s3 + $0xe8] sm:$0xff]  }
 0x144   : > { %10573 = vmatprep.mubr.msk.bf16.mxu1 %vm16652_vm10, %v16651_v27  ;;  %10642 = vmatpush3.bf16.msra.mxu1 %v10986_v56 }
 0x145   : > { %v10292_v63 = vpop.f32.mrf.mxu0  ;;  %v10350_v28 = vpop.f32.mrf.mxu1  ;;  %v10236_v19 = vpack.c.bf16 %v16413_v8, %v16414_v41  ;;  %10643 = vmatprep.subr.bf16.mxu1 %v16651_v27  ;;  %v12888_v40 = vadd.f32 %v10349_v57, %v1912_v35  ;;  %v12905_v57 = vsel %vm2511_vm3, %v12799_v0, 0  ;;  %v3459_v0 = vsel %vm12883_vm11, 65537, %v16505_v20  ;;  %v2144_v35 = vld [vmem:[#allocation2 + $0x8] sm:$0xf] }
 0x146   : > { %vm3471_vm3 = vsmask.f32 3328  ;;  %vm3436_vm11 = vcmp.eq.s32.totalorder %v12615_v24, 1  ;;  %v3488_v60 = vshrl.u32 %v3459_v0, 16 }
 0x147   : > { %v10293_v43 = vpop.f32.mrf.mxu0  ;;  %v10351_v26 = vpop.f32.mrf.mxu1  ;;  %10254 = vst [vmem:[#allocation2 + $0x10] sm:$0xff] %v10236_v19   ;;  %16658 = vst [vmem:[#allocation69_spill] sm:$0xff] %v12888_v40  ;;  %v16669_v62 = vmax.f32 %v12888_v40, 0.0 }
 0x148   : > { %v10294_v48 = vadd.f32 %v10293_v43, %v10292_v63  ;;  %v3458_v63 = vsel %vm3445_vm0, 65537, %v16505_v20  ;;  %v10352_v56 = vadd.f32 %v10351_v26, %v10350_v28  ;;  %10644 = vmatpush3.bf16.msra.mxu1 %v10988_v23  ;;  %v12915_v26 = vsel %vm12223_vm8, %v2457_v32, %v2464_v17  ;;  %v2145_v17 = vld [vmem:[#allocation2 + $0xc] sm:$0xf]  ;;  %v12944_v32 = vpop.permute.xlu1 %5003  ;;  %vm13009_vm5 = vmpackc.low %vm3436_vm11, %vm3436_vm11 }
 0x149   : > { %v12848_v33 = vpop.f32.mrf.mxu1  ;;  %v10295_v34 = vpop.f32.mrf.mxu0  ;;  %v3475_v8 = vshll.u32 %v3458_v63, 16  ;;  %v3478_v41 = vshrl.u32 %v3458_v63, 16  ;;  %v12919_v63 = vsel %vm12223_vm8, %v2466_v16, %v2473_v30  ;;  %10645 = vmatprep.subr.bf16.mxu1 %v16651_v27  ;;  %16665 = vst [vmem:[#allocation72_spill] sm:$0xff] %v12944_v32  ;;  %vm2512_vm0 = vcmp.ne.s16.totalorder %v12792_v14, 0  ;;  %v16730_v32 = vld [vmem:[#allocation23_spill] sm:$0xff] }
 0x14a   : > { %v1917_v49 = vadd.f32 %v10294_v48, %v12706_v18  ;;  %v3484_v16 = vshll.u32 %v3459_v0, 16  ;;  %v13024_v24 = vsel %vm3123_vm9, %v2145_v17, 0  ;;  %vm3437_vm9 = vcmp.eq.s32.totalorder %v12619_v3, 1 }
 0x14b   : > { %v10354_v12 = vpop.f32.mrf.mxu1  ;;  %v10296_v28 = vpop.f32.mrf.mxu0  ;;  %v12954_v30 = vrot.slane %v3475_v8, 5  ;;  %v3480_v4 = vrot.slane %v3478_v41, 4  ;;  %v2274_v8 = vsel %vm12925_vm12, %v2144_v35, 0  ;;  %v2275_v41 = vsel %vm12950_vm4, %v2145_v17, 0  ;;  %vm13071_vm4 = vmor %vm3471_vm3, %vm3472_vm7 }
 0x14c   : > { %v12908_v36 = vadd.f32 %v10352_v56, %v1917_v49  ;;  %v10297_v49 = vadd.f32 %v10296_v28, %v10295_v34  ;;  %v16668_v56 = vrot.slane %v12746_v29, 4  ;;  %v12971_v34 = vpop.permute.xlu0 %5006  ;;  %10646 = vmatpush3.bf16.msra.mxu1 %v10989_v37  ;;  %v10991_v29 = vld [vmem:[%s16303_s3 + $0xe0] sm:$0xff]   ;;  %v10355_v28 = vadd.f32 %v10354_v12, %v12848_v33  ;;  %v13013_v58 = vpop.permute.xlu1 %5009 }
 0x14d   : > { %v12897_v7 = vpop.f32.mrf.mxu1  ;;  %16671 = vst [vmem:[#allocation73_spill] sm:$0xff] %v12971_v34  ;;  %10647 = vmatprep.subr.bf16.mxu1 %v16651_v27  ;;  %vm2514_vm12 = vcmp.ne.s16.totalorder %v12785_v2, 0  ;;  %v3481_v51 = vor.u32 %v3480_v4, %v12954_v30  ;;  %v9954_v52 = vcombine.low %v2274_v8, %v2275_v41  ;;  %v13001_v12 = vrot.slane %v3484_v16, 5  ;;  %16676 = vst [vmem:[#allocation74_spill] sm:$0xff] %v13013_v58  ;;  %v10993_v16 = vld [vmem:[%s16303_s3 + $0xd8] sm:$0xff]  }
 0x14e   : > { %16660 = vst [vmem:[#allocation71_spill] sm:$0xff] %v12908_v36  ;;  %v2420_v48 = vsel %vm12223_vm8, %v16668_v56, %v12753_v10  ;;  %v16670_v22 = vmax.f32 %v12908_v36, 0.0  ;;  %v3460_v10 = vsel %vm12937_vm6, 65537, %v16505_v20  ;;  %v1920_v5 = vadd.f32 %v10297_v49, %v12706_v18 }
 0x14f   : > { %v10357_v19 = vpop.f32.mrf.mxu1  ;;  %vm2513_vm13 = vcmp.ne.s16.totalorder %v2420_v48, 0  ;;  %v12996_v56 = vsel %vm3122_vm1, %v2144_v35, 0  ;;  %vm2250_vm6 = vcmp.eq.s32.totalorder %v12415_v15, 1  ;;  %v3494_v0 = vshll.u32 %v3460_v10, 16  ;;  %10574 = vmatmul.mubr.bf16.gmra.mxu1 %v9954_v52  ;;  %v10994_v52 = vld [vmem:[%s16303_s3 + $0xd0] sm:$0xff]  }
 0x150   : > { %v10241_v6 = vpack.c.bf16 %v16670_v22, %v16669_v62  ;;  %v3461_v62 = vsel %vm12982_vm2, 65537, %v16505_v20  ;;  %10648 = vmatpush3.bf16.msra.mxu1 %v10991_v29  ;;  %v1925_v49 = vadd.f32 %v12631_v45, %v12706_v18  ;;  %v13020_v8 = vadd.f32 %v10355_v28, %v1920_v5  ;;  %v13035_v28 = vpop.permute.xlu0 %5012  ;;  %10577 = vmatprep.mubr.msk.bf16.mxu1 %vm16652_vm10, %v16651_v27  ;;  %vm13093_vm2 = vmpackc.low %vm3437_vm9, %vm3437_vm9 }
 0x151   : > { %v12961_v23 = vpop.f32.mrf.mxu1  ;;  %v10358_v41 = vadd.f32 %v10357_v19, %v12897_v7  ;;  %10649 = vmatprep.subr.bf16.mxu1 %v16651_v27  ;;  %v3490_v29 = vrot.slane %v3488_v60, 4  ;;  %v2526_v22 = vsel %vm2513_vm13, %v2144_v35, 0  ;;  %v2527_v36 = vsel %vm2514_vm12, %v2145_v17, 0  ;;  %16678 = vst [vmem:[#allocation76_spill] sm:$0xff] %v13035_v28  ;;  %vm13128_vm12 = vmpackc.low %vm2250_vm6, %vm2250_vm6 }
 0x152   : > { %10255 = vst [vmem:[#allocation2 + $0x18] sm:$0xff] %v10241_v6   ;;  %v3498_v6 = vshrl.u32 %v3460_v10, 16  ;;  %16677 = vst [vmem:[#allocation75_spill] sm:$0xff] %v13020_v8  ;;  %v3504_v13 = vshll.u32 %v3461_v62, 16  ;;  %v3508_v7 = vshrl.u32 %v3461_v62, 16  ;;  %v3462_v19 = vsel %vm13009_vm5, 65537, %v16505_v20 }
 0x153   : > { %v12988_v37 = vpop.f32.mrf.mxu1  ;;  %v13042_v60 = vadd.f32 %v10358_v41, %v1925_v49  ;;  %v13046_v2 = vrot.slane %v3481_v51, 4  ;;  %vm3602_vm1 = vcmp.ne.s16.totalorder %v12954_v30, 0  ;;  %v13049_v35 = vrot.slane %v3494_v0, 5 }
 0x154   : > { %v16680_v17 = vrot.slane %v12779_v21, 4  ;;  %10650 = vmatpush3.bf16.msra.mxu1 %v10993_v16  ;;  %v16421_v51 = vmax.f32 %v13020_v8, 0.0  ;;  %v13063_v62 = vcombine.low %v2526_v22, %v2527_v36  ;;  %v3366_v21 = vld [vmem:[#allocation2] sm:$0x8]  ;;  %v3500_v16 = vrot.slane %v3498_v6, 4 }
 0x155   : > { %v12998_v33 = vpop.f32.mrf.mxu1  ;;  %16679 = vst [vmem:[#allocation77_spill] sm:$0xff] %v13042_v60  ;;  %10651 = vmatprep.subr.bf16.mxu1 %v16651_v27  ;;  %v3514_v49 = vshll.u32 %v3462_v19, 16  ;;  %v3518_v41 = vshrl.u32 %v3462_v19, 16  ;;  %v2525_v36 = vsel %vm2512_vm0, %v12808_v38, 0  ;;  %v3491_v22 = vor.u32 %v3490_v29, %v13001_v12  ;;  %v5525_v38 = vpop.permute.xlu0 %5524 }
 0x156   : > { %v13056_v5 = vsel %vm12223_vm8, %v16680_v17, %v12796_v61  ;;  %v13075_v17 = vpop.permute.xlu1 %5015  ;;  %v13081_v45 = vrot.slane %v3504_v13, 5  ;;  %v3510_v0 = vrot.slane %v3508_v7, 4  ;;  %v16684_v40 = vmax.f32 %v13042_v60, 0.0  ;;  %v13112_v7 = vld [vmem:[#allocation2 + $0x10] sm:$0xf] }
 0x157   : > { %v13027_v10 = vpop.f32.mrf.mxu1  ;;  %16683 = vst [vmem:[#allocation78_spill] sm:$0xff] %v13075_v17  ;;  %vm2251_vm3 = vcmp.eq.s32.totalorder %v12432_v31, 1  ;;  %vm16434_vm0 = vsmask.f32 7424  ;;  %vm2515_vm11 = vcmp.ne.s16.totalorder %v12852_v55, 0  ;;  %vm2516_vm7 = vcmp.ne.s16.totalorder %v13056_v5, 0 }
 0x158   : > { %v10246_v28 = vpack.c.bf16 %v16684_v40, %v16421_v51  ;;  %10652 = vmatpush3.bf16.msra.mxu1 %v10994_v52  ;;  %v10996_v40 = vld [vmem:[%s16303_s3 + $0xc8] sm:$0xff]   ;;  %v13104_v6 = vsel %vm3602_vm1, %v3366_v21, 0  ;;  %v9938_v29 = vcombine.low %v12905_v57, %v2525_v36  ;;  %v2596_v13 = vshll.u32 %v13063_v62, 16  ;;  %v13123_v51 = vld [vmem:[#allocation2 + $0x14] sm:$0xf]  ;;  %vm13143_vm5 = vmpackc.low %vm2251_vm3, %vm2251_vm3 }
 0x159   : > { %v13044_v48 = vpop.f32.mrf.mxu1  ;;  %10653 = vmatprep.subr.bf16.mxu1 %v16651_v27  ;;  %vm2252_vm13 = vcmp.eq.s32.totalorder %v12467_v44, 1  ;;  %v3501_v30 = vor.u32 %v3500_v16, %v13049_v35  ;;  %v13119_v52 = vrot.slane %v3514_v49, 5  ;;  %v3520_v21 = vrot.slane %v3518_v41, 4  ;;  %v16714_v44 = vld [vmem:[#allocation28_spill] sm:$0xff] }
 0x15a   : > { %10256 = vst [vmem:[#allocation2 + $0x20] sm:$0xff] %v10246_v28   ;;  %v10303_v28 = vadd.f32 %v12643_v59, %v12637_v47  ;;  %v13132_v36 = vrot.slane %v3491_v22, 4  ;;  %v3511_v3 = vor.u32 %v3510_v0, %v13081_v45  ;;  %v13138_v16 = vsel %vm13093_vm2, 65537, %v16505_v20  ;;  %v5528_v41 = vpop.permute.xlu1 %5527  ;;  %v16691_v22 = vld [vmem:[#allocation12_spill] sm:$0xff] }
 0x15b   : > { %v13066_v4 = vpop.f32.mrf.mxu1  ;;  %v2591_v49 = vshll.u32 %v9938_v29, 16  ;;  %vm3438_vm6 = vcmp.eq.s32.totalorder %v12621_v9, 1  ;;  %vm3439_vm1 = vcmp.eq.s32.totalorder %v12623_v1, 1  ;;  %v10361_v59 = vadd.f32 %v12988_v37, %v12961_v23  ;;  %v10997_v23 = vld [vmem:[%s16303_s3 + $0xc0] sm:$0xff]  }
 0x15c   : > { %v2276_v0 = vsel %vm13128_vm12, %v13112_v7, 0  ;;  %10654 = vmatpush3.bf16.msra.mxu1 %v10996_v40  ;;  %vm2253_vm9 = vcmp.eq.s32.totalorder %v16691_v22, 1  ;;  %v2589_v31 = vshrl.u32 %v9938_v29, 16  ;;  %v2277_v60 = vsel %vm13143_vm5, %v13123_v51, 0  ;;  %vm13177_vm3 = vmpackc.low %vm3438_vm6, %vm3438_vm6  ;;  %v10987_v22 = vld [vmem:[%s16303_s3 + $0xa8] sm:$0xff]  }
 0x15d   : > { %v13087_v58 = vpop.f32.mrf.mxu1  ;;  %v2593_v14 = vrot.slane %v2591_v49, 1  ;;  %10655 = vmatprep.subr.bf16.mxu1 %v16651_v27  ;;  %v3521_v57 = vor.u32 %v3520_v21, %v13119_v52  ;;  %v3524_v40 = vshll.u32 %v13138_v16, 16  ;;  %v1928_v29 = vadd.f32 %v10303_v28, %v12706_v18  ;;  %vm13187_vm2 = vmpackc.low %vm3439_vm1, %vm3439_vm1 }
 0x15e   : > { %v9955_v49 = vcombine.low %v2276_v0, %v2277_v60  ;;  %v13169_v8 = vrot.slane %v3501_v30, 4  ;;  %v13171_v15 = vrot.slane %v3511_v3, 4  ;;  %v3528_v17 = vshrl.u32 %v13138_v16, 16  ;;  %v10984_v60 = vld [vmem:[%s16303_s3 + $0xb8] sm:$0xff]   ;;  %v16697_v30 = vld [vmem:[#allocation37_spill] sm:$0xff] }
 0x15f   : > { %v13114_v19 = vpop.f32.mrf.mxu1  ;;  %v2594_v21 = vor.u32 %v2593_v14, %v2589_v31  ;;  %v1933_v9 = vadd.f32 %v16697_v30, %v12706_v18  ;;  %v13193_v28 = vadd.f32 %v10361_v59, %v1928_v29  ;;  %vm5562_vm12 = vcmp.eq.s32.totalorder %v5525_v38, 1  ;;  %v4967_v31 = vld [vmem:[#allocation2 + $0x8] sm:$0xf]  ;;  %v4968_v29 = vld [vmem:[#allocation2 + $0xc] sm:$0xf] }
 0x160   : > { %10578 = vmatmul.mubr.bf16.gmra.mxu1 %v9955_v49  ;;  %vm5563_vm5 = vcmp.eq.s32.totalorder %v5528_v41, 1  ;;  %v2528_v1 = vsel %vm2515_vm11, %v13112_v7, 0  ;;  %v2529_v0 = vsel %vm2516_vm7, %v13123_v51, 0  ;;  %vm13203_vm6 = vmpackc.low %vm5562_vm12, %vm5562_vm12  ;;  %v10364_v38 = vadd.f32 %v13027_v10, %v12998_v33  ;;  %v13220_v49 = vpop.permute.xlu1 %5021  ;;  %v16702_v10 = vld [vmem:[#allocation26_spill] sm:$0xff]  ;;  %v16706_v30 = vld [vmem:[#allocation36_spill] sm:$0xff] }
 0x161   : > { %v10371_v47 = vpop.f32.mrf.mxu1  ;;  %16698 = vst [vmem:[#allocation37_spill] sm:$0xff] %v13193_v28  ;;  %10581 = vmatprep.mubr.msk.bf16.mxu1 %vm16652_vm10, %v16651_v27  ;;  %10656 = vmatpush3.bf16.msra.mxu1 %v10997_v23  ;;  %v13211_v59 = vrot.slane %v3521_v57, 4  ;;  %v13213_v55 = vrot.slane %v3524_v40, 5  ;;  %v3464_v5 = vsel %vm13177_vm3, 65537, %v16505_v20  ;;  %v5588_v41 = vsel %vm13203_vm6, %v4967_v31, 0  ;;  %vm5576_vm11 = vmpackc.low %vm5563_vm5, %vm5563_vm5  ;;  %v10985_v40 = vld [vmem:[%s16303_s3 + $0xb0] sm:$0xff]  }
 0x162   : > { %v13155_v47 = vrot.slane %v2596_v13, 1  ;;  %v13167_v13 = vpop.permute.xlu0 %5018  ;;  %16701 = vst [vmem:[#allocation79_spill] sm:$0xff] %v13220_v49  ;;  %10729 = vmatprep.subr.bf16.mxu1 %v16651_v27  ;;  %v13226_v33 = vsel %vm13187_vm2, 65537, %v16505_v20  ;;  %vm3440_vm7 = vcmp.eq.s32.totalorder %v16702_v10, 1  ;;  %v5589_v23 = vsel %vm5576_vm11, %v4968_v29, 0  ;;  %vm13249_vm12 = vmpackc.low %vm2252_vm13, %vm2252_vm13 }
 0x163   : > { %v10372_v37 = vpop.f32.mrf.mxu1  ;;  %16692 = vst [vmem:[#allocation12_spill] sm:$0xff] %v13167_v13  ;;  %v13229_v57 = vadd.f32 %v10364_v38, %v1933_v9  ;;  %vm2517_vm3 = vcmp.ne.s16.totalorder %v12894_v42, 0  ;;  %vm2518_vm2 = vcmp.ne.s16.totalorder %v12915_v26, 0  ;;  %v13253_v14 = vrot.slane %v3528_v17, 4  ;;  %vm13268_vm13 = vmpackc.low %vm3440_vm7, %vm3440_vm7 }
 0x164   : > { %v2599_v16 = vsel %vm16434_vm0, %v2594_v21, %v13155_v47  ;;  %v16704_v37 = vld [vmem:[#allocation27_spill] sm:$0xff]  ;;  %v3534_v38 = vshll.u32 %v3464_v5, 16  ;;  %v2600_v29 = vshrl.u32 %v13063_v62, 16  ;;  %vm3442_vm6 = vcmp.eq.s32.totalorder %v16714_v44, 1  ;;  %vm13294_vm11 = vmpackc.low %vm2253_vm9, %vm2253_vm9  ;;  %v5534_v34 = vpop.permute.xlu1 %5533 }
 0x165   : > { %10526 = vmatmul.mubr.bf16.vlgmr.msra.gmra.mxu0 %v2599_v16  ;;  %16703 = vst [vmem:[#allocation26_spill] sm:$0xff] %v13229_v57  ;;  %vm3441_vm1 = vcmp.eq.s32.totalorder %v16704_v37, 1  ;;  %v16705_v21 = vld [vmem:[#allocation35_spill] sm:$0xff]  ;;  %v13239_v16 = vcombine.low %v5588_v41, %v5589_v23  ;;  %v16428_v41 = vmax.f32 %v13193_v28, 0.0  ;;  %v16715_v62 = vmax.f32 %v13229_v57, 0.0 }
 0x166   : > { %10598 = vmatpush3.bf16.msra.mxu0 %v10984_v60  ;;  %10529 = vmatprep.mubr.msk.bf16.mxu0 %vm16652_vm10, %v16651_v27  ;;  %v10309_v3 = vadd.f32 %v16706_v30, %v16705_v21  ;;  %v13242_v60 = vcombine.low %v2528_v1, %v2529_v0  ;;  %v5531_v9 = vpop.permute.xlu0 %5530  ;;  %v13274_v21 = vld [vmem:[#allocation2 + $0x18] sm:$0xf]  ;;  %v13276_v30 = vld [vmem:[#allocation2 + $0x1c] sm:$0xf]  ;;  %v3538_v0 = vshrl.u32 %v3464_v5, 16  ;;  %v3544_v1 = vshll.u32 %v13226_v33, 16  ;;  %vm13282_vm5 = vmpackc.low %vm3441_vm1, %vm3441_vm1 }
 0x167   : > { %16707 = vst [vmem:[#allocation27_spill] sm:$0xff] %v13239_v16  ;;  %10599 = vmatprep.subr.bf16.mxu0 %v16651_v27  ;;  %v10251_v16 = vpack.c.bf16 %v16715_v62, %v16428_v41  ;;  %v2602_v49 = vor.u32 %v2600_v29, %v13155_v47  ;;  %v10367_v28 = vadd.f32 %v13066_v4, %v13044_v48  ;;  %v3548_v62 = vshrl.u32 %v13226_v33, 16  ;;  %vm13336_vm1 = vmpackc.low %vm3442_vm6, %vm3442_vm6 }
 0x168   : > { %v2604_v23 = vshll.u32 %v13242_v60, 16  ;;  %v1936_v37 = vadd.f32 %v10309_v3, %v12706_v18  ;;  %v3466_v47 = vsel %vm13268_vm13, 65537, %v16505_v20  ;;  %v2278_v48 = vsel %vm13249_vm12, %v13274_v21, 0  ;;  %v16719_v3 = vld [vmem:[#allocation21_spill] sm:$0xff] }
 0x169   : > { %10257 = vst [vmem:[#allocation2 + $0x28] sm:$0xff] %v10251_v16   ;;  %v2279_v4 = vsel %vm13294_vm11, %v13276_v30, 0  ;;  %vm2255_vm7 = vcmp.eq.s32.totalorder %v16719_v3, 1  ;;  %v13320_v29 = vrot.slane %v3534_v38, 5  ;;  %v3467_v33 = vsel %vm13282_vm5, 65537, %v16505_v20  ;;  %v10992_v38 = vld [vmem:[%s16303_s3 + $0x98] sm:$0xff]  }
 0x16a   : > { %10600 = vmatpush3.bf16.msra.mxu0 %v10985_v40  ;;  %v13300_v13 = vrot.slane %v2604_v23, 1  ;;  %v16718_v40 = vld [vmem:[#allocation19_spill] sm:$0xff]  ;;  %v2024_v16 = vadd.f32 %v10367_v28, %v1936_v37  ;;  %v13327_v23 = vpop.permute.xlu0 %5024  ;;  %v13329_v31 = vrot.slane %v3538_v0, 4  ;;  %v13331_v41 = vrot.slane %v3544_v1, 5  ;;  %v4969_v1 = vld [vmem:[#allocation2 + $0x10] sm:$0xf] }
 0x16b   : > { %10601 = vmatprep.subr.bf16.mxu0 %v16651_v27  ;;  %vm2254_vm9 = vcmp.eq.s32.totalorder %v16718_v40, 1  ;;  %16720 = vst [vmem:[#allocation35_spill] sm:$0xff] %v13327_v23  ;;  %v9956_v10 = vcombine.low %v2278_v48, %v2279_v4  ;;  %vm5564_vm12 = vcmp.eq.s32.totalorder %v5531_v9, 1  ;;  %v3558_v0 = vshrl.u32 %v3466_v47, 16  ;;  %v10990_v9 = vld [vmem:[%s16303_s3 + $0xa0] sm:$0xff]   ;;  %v16726_v4 = vld [vmem:[#allocation29_spill] sm:$0xff] }
 0x16c   : > { %v2607_v17 = vsel %vm16434_vm0, %v2602_v49, %v13300_v13  ;;  %v3554_v49 = vshll.u32 %v3466_v47, 16  ;;  %v13344_v5 = vmax.f32 %v2024_v16, 0.0  ;;  %vm13346_vm13 = vmpackc.low %vm5564_vm12, %vm5564_vm12  ;;  %v3564_v37 = vshll.u32 %v3467_v33, 16  ;;  %v4970_v16 = vld [vmem:[#allocation2 + $0x14] sm:$0xf] }
 0x16d   : > { %10530 = vmatmul.mubr.bf16.gmra.mxu0 %v2607_v17  ;;  %v3568_v48 = vshrl.u32 %v3467_v33, 16  ;;  %10582 = vmatmul.mubr.bf16.gmra.mxu1 %v9956_v10  ;;  %v5590_v47 = vsel %vm13346_vm13, %v4969_v1, 0  ;;  %vm5565_vm5 = vcmp.eq.s32.totalorder %v5534_v34, 1  ;;  %vm3443_vm6 = vcmp.eq.s32.totalorder %v16726_v4, 1  ;;  %v13367_v10 = vpop.permute.xlu1 %5027  ;;  %v16728_v1 = vld [vmem:[#allocation48_spill] sm:$0xff] }
 0x16e   : > { %16723 = vst [vmem:[#allocation36_spill] sm:$0xff] %v13344_v5  ;;  %10602 = vmatpush3.bf16.msra.mxu0 %v10987_v22  ;;  %10533 = vmatprep.mubr.msk.bf16.mxu0 %vm16652_vm10, %v16651_v27  ;;  %v10226_v22 = vpack.c.bf16 %v13344_v5, %v13344_v5  ;;  %v2530_v17 = vsel %vm2517_vm3, %v13274_v21, 0  ;;  %v2531_v33 = vsel %vm2518_vm2, %v13276_v30, 0  ;;  %vm5578_vm11 = vmpackc.low %vm5565_vm5, %vm5565_vm5  ;;  %v3468_v34 = vsel %vm13336_vm1, 65537, %v16505_v20  ;;  %v5537_v23 = vpop.permute.xlu0 %5536  ;;  %v13404_v4 = vld [vmem:[#allocation2 + $0x20] sm:$0xf] }
 0x16f   : > { %10603 = vmatprep.subr.bf16.mxu0 %v16651_v27  ;;  %16727 = vst [vmem:[#allocation28_spill] sm:$0xff] %v13367_v10  ;;  %10585 = vmatprep.mubr.msk.bf16.mxu1 %vm16652_vm10, %v16651_v27  ;;  %v1941_v44 = vadd.f32 %v16728_v1, %v12706_v18  ;;  %v5591_v42 = vsel %vm5578_vm11, %v4970_v16, 0  ;;  %v10370_v28 = vadd.f32 %v13114_v19, %v13087_v58  ;;  %v3550_v26 = vrot.slane %v3548_v62, 4  ;;  %vm13393_vm2 = vmpackc.low %vm3443_vm6, %vm3443_vm6 }
 0x170   : > { %v13378_v5 = vrot.slane %v3554_v49, 5  ;;  %v3560_v57 = vrot.slane %v3558_v0, 4  ;;  %2114 = vst [vmem:[#allocation2 + $0x30] sm:$0xf] %v10226_v22  ;;  %v13380_v10 = vcombine.low %v5590_v47, %v5591_v42  ;;  %vm2256_vm3 = vcmp.eq.s32.totalorder %v16730_v32, 1  ;;  %v16733_v0 = vld [vmem:[#allocation10_spill] sm:$0xff]  ;;  %vm13414_vm5 = vmpackc.low %vm2254_vm9, %vm2254_vm9 }
 0x171   : > { %v3531_v18 = vor.u32 %v13253_v14, %v13213_v55  ;;  %v3541_v58 = vor.u32 %v13329_v31, %v13320_v29  ;;  %v2029_v62 = vadd.f32 %v10370_v28, %v1941_v44  ;;  %v13397_v49 = vcombine.low %v2530_v17, %v2531_v33  ;;  %16734 = vst [vmem:[#allocation21_spill] sm:$0xff] %v13404_v4  ;;  %v16735_v22 = vld [vmem:[#allocation30_spill] sm:$0xff]  ;;  %v13409_v33 = vld [vmem:[#allocation2 + $0x24] sm:$0xf]  ;;  %v16740_v44 = vld [vmem:[#allocation31_spill] sm:$0xff]  ;;  %v5540_v42 = vpop.permute.xlu1 %5539 }
 0x172   : > { %16729 = vst [vmem:[#allocation19_spill] sm:$0xff] %v13380_v10  ;;  %10604 = vmatpush3.bf16.msra.mxu0 %v10990_v9  ;;  %vm2519_vm1 = vcmp.ne.s16.totalorder %v12919_v63, 0  ;;  %vm2520_vm12 = vcmp.ne.s16.totalorder %v16733_v0, 0  ;;  %v13402_v14 = vrot.slane %v3564_v37, 5  ;;  %v3570_v9 = vrot.slane %v3568_v48, 4  ;;  %16736 = vst [vmem:[#allocation29_spill] sm:$0xff] %v13409_v33 }
 0x173   : > { %10605 = vmatprep.subr.bf16.mxu0 %v16651_v27  ;;  %v3574_v31 = vshll.u32 %v3468_v34, 16  ;;  %v3578_v47 = vshrl.u32 %v3468_v34, 16  ;;  %vm3444_vm13 = vcmp.eq.s32.totalorder %v16735_v22, 1  ;;  %v2046_v16 = vmax.f32 %v2029_v62, 0.0  ;;  %v16739_v48 = vld [vmem:[#allocation24_spill] sm:$0xff]  ;;  %vm13428_vm9 = vmpackc.low %vm2255_vm7, %vm2255_vm7 }
 0x174   : > { %v2608_v28 = vshrl.u32 %v13242_v60, 16  ;;  %v2612_v17 = vshll.u32 %v13397_v49, 16  ;;  %vm2257_vm6 = vcmp.eq.s32.totalorder %v16739_v48, 1  ;;  %v3551_v34 = vor.u32 %v3550_v26, %v13331_v41  ;;  %vm13449_vm7 = vmpackc.low %vm3444_vm13, %vm3444_vm13 }
 0x175   : > { %v3561_v1 = vor.u32 %v3560_v57, %v13378_v5  ;;  %v3469_v60 = vsel %vm13393_vm2, 65537, %v16505_v20  ;;  %vm4120_vm11 = vcmp.eq.s32.totalorder %v16740_v44, 1  ;;  %v13432_v62 = vpack.c.bf16 %v2046_v16, %v2046_v16 }
 0x176   : > { %10606 = vmatpush3.bf16.msra.mxu0 %v10992_v38  ;;  %v2610_v26 = vor.u32 %v2608_v28, %v13300_v13  ;;  %v13435_v57 = vrot.slane %v2612_v17, 1  ;;  %v2280_v19 = vsel %vm13414_vm5, %v13404_v4, 0  ;;  %v3571_v38 = vor.u32 %v3570_v9, %v13402_v14  ;;  %v13456_v28 = vpop.permute.xlu0 %5030  ;;  %v10995_v9 = vld [vmem:[%s16303_s3 + $0x90] sm:$0xff]   ;;  %vm13479_vm2 = vmpackc.low %vm4120_vm11, %vm4120_vm11 }
 0x177   : > { %16743 = vst [vmem:[#allocation48_spill] sm:$0xff] %v13432_v62  ;;  %10607 = vmatprep.subr.bf16.mxu0 %v16651_v27  ;;  %v13442_v3 = vrot.slane %v3574_v31, 5  ;;  %v13444_v10 = vrot.slane %v3578_v47, 4  ;;  %v2281_v13 = vsel %vm13428_vm9, %v13409_v33, 0  ;;  %16747 = vst [vmem:[#allocation10_spill] sm:$0xff] %v13456_v28  ;;  %v13465_v47 = vrot.slane %v3531_v18, 4 }
 0x178   : > { %2115 = vst [vmem:[#allocation2 + $0x34] sm:$0x1] %v13432_v62  ;;  %v2615_v22 = vsel %vm16434_vm0, %v2610_v26, %v13435_v57  ;;  %v9957_v17 = vcombine.low %v2280_v19, %v2281_v13  ;;  %v13470_v37 = vrot.slane %v3541_v58, 4  ;;  %v13472_v40 = vrot.slane %v3551_v34, 4  ;;  %v4971_v34 = vld [vmem:[#allocation2 + $0x18] sm:$0xf]  ;;  %v5543_v13 = vpop.permute.xlu1 %5542  ;;  %vm13525_vm0 = vmpackc.low %vm2256_vm3, %vm2256_vm3 }
 0x179   : > { %16744 = vst [vmem:[#allocation23_spill] sm:$0xff] %v13442_v3  ;;  %v13474_v28 = vrot.slane %v3561_v1, 4  ;;  %10534 = vmatmul.mubr.bf16.gmra.mxu0 %v2615_v22  ;;  %vm5566_vm13 = vcmp.eq.s32.totalorder %v5537_v23, 1  ;;  %v3584_v18 = vshll.u32 %v3469_v60, 16  ;;  %v3588_v31 = vshrl.u32 %v3469_v60, 16  ;;  %v16753_v60 = vld [vmem:[#allocation32_spill] sm:$0xff] }
 0x17a   : > { %v13486_v58 = vsel %vm13449_vm7, 65537, %v16505_v20  ;;  %10586 = vmatmul.mubr.bf16.gmra.mxu1 %v9957_v17  ;;  %vm13488_vm5 = vmpackc.low %vm5566_vm13, %vm5566_vm13  ;;  %vm5567_vm9 = vcmp.eq.s32.totalorder %v5540_v42, 1  ;;  %10537 = vmatprep.mubr.msk.bf16.mxu0 %vm16652_vm10, %v16651_v27  ;;  %v13494_v44 = vrot.slane %v3571_v38, 4  ;;  %v3581_v23 = vor.u32 %v13444_v10, %v13442_v3  ;;  %v4972_v19 = vld [vmem:[#allocation2 + $0x1c] sm:$0xf]  ;;  %v10998_v42 = vld [vmem:[%s16303_s3 + $0x88] sm:$0xff]   ;;  %v5546_v16 = vpop.permute.xlu0 %5545 }
 0x17b   : > { %16750 = vst [vmem:[#allocation30_spill] sm:$0xff] %v13486_v58  ;;  %vm4121_vm11 = vcmp.eq.s32.totalorder %v16753_v60, 1  ;;  %v5592_v26 = vsel %vm13488_vm5, %v4971_v34, 0  ;;  %vm13501_vm7 = vmpackc.low %vm5567_vm9, %vm5567_vm9  ;;  %10589 = vmatprep.mubr.msk.bf16.mxu1 %vm16652_vm10, %v16651_v27  ;;  %10608 = vmatpush3.bf16.msra.mxu0 %v10995_v9  ;;  %v16756_v10 = vld [vmem:[#allocation33_spill] sm:$0xff]  ;;  %v2532_v38 = vsel %vm2519_vm1, %v13404_v4, 0  ;;  %v2533_v22 = vsel %vm2520_vm12, %v13409_v33, 0 }
 0x17c   : > { %vm4122_vm13 = vcmp.eq.s32.totalorder %v16756_v10, 1  ;;  %v5593_v17 = vsel %vm13501_vm7, %v4972_v19, 0  ;;  %10609 = vmatprep.subr.bf16.mxu0 %v16651_v27  ;;  %v16757_v9 = vld [vmem:[#allocation11_spill] sm:$0xff]  ;;  %v16758_v34 = vld [vmem:[#allocation9_spill] sm:$0xff]  ;;  %v13540_v19 = vsel %vm13479_vm2, 65537, %v16505_v20  ;;  %v13548_v11 = vrot.slane %v3584_v18, 5  ;;  %vm13553_vm3 = vmpackc.low %vm4121_vm11, %vm4121_vm11 }
 0x17d   : > { %vm2521_vm5 = vcmp.ne.s16.totalorder %v16757_v9, 0  ;;  %vm2522_vm9 = vcmp.ne.s16.totalorder %v16758_v34, 0  ;;  %v13542_v32 = vcombine.low %v5592_v26, %v5593_v17  ;;  %v3590_v63 = vrot.slane %v3588_v31, 4  ;;  %v13558_v26 = vld [vmem:[#allocation2 + $0x28] sm:$0xf]  ;;  %v16765_v17 = vld [vmem:[#allocation25_spill] sm:$0xff]  ;;  %vm13569_vm2 = vmpackc.low %vm4122_vm13, %vm4122_vm13 }
 0x17e   : > { %vm4123_vm1 = vcmp.eq.s32.totalorder %v16764_v50, 1  ;;  %vm2258_vm12 = vcmp.eq.s32.totalorder %v16765_v17, 1  ;;  %v3594_v31 = vshll.u32 %v13486_v58, 16  ;;  %vm5568_vm11 = vcmp.eq.s32.totalorder %v5543_v13, 1  ;;  %vm13583_vm7 = vmpackc.low %vm2257_vm6, %vm2257_vm6  ;;  %v5552_v60 = vpop.permute.xlu0 %5551  ;;  %v4973_v3 = vld [vmem:[#allocation2 + $0x20] sm:$0xf] }
 0x17f   : > { %16761 = vst [vmem:[#allocation24_spill] sm:$0xff] %v13542_v32  ;;  %v13573_v62 = vcombine.low %v2532_v38, %v2533_v22  ;;  %v13575_v32 = vld [vmem:[#allocation2 + $0x2c] sm:$0xf]  ;;  %10610 = vmatpush3.bf16.msra.mxu0 %v10998_v42  ;;  %v13591_v22 = vrot.slane %v3581_v23, 4  ;;  %v4160_v18 = vshrl.u32 %v13540_v19, 16  ;;  %vm13600_vm6 = vmpackc.low %vm4123_vm1, %vm4123_vm1  ;;  %v2616_v46 = vshrl.u32 %v13397_v49, 16  ;;  %v5549_v38 = vpop.permute.xlu1 %5548 }
 0x180   : > { %10611 = vmatprep.subr.bf16.mxu0 %v16651_v27  ;;  %v2282_v42 = vsel %vm13525_vm0, %v13558_v26, 0  ;;  %v3591_v58 = vor.u32 %v3590_v63, %v13548_v11  ;;  %v13613_v50 = vsel %vm13553_vm3, 65537, %v16505_v20  ;;  %v13618_v48 = vsel %vm13569_vm2, 65537, %v16505_v20  ;;  %vm13622_vm13 = vmpackc.low %vm5568_vm11, %vm5568_vm11  ;;  %v4976_v49 = vld [vmem:[#allocation2 + $0x2c] sm:$0xf] }
 0x181   : > { %v2620_v23 = vshll.u32 %v13573_v62, 16  ;;  %v2283_v1 = vsel %vm13583_vm7, %v13575_v32, 0  ;;  %v13629_v63 = vrot.slane %v3594_v31, 5  ;;  %v2618_v0 = vor.u32 %v2616_v46, %v13435_v57 }
 0x182   : > { %v9958_v33 = vcombine.low %v2282_v42, %v2283_v1  ;;  %v13634_v4 = vrot.slane %v4160_v18, 7  ;;  %v13639_v13 = vsel %vm13600_vm6, 65537, %v16505_v20  ;;  %vm5569_vm0 = vcmp.eq.s32.totalorder %v5546_v16, 1  ;;  %v4974_v18 = vld [vmem:[#allocation2 + $0x24] sm:$0xf] }
 0x183   : > { %v13632_v25 = vrot.slane %v2620_v23, 1  ;;  %10612 = vmatpush3.bf16.msra.mxu0 %v10999_v39  ;;  %vm5570_vm3 = vcmp.eq.s32.totalorder %v5549_v38, 1  ;;  %v4168_v31 = vshrl.u32 %v13613_v50, 16  ;;  %v4177_v46 = vshrl.u32 %v13618_v48, 16  ;;  %vm5582_vm2 = vmpackc.low %vm5569_vm0, %vm5569_vm0  ;;  %v4975_v23 = vld [vmem:[#allocation2 + $0x28] sm:$0xf]  ;;  %v5555_v1 = vpop.permute.xlu1 %5554 }
 0x184   : > { %10685 = vmatprep.subr.bf16.mxu0 %v16651_v27  ;;  %v5594_v57 = vsel %vm13622_vm13, %v4973_v3, 0  ;;  %vm16774_vm1 = vsmask.f32 7424  ;;  %10590 = vmatmul.mubr.bf16.gmra.mxu1 %v9958_v33  ;;  %v16775_v53 = vsel %vm13071_vm4, %v13046_v2, %v13001_v12  ;;  %v2534_v3 = vsel %vm2521_vm5, %v13558_v26, 0  ;;  %vm13663_vm7 = vmpackc.low %vm5570_vm3, %vm5570_vm3  ;;  %v16780_v12 = vld [vmem:[#allocation14_spill] sm:$0xff] }
 0x185   : > { %v2623_v39 = vsel %vm16774_vm1, %v2618_v0, %v13632_v25  ;;  %vm13653_vm11 = vcmp.ne.s16.totalorder %v16775_v53, 0  ;;  %v2535_v33 = vsel %vm2522_vm9, %v13575_v32, 0  ;;  %v5595_v10 = vsel %vm5582_vm2, %v4974_v18, 0  ;;  %10593 = vmatprep.mubr.msk.bf16.mxu1 %vm16652_vm10, %v16651_v27  ;;  %v2154_v18 = vld [vmem:[#allocation2 + $0x30] sm:$0x1]  ;;  %vm2271_vm2 = vmpackc.low %vm2258_vm12, %vm2258_vm12 }
 0x186   : > { %10538 = vmatmul.mubr.bf16.gmra.mxu0 %v2623_v39  ;;  %vm5571_vm6 = vcmp.eq.s32.totalorder %v5552_v60, 1  ;;  %v13674_v9 = vrot.slane %v3591_v58, 4  ;;  %v4186_v34 = vshrl.u32 %v13639_v13, 16  ;;  %v13677_v42 = vcombine.low %v5594_v57, %v5595_v10  ;;  %v16782_v60 = vld [vmem:[#allocation38_spill] sm:$0xff]  ;;  %v16783_v57 = vld [vmem:[#allocation41_spill] sm:$0xff] }
 0x187   : > { %10541 = vmatprep.mubr.msk.bf16.mxu0 %vm16652_vm10, %v16651_v27  ;;  %vm5584_vm5 = vmpackc.low %vm5571_vm6, %vm5571_vm6  ;;  %v4171_v0 = vshll.u32 %v13613_v50, 16  ;;  %vm4124_vm9 = vcmp.eq.s32.totalorder %v16782_v60, 1  ;;  %v5596_v39 = vsel %vm13663_vm7, %v4975_v23, 0  ;;  %v13685_v53 = vrot.slane %v4168_v31, 7  ;;  %v5558_v23 = vpop.permute.xlu0 %5557 }
 0x188   : > { %16781 = vst [vmem:[#allocation31_spill] sm:$0xff] %v13677_v42  ;;  %v5597_v58 = vsel %vm5584_vm5, %v4976_v49, 0  ;;  %vm4125_vm0 = vcmp.eq.s32.totalorder %v16783_v57, 1  ;;  %v13690_v2 = vcombine.low %v2534_v3, %v2535_v33  ;;  %v16785_v50 = vsel %vm13071_vm4, %v13132_v36, %v13049_v35  ;;  %vm13722_vm6 = vmpackc.low %vm4124_vm9, %vm4124_vm9  ;;  %v16824_v49 = vld [vmem:[#allocation50_spill] sm:$0xff]  ;;  %v16825_v42 = vld [vmem:[#allocation4_spill] sm:$0xff] }
 0x189   : > { %v13688_v10 = vcombine.low %v5596_v39, %v5597_v58  ;;  %vm13697_vm3 = vcmp.ne.s16.totalorder %v16785_v50, 0  ;;  %v16788_v31 = vsel %vm13071_vm4, %v13169_v8, %v13081_v45  ;;  %v13713_v3 = vrot.slane %v4177_v46, 7  ;;  %vm13741_vm12 = vmpackc.low %vm4125_vm0, %vm4125_vm0  ;;  %v4977_v8 = vld [vmem:[#allocation2 + $0x30] sm:$0xf]  ;;  %v13811_v50 = vld [vmem:[#allocation2 + $0xc] sm:$0xf] }
 0x18a   : > { %vm13706_vm1 = vcmp.ne.s16.totalorder %v16788_v31, 0  ;;  %v4180_v35 = vshll.u32 %v13618_v48, 16  ;;  %v4189_v36 = vshll.u32 %v13639_v13, 16  ;;  %vm5572_vm7 = vcmp.eq.s32.totalorder %v5555_v1, 1 }
 0x18b   : > { %16784 = vst [vmem:[#allocation32_spill] sm:$0xff] %v13688_v10  ;;  %v13717_v33 = vrot.slane %v4186_v34, 7  ;;  %v2624_v45 = vshrl.u32 %v13573_v62, 16  ;;  %v2628_v17 = vshll.u32 %v13690_v2, 16  ;;  %v2284_v46 = vsel %vm2271_vm2, %v2154_v18, 0  ;;  %vm13767_vm0 = vmpackc.low %vm5572_vm7, %vm5572_vm7 }
 0x18c   : > { %v16794_v13 = vshll.u32 %v13540_v19, 16  ;;  %v9959_v60 = vcombine.low %v2284_v46, %v2284_v46  ;;  %v16797_v39 = vsel %vm13071_vm4, %v13171_v15, %v13119_v52  ;;  %v16800_v19 = vsel %vm13071_vm4, %v13211_v59, %v13213_v55  ;;  %v13772_v46 = vld [vmem:[#allocation2 + $0x30] sm:$0x3] }
 0x18d   : > { %16791 = vst [vmem:[#allocation33_spill] sm:$0xff] %v13717_v33  ;;  %vm13750_vm5 = vcmp.ne.s16.totalorder %v16797_v39, 0  ;;  %vm13759_vm9 = vcmp.ne.s16.totalorder %v16800_v19, 0  ;;  %v2626_v15 = vor.u32 %v2624_v45, %v13632_v25  ;;  %v2630_v31 = vrot.slane %v2628_v17, 1  ;;  %v13787_v39 = vld [vmem:[#allocation2 + $0x8] sm:$0xf] }
 0x18e   : > { %v13735_v34 = vor.u32 %v16794_v13, %v13634_v4  ;;  %v13775_v59 = vor.u32 %v4171_v0, %v13685_v53  ;;  %v13778_v55 = vor.u32 %v4180_v35, %v13713_v3  ;;  %v13783_v1 = vsel %vm13722_vm6, 65537, %v16505_v20  ;;  %10594 = vmatmul.mubr.bf16.gmra.mxu1 %v9959_v60  ;;  %v13785_v13 = vld [vmem:[#allocation2 + $0x4] sm:$0xf]  ;;  %v16806_v25 = vld [vmem:[#allocation13_spill] sm:$0xff] }
 0x18f   : > { %vm5573_vm2 = vcmp.eq.s32.totalorder %v5558_v23, 1  ;;  %16805 = vst [vmem:[#allocation11_spill] sm:$0xff] %v13785_v13  ;;  %vm3121_vm7 = vcmp.ne.s16.totalorder %v16806_v25, 0  ;;  %v13791_v45 = vor.u32 %v4189_v36, %v13717_v33  ;;  %v13797_v35 = vsel %vm13741_vm12, 65537, %v16505_v20  ;;  %v4978_v23 = vld [vmem:[#allocation2 + $0x34] sm:$0xf]  ;;  %10657 = vmatprep.mubr.msk.bf16.mxu1 %vm16652_vm10, %v16651_v27 }
 0x190   : > { %vm16807_vm6 = vsmask.f32 7424  ;;  %vm5586_vm13 = vmpackc.low %vm5573_vm2, %vm5573_vm2  ;;  %v16808_v60 = vld [vmem:[#allocation40_spill] sm:$0xff]  ;;  %v5598_v36 = vsel %vm13767_vm0, %v4977_v8, 0  ;;  %vm16810_vm12 = vcmp.ne.s16.totalorder %v16780_v12, 0  ;;  %v2632_v16 = vshrl.u32 %v13690_v2, 16 }
 0x191   : > { %v2631_v17 = vsel %vm16807_vm6, %v2626_v15, %v2630_v31  ;;  %v16809_v19 = vrot.slane %v16808_v60, 5  ;;  %v5599_v0 = vsel %vm5586_vm13, %v4978_v23, 0  ;;  %v2536_v62 = vsel %vm16810_vm12, %v13772_v46, 0  ;;  %v16815_v23 = vld [vmem:[#allocation15_spill] sm:$0xff] }
 0x192   : > { %10542 = vmatmul.mubr.bf16.gmra.mxu0 %v2631_v17  ;;  %v16811_v15 = vsel %vm13071_vm4, %v13465_v47, %v13320_v29  ;;  %v13823_v8 = vcombine.low %v5598_v36, %v5599_v0  ;;  %v13827_v12 = vcombine.low %v2536_v62, %v2536_v62  ;;  %v3617_v17 = vsel %vm13653_vm11, %v13785_v13, 0  ;;  %v16816_v29 = vld [vmem:[#allocation16_spill] sm:$0xff]  ;;  %v16820_v62 = vld [vmem:[#allocation42_spill] sm:$0xff]  ;;  %v16823_v36 = vld [vmem:[#allocation45_spill] sm:$0xff] }
 0x193   : > { %v13804_v48 = vrot.slane %v16809_v19, 4  ;;  %vm13818_vm2 = vcmp.ne.s16.totalorder %v16811_v15, 0  ;;  %10545 = vmatprep.mubr.msk.bf16.mxu0 %vm16652_vm10, %v16651_v27  ;;  %v16817_v47 = vsel %vm13071_vm4, %v13470_v37, %v13331_v41  ;;  %v13847_v15 = vld [vmem:[#allocation2 + $0x10] sm:$0xf]  ;;  %v3618_v41 = vsel %vm13697_vm3, %v13787_v39, 0 }
 0x194   : > { %16814 = vst [vmem:[#allocation9_spill] sm:$0xff] %v13823_v8  ;;  %vm13839_vm6 = vcmp.ne.s16.totalorder %v16817_v47, 0  ;;  %16821 = vst [vmem:[#allocation34_spill] sm:$0xff] %v13847_v15  ;;  %v2636_v57 = vshll.u32 %v13827_v12, 16  ;;  %v3619_v37 = vsel %vm13706_vm1, %v13811_v50, 0  ;;  %v10016_v47 = vcombine.low %v13104_v6, %v3617_v17  ;;  %v16826_v13 = vld [vmem:[#allocation5_spill] sm:$0xff] }
 0x195   : > { %v13857_v19 = vld [vmem:[#allocation2 + $0x14] sm:$0xf]  ;;  %vm4645_vm11 = vcmp.eq.s32.totalorder %v16823_v36, 1  ;;  %vm4646_vm0 = vcmp.eq.s32.totalorder %v16824_v49, 1  ;;  %v2634_v2 = vor.u32 %v2632_v16, %v2630_v31  ;;  %v10017_v52 = vcombine.low %v3618_v41, %v3619_v37  ;;  %v14239_v0 = vld [vmem:[#allocation2 + $0x30] sm:$0xf] }
 0x196   : > { %16822 = vst [vmem:[#allocation25_spill] sm:$0xff] %v13857_v19  ;;  %v2638_v8 = vrot.slane %v2636_v57, 1  ;;  %vm3682_vm13 = vsmask.f32 4352  ;;  %v3684_v10 = vshrl.u32 %v10016_v47, 16  ;;  %v3687_v33 = vshll.u32 %v10016_v47, 16 }
 0x197   : > { %v16827_v6 = vsel %vm13071_vm4, %v13472_v40, %v13378_v5  ;;  %v3692_v17 = vshrl.u32 %v10017_v52, 16  ;;  %v3695_v31 = vshll.u32 %v10017_v52, 16  ;;  %v3620_v57 = vsel %vm13750_vm5, %v13847_v15, 0  ;;  %v13889_v47 = vld [vmem:[#allocation2 + $0x18] sm:$0xf]  ;;  %v11005_v5 = vld [vmem:[%s16303_s3 + $0x168] sm:$0xff]  }
 0x198   : > { %vm13868_vm1 = vcmp.ne.s16.totalorder %v16827_v6, 0  ;;  %v3621_v16 = vsel %vm13759_vm9, %v13857_v19, 0  ;;  %v16830_v41 = vsel %vm13071_vm4, %v13474_v28, %v13402_v14  ;;  %vm16833_vm3 = vsmask.f32 7424  ;;  %v11182_v15 = vld [vmem:[#allocation2 + $0x4] sm:$0xf] }
 0x199   : > { %vm13883_vm12 = vcmp.ne.s16.totalorder %v16830_v41, 0  ;;  %v2639_v40 = vsel %vm16833_vm3, %v2634_v2, %v2638_v8  ;;  %v3686_v52 = vrot.slane %v3684_v10, 3  ;;  %v3689_v37 = vrot.slane %v3687_v33, 4  ;;  %v13893_v28 = vld [vmem:[#allocation2 + $0x1c] sm:$0xf] }
 0x19a   : > { %v2640_v58 = vshrl.u32 %v13827_v12, 16  ;;  %10546 = vmatmul.mubr.bf16.gmra.mxu0 %v2639_v40  ;;  %v3694_v18 = vrot.slane %v3692_v17, 3  ;;  %v3697_v6 = vrot.slane %v3695_v31, 4  ;;  %v10018_v19 = vcombine.low %v3620_v57, %v3621_v16  ;;  %v16834_v41 = vld [vmem:[#allocation3_spill] sm:$0xff]  ;;  %v16847_v40 = vld [vmem:[#allocation18_spill] sm:$0xff] }
 0x19b   : > { %v3134_v14 = vsel %vm3121_vm7, %v11182_v15, 0  ;;  %vm16835_vm9 = vcmp.eq.s32.totalorder %v16820_v62, 1  ;;  %v3690_v33 = vor.u32 %v3689_v37, %v3686_v52  ;;  %10549 = vmatprep.mubr.msk.bf16.mxu0 %vm16652_vm10, %v16651_v27  ;;  %v16838_v25 = vsel %vm12873_vm14, %v12869_v54, 0  ;;  %v16840_v62 = vld [vmem:[#allocation17_spill] sm:$0xff]  ;;  %vm13929_vm14 = vmpackc.low %vm4646_vm0, %vm4646_vm0 }
 0x19c   : > { %vm13899_vm3 = vmpackc.low %vm16835_vm9, %vm16835_vm9  ;;  %v9984_v12 = vcombine.low %v16838_v25, %v3134_v14  ;;  %vm3196_vm7 = vcmask 1046528   ;;  %v16839_v15 = vcombine.low %v12996_v56, %v13024_v24  ;;  %v3698_v31 = vor.u32 %v3697_v6, %v3694_v18  ;;  %v11002_v56 = vld [vmem:[%s16303_s3 + $0x178] sm:$0xff]   ;;  %v13944_v6 = vld [vmem:[#allocation2 + $0x20] sm:$0xf] }
 0x19d   : > { %vm13916_vm9 = vmpackc.low %vm4645_vm11, %vm4645_vm11  ;;  %v3701_v57 = vshrl.u32 %v10018_v19, 16  ;;  %v3704_v43 = vshll.u32 %v10018_v19, 16  ;;  %v3622_v54 = vsel %vm13818_vm2, %v13889_v47, 0  ;;  %v3623_v19 = vsel %vm13839_vm6, %v13893_v28, 0  ;;  %v16848_v14 = vld [vmem:[#allocation20_spill] sm:$0xff] }
 0x19e   : > { %v3198_v2 = vrot.slane %v16839_v15, 1  ;;  %v3197_v36 = vrot.slane %v9984_v12, 1  ;;  %vm16845_vm11 = vcmp.ne.s16.totalorder %v16815_v23, 0  ;;  %vm16846_vm2 = vcmp.ne.s16.totalorder %v16816_v29, 0  ;;  %v13955_v29 = vld [vmem:[#allocation2 + $0x24] sm:$0xf] }
 0x19f   : > { %v3137_v60 = vsel %vm16845_vm11, %v13112_v7, 0  ;;  %v3138_v16 = vsel %vm16846_vm2, %v13123_v51, 0  ;;  %vm3130_vm5 = vcmp.ne.s16.totalorder %v16847_v40, 0  ;;  %v3699_v49 = vsel %vm3682_vm13, %v3690_v33, %v3698_v31  ;;  %v16849_v33 = vld [vmem:[#allocation22_spill] sm:$0xff]  ;;  %v16850_v12 = vld [vmem:[#allocation51_spill] sm:$0xff] }
 0x1a0   : > { %v3703_v52 = vrot.slane %v3701_v57, 3  ;;  %v3706_v37 = vrot.slane %v3704_v43, 4  ;;  %v10019_v18 = vcombine.low %v3622_v54, %v3623_v19  ;;  %v13950_v23 = vsel %vm13899_vm3, 65537, %v16505_v20  ;;  %10658 = vmatmul.mubr.bf16.vlgmr.msra.gmra.mxu1 %v3699_v49  ;;  %v11004_v57 = vld [vmem:[%s16303_s3 + $0x170] sm:$0xff]  }
 0x1a1   : > { %v13953_v7 = vsel %vm3196_vm7, %v3197_v36, %v3198_v2  ;;  %v9986_v51 = vcombine.low %v3137_v60, %v3138_v16  ;;  %vm3131_vm0 = vcmp.ne.s16.totalorder %v16848_v14, 0  ;;  %vm3132_vm6 = vcmp.ne.s16.totalorder %v16849_v33, 0  ;;  %10661 = vmatprep.mubr.msk.bf16.mxu1 %vm16652_vm10, %v16651_v27  ;;  %10730 = vmatpush3.bf16.msra.mxu1 %v11002_v56  ;;  %v16861_v60 = vld [vmem:[#allocation54_spill] sm:$0xff] }
 0x1a2   : > { %v13962_v25 = vsel %vm13916_vm9, 65537, %v16505_v20  ;;  %v13967_v10 = vsel %vm13929_vm14, 65537, %v16505_v20  ;;  %vm4647_vm3 = vcmp.eq.s32.totalorder %v16850_v12, 1  ;;  %v2642_v15 = vor.u32 %v2640_v58, %v2638_v8  ;;  %10731 = vmatprep.subr.bf16.mxu1 %v16651_v27  ;;  %v16853_v58 = vld [vmem:[#allocation23_spill] sm:$0xff] }
 0x1a3   : > { %v3200_v43 = vrot.slane %v9986_v51, 1  ;;  %v3624_v17 = vsel %vm13868_vm1, %v13944_v6, 0  ;;  %vm16851_vm9 = vcmp.ne.s16.totalorder %v16825_v42, 0  ;;  %vm16852_vm14 = vcmp.ne.s16.totalorder %v16826_v13, 0 }
 0x1a4   : > { %v3139_v54 = vsel %vm16851_vm9, %v13274_v21, 0  ;;  %v3140_v8 = vsel %vm16852_vm14, %v13276_v30, 0  ;;  %v16854_v56 = vsel %vm13071_vm4, %v13494_v44, %v16853_v58  ;;  %v16857_v38 = vsel %vm13071_vm4, %v13591_v22, %v13548_v11  ;;  %10550 = vmatmul.mubr.bf16.gmra.mxu0 %v2642_v15 }
 0x1a5   : > { %vm13990_vm11 = vcmp.ne.s16.totalorder %v16854_v56, 0  ;;  %vm13999_vm1 = vcmp.ne.s16.totalorder %v16857_v38, 0  ;;  %v14003_v30 = vor.u32 %v3706_v37, %v3703_v52  ;;  %v3710_v13 = vshrl.u32 %v10019_v18, 16  ;;  %10613 = vmatprep.mubr.msk.bf16.mxu0 %vm16652_vm10, %v16651_v27  ;;  %v16862_v52 = vld [vmem:[#allocation46_spill] sm:$0xff]  ;;  %10732 = vmatpush3.bf16.msra.mxu1 %v11004_v57  ;;  %v16863_v37 = vld [vmem:[#allocation21_spill] sm:$0xff]  ;;  %v16869_v38 = vld [vmem:[#allocation55_spill] sm:$0xff] }
 0x1a6   : > { %v3713_v42 = vshll.u32 %v10019_v18, 16  ;;  %v3625_v44 = vsel %vm13883_vm12, %v13955_v29, 0  ;;  %v16860_v36 = vshrl.u32 %v13783_v1, 16  ;;  %vm4648_vm2 = vcmp.eq.s32.totalorder %v16861_v60, 1  ;;  %vm4660_vm12 = vmpackc.low %vm4647_vm3, %vm4647_vm3  ;;  %10733 = vmatprep.subr.bf16.mxu1 %v16651_v27  ;;  %v11001_v57 = vld [vmem:[%s16303_s3 + $0x130] sm:$0xff]  }
 0x1a7   : > { %v14016_v11 = vsel %vm3196_vm7, %v3198_v2, %v3200_v43  ;;  %v9987_v22 = vcombine.low %v3139_v54, %v3140_v8  ;;  %v4691_v16 = vrot.slane %v13950_v23, 5  ;;  %v4694_v49 = vrot.slane %v13962_v25, 5  ;;  %v16865_v54 = vld [vmem:[#allocation29_spill] sm:$0xff]  ;;  %vm14038_vm3 = vmpackc.low %vm4648_vm2, %vm4648_vm2  ;;  %v16903_v23 = vld [vmem:[#allocation47_spill] sm:$0xff] }
 0x1a8   : > { %v14010_v19 = vrot.slane %v16860_v36, 7  ;;  %vm16864_vm14 = vcmp.ne.s16.totalorder %v16834_v41, 0  ;;  %v4697_v18 = vrot.slane %v13967_v10, 5  ;;  %v10020_v51 = vcombine.low %v3624_v17, %v3625_v44  ;;  %v11006_v25 = vld [vmem:[%s16303_s3 + $0x120] sm:$0xff]  }
 0x1a9   : > { %v3141_v2 = vsel %vm16864_vm14, %v16863_v37, 0  ;;  %v3202_v15 = vrot.slane %v9987_v22, 1  ;;  %vm16866_vm9 = vcmp.ne.s16.totalorder %v16840_v62, 0  ;;  %v3708_v41 = vsel %vm3682_vm13, %v3698_v31, %v14003_v30  ;;  %v11000_v62 = vld [vmem:[%s16303_s3 + $0x138] sm:$0xff]   ;;  %10734 = vmatpush3.bf16.msra.mxu1 %v11005_v5 }
 0x1aa   : > { %v3142_v12 = vsel %vm16866_vm9, %v16865_v54, 0  ;;  %v3712_v8 = vrot.slane %v3710_v13, 3  ;;  %v3715_v58 = vrot.slane %v3713_v42, 4  ;;  %v14045_v56 = vsel %vm4660_vm12, 65537, %v16505_v20  ;;  %10662 = vmatmul.mubr.bf16.gmra.mxu1 %v3708_v41  ;;  %10735 = vmatprep.subr.bf16.mxu1 %v16651_v27  ;;  %v16875_v37 = vld [vmem:[#allocation30_spill] sm:$0xff] }
 0x1ab   : > { %v9988_v17 = vcombine.low %v3141_v2, %v3142_v12  ;;  %vm4649_vm14 = vcmp.eq.s32.totalorder %v16869_v38, 1  ;;  %v14052_v44 = vsel %vm3196_vm7, %v3200_v43, %v3202_v15  ;;  %v3143_v31 = vsel %vm3130_vm5, %v13558_v26, 0  ;;  %10665 = vmatprep.mubr.msk.bf16.mxu1 %vm16652_vm10, %v16651_v27 }
 0x1ac   : > { %v16870_v13 = vrot.slane %v13634_v4, 4  ;;  %v16872_v60 = vrot.slane %v13685_v53, 4  ;;  %v16873_v43 = vrot.slane %v13713_v3, 4  ;;  %v14080_v4 = vld [vmem:[#allocation2 + $0x28] sm:$0xf]  ;;  %v14090_v3 = vsel %vm14038_vm3, 65537, %v16505_v20  ;;  %vm14109_vm9 = vmpackc.low %vm4649_vm14, %vm4649_vm14  ;;  %10614 = vmatmul.mubr.bf16.vlgmr.msra.gmra.mxu0 %v13953_v7 }
 0x1ad   : > { %v3204_v53 = vrot.slane %v9988_v17, 1  ;;  %v3144_v40 = vsel %vm3131_vm0, %v13575_v32, 0  ;;  %v3145_v5 = vsel %vm3132_vm6, %v13772_v46, 0  ;;  %v16876_v2 = vshrl.u32 %v16875_v37, 16  ;;  %10686 = vmatpush3.bf16.msra.mxu0 %v11000_v62  ;;  %10617 = vmatprep.mubr.msk.bf16.mxu0 %vm16652_vm10, %v16651_v27  ;;  %v16887_v62 = vld [vmem:[#allocation60_spill] sm:$0xff] }
 0x1ae   : > { %v14062_v36 = vsel %vm12223_vm8, %v16870_v13, %v13775_v59  ;;  %v14069_v22 = vsel %vm12223_vm8, %v16872_v60, %v13778_v55  ;;  %v14076_v26 = vsel %vm12223_vm8, %v16873_v43, %v13791_v45  ;;  %v14082_v59 = vld [vmem:[#allocation2 + $0x2c] sm:$0xf]  ;;  %v11007_v55 = vld [vmem:[%s16303_s3 + $0x160] sm:$0xff]   ;;  %v16874_v45 = vld [vmem:[#allocation58_spill] sm:$0xff]  ;;  %v14114_v32 = vor.u32 %v3715_v58, %v3712_v8  ;;  %10687 = vmatprep.subr.bf16.mxu0 %v16651_v27 }
 0x1af   : > { %vm4650_vm5 = vcmp.eq.s32.totalorder %v16874_v45, 1  ;;  %vm14102_vm2 = vcmp.ne.s16.totalorder %v16876_v2, 0  ;;  %v3719_v14 = vshrl.u32 %v10020_v51, 16  ;;  %v3722_v33 = vshll.u32 %v10020_v51, 16  ;;  %10736 = vmatpush3.bf16.msra.mxu1 %v11007_v55  ;;  %v11003_v45 = vld [vmem:[%s16303_s3 + $0x128] sm:$0xff]  }
 0x1b0   : > { %v14117_v46 = vsel %vm3196_vm7, %v3202_v15, %v3204_v53  ;;  %v3626_v41 = vsel %vm13990_vm11, %v14080_v4, 0  ;;  %v3627_v7 = vsel %vm13999_vm1, %v14082_v59, 0  ;;  %v9989_v51 = vcombine.low %v3143_v31, %v3144_v40  ;;  %10737 = vmatprep.subr.bf16.mxu1 %v16651_v27  ;;  %vm14166_vm12 = vmpackc.low %vm4650_vm5, %vm4650_vm5 }
 0x1b1   : > { %v9990_v8 = vcombine.low %v3145_v5, %v3145_v5  ;;  %v16881_v15 = vsel %vm13071_vm4, %v13674_v9, %v13629_v63  ;;  %v4693_v17 = vrot.slane %v4691_v16, 4  ;;  %v4696_v24 = vrot.slane %v4694_v49, 4  ;;  %v16890_v5 = vld [vmem:[#allocation63_spill] sm:$0xff]  ;;  %10688 = vmatpush3.bf16.msra.mxu0 %v11001_v57  ;;  %v3379_v57 = vld [vmem:[#allocation2 + $0x34] sm:$0x1] }
 0x1b2   : > { %vm14135_vm0 = vcmp.ne.s16.totalorder %v16881_v15, 0  ;;  %v4700_v21 = vrot.slane %v14045_v56, 5  ;;  %v4703_v38 = vrot.slane %v14090_v3, 5  ;;  %vm16884_vm6 = vcmp.eq.s32.totalorder %v16862_v52, 1  ;;  %v11009_v56 = vld [vmem:[%s16303_s3 + $0x158] sm:$0xff]   ;;  %10689 = vmatprep.subr.bf16.mxu0 %v16651_v27  ;;  %v11010_v63 = vld [vmem:[%s16303_s3 + $0x150] sm:$0xff]  }
 0x1b3   : > { %vm14149_vm11 = vmpackc.low %vm16884_vm6, %vm16884_vm6  ;;  %v4675_v9 = vsel %vm14109_vm9, 65537, %v16505_v20  ;;  %vm4651_vm1 = vcmp.eq.s32.totalorder %v16887_v62, 1  ;;  %v3206_v31 = vrot.slane %v9989_v51, 1  ;;  %v14161_v13 = vrot.slane %v9990_v8, 1  ;;  %10738 = vmatpush3.bf16.msra.mxu1 %v11009_v56  ;;  %v16899_v52 = vld [vmem:[#allocation44_spill] sm:$0xff] }
 0x1b4   : > { %v3717_v60 = vsel %vm3682_vm13, %v14003_v30, %v14114_v32  ;;  %v3721_v43 = vrot.slane %v3719_v14, 3  ;;  %v3724_v55 = vrot.slane %v3722_v33, 4  ;;  %v10021_v3 = vcombine.low %v3626_v41, %v3627_v7  ;;  %v16892_v14 = vld [vmem:[#allocation49_spill] sm:$0xff]  ;;  %10618 = vmatmul.mubr.bf16.gmra.mxu0 %v14016_v11  ;;  %10739 = vmatprep.subr.bf16.mxu1 %v16651_v27 }
 0x1b5   : > { %v4699_v40 = vrot.slane %v4697_v18, 4  ;;  %vm4652_vm3 = vcmp.eq.s32.totalorder %v16890_v5, 1  ;;  %10666 = vmatmul.mubr.bf16.gmra.mxu1 %v3717_v60  ;;  %v14180_v37 = vsel %vm3196_vm7, %v3204_v53, %v3206_v31  ;;  %v14184_v30 = vsel %vm3196_vm7, %v3206_v31, %v14161_v13  ;;  %vm14208_vm7 = vmpackc.low %vm4651_vm1, %vm4651_vm1  ;;  %10690 = vmatpush3.bf16.msra.mxu0 %v11003_v45 }
 0x1b6   : > { %v16891_v2 = vshrl.u32 %v13797_v35, 16  ;;  %vm4127_vm14 = vcmp.eq.s32.totalorder %v16892_v14, 1  ;;  %v4702_v33 = vrot.slane %v4700_v21, 4  ;;  %v4706_v41 = vrot.slane %v4675_v9, 5  ;;  %10669 = vmatprep.mubr.msk.bf16.mxu1 %vm16652_vm10, %v16651_v27  ;;  %v16895_v9 = vld [vmem:[#allocation39_spill] sm:$0xff]  ;;  %vm14232_vm6 = vmpackc.low %vm4652_vm3, %vm4652_vm3  ;;  %10621 = vmatprep.mubr.msk.bf16.mxu0 %vm16652_vm10, %v16651_v27 }
 0x1b7   : > { %v14198_v7 = vsel %vm14149_vm11, 65537, %v16505_v20  ;;  %v4705_v51 = vrot.slane %v4703_v38, 4  ;;  %v14203_v8 = vsel %vm14166_vm12, 65537, %v16505_v20  ;;  %v16896_v31 = vrot.slane %v16895_v9, 5  ;;  %10691 = vmatprep.subr.bf16.mxu0 %v16651_v27  ;;  %vm14276_vm12 = vmpackc.low %vm4127_vm14, %vm4127_vm14  ;;  %10740 = vmatpush3.bf16.msra.mxu1 %v11010_v63  ;;  %v11013_v63 = vld [vmem:[%s16303_s3 + $0x140] sm:$0xff]  }
 0x1b8   : > { %v14188_v12 = vrot.slane %v16891_v2, 7  ;;  %vm4721_vm9 = vcmp.ne.s16.totalorder %v16899_v52, 0  ;;  %v14227_v2 = vsel %vm12671_vm15, %v13804_v48, %v4691_v16  ;;  %v14237_v9 = vor.u32 %v3724_v55, %v3721_v43  ;;  %10741 = vmatprep.subr.bf16.mxu1 %v16651_v27 }
 0x1b9   : > { %vm14217_vm5 = vcmp.ne.s16.totalorder %v16896_v31, 0  ;;  %v3728_v31 = vshrl.u32 %v10021_v3, 16  ;;  %v3731_v53 = vshll.u32 %v10021_v3, 16  ;;  %vm4722_vm11 = vcmp.ne.s16.totalorder %v16903_v23, 0  ;;  %v11012_v3 = vld [vmem:[%s16303_s3 + $0x148] sm:$0xff]   ;;  %10692 = vmatpush3.bf16.msra.mxu0 %v11006_v25 }
 0x1ba   : > { %v14247_v48 = vsel %vm12671_vm15, %v4693_v17, %v4694_v49  ;;  %v14253_v11 = vsel %vm12671_vm15, %v4696_v24, %v4697_v18  ;;  %v14257_v16 = vsel %vm12671_vm15, %v4699_v40, %v4700_v21  ;;  %v3629_v49 = vsel %vm14102_vm2, %v3379_v57, 0  ;;  %v16904_v24 = vld [vmem:[#allocation65_spill] sm:$0xff]  ;;  %10693 = vmatprep.subr.bf16.mxu0 %v16651_v27 }
 0x1bb   : > { %v14268_v10 = vsel %vm12671_vm15, %v4702_v33, %v4703_v38  ;;  %v4708_v18 = vrot.slane %v4706_v41, 4  ;;  %v4709_v17 = vrot.slane %v14203_v8, 5  ;;  %vm4653_vm1 = vcmp.eq.s32.totalorder %v16904_v24, 1  ;;  %v4561_v8 = vld [vmem:[#allocation2 + $0x4] sm:$0x8]  ;;  %10742 = vmatpush3.bf16.msra.mxu1 %v11012_v3  ;;  %v16912_v3 = vld [vmem:[#allocation34_spill] sm:$0xff] }
 0x1bc   : > { %v14282_v54 = vsel %vm12671_vm15, %v4705_v51, %v4706_v41  ;;  %v4677_v38 = vsel %vm14208_vm7, 65537, %v16505_v20  ;;  %v14290_v43 = vsel %vm14232_vm6, 65537, %v16505_v20  ;;  %v3628_v55 = vsel %vm14135_vm0, %v14239_v0, 0  ;;  %vm14313_vm3 = vmpackc.low %vm4653_vm1, %vm4653_vm1  ;;  %10622 = vmatmul.mubr.bf16.gmra.mxu0 %v14052_v44  ;;  %10743 = vmatprep.subr.bf16.mxu1 %v16651_v27  ;;  %v11011_v44 = vld [vmem:[%s16303_s3 + $0x110] sm:$0xff]  }
 0x1bd   : > { %v3726_v40 = vsel %vm3682_vm13, %v14114_v32, %v14237_v9  ;;  %v3730_v5 = vrot.slane %v3728_v31, 3  ;;  %v3733_v45 = vrot.slane %v3731_v53, 4  ;;  %v10022_v14 = vcombine.low %v3628_v55, %v3629_v49  ;;  %10625 = vmatprep.mubr.msk.bf16.mxu0 %vm16652_vm10, %v16651_v27 }
 0x1be   : > { %v16907_v33 = vshll.u32 %v13797_v35, 16  ;;  %vm4723_vm2 = vcmp.ne.s16.totalorder %v14227_v2, 0  ;;  %vm4724_vm0 = vcmp.ne.s16.totalorder %v14247_v48, 0  ;;  %v4213_v58 = vshrl.u32 %v14198_v7, 16  ;;  %10670 = vmatmul.mubr.bf16.gmra.mxu1 %v3726_v40  ;;  %v11008_v35 = vld [vmem:[%s16303_s3 + $0x118] sm:$0xff]   ;;  %v11014_v2 = vld [vmem:[%s16303_s3 + $0x108] sm:$0xff]  }
 0x1bf   : > { %v14323_v57 = vsel %vm14276_vm12, 65537, %v16505_v20  ;;  %vm4725_vm14 = vcmp.ne.s16.totalorder %v14253_v11, 0  ;;  %v14328_v53 = vsel %vm12671_vm15, %v4708_v18, %v4709_v17  ;;  %v4715_v51 = vrot.slane %v14290_v43, 5  ;;  %10673 = vmatprep.mubr.msk.bf16.mxu1 %vm16652_vm10, %v16651_v27  ;;  %v16910_v18 = vld [vmem:[#allocation52_spill] sm:$0xff]  ;;  %10694 = vmatpush3.bf16.msra.mxu0 %v11008_v35 }
 0x1c0   : > { %v14305_v41 = vor.u32 %v16907_v33, %v14188_v12  ;;  %vm4726_vm7 = vcmp.ne.s16.totalorder %v14257_v16, 0  ;;  %v4712_v15 = vrot.slane %v4677_v38, 5  ;;  %v4679_v56 = vsel %vm14313_vm3, 65537, %v16505_v20  ;;  %10695 = vmatprep.subr.bf16.mxu0 %v16651_v27  ;;  %10744 = vmatpush3.bf16.msra.mxu1 %v11013_v63 }
 0x1c1   : > { %v14344_v31 = vor.u32 %v3733_v45, %v3730_v5  ;;  %v3737_v25 = vshrl.u32 %v10022_v14, 16  ;;  %v3740_v49 = vshll.u32 %v10022_v14, 16  ;;  %vm4128_vm1 = vcmp.eq.s32.totalorder %v16910_v18, 1  ;;  %10817 = vmatprep.subr.bf16.mxu1 %v16651_v27 }
 0x1c2   : > { %v4711_v24 = vrot.slane %v4709_v17, 4  ;;  %vm4729_vm6 = vcmp.ne.s16.totalorder %v14328_v53, 0  ;;  %v4733_v21 = vsel %vm14217_vm5, %v4561_v8, 0  ;;  %v4734_v38 = vsel %vm4721_vm9, %v13787_v39, 0  ;;  %v16911_v17 = vld [vmem:[#allocation53_spill] sm:$0xff] }
 0x1c3   : > { %vm4275_vm3 = vcmp.ne.s16.totalorder %v14062_v36, 0  ;;  %vm4129_vm12 = vcmp.eq.s32.totalorder %v16911_v17, 1  ;;  %v4717_v43 = vrot.slane %v4715_v51, 4  ;;  %v4735_v55 = vsel %vm4722_vm11, %v13811_v50, 0  ;;  %10696 = vmatpush3.bf16.msra.mxu0 %v11011_v44 }
 0x1c4   : > { %v4736_v60 = vsel %vm4723_vm2, %v16912_v3, 0  ;;  %v10102_v40 = vcombine.low %v4733_v21, %v4734_v38  ;;  %v4713_v52 = vsel %vm12671_vm15, %v4711_v24, %v4712_v15  ;;  %v4714_v5 = vrot.slane %v4712_v15, 4  ;;  %v16913_v15 = vld [vmem:[#allocation25_spill] sm:$0xff]  ;;  %10697 = vmatprep.subr.bf16.mxu0 %v16651_v27  ;;  %v4562_v24 = vld [vmem:[#allocation2 + $0x34] sm:$0xf]  ;;  %10626 = vmatmul.mubr.bf16.gmra.mxu0 %v14117_v46 }
 0x1c5   : > { %v4718_v45 = vrot.slane %v4679_v56, 5  ;;  %v10103_v14 = vcombine.low %v4735_v55, %v4736_v60  ;;  %vm4277_vm5 = vcmp.ne.s16.totalorder %v14076_v26, 0  ;;  %v3735_v33 = vsel %vm3682_vm13, %v14237_v9, %v14344_v31  ;;  %10629 = vmatprep.mubr.msk.bf16.mxu0 %vm16652_vm10, %v16651_v27 }
 0x1c6   : > { %v3739_v23 = vrot.slane %v3737_v25, 3  ;;  %v3742_v32 = vrot.slane %v3740_v49, 4  ;;  %vm4796_vm9 = vcmask 1044480   ;;  %10674 = vmatmul.mubr.bf16.gmra.mxu1 %v3735_v33  ;;  %v4797_v35 = vrot.slane %v10102_v40, 3 }
 0x1c7   : > { %v4798_v8 = vrot.slane %v10103_v14, 3  ;;  %v4737_v63 = vsel %vm4724_vm0, %v16913_v15, 0  ;;  %v4738_v9 = vsel %vm4725_vm14, %v13889_v47, 0  ;;  %v4716_v56 = vsel %vm12671_vm15, %v4714_v5, %v4715_v51  ;;  %10677 = vmatprep.mubr.msk.bf16.mxu1 %vm16652_vm10, %v16651_v27  ;;  %10698 = vmatpush3.bf16.msra.mxu0 %v11014_v2 }
 0x1c8   : > { %v4719_v25 = vsel %vm12671_vm15, %v4717_v43, %v4718_v45  ;;  %v10104_v49 = vcombine.low %v4737_v63, %v4738_v9  ;;  %v4739_v48 = vsel %vm4726_vm7, %v13893_v28, 0  ;;  %vm4730_vm11 = vcmp.ne.s16.totalorder %v4713_v52, 0  ;;  %10699 = vmatprep.subr.bf16.mxu0 %v16651_v27  ;;  %vm14429_vm7 = vmpackc.low %vm4128_vm1, %vm4128_vm1 }
 0x1c9   : > { %v14396_v11 = vsel %vm4796_vm9, %v4797_v35, %v4798_v8  ;;  %vm16914_vm2 = vcmp.ne.s16.totalorder %v14268_v10, 0  ;;  %vm16915_vm15 = vcmp.ne.s16.totalorder %v14282_v54, 0  ;;  %v14405_v44 = vor.u32 %v3742_v32, %v3739_v23  ;;  %v11015_v10 = vld [vmem:[%s16303_s3 + $0x100] sm:$0xff]  }
 0x1ca   : > { %v4740_v51 = vsel %vm16914_vm2, %v13944_v6, 0  ;;  %v4741_v62 = vsel %vm16915_vm15, %v13955_v29, 0  ;;  %v4800_v21 = vrot.slane %v10104_v49, 3  ;;  %v4742_v38 = vsel %vm4729_vm6, %v14080_v4, 0  ;;  %v16918_v32 = vld [vmem:[#allocation11_spill] sm:$0xff] }
 0x1cb   : > { %v10105_v16 = vcombine.low %v4739_v48, %v4740_v51  ;;  %vm4731_vm0 = vcmp.ne.s16.totalorder %v4716_v56, 0  ;;  %vm4732_vm14 = vcmp.ne.s16.totalorder %v4719_v25, 0  ;;  %v10106_v54 = vcombine.low %v4741_v62, %v4742_v38  ;;  %10700 = vmatpush3.bf16.msra.mxu0 %v11015_v10  ;;  %v16924_v25 = vld [vmem:[#allocation56_spill] sm:$0xff]  ;;  %v16925_v62 = vld [vmem:[#allocation57_spill] sm:$0xff] }
 0x1cc   : > { %v4743_v46 = vsel %vm4730_vm11, %v14082_v59, 0  ;;  %v14419_v43 = vsel %vm4796_vm9, %v4798_v8, %v4800_v21  ;;  %v4744_v55 = vsel %vm4731_vm0, %v14239_v0, 0  ;;  %v4745_v60 = vsel %vm4732_vm14, %v4562_v24, 0  ;;  %10773 = vmatprep.subr.bf16.mxu0 %v16651_v27  ;;  %10630 = vmatmul.mubr.bf16.gmra.mxu0 %v14180_v37 }
 0x1cd   : > { %v4802_v53 = vrot.slane %v10105_v16, 3  ;;  %v4288_v40 = vsel %vm4275_vm3, %v13787_v39, 0  ;;  %v4804_v5 = vrot.slane %v10106_v54, 3  ;;  %v10107_v45 = vcombine.low %v4743_v46, %v4744_v55  ;;  %vm14445_vm3 = vmpackc.low %vm4129_vm12, %vm4129_vm12  ;;  %10633 = vmatprep.mubr.msk.bf16.mxu0 %vm16652_vm10, %v16651_v27  ;;  %v16926_v16 = vld [vmem:[#allocation33_spill] sm:$0xff] }
 0x1ce   : > { %v10108_v14 = vcombine.low %v4745_v60, %v4745_v60  ;;  %v4222_v33 = vshrl.u32 %v14323_v57, 16  ;;  %v3744_v23 = vsel %vm3682_vm13, %v14344_v31, %v14405_v44  ;;  %vm16919_vm6 = vcmp.ne.s16.totalorder %v13735_v34, 0 }
 0x1cf   : > { %v4287_v39 = vsel %vm16919_vm6, %v16918_v32, 0  ;;  %v14440_v36 = vsel %vm4796_vm9, %v4800_v21, %v4802_v53  ;;  %10678 = vmatmul.mubr.bf16.gmra.mxu1 %v3744_v23  ;;  %v4290_v2 = vsel %vm4277_vm5, %v16912_v3, 0  ;;  %v14453_v31 = vsel %vm4796_vm9, %v4802_v53, %v4804_v5 }
 0x1d0   : > { %v4806_v34 = vrot.slane %v10107_v45, 3  ;;  %v14455_v35 = vrot.slane %v10108_v14, 3  ;;  %vm4276_vm1 = vcmp.ne.s16.totalorder %v14069_v22, 0  ;;  %v16922_v17 = vshll.u32 %v13783_v1, 16  ;;  %10681 = vmatprep.mubr.msk.bf16.mxu1 %vm16652_vm10, %v16651_v27 }
 0x1d1   : > { %v16923_v63 = vrot.slane %v14010_v19, 4  ;;  %v10071_v3 = vcombine.low %v4287_v39, %v4288_v40  ;;  %v14472_v22 = vsel %vm14429_vm7, 65537, %v16505_v20  ;;  %v4289_v1 = vsel %vm4276_vm1, %v13811_v50, 0 }
 0x1d2   : > { %v4200_v8 = vor.u32 %v16922_v17, %v14010_v19  ;;  %v14476_v9 = vsel %vm4796_vm9, %v4804_v5, %v4806_v34  ;;  %v14480_v19 = vsel %vm4796_vm9, %v4806_v34, %v14455_v35  ;;  %v4155_v56 = vsel %vm14445_vm3, 65537, %v16505_v20 }
 0x1d3   : > { %v4210_v26 = vsel %vm12223_vm8, %v16923_v63, %v14305_v41  ;;  %v4216_v41 = vshll.u32 %v14198_v7, 16  ;;  %vm4130_vm12 = vcmp.eq.s32.totalorder %v16924_v25, 1  ;;  %v14488_v49 = vcombine.low %v4289_v1, %v4290_v2  ;;  %v16930_v2 = vld [vmem:[#allocation62_spill] sm:$0xff] }
 0x1d4   : > { %v4215_v50 = vrot.slane %v4213_v58, 7  ;;  %v14492_v48 = vrot.slane %v4222_v33, 7  ;;  %v4225_v51 = vshll.u32 %v14323_v57, 16  ;;  %vm4131_vm5 = vcmp.eq.s32.totalorder %v16925_v62, 1  ;;  %vm14503_vm9 = vmpackc.low %vm4130_vm12, %vm4130_vm12  ;;  %10634 = vmatmul.mubr.bf16.gmra.mxu0 %v14184_v30  ;;  %v11018_v30 = vld [vmem:[%s16303_s3 + $0x1f8] sm:$0xff]  }
 0x1d5   : > { %v4231_v24 = vshrl.u32 %v14472_v22, 16  ;;  %v4353_v21 = vshll.u32 %v10071_v3, 16  ;;  %v16927_v38 = vrot.slane %v16926_v16, 4  ;;  %v4240_v10 = vshrl.u32 %v4155_v56, 16  ;;  %vm4144_vm2 = vmpackc.low %vm4131_vm5, %vm4131_vm5  ;;  %10637 = vmatprep.mubr.msk.bf16.mxu0 %vm16652_vm10, %v16651_v27 }
 0x1d6   : > { %v4211_v58 = vrot.slane %v14188_v12, 4  ;;  %vm4279_vm11 = vcmp.ne.s16.totalorder %v4210_v26, 0  ;;  %v4358_v57 = vshll.u32 %v14488_v49, 16  ;;  %v4218_v54 = vor.u32 %v4216_v41, %v4215_v50 }
 0x1d7   : > { %v4201_v37 = vsel %vm12223_vm8, %v16927_v38, %v4200_v8  ;;  %v4220_v46 = vrot.slane %v4215_v50, 4  ;;  %v4227_v53 = vor.u32 %v4225_v51, %v14492_v48  ;;  %10682 = vmatmul.mubr.bf16.gmra.mxu1 %v14405_v44  ;;  %v4292_v55 = vsel %vm4279_vm11, %v13889_v47, 0  ;;  %v11020_v50 = vld [vmem:[%s16303_s3 + $0x1f0] sm:$0xff]  }
 0x1d8   : > { %vm4278_vm15 = vcmp.ne.s16.totalorder %v4201_v37, 0  ;;  %v4233_v60 = vrot.slane %v4231_v24, 7  ;;  %v4243_v40 = vshll.u32 %v4155_v56, 16  ;;  %10745 = vmatprep.mubr.msk.bf16.mxu1 %vm16652_vm10, %v16651_v27  ;;  %v4355_v5 = vrot.slane %v4353_v21, 1 }
 0x1d9   : > { %v14514_v12 = vrot.slane %v4240_v10, 7  ;;  %v4156_v45 = vsel %vm14503_vm9, 65537, %v16505_v20  ;;  %v4157_v14 = vsel %vm4144_vm2, 65537, %v16505_v20  ;;  %v4291_v33 = vsel %vm4278_vm15, %v16913_v15, 0  ;;  %v16933_v10 = vld [vmem:[#allocation70_spill] sm:$0xff] }
 0x1da   : > { %v4351_v47 = vshrl.u32 %v10071_v3, 16  ;;  %v4360_v44 = vrot.slane %v4358_v57, 1  ;;  %v14522_v52 = vcombine.low %v4291_v33, %v4292_v55  ;;  %v4219_v23 = vsel %vm12223_vm8, %v4211_v58, %v4218_v54 }
 0x1db   : > { %v4228_v32 = vsel %vm12223_vm8, %v4220_v46, %v4227_v53  ;;  %v4249_v39 = vshrl.u32 %v4156_v45, 16  ;;  %v4258_v18 = vshrl.u32 %v4157_v14, 16  ;;  %vm4132_vm0 = vcmp.eq.s32.totalorder %v16930_v2, 1  ;;  %v16934_v53 = vld [vmem:[#allocation68_spill] sm:$0xff] }
 0x1dc   : > { %v4356_v15 = vor.u32 %v4355_v5, %v4351_v47  ;;  %v4234_v34 = vshll.u32 %v14472_v22, 16  ;;  %v4238_v17 = vrot.slane %v4233_v60, 4  ;;  %v4245_v8 = vor.u32 %v4243_v40, %v14514_v12  ;;  %vm4145_vm3 = vmpackc.low %vm4132_vm0, %vm4132_vm0  ;;  %v16932_v22 = vld [vmem:[#allocation67_spill] sm:$0xff]  ;;  %10638 = vmatmul.mubr.bf16.gmra.mxu0 %v14161_v13  ;;  %v11021_v13 = vld [vmem:[%s16303_s3 + $0x1e8] sm:$0xff]  }
 0x1dd   : > { %vm4281_vm14 = vcmp.ne.s16.totalorder %v4228_v32, 0  ;;  %vm16931_vm7 = vsmask.f32 7424  ;;  %v4366_v26 = vshll.u32 %v14522_v52, 16  ;;  %vm4280_vm6 = vcmp.ne.s16.totalorder %v4219_v23, 0  ;;  %10701 = vmatprep.mubr.msk.bf16.mxu0 %vm16652_vm10, %v16651_v27  ;;  %v11016_v40 = vld [vmem:[%s16303_s3 + $0x1b8] sm:$0xff]  }
 0x1de   : > { %v4361_v63 = vsel %vm16931_vm7, %v4356_v15, %v4360_v44  ;;  %v4229_v3 = vrot.slane %v14492_v48, 4  ;;  %v4294_v1 = vsel %vm4281_vm14, %v13944_v6, 0  ;;  %v4251_v41 = vrot.slane %v4249_v39, 7  ;;  %vm16935_vm15 = vmmov %vm16931_vm7  ;;  %v16936_v23 = vld [vmem:[#allocation72_spill] sm:$0xff]  ;;  %v16937_v32 = vld [vmem:[#allocation59_spill] sm:$0xff] }
 0x1df   : > { %10746 = vmatmul.mubr.bf16.vlgmr.msra.gmra.mxu1 %v4361_v63  ;;  %v4252_v56 = vshll.u32 %v4156_v45, 16  ;;  %v14540_v25 = vrot.slane %v4258_v18, 7  ;;  %vm5032_vm1 = vcmp.eq.s32.totalorder %v16932_v22, 1  ;;  %v4236_v51 = vor.u32 %v4234_v34, %v4233_v60 }
 0x1e0   : > { %10749 = vmatprep.mubr.msk.bf16.mxu1 %vm16652_vm10, %v16651_v27  ;;  %10818 = vmatpush3.bf16.msra.mxu1 %v11018_v30  ;;  %v4246_v48 = vsel %vm12223_vm8, %v4238_v17, %v4245_v8  ;;  %v4261_v62 = vshll.u32 %v4157_v14, 16  ;;  %v4293_v6 = vsel %vm4280_vm6, %v13893_v28, 0  ;;  %v4158_v24 = vsel %vm4145_vm3, 65537, %v16505_v20  ;;  %vm5045_vm12 = vmpackc.low %vm5032_vm1, %vm5032_vm1  ;;  %v11023_v14 = vld [vmem:[%s16303_s3 + $0x1e0] sm:$0xff]   ;;  %v16938_v8 = vld [vmem:[#allocation73_spill] sm:$0xff] }
 0x1e1   : > { %10819 = vmatprep.subr.bf16.mxu1 %v16651_v27  ;;  %v4362_v21 = vshrl.u32 %v14488_v49, 16  ;;  %v4368_v16 = vrot.slane %v4366_v26, 1  ;;  %v14555_v38 = vcombine.low %v4293_v6, %v4294_v1  ;;  %v4247_v37 = vrot.slane %v14514_v12, 4  ;;  %v11019_v6 = vld [vmem:[%s16303_s3 + $0x1a8] sm:$0xff]  }
 0x1e2   : > { %vm5034_vm5 = vcmp.eq.s32.totalorder %v16933_v10, 1  ;;  %v4254_v28 = vor.u32 %v4252_v56, %v4251_v41  ;;  %v4256_v7 = vrot.slane %v4251_v41, 4  ;;  %v4263_v58 = vor.u32 %v4261_v62, %v14540_v25  ;;  %v16944_v10 = vld [vmem:[#allocation61_spill] sm:$0xff] }
 0x1e3   : > { %v4364_v57 = vor.u32 %v4362_v21, %v4360_v44  ;;  %v4237_v49 = vsel %vm12223_vm8, %v4229_v3, %v4236_v51  ;;  %vm4283_vm9 = vcmp.ne.s16.totalorder %v4246_v48, 0  ;;  %v4267_v54 = vshrl.u32 %v4158_v24, 16  ;;  %vm5047_vm2 = vmpackc.low %vm5034_vm5, %vm5034_vm5  ;;  %v11025_v3 = vld [vmem:[%s16303_s3 + $0x1d8] sm:$0xff]  }
 0x1e4   : > { %10820 = vmatpush3.bf16.msra.mxu1 %v11020_v50  ;;  %v5058_v46 = vsel %vm5045_vm12, 65537, %v16505_v20  ;;  %vm5033_vm11 = vcmp.eq.s32.totalorder %v16934_v53, 1  ;;  %v4374_v60 = vshll.u32 %v14555_v38, 16  ;;  %v4296_v5 = vsel %vm4283_vm9, %v14080_v4, 0  ;;  %10702 = vmatmul.mubr.bf16.vlgmr.msra.gmra.mxu0 %v16937_v32  ;;  %vm16941_vm5 = vmmov %vm16935_vm15 }
 0x1e5   : > { %10821 = vmatprep.subr.bf16.mxu1 %v16651_v27  ;;  %v4369_v55 = vsel %vm16935_vm15, %v4364_v57, %v4368_v16  ;;  %vm4282_vm0 = vcmp.ne.s16.totalorder %v4237_v49, 0  ;;  %v4255_v12 = vsel %vm12223_vm8, %v4247_v37, %v4254_v28  ;;  %v4264_v45 = vsel %vm12223_vm8, %v4256_v7, %v4263_v58  ;;  %vm5046_vm14 = vmpackc.low %vm5033_vm11, %vm5033_vm11  ;;  %10774 = vmatpush3.bf16.msra.mxu0 %v11016_v40  ;;  %v16946_v7 = vld [vmem:[#allocation64_spill] sm:$0xff] }
 0x1e6   : > { %v4269_v33 = vrot.slane %v4267_v54, 7  ;;  %v5072_v47 = vshll.u32 %v5058_v46, 16  ;;  %v5060_v4 = vsel %vm5047_vm2, 65537, %v16505_v20  ;;  %v4295_v44 = vsel %vm4282_vm0, %v13955_v29, 0  ;;  %10705 = vmatprep.mubr.msk.bf16.mxu0 %vm16652_vm10, %v16651_v27  ;;  %v11017_v29 = vld [vmem:[%s16303_s3 + $0x1b0] sm:$0xff]   ;;  %10775 = vmatprep.subr.bf16.mxu0 %v16651_v27 }
 0x1e7   : > { %10750 = vmatmul.mubr.bf16.gmra.mxu1 %v4369_v55  ;;  %vm5035_vm7 = vcmp.eq.s32.totalorder %v16936_v23, 1  ;;  %v4370_v39 = vshrl.u32 %v14522_v52, 16  ;;  %v4376_v18 = vrot.slane %v4374_v60, 1  ;;  %v14591_v2 = vcombine.low %v4295_v44, %v4296_v5  ;;  %v11026_v54 = vld [vmem:[%s16303_s3 + $0x1d0] sm:$0xff]  }
 0x1e8   : > { %10753 = vmatprep.mubr.msk.bf16.mxu1 %vm16652_vm10, %v16651_v27  ;;  %10822 = vmatpush3.bf16.msra.mxu1 %v11021_v13  ;;  %v4270_v15 = vshll.u32 %v4158_v24, 16  ;;  %v5075_v30 = vshrl.u32 %v5058_v46, 16  ;;  %v5059_v34 = vsel %vm5046_vm14, 65537, %v16505_v20  ;;  %v5091_v17 = vshll.u32 %v5060_v4, 16  ;;  %vm14604_vm12 = vmpackc.low %vm5035_vm7, %vm5035_vm7 }
 0x1e9   : > { %10823 = vmatprep.subr.bf16.mxu1 %v16651_v27  ;;  %vm5036_vm6 = vcmp.eq.s32.totalorder %v16938_v8, 1  ;;  %v4372_v63 = vor.u32 %v4370_v39, %v4368_v16  ;;  %vm4284_vm3 = vcmp.ne.s16.totalorder %v4255_v12, 0  ;;  %vm4285_vm1 = vcmp.ne.s16.totalorder %v4264_v45, 0  ;;  %10776 = vmatpush3.bf16.msra.mxu0 %v11017_v29  ;;  %v11028_v39 = vld [vmem:[%s16303_s3 + $0x1c8] sm:$0xff]   ;;  %vm16954_vm14 = vmmov %vm16941_vm5  ;;  %v11024_v8 = vld [vmem:[%s16303_s3 + $0x198] sm:$0xff]  }
 0x1ea   : > { %v5095_v52 = vshrl.u32 %v5060_v4, 16  ;;  %v4272_v1 = vor.u32 %v4270_v15, %v4269_v33  ;;  %v14612_v41 = vrot.slane %v5072_v47, 5  ;;  %v4382_v22 = vshll.u32 %v14591_v2, 16  ;;  %vm14619_vm9 = vmpackc.low %vm5036_vm6, %vm5036_vm6  ;;  %10777 = vmatprep.subr.bf16.mxu0 %v16651_v27  ;;  %v4067_v47 = vld [vmem:[#allocation2 + $0x34] sm:$0x3] }
 0x1eb   : > { %v4377_v56 = vsel %vm16941_vm5, %v4372_v63, %v4376_v18  ;;  %v5077_v50 = vrot.slane %v5075_v30, 4  ;;  %v5081_v51 = vshll.u32 %v5059_v34, 16  ;;  %v5085_v48 = vshrl.u32 %v5059_v34, 16 }
 0x1ec   : > { %10824 = vmatpush3.bf16.msra.mxu1 %v11023_v14  ;;  %v4298_v24 = vsel %vm4285_vm1, %v14239_v0, 0  ;;  %v4265_v21 = vrot.slane %v14540_v25, 4  ;;  %v14629_v16 = vrot.slane %v5091_v17, 5  ;;  %v5061_v37 = vsel %vm14604_vm12, 65537, %v16505_v20  ;;  %v16948_v0 = vld [vmem:[#allocation74_spill] sm:$0xff]  ;;  %v16949_v25 = vld [vmem:[#allocation76_spill] sm:$0xff]  ;;  %vm16961_vm1 = vmmov %vm16941_vm5 }
 0x1ed   : > { %10825 = vmatprep.subr.bf16.mxu1 %v16651_v27  ;;  %v16945_v28 = vmax.f32 %v16944_v10, 0.0  ;;  %v16947_v58 = vmax.f32 %v16946_v7, 0.0  ;;  %v5097_v13 = vrot.slane %v5095_v52, 4  ;;  %vm5037_vm11 = vcmp.eq.s32.totalorder %v16948_v0, 1  ;;  %10778 = vmatpush3.bf16.msra.mxu0 %v11019_v6  ;;  %v16959_v6 = vld [vmem:[#allocation78_spill] sm:$0xff] }
 0x1ee   : > { %vm5038_vm2 = vcmp.eq.s32.totalorder %v16949_v25, 1  ;;  %v4297_v49 = vsel %vm4284_vm3, %v14082_v59, 0  ;;  %v5062_v46 = vsel %vm14619_vm9, 65537, %v16505_v20  ;;  %v4378_v53 = vshrl.u32 %v14555_v38, 16  ;;  %v11022_v38 = vld [vmem:[%s16303_s3 + $0x1a0] sm:$0xff]   ;;  %vm14668_vm15 = vmpackc.low %vm5037_vm11, %vm5037_vm11  ;;  %10779 = vmatprep.subr.bf16.mxu0 %v16651_v27 }
 0x1ef   : > { %10754 = vmatmul.mubr.bf16.gmra.mxu1 %v4377_v56  ;;  %v2048_v57 = vpack.c.bf16 %v16947_v58, %v16945_v28  ;;  %v4384_v55 = vrot.slane %v4382_v22, 1  ;;  %v14652_v60 = vcombine.low %v4297_v49, %v4298_v24  ;;  %v4273_v59 = vsel %vm12223_vm8, %v4265_v21, %v4272_v1  ;;  %vm14677_vm8 = vmpackc.low %vm5038_vm2, %vm5038_vm2  ;;  %v16957_v56 = vld [vmem:[#allocation69_spill] sm:$0xff]  ;;  %v11029_v24 = vld [vmem:[%s16303_s3 + $0x1c0] sm:$0xff]  }
 0x1f0   : > { %10757 = vmatprep.mubr.msk.bf16.mxu1 %vm16652_vm10, %v16651_v27  ;;  %10826 = vmatpush3.bf16.msra.mxu1 %v11025_v3  ;;  %v5078_v40 = vor.u32 %v5077_v50, %v14612_v41  ;;  %v14658_v5 = vrot.slane %v5081_v51, 5  ;;  %v5087_v12 = vrot.slane %v5085_v48, 4  ;;  %v5101_v45 = vshll.u32 %v5061_v37, 16  ;;  %v16955_v3 = vld [vmem:[#allocation66_spill] sm:$0xff] }
 0x1f1   : > { %10706 = vmatmul.mubr.bf16.gmra.mxu0 %v2048_v57  ;;  %10827 = vmatprep.subr.bf16.mxu1 %v16651_v27  ;;  %v5105_v14 = vshrl.u32 %v5061_v37, 16  ;;  %v4380_v33 = vor.u32 %v4378_v53, %v4376_v18  ;;  %v5098_v4 = vor.u32 %v5097_v13, %v14629_v16  ;;  %v5111_v44 = vshll.u32 %v5062_v46, 16  ;;  %v11027_v13 = vld [vmem:[%s16303_s3 + $0x190] sm:$0xff]  }
 0x1f2   : > { %10709 = vmatprep.mubr.msk.bf16.mxu0 %vm16652_vm10, %v16651_v27  ;;  %v5115_v23 = vshrl.u32 %v5062_v46, 16  ;;  %vm4286_vm0 = vcmp.ne.s16.totalorder %v4273_v59, 0  ;;  %v4390_v15 = vshll.u32 %v14652_v60, 16  ;;  %v5079_v30 = vrot.slane %v5078_v40, 4  ;;  %10780 = vmatpush3.bf16.msra.mxu0 %v11022_v38 }
 0x1f3   : > { %v4385_v18 = vsel %vm16954_vm14, %v4380_v33, %v4384_v55  ;;  %v5088_v29 = vor.u32 %v5087_v12, %v14658_v5  ;;  %v5063_v34 = vsel %vm14668_vm15, 65537, %v16505_v20  ;;  %v4299_v17 = vsel %vm4286_vm0, %v4067_v47, 0  ;;  %10781 = vmatprep.subr.bf16.mxu0 %v16651_v27  ;;  %vm16976_vm14 = vmmov %vm16961_vm1 }
 0x1f4   : > { %10828 = vmatpush3.bf16.msra.mxu1 %v11026_v54  ;;  %v5103_v63 = vrot.slane %v5101_v45, 5  ;;  %v5107_v52 = vrot.slane %v5105_v14, 4  ;;  %v5064_v26 = vsel %vm14677_vm8, 65537, %v16505_v20  ;;  %v16956_v1 = vmax.f32 %v16955_v3, 0.0 }
 0x1f5   : > { %10829 = vmatprep.subr.bf16.mxu1 %v16651_v27  ;;  %v16958_v22 = vmax.f32 %v16957_v56, 0.0  ;;  %v5099_v51 = vrot.slane %v5098_v4, 4  ;;  %v14704_v48 = vrot.slane %v5111_v44, 5  ;;  %v5117_v62 = vrot.slane %v5115_v23, 4  ;;  %v16966_v4 = vld [vmem:[#allocation71_spill] sm:$0xff] }
 0x1f6   : > { %vm5039_vm7 = vcmp.eq.s32.totalorder %v16959_v6, 1  ;;  %v5121_v21 = vshll.u32 %v5063_v34, 16  ;;  %v4386_v37 = vshrl.u32 %v14591_v2, 16  ;;  %v4392_v10 = vrot.slane %v4390_v15, 1  ;;  %10782 = vmatpush3.bf16.msra.mxu0 %v11024_v8  ;;  %v16960_v2 = vld [vmem:[#allocation12_spill] sm:$0xff]  ;;  %v16968_v23 = vld [vmem:[#allocation75_spill] sm:$0xff] }
 0x1f7   : > { %10758 = vmatmul.mubr.bf16.gmra.mxu1 %v4385_v18  ;;  %v2049_v50 = vpack.c.bf16 %v16958_v22, %v16956_v1  ;;  %v14711_v28 = vcombine.low %v4299_v17, %v4299_v17  ;;  %v5089_v7 = vrot.slane %v5088_v29, 4  ;;  %v5125_v58 = vshrl.u32 %v5063_v34, 16  ;;  %vm5052_vm6 = vmpackc.low %vm5039_vm7, %vm5039_vm7  ;;  %10783 = vmatprep.subr.bf16.mxu0 %v16651_v27  ;;  %v4966_v15 = vld [vmem:[#allocation2 + $0x4] sm:$0x8]  ;;  %v16972_v1 = vld [vmem:[#allocation35_spill] sm:$0xff] }
 0x1f8   : > { %10761 = vmatprep.mubr.msk.bf16.mxu1 %vm16652_vm10, %v16651_v27  ;;  %10830 = vmatpush3.bf16.msra.mxu1 %v11028_v39  ;;  %v5131_v57 = vshll.u32 %v5064_v26, 16  ;;  %v5135_v0 = vshrl.u32 %v5064_v26, 16  ;;  %vm5040_vm3 = vcmp.eq.s32.totalorder %v16960_v2, 1  ;;  %v4388_v25 = vor.u32 %v4386_v37, %v4384_v55  ;;  %v11184_v26 = vld [vmem:[#allocation2 + $0x10] sm:$0xf] }
 0x1f9   : > { %10710 = vmatmul.mubr.bf16.gmra.mxu0 %v2049_v50  ;;  %10831 = vmatprep.subr.bf16.mxu1 %v16651_v27  ;;  %v5108_v49 = vor.u32 %v5107_v52, %v5103_v63  ;;  %v5118_v54 = vor.u32 %v5117_v62, %v14704_v48  ;;  %v5084_v46 = vsel %vm13071_vm4, %v5079_v30, %v14658_v5  ;;  %v5123_v59 = vrot.slane %v5121_v21, 5  ;;  %vm5053_vm12 = vmpackc.low %vm5040_vm3, %vm5040_vm3  ;;  %v11030_v5 = vld [vmem:[%s16303_s3 + $0x188] sm:$0xff]  }
 0x1fa   : > { %10713 = vmatprep.mubr.msk.bf16.mxu0 %vm16652_vm10, %v16651_v27  ;;  %v5104_v53 = vsel %vm13071_vm4, %v5099_v51, %v5103_v63  ;;  %v4393_v40 = vsel %vm16961_vm1, %v4388_v25, %v4392_v10  ;;  %v4398_v12 = vshll.u32 %v14711_v28, 16  ;;  %v5127_v38 = vrot.slane %v5125_v58, 4  ;;  %10784 = vmatpush3.bf16.msra.mxu0 %v11027_v13  ;;  %v11183_v63 = vld [vmem:[#allocation2 + $0x8] sm:$0xf]  ;;  %v11185_v62 = vld [vmem:[#allocation2 + $0xc] sm:$0xf] }
 0x1fb   : > { %v14732_v55 = vrot.slane %v5131_v57, 5  ;;  %v14735_v45 = vsel %vm5052_vm6, 65537, %v16505_v20  ;;  %v5094_v14 = vsel %vm13071_vm4, %v5089_v7, %v14629_v16  ;;  %v5137_v42 = vrot.slane %v5135_v0, 4  ;;  %10785 = vmatprep.subr.bf16.mxu0 %v16651_v27  ;;  %v16973_v58 = vld [vmem:[#allocation79_spill] sm:$0xff] }
 0x1fc   : > { %10832 = vmatpush3.bf16.msra.mxu1 %v11029_v24  ;;  %vm14743_vm5 = vcmp.ne.s16.totalorder %v5084_v46, 0  ;;  %vm14747_vm9 = vcmp.ne.s16.totalorder %v5104_v53, 0  ;;  %v16967_v44 = vmax.f32 %v16966_v4, 0.0  ;;  %v16969_v16 = vmax.f32 %v16968_v23, 0.0  ;;  %v16981_v53 = vld [vmem:[#allocation37_spill] sm:$0xff]  ;;  %v16985_v4 = vld [vmem:[#allocation28_spill] sm:$0xff] }
 0x1fd   : > { %vm5199_vm11 = vcmp.ne.s16.totalorder %v14612_v41, 0  ;;  %v5109_v39 = vrot.slane %v5108_v49, 4  ;;  %v5119_v18 = vrot.slane %v5118_v54, 4  ;;  %vm14759_vm2 = vcmp.ne.s16.totalorder %v5094_v14, 0  ;;  %v16979_v54 = vld [vmem:[#allocation77_spill] sm:$0xff] }
 0x1fe   : > { %v2050_v32 = vpack.c.bf16 %v16969_v16, %v16967_v44  ;;  %v5066_v29 = vsel %vm5053_vm12, 65537, %v16505_v20  ;;  %v4394_v34 = vshrl.u32 %v14652_v60, 16  ;;  %v4400_v17 = vrot.slane %v4398_v12, 1  ;;  %10786 = vmatpush3.bf16.msra.mxu0 %v11030_v5  ;;  %v11031_v60 = vld [vmem:[%s16303_s3 + $0x180] sm:$0xff]   ;;  %v11186_v44 = vld [vmem:[#allocation2 + $0x18] sm:$0xf] }
 0x1ff   : > { %10762 = vmatmul.mubr.bf16.gmra.mxu1 %v4393_v40  ;;  %v5141_v8 = vshll.u32 %v14735_v45, 16  ;;  %v5214_v52 = vsel %vm14743_vm5, %v11183_v63, 0  ;;  %v5216_v3 = vsel %vm14747_vm9, %v11184_v26, 0  ;;  %vm5042_vm15 = vcmp.eq.s32.totalorder %v16972_v1, 1  ;;  %10787 = vmatprep.subr.bf16.mxu0 %v16651_v27  ;;  %v11188_v49 = vld [vmem:[#allocation2 + $0x20] sm:$0xf] }
 0x200   : > { %10765 = vmatprep.mubr.msk.bf16.mxu1 %vm16652_vm10, %v16651_v27  ;;  %v5128_v56 = vor.u32 %v5127_v38, %v5123_v59  ;;  %v5138_v22 = vor.u32 %v5137_v42, %v14732_v55  ;;  %v5213_v50 = vsel %vm5199_vm11, %v4966_v15, 0  ;;  %v4396_v51 = vor.u32 %v4394_v34, %v4392_v10  ;;  %vm14788_vm0 = vmpackc.low %vm5042_vm15, %vm5042_vm15  ;;  %v11187_v34 = vld [vmem:[#allocation2 + $0x14] sm:$0xf] }
 0x201   : > { %10714 = vmatmul.mubr.bf16.gmra.mxu0 %v2050_v32  ;;  %v5215_v6 = vsel %vm14759_vm2, %v11185_v62, 0  ;;  %v5151_v24 = vshll.u32 %v5066_v29, 16  ;;  %v5155_v21 = vshrl.u32 %v5066_v29, 16  ;;  %v5124_v37 = vsel %vm13071_vm4, %v5119_v18, %v5123_v59 }
 0x202   : > { %10717 = vmatprep.mubr.msk.bf16.mxu0 %vm16652_vm10, %v16651_v27  ;;  %v10134_v7 = vcombine.low %v5213_v50, %v5214_v52  ;;  %vm5041_vm8 = vcmp.eq.s32.totalorder %v16973_v58, 1  ;;  %v10135_v57 = vcombine.low %v5215_v6, %v5216_v3  ;;  %v4401_v10 = vsel %vm16976_vm14, %v4396_v51, %v4400_v17  ;;  %10788 = vmatpush3.bf16.msra.mxu0 %v11031_v60 }
 0x203   : > { %v5145_v13 = vshrl.u32 %v14735_v45, 16  ;;  %v5114_v0 = vsel %vm13071_vm4, %v5109_v39, %v14704_v48  ;;  %v5139_v2 = vrot.slane %v5138_v22, 4  ;;  %v14797_v25 = vrot.slane %v5141_v8, 5  ;;  %10861 = vmatprep.subr.bf16.mxu0 %v16651_v27  ;;  %vm5054_vm6 = vmpackc.low %vm5041_vm8, %vm5041_vm8  ;;  %v14845_v60 = vpop.f32.mrf.mxu1 }
 0x204   : > { %vm14799_vm7 = vcmp.ne.s16.totalorder %v5124_v37, 0  ;;  %v16980_v46 = vmax.f32 %v16979_v54, 0.0  ;;  %v16982_v59 = vmax.f32 %v16981_v53, 0.0  ;;  %v5129_v48 = vrot.slane %v5128_v56, 4  ;;  %v16992_v37 = vld [vmem:[#allocation36_spill] sm:$0xff] }
 0x205   : > { %v14810_v12 = vrot.slane %v5151_v24, 5  ;;  %v5157_v38 = vrot.slane %v5155_v21, 4  ;;  %v5068_v45 = vsel %vm14788_vm0, 65537, %v16505_v20  ;;  %v5280_v14 = vshrl.u32 %v10134_v7, 16  ;;  %v16990_v24 = vld [vmem:[#allocation26_spill] sm:$0xff] }
 0x206   : > { %v2051_v40 = vpack.c.bf16 %v16982_v59, %v16980_v46  ;;  %v5288_v5 = vshrl.u32 %v10135_v57, 16  ;;  %v5291_v42 = vshll.u32 %v10135_v57, 16  ;;  %vm14818_vm3 = vcmp.ne.s16.totalorder %v5114_v0, 0 }
 0x207   : > { %10766 = vmatmul.mubr.bf16.gmra.mxu1 %v4401_v10  ;;  %v5283_v47 = vshll.u32 %v10134_v7, 16  ;;  %vm5043_vm1 = vcmp.eq.s32.totalorder %v16985_v4, 1  ;;  %v5218_v23 = vsel %vm14799_vm7, %v11186_v44, 0  ;;  %v4402_v16 = vshrl.u32 %v14711_v28, 16 }
 0x208   : > { %10769 = vmatprep.mubr.msk.bf16.mxu1 %vm16652_vm10, %v16651_v27  ;;  %v5067_v32 = vsel %vm5054_vm6, 65537, %v16505_v20  ;;  %v5171_v39 = vshll.u32 %v5068_v45, 16  ;;  %v5175_v18 = vshrl.u32 %v5068_v45, 16  ;;  %v5144_v15 = vsel %vm13071_vm4, %v5139_v2, %v14797_v25  ;;  %vm14838_vm12 = vmpackc.low %vm5043_vm1, %vm5043_vm1  ;;  %v16995_v45 = vld [vmem:[#allocation10_spill] sm:$0xff] }
 0x209   : > { %10718 = vmatmul.mubr.bf16.gmra.mxu0 %v2051_v40  ;;  %v5147_v30 = vrot.slane %v5145_v13, 4  ;;  %v5158_v29 = vor.u32 %v5157_v38, %v14810_v12  ;;  %v5217_v8 = vsel %vm14818_vm3, %v11187_v34, 0  ;;  %v4404_v63 = vor.u32 %v4402_v16, %v4400_v17  ;;  %v11191_v17 = vld [vmem:[#allocation2 + $0x24] sm:$0xf] }
 0x20a   : > { %10721 = vmatprep.mubr.msk.bf16.mxu0 %vm16652_vm10, %v16651_v27  ;;  %v5290_v28 = vrot.slane %v5288_v5, 3  ;;  %v5293_v52 = vrot.slane %v5291_v42, 4  ;;  %v10136_v3 = vcombine.low %v5217_v8, %v5218_v23  ;;  %v5134_v1 = vsel %vm13071_vm4, %v5129_v48, %v14732_v55  ;;  %v10571_v55 = vpop.f32.mrf.mxu1  ;;  %v11189_v48 = vld [vmem:[#allocation2 + $0x1c] sm:$0xf] }
 0x20b   : > { %v5282_v56 = vrot.slane %v5280_v14, 3  ;;  %v5285_v22 = vrot.slane %v5283_v47, 4  ;;  %v5161_v50 = vshll.u32 %v5067_v32, 16  ;;  %vm14847_vm5 = vcmp.ne.s16.totalorder %v5144_v15, 0 }
 0x20c   : > { %v5165_v51 = vshrl.u32 %v5067_v32, 16  ;;  %v14851_v62 = vrot.slane %v5171_v39, 5  ;;  %v5177_v6 = vrot.slane %v5175_v18, 4  ;;  %v16991_v21 = vmax.f32 %v16990_v24, 0.0  ;;  %v14868_v46 = vpop.f32.mrf.mxu1 }
 0x20d   : > { %v5148_v58 = vor.u32 %v5147_v30, %v14797_v25  ;;  %v5159_v57 = vrot.slane %v5158_v29, 4  ;;  %v5069_v41 = vsel %vm14838_vm12, 65537, %v16505_v20  ;;  %vm14862_vm9 = vcmp.ne.s16.totalorder %v5134_v1, 0 }
 0x20e   : > { %v2052_v7 = vpack.c.bf16 %v16992_v37, %v16991_v21  ;;  %v5294_v13 = vor.u32 %v5293_v52, %v5290_v28  ;;  %v5297_v0 = vshrl.u32 %v10136_v3, 16  ;;  %v5300_v2 = vshll.u32 %v10136_v3, 16  ;;  %v10572_v14 = vpop.f32.mrf.mxu1  ;;  %v11190_v52 = vld [vmem:[#allocation2 + $0x28] sm:$0xf] }
 0x20f   : > { %10770 = vmatmul.mubr.bf16.gmra.mxu1 %v4404_v63  ;;  %v5220_v54 = vsel %vm14847_vm5, %v11188_v49, 0  ;;  %v5286_v25 = vor.u32 %v5285_v22, %v5282_v56  ;;  %v5163_v53 = vrot.slane %v5161_v50, 5  ;;  %v5167_v59 = vrot.slane %v5165_v51, 4  ;;  %v16998_v63 = vld [vmem:[#allocation48_spill] sm:$0xff] }
 0x210   : > { %10833 = vmatprep.mubr.msk.bf16.mxu1 %vm16652_vm10, %v16651_v27  ;;  %v5178_v40 = vor.u32 %v5177_v6, %v14851_v62  ;;  %v5219_v38 = vsel %vm14862_vm9, %v11189_v48, 0  ;;  %vm5044_vm11 = vcmp.eq.s32.totalorder %v16995_v45, 1  ;;  %v5149_v5 = vrot.slane %v5148_v58, 4  ;;  %v14896_v56 = vpop.f32.mrf.mxu1 }
 0x211   : > { %10722 = vmatmul.mubr.bf16.gmra.mxu0 %v2052_v7  ;;  %v5181_v42 = vshll.u32 %v5069_v41, 16  ;;  %v10137_v33 = vcombine.low %v5219_v38, %v5220_v54  ;;  %v5164_v47 = vsel %vm13071_vm4, %v5159_v57, %v5163_v53  ;;  %v5299_v4 = vrot.slane %v5297_v0, 3  ;;  %vm5057_vm2 = vmpackc.low %vm5044_vm11, %vm5044_vm11  ;;  %v11032_v57 = vld [vmem:[%s16303_s3 + $0x238] sm:$0xff]   ;;  %v11192_v0 = vld [vmem:[#allocation2 + $0x30] sm:$0xf] }
 0x212   : > { %10725 = vmatprep.mubr.msk.bf16.mxu0 %vm16652_vm10, %v16651_v27  ;;  %v5302_v44 = vrot.slane %v5300_v2, 4  ;;  %v5295_v23 = vsel %vm3682_vm13, %v5286_v25, %v5294_v13  ;;  %v5185_v16 = vshrl.u32 %v5069_v41, 16  ;;  %v5154_v32 = vsel %vm13071_vm4, %v5149_v5, %v14810_v12  ;;  %v10575_v7 = vpop.f32.mrf.mxu1 }
 0x213   : > { %v5168_v39 = vor.u32 %v5167_v59, %v5163_v53  ;;  %v5179_v18 = vrot.slane %v5178_v40, 4  ;;  %vm14882_vm15 = vcmp.ne.s16.totalorder %v5164_v47, 0  ;;  %v5183_v30 = vrot.slane %v5181_v42, 5  ;;  %v11033_v53 = vld [vmem:[%s16303_s3 + $0x230] sm:$0xff]   ;;  %v11193_v59 = vld [vmem:[#allocation2 + $0x2c] sm:$0xf] }
 0x214   : > { %v5306_v29 = vshrl.u32 %v10137_v33, 16  ;;  %v5070_v34 = vsel %vm5057_vm2, 65537, %v16505_v20  ;;  %v5309_v8 = vshll.u32 %v10137_v33, 16  ;;  %vm5207_vm8 = vcmp.ne.s16.totalorder %v5154_v32, 0  ;;  %v14911_v41 = vpop.f32.mrf.mxu1  ;;  %v11034_v42 = vld [vmem:[%s16303_s3 + $0x228] sm:$0xff]  }
 0x215   : > { %v5303_v28 = vor.u32 %v5302_v44, %v5299_v4  ;;  %v5187_v12 = vrot.slane %v5185_v16, 4  ;;  %v5222_v26 = vsel %vm14882_vm15, %v11190_v52, 0  ;;  %v5169_v3 = vrot.slane %v5168_v39, 4  ;;  %v14939_v44 = vld [vmem:[#allocation2 + $0x38] sm:$0x1]  ;;  %v11035_v39 = vld [vmem:[%s16303_s3 + $0x220] sm:$0xff]  }
 0x216   : > { %v5184_v1 = vsel %vm13071_vm4, %v5179_v18, %v5183_v30  ;;  %v5191_v22 = vshll.u32 %v5070_v34, 16  ;;  %v5308_v50 = vrot.slane %v5306_v29, 3  ;;  %v5221_v51 = vsel %vm5207_vm8, %v11191_v17, 0  ;;  %v10576_v54 = vpop.f32.mrf.mxu1  ;;  %v11194_v16 = vld [vmem:[#allocation2 + $0x34] sm:$0xf]  ;;  %v11036_v52 = vld [vmem:[%s16303_s3 + $0x218] sm:$0xff]  }
 0x217   : > { %10834 = vmatmul.mubr.bf16.vlgmr.msra.gmra.mxu1 %v5295_v23  ;;  %v5311_v6 = vrot.slane %v5309_v8, 4  ;;  %v10138_v24 = vcombine.low %v5221_v51, %v5222_v26  ;;  %v5174_v21 = vsel %vm13071_vm4, %v5169_v3, %v14851_v62  ;;  %v5304_v37 = vsel %vm3682_vm13, %v5294_v13, %v5303_v28  ;;  %v11038_v7 = vld [vmem:[%s16303_s3 + $0x208] sm:$0xff]  }
 0x218   : > { %10837 = vmatprep.mubr.msk.bf16.mxu1 %vm16652_vm10, %v16651_v27  ;;  %v5188_v55 = vor.u32 %v5187_v12, %v5183_v30  ;;  %vm14902_vm0 = vcmp.ne.s16.totalorder %v5184_v1, 0  ;;  %v5193_v10 = vrot.slane %v5191_v22, 5  ;;  %vm5209_vm14 = vcmp.ne.s16.totalorder %v5174_v21, 0 }
 0x219   : > { %10726 = vmatmul.mubr.bf16.gmra.mxu0 %v16998_v63  ;;  %v5315_v62 = vshrl.u32 %v10138_v24, 16  ;;  %v5318_v13 = vshll.u32 %v10138_v24, 16  ;;  %v5224_v2 = vsel %vm14902_vm0, %v11192_v0, 0  ;;  %v5312_v49 = vor.u32 %v5311_v6, %v5308_v50  ;;  %v11037_v6 = vld [vmem:[%s16303_s3 + $0x210] sm:$0xff]  }
 0x21a   : > { %10789 = vmatprep.mubr.msk.bf16.mxu0 %vm16652_vm10, %v16651_v27  ;;  %v5189_v25 = vrot.slane %v5188_v55, 4  ;;  %v5223_v40 = vsel %vm5209_vm14, %v11193_v59, 0 }
 0x21b   : > { %v10139_v48 = vcombine.low %v5223_v40, %v5224_v2  ;;  %v5317_v45 = vrot.slane %v5315_v62, 3  ;;  %v5320_v14 = vrot.slane %v5318_v13, 4  ;;  %v5313_v5 = vsel %vm3682_vm13, %v5303_v28, %v5312_v49  ;;  %v11039_v13 = vld [vmem:[%s16303_s3 + $0x200] sm:$0xff]  }
 0x21c   : > { %v5194_v38 = vsel %vm13071_vm4, %v5189_v25, %v5193_v10 }
 0x21d   : > { %vm14928_vm7 = vcmp.ne.s16.totalorder %v5194_v38, 0  ;;  %v5324_v61 = vshrl.u32 %v10139_v48, 16  ;;  %v5327_v4 = vshll.u32 %v10139_v48, 16  ;;  %v5321_v23 = vor.u32 %v5320_v14, %v5317_v45 }
 0x21e   : > { %v5225_v32 = vsel %vm14928_vm7, %v11194_v16, 0 }
 0x21f   : > { %10838 = vmatmul.mubr.bf16.gmra.mxu1 %v5304_v37  ;;  %v5326_v15 = vrot.slane %v5324_v61, 3  ;;  %v5322_v63 = vsel %vm3682_vm13, %v5312_v49, %v5321_v23 }
 0x220   : > { %10841 = vmatprep.mubr.msk.bf16.mxu1 %vm16652_vm10, %v16651_v27  ;;  %v2924_v18 = vpop.f32.mrf.mxu1 }
 0x221   : > { %10790 = vmatmul.mubr.bf16.vlgmr.msra.gmra.mxu0 %v14396_v11  ;;  %v5195_v11 = vshrl.u32 %v5070_v34, 16  ;;  %v5329_v34 = vrot.slane %v5327_v4, 4 }
 0x222   : > { %10862 = vmatpush3.bf16.msra.mxu0 %v11032_v57  ;;  %10793 = vmatprep.mubr.msk.bf16.mxu0 %vm16652_vm10, %v16651_v27  ;;  %v10579_v29 = vpop.f32.mrf.mxu1 }
 0x223   : > { %10863 = vmatprep.subr.bf16.mxu0 %v16651_v27  ;;  %vm14935_vm4 = vcmp.ne.s16.totalorder %v5195_v11, 0 }
 0x224   : > { %v2927_v26 = vpop.f32.mrf.mxu1 }
 0x225   : > { %v2732_v30 = vpop.f32.mrf.mxu0 }
 0x226   : > { %10864 = vmatpush3.bf16.msra.mxu0 %v11033_v53  ;;  %v14955_v28 = vadd.f32 %v14845_v60, %v2732_v30  ;;  %v10580_v1 = vpop.f32.mrf.mxu1  ;;  %v5330_v60 = vor.u32 %v5329_v34, %v5326_v15 }
 0x227   : > { %10842 = vmatmul.mubr.bf16.gmra.mxu1 %v5313_v5  ;;  %10865 = vmatprep.subr.bf16.mxu0 %v16651_v27  ;;  %v10527_v12 = vpop.f32.mrf.mxu0 }
 0x228   : > { %10845 = vmatprep.mubr.msk.bf16.mxu1 %vm16652_vm10, %v16651_v27  ;;  %v5331_v37 = vsel %vm3682_vm13, %v5321_v23, %v5330_v60  ;;  %v17006_v12 = vld [vmem:[#allocation19_spill] sm:$0xff] }
 0x229   : > { %10794 = vmatmul.mubr.bf16.gmra.mxu0 %v14419_v43  ;;  %v5226_v43 = vsel %vm14935_vm4, %v14939_v44, 0  ;;  %v2735_v3 = vpop.f32.mrf.mxu0 }
 0x22a   : > { %10866 = vmatpush3.bf16.msra.mxu0 %v11034_v42  ;;  %10797 = vmatprep.mubr.msk.bf16.mxu0 %vm16652_vm10, %v16651_v27  ;;  %v10140_v8 = vcombine.low %v5225_v32, %v5226_v43  ;;  %v14965_v17 = vadd.f32 %v14868_v46, %v2735_v3 }
 0x22b   : > { %10867 = vmatprep.subr.bf16.mxu0 %v16651_v27  ;;  %v10528_v51 = vpop.f32.mrf.mxu0 }
 0x22c   : > { %v5333_v22 = vshrl.u32 %v10140_v8, 16  ;;  %v5336_v50 = vshll.u32 %v10140_v8, 16 }
 0x22d   : > { %v2932_v58 = vpop.f32.mrf.mxu1 }
 0x22e   : > { %10868 = vmatpush3.bf16.msra.mxu0 %v11035_v39  ;;  %v5335_v24 = vrot.slane %v5333_v22, 3  ;;  %v5338_v21 = vrot.slane %v5336_v50, 4  ;;  %v17005_v39 = vld [vmem:[#allocation27_spill] sm:$0xff] }
 0x22f   : > { %10846 = vmatmul.mubr.bf16.gmra.mxu1 %v5322_v63  ;;  %10869 = vmatprep.subr.bf16.mxu0 %v16651_v27  ;;  %v10583_v62 = vpop.f32.mrf.mxu1 }
 0x230   : > { %10849 = vmatprep.mubr.msk.bf16.mxu1 %vm16652_vm10, %v16651_v27  ;;  %v5339_v57 = vor.u32 %v5338_v21, %v5335_v24  ;;  %v11043_v62 = vld [vmem:[%s16305_s5 + $0xe8] ss:$16 sps:$4 sm:$0xff]  }
 0x231   : > { %10798 = vmatmul.mubr.bf16.gmra.mxu0 %v14440_v36  ;;  %v2740_v36 = vpop.f32.mrf.mxu0  ;;  %v2935_v2 = vpop.f32.mrf.mxu1 }
 0x232   : > { %10801 = vmatprep.mubr.msk.bf16.mxu0 %vm16652_vm10, %v16651_v27  ;;  %10870 = vmatpush3.bf16.msra.mxu0 %v11036_v52  ;;  %v14975_v46 = vadd.f32 %v14896_v56, %v2740_v36 }
 0x233   : > { %10871 = vmatprep.subr.bf16.mxu0 %v16651_v27  ;;  %v10531_v55 = vpop.f32.mrf.mxu0  ;;  %v10584_v49 = vpop.f32.mrf.mxu1 }
 0x235   : > { %v2743_v10 = vpop.f32.mrf.mxu0 }
 0x236   : > { %10872 = vmatpush3.bf16.msra.mxu0 %v11037_v6  ;;  %v14987_v56 = vadd.f32 %v14911_v41, %v2743_v10  ;;  %v17007_v6 = vld [vmem:[#allocation24_spill] sm:$0xff] }
 0x237   : > { %10850 = vmatmul.mubr.bf16.gmra.mxu1 %v5331_v37  ;;  %10873 = vmatprep.subr.bf16.mxu0 %v16651_v27  ;;  %v10532_v0 = vpop.f32.mrf.mxu0 }
 0x238   : > { %10853 = vmatprep.mubr.msk.bf16.mxu1 %vm16652_vm10, %v16651_v27 }
 0x239   : > { %10802 = vmatmul.mubr.bf16.gmra.mxu0 %v14453_v31  ;;  %v5340_v31 = vsel %vm3682_vm13, %v5330_v60, %v5339_v57  ;;  %v2748_v41 = vpop.f32.mrf.mxu0 }
 0x23a   : > { %10805 = vmatprep.mubr.msk.bf16.mxu0 %vm16652_vm10, %v16651_v27  ;;  %10874 = vmatpush3.bf16.msra.mxu0 %v11038_v7  ;;  %v14999_v54 = vadd.f32 %v2924_v18, %v2748_v41  ;;  %v2940_v25 = vpop.f32.mrf.mxu1 }
 0x23b   : > { %10875 = vmatprep.subr.bf16.mxu0 %v16651_v27  ;;  %v10535_v53 = vpop.f32.mrf.mxu0 }
 0x23c   : > { %v10587_v59 = vpop.f32.mrf.mxu1 }
 0x23d   : > { %v2751_v40 = vpop.f32.mrf.mxu0 }
 0x23e   : > { %10876 = vmatpush3.bf16.msra.mxu0 %v11039_v13  ;;  %v15001_v48 = vadd.f32 %v2927_v26, %v2751_v40  ;;  %v2943_v38 = vpop.f32.mrf.mxu1  ;;  %v11045_v13 = vld [vmem:[%s16305_s5 + $0xec] ss:$16 sps:$4 sm:$0xff]  }
 0x23f   : > { %10854 = vmatmul.mubr.bf16.gmra.mxu1 %v5340_v31  ;;  %v10536_v11 = vpop.f32.mrf.mxu0  ;;  %v17008_v31 = vld [vmem:[#allocation31_spill] sm:$0xff]  ;;  %6162 = vmatprep.subr.bf16.mxu0 %v11045_v13 }
 0x240   : > { %10857 = vmatprep.mubr.msk.bf16.mxu1 %vm16652_vm10, %v16651_v27 }
 0x241   : > { %10806 = vmatmul.mubr.bf16.gmra.mxu0 %v14476_v9  ;;  %v10588_v9 = vpop.f32.mrf.mxu1 }
 0x242   : > { %10809 = vmatprep.mubr.msk.bf16.mxu0 %vm16652_vm10, %v16651_v27  ;;  %v11046_v9 = vld [vmem:[%s16305_s5 + $0xc0] ss:$16 sps:$4 sm:$0xff]  }
 0x244   : > { %v2948_v45 = vpop.f32.mrf.mxu1 }
 0x246   : > { %v2756_v14 = vpop.f32.mrf.mxu0  ;;  %v10591_v42 = vpop.f32.mrf.mxu1 }
 0x247   : > { %10858 = vmatmul.mubr.bf16.gmra.mxu1 %v5339_v57  ;;  %v15007_v5 = vadd.f32 %v2932_v58, %v2756_v14  ;;  %v11040_v58 = vld [vmem:[%s16305_s5 + $0xe0] ss:$16 sps:$4 sm:$0xff]   ;;  %v11042_v57 = vld [vmem:[%s16305_s5 + $0xe4] ss:$16 sps:$4 sm:$0xff]   ;;  %v11049_v14 = vld [vmem:[%s16305_s5 + $0xc8] ss:$16 sps:$4 sm:$0xff]  }
 0x248   : > { %6093 = vmatprep.mubr.bf16.mxu1 %v16505_v20  ;;  %v10539_v33 = vpop.f32.mrf.mxu0  ;;  %v2951_v61 = vpop.f32.mrf.mxu1  ;;  %6061 = vmatprep.subr.bf16.mxu1 %v11042_v57  ;;  %v11051_v42 = vld [vmem:[%s16305_s5 + $0xcc] ss:$16 sps:$4 sm:$0xff]  }
 0x249   : > { %10810 = vmatmul.mubr.bf16.gmra.mxu0 %v14480_v19  ;;  %6062 = vmatpush1.bf16.msra.mxu1 %v11040_v58 }
 0x24a   : > { %10813 = vmatprep.mubr.msk.bf16.mxu0 %vm16652_vm10, %v16651_v27  ;;  %v2759_v47 = vpop.f32.mrf.mxu0  ;;  %v10592_v19 = vpop.f32.mrf.mxu1 }
 0x24b   : > { %v15012_v4 = vadd.f32 %v2935_v2, %v2759_v47  ;;  %v17009_v47 = vld [vmem:[#allocation32_spill] sm:$0xff]  ;;  %v5561_v19 = vpop.permute.xlu1 %5560 }
 0x24c   : > { %v10540_v23 = vpop.f32.mrf.mxu0  ;;  %vm5574_vm13 = vcmp.eq.s32.totalorder %v5561_v19, 1 }
 0x24d   : > { %vm5587_vm6 = vmpackc.low %vm5574_vm13, %vm5574_vm13 }
 0x24e   : > { %v2956_v16 = vpop.f32.mrf.mxu1 }
 0x250   : > { %v10595_v18 = vpop.f32.mrf.mxu1 }
 0x251   : > { %10814 = vmatmul.mubr.bf16.gmra.mxu0 %v14455_v35 }
 0x252   : > { %10877 = vmatprep.mubr.msk.bf16.mxu0 %vm16652_vm10, %v16651_v27  ;;  %v2764_v32 = vpop.f32.mrf.mxu0  ;;  %v2959_v43 = vpop.f32.mrf.mxu1 }
 0x253   : > { %v15015_v15 = vadd.f32 %v2940_v25, %v2764_v32  ;;  %v11054_v43 = vld [vmem:[%s16305_s5 + $0xa4] ss:$16 sps:$4 sm:$0xff]  }
 0x254   : > { %v10543_v35 = vpop.f32.mrf.mxu0  ;;  %v10596_v29 = vpop.f32.mrf.mxu1 }
 0x255   : > { %v11052_v35 = vld [vmem:[%s16305_s5 + $0xa0] ss:$16 sps:$4 sm:$0xff]   ;;  %v11057_v29 = vld [vmem:[%s16305_s5 + $0xac] ss:$16 sps:$4 sm:$0xff]  }
 0x256   : > { %v2767_v30 = vpop.f32.mrf.mxu0 }
 0x257   : > { %v15019_v34 = vadd.f32 %v2943_v38, %v2767_v30 }
 0x258   : > { %v10544_v8 = vpop.f32.mrf.mxu0 }
 0x259   : > { %10878 = vmatmul.mubr.bf16.vlgmr.msra.gmra.mxu0 %v17005_v39 }
 0x25a   : > { %10881 = vmatprep.mubr.msk.bf16.mxu0 %vm16652_vm10, %v16651_v27  ;;  %v2772_v63 = vpop.f32.mrf.mxu0  ;;  %6163 = vmatpush1.bf16.msra.mxu0 %v11043_v62 }
 0x25b   : > { %v15022_v52 = vadd.f32 %v2948_v45, %v2772_v63  ;;  %6164 = vmatprep.subr.bf16.mxu0 %v11051_v42  ;;  %v11073_v42 = vld [vmem:[%s16305_s5 + $0x48] ss:$16 sps:$4 sm:$0xff]  }
 0x25c   : > { %v10547_v26 = vpop.f32.mrf.mxu0 }
 0x25e   : > { %v2775_v3 = vpop.f32.mrf.mxu0  ;;  %6165 = vmatpush1.bf16.msra.mxu0 %v11049_v14  ;;  %v11072_v14 = vld [vmem:[%s16305_s5 + $0x44] ss:$16 sps:$4 sm:$0xff]  }
 0x25f   : > { %v15026_v22 = vadd.f32 %v2951_v61, %v2775_v3  ;;  %6166 = vmatprep.subr.bf16.mxu0 %v11057_v29  ;;  %v11076_v29 = vld [vmem:[%s16305_s5 + $0x20] ss:$16 sps:$4 sm:$0xff]  }
 0x260   : > { %v3834_v1 = vpop.f32.mrf.mxu1  ;;  %v10548_v50 = vpop.f32.mrf.mxu0 }
 0x261   : > { %10882 = vmatmul.mubr.bf16.gmra.mxu0 %v17006_v12  ;;  %v17010_v50 = vld [vmem:[#allocation9_spill] sm:$0xff] }
 0x262   : > { %10885 = vmatprep.mubr.msk.bf16.mxu0 %vm16652_vm10, %v16651_v27  ;;  %v10659_v60 = vpop.f32.mrf.mxu1 }
 0x264   : > { %v2780_v51 = vpop.f32.mrf.mxu0  ;;  %v3837_v24 = vpop.f32.mrf.mxu1 }
 0x265   : > { %v15029_v21 = vadd.f32 %v2956_v16, %v2780_v51 }
 0x266   : > { %v10551_v37 = vpop.f32.mrf.mxu0  ;;  %v10660_v36 = vpop.f32.mrf.mxu1 }
 0x267   : > { %v11058_v36 = vld [vmem:[%s16305_s5 + $0x80] ss:$16 sps:$4 sm:$0xff]  }
 0x268   : > { %v2783_v7 = vpop.f32.mrf.mxu0 }
 0x269   : > { %10886 = vmatmul.mubr.bf16.gmra.mxu0 %v17007_v6  ;;  %v11060_v7 = vld [vmem:[%s16305_s5 + $0x84] ss:$16 sps:$4 sm:$0xff]  }
 0x26a   : > { %10889 = vmatprep.mubr.msk.bf16.mxu0 %vm16652_vm10, %v16651_v27  ;;  %v3842_v55 = vpop.f32.mrf.mxu1  ;;  %v10552_v10 = vpop.f32.mrf.mxu0 }
 0x26c   : > { %v10663_v0 = vpop.f32.mrf.mxu1  ;;  %v3299_v2 = vpop.f32.mrf.mxu0 }
 0x26d   : > { %v3353_v41 = vadd.f32 %v3299_v2, %v14955_v28  ;;  %v11048_v28 = vld [vmem:[%s16305_s5 + $0xc4] ss:$16 sps:$4 sm:$0xff]  }
 0x26e   : > { %v3845_v49 = vpop.f32.mrf.mxu1  ;;  %v10615_v25 = vpop.f32.mrf.mxu0  ;;  %6063 = vmatprep.subr.bf16.mxu1 %v11048_v28 }
 0x26f   : > { %v15049_v59 = vadd.f32 %v3834_v1, %v3353_v41  ;;  %6064 = vmatpush1.bf16.msra.mxu1 %v11046_v9  ;;  %v11067_v41 = vld [vmem:[%s16305_s5 + $0x68] ss:$16 sps:$4 sm:$0xff]  }
 0x270   : > { %v10664_v53 = vpop.f32.mrf.mxu1  ;;  %v3302_v40 = vpop.f32.mrf.mxu0  ;;  %6065 = vmatprep.subr.bf16.mxu1 %v11054_v43 }
 0x271   : > { %10890 = vmatmul.mubr.bf16.gmra.mxu0 %v17008_v31  ;;  %v3354_v11 = vadd.f32 %v3302_v40, %v14965_v17  ;;  %v11069_v53 = vld [vmem:[%s16305_s5 + $0x6c] ss:$16 sps:$4 sm:$0xff]  }
 0x272   : > { %10893 = vmatprep.mubr.msk.bf16.mxu0 %vm16652_vm10, %v16651_v27  ;;  %v10616_v45 = vpop.f32.mrf.mxu0 }
 0x273   : > { %v15064_v61 = vadd.f32 %v3837_v24, %v3354_v11  ;;  %6066 = vmatpush1.bf16.msra.mxu1 %v11052_v35  ;;  %v11070_v45 = vld [vmem:[%s16305_s5 + $0x40] ss:$16 sps:$4 sm:$0xff]  }
 0x274   : > { %v3307_v17 = vpop.f32.mrf.mxu0  ;;  %6067 = vmatprep.subr.bf16.mxu1 %v11060_v7 }
 0x275   : > { %v3850_v38 = vpop.f32.mrf.mxu1  ;;  %v3355_v16 = vadd.f32 %v3307_v17, %v14975_v46  ;;  %v11055_v46 = vld [vmem:[%s16305_s5 + $0xa8] ss:$16 sps:$4 sm:$0xff]  }
 0x276   : > { %v10619_v32 = vpop.f32.mrf.mxu0  ;;  %6167 = vmatpush1.bf16.msra.mxu0 %v11055_v46 }
 0x277   : > { %v10667_v33 = vpop.f32.mrf.mxu1  ;;  %v15070_v18 = vadd.f32 %v3842_v55, %v3355_v16  ;;  %6068 = vmatpush1.bf16.msra.mxu1 %v11058_v36 }
 0x278   : > { %v3310_v30 = vpop.f32.mrf.mxu0 }
 0x279   : > { %10894 = vmatmul.mubr.bf16.gmra.mxu0 %v17009_v47  ;;  %v3853_v23 = vpop.f32.mrf.mxu1  ;;  %v3356_v63 = vadd.f32 %v3310_v30, %v14987_v56  ;;  %v5600_v56 = vsel %vm5587_vm6, %v14939_v44, 0 }
 0x27a   : > { %10897 = vmatprep.mubr.msk.bf16.mxu0 %vm16652_vm10, %v16651_v27  ;;  %v10620_v12 = vpop.f32.mrf.mxu0  ;;  %v10171_v57 = vcombine.low %v5600_v56, %v5600_v56 }
 0x27b   : > { %v10668_v39 = vpop.f32.mrf.mxu1  ;;  %v15085_v3 = vadd.f32 %v3845_v49, %v3356_v63  ;;  %v11064_v49 = vld [vmem:[%s16305_s5 + $0x60] ss:$16 sps:$4 sm:$0xff]  }
 0x27c   : > { %v3315_v1 = vpop.f32.mrf.mxu0 }
 0x27d   : > { %v3357_v51 = vadd.f32 %v3315_v1, %v14999_v54  ;;  %v11061_v54 = vld [vmem:[%s16305_s5 + $0x88] ss:$16 sps:$4 sm:$0xff]  }
 0x27e   : > { %v3858_v8 = vpop.f32.mrf.mxu1  ;;  %v10623_v6 = vpop.f32.mrf.mxu0 }
 0x27f   : > { %v15092_v37 = vadd.f32 %v3850_v38, %v3357_v51 }
 0x280   : > { %v10671_v26 = vpop.f32.mrf.mxu1  ;;  %v3318_v55 = vpop.f32.mrf.mxu0 }
 0x281   : > { %10898 = vmatmul.mubr.bf16.gmra.mxu0 %v17010_v50  ;;  %v3358_v58 = vadd.f32 %v3318_v55, %v15001_v48  ;;  %v11066_v48 = vld [vmem:[%s16305_s5 + $0x64] ss:$16 sps:$4 sm:$0xff]  }
 0x282   : > { %v3861_v60 = vpop.f32.mrf.mxu1  ;;  %10901 = vmatprep.mubr.msk.bf16.mxu0 %vm16652_vm10, %v16651_v27  ;;  %v11063_v27 = vld [vmem:[%s16305_s5 + $0x8c] ss:$16 sps:$4 sm:$0xff]   ;;  %v10624_v10 = vpop.f32.mrf.mxu0  ;;  %6069 = vmatprep.subr.bf16.mxu1 %v11066_v48 }
 0x283   : > { %6168 = vmatprep.subr.bf16.mxu0 %v11063_v27  ;;  %v15107_v13 = vadd.f32 %v3853_v23, %v3358_v58  ;;  %6070 = vmatpush1.bf16.msra.mxu1 %v11064_v49 }
 0x284   : > { %v10672_v24 = vpop.f32.mrf.mxu1  ;;  %6169 = vmatpush1.bf16.msra.mxu0 %v11061_v54  ;;  %v3323_v0 = vpop.f32.mrf.mxu0  ;;  %6071 = vmatprep.subr.bf16.mxu1 %v11072_v14 }
 0x285   : > { %v3359_v31 = vadd.f32 %v3323_v0, %v15007_v5  ;;  %6170 = vmatprep.subr.bf16.mxu0 %v11069_v53  ;;  %v11085_v0 = vld [vmem:[%s16305_s5 + $0x8] ss:$16 sps:$4 sm:$0xff]  }
 0x286   : > { %v3866_v44 = vpop.f32.mrf.mxu1  ;;  %v10627_v25 = vpop.f32.mrf.mxu0 }
 0x287   : > { %v15123_v40 = vadd.f32 %v3858_v8, %v3359_v31  ;;  %6072 = vmatpush1.bf16.msra.mxu1 %v11070_v45  ;;  %v11079_v8 = vld [vmem:[%s16305_s5 + $0x28] ss:$16 sps:$4 sm:$0xff]  }
 0x288   : > { %v10675_v62 = vpop.f32.mrf.mxu1  ;;  %v3326_v38 = vpop.f32.mrf.mxu0  ;;  %6171 = vmatpush1.bf16.msra.mxu0 %v11067_v41 }
 0x289   : > { %10902 = vmatmul.mubr.bf16.gmra.mxu0 %v10171_v57  ;;  %v3360_v9 = vadd.f32 %v3326_v38, %v15012_v4  ;;  %v11075_v4 = vld [vmem:[%s16305_s5 + $0x4c] ss:$16 sps:$4 sm:$0xff]   ;;  %v11082_v62 = vld [vmem:[%s16305_s5] ss:$16 sps:$4 sm:$0xff]  }
 0x28a   : > { %v3869_v2 = vpop.f32.mrf.mxu1  ;;  %6194 = vmatprep.mubr.bf16.mxu0 %v16505_v20  ;;  %v10628_v28 = vpop.f32.mrf.mxu0  ;;  %6172 = vmatprep.subr.bf16.mxu0 %v11075_v4 }
 0x28b   : > { %v15135_v17 = vadd.f32 %v3861_v60, %v3360_v9 }
 0x28c   : > { %v10676_v5 = vpop.f32.mrf.mxu1  ;;  %v3331_v47 = vpop.f32.mrf.mxu0  ;;  %6173 = vmatpush1.bf16.msra.mxu0 %v11073_v42 }
 0x28d   : > { %v3361_v23 = vadd.f32 %v3331_v47, %v15015_v15  ;;  %v11078_v15 = vld [vmem:[%s16305_s5 + $0x24] ss:$16 sps:$4 sm:$0xff]  }
 0x28e   : > { %v10631_v16 = vpop.f32.mrf.mxu0  ;;  %6073 = vmatprep.subr.bf16.mxu1 %v11078_v15 }
 0x28f   : > { %v3874_v11 = vpop.f32.mrf.mxu1  ;;  %v15141_v39 = vadd.f32 %v3866_v44, %v3361_v23  ;;  %6074 = vmatpush1.bf16.msra.mxu1 %v11076_v29 }
 0x290   : > { %v3334_v35 = vpop.f32.mrf.mxu0 }
 0x291   : > { %v10679_v33 = vpop.f32.mrf.mxu1  ;;  %v3362_v46 = vadd.f32 %v3334_v35, %v15019_v34  ;;  %v11081_v34 = vld [vmem:[%s16305_s5 + $0x2c] ss:$16 sps:$4 sm:$0xff]  }
 0x292   : > { %v10632_v30 = vpop.f32.mrf.mxu0  ;;  %6174 = vmatprep.subr.bf16.mxu0 %v11081_v34 }
 0x293   : > { %v3877_v19 = vpop.f32.mrf.mxu1  ;;  %v15153_v12 = vadd.f32 %v3869_v2, %v3362_v46  ;;  %6175 = vmatpush1.bf16.msra.mxu0 %v11079_v8 }
 0x294   : > { %v3339_v26 = vpop.f32.mrf.mxu0 }
 0x295   : > { %v10680_v32 = vpop.f32.mrf.mxu1  ;;  %v3363_v50 = vadd.f32 %v3339_v26, %v15022_v52 }
 0x296   : > { %v10635_v60 = vpop.f32.mrf.mxu0 }
 0x297   : > { %v3882_v43 = vpop.f32.mrf.mxu1  ;;  %v15159_v56 = vadd.f32 %v3874_v11, %v3363_v50 }
 0x298   : > { %v3342_v6 = vpop.f32.mrf.mxu0 }
 0x299   : > { %v10683_v63 = vpop.f32.mrf.mxu1  ;;  %v3364_v36 = vadd.f32 %v3342_v6, %v15026_v22  ;;  %v11084_v22 = vld [vmem:[%s16305_s5 + $0x4] ss:$16 sps:$4 sm:$0xff]  }
 0x29a   : > { %v10636_v7 = vpop.f32.mrf.mxu0  ;;  %6075 = vmatprep.subr.bf16.mxu1 %v11084_v22 }
 0x29b   : > { %v3885_v1 = vpop.f32.mrf.mxu1  ;;  %v15162_v55 = vadd.f32 %v3877_v19, %v3364_v36  ;;  %6076 = vmatpush1.bf16.msra.mxu1 %v11082_v62 }
 0x29c   : > { %v3347_v27 = vpop.f32.mrf.mxu0 }
 0x29d   : > { %v10684_v51 = vpop.f32.mrf.mxu1  ;;  %v3365_v58 = vadd.f32 %v3347_v27, %v15029_v21  ;;  %v11087_v21 = vld [vmem:[%s16305_s5 + $0xc] ss:$16 sps:$4 sm:$0xff]  }
 0x29e   : > { %v10639_v52 = vpop.f32.mrf.mxu0  ;;  %6176 = vmatprep.subr.bf16.mxu0 %v11087_v21 }
 0x29f   : > { %v4494_v24 = vpop.f32.mrf.mxu1  ;;  %v15165_v10 = vadd.f32 %v3882_v43, %v3365_v58  ;;  %6177 = vmatpush1.bf16.msra.mxu0 %v11085_v0 }
 0x2a0   : > { %v3350_v2 = vpop.f32.mrf.mxu0 }
 0x2a1   : > { %v10747_v54 = vpop.f32.mrf.mxu1 }
 0x2a2   : > { %v10640_v49 = vpop.f32.mrf.mxu0 }
 0x2a3   : > { %v4497_v44 = vpop.f32.mrf.mxu1 }
 0x2a4   : > { %v4000_v41 = vpop.f32.mrf.mxu0 }
 0x2a5   : > { %v10748_v57 = vpop.f32.mrf.mxu1  ;;  %v4054_v53 = vadd.f32 %v4000_v41, %v15049_v59 }
 0x2a6   : > { %v10703_v5 = vpop.f32.mrf.mxu0 }
 0x2a7   : > { %v4502_v31 = vpop.f32.mrf.mxu1  ;;  %v15180_v11 = vadd.f32 %v4494_v24, %v4054_v53 }
 0x2a8   : > { %v4003_v9 = vpop.f32.mrf.mxu0 }
 0x2a9   : > { %v10751_v48 = vpop.f32.mrf.mxu1  ;;  %v4055_v45 = vadd.f32 %v4003_v9, %v15064_v61 }
 0x2aa   : > { %v10704_v14 = vpop.f32.mrf.mxu0 }
 0x2ab   : > { %v4505_v25 = vpop.f32.mrf.mxu1  ;;  %v15183_v33 = vadd.f32 %v4497_v44, %v4055_v45 }
 0x2ad   : > { %v10752_v38 = vpop.f32.mrf.mxu1 }
 0x2af   : > { %v4510_v28 = vpop.f32.mrf.mxu1 }
 0x2b1   : > { %v10755_v42 = vpop.f32.mrf.mxu1  ;;  %v4008_v4 = vpop.f32.mrf.mxu0 }
 0x2b2   : > { %v4056_v19 = vadd.f32 %v4008_v4, %v15070_v18 }
 0x2b3   : > { %v4513_v47 = vpop.f32.mrf.mxu1  ;;  %v10707_v23 = vpop.f32.mrf.mxu0 }
 0x2b4   : > { %v15186_v32 = vadd.f32 %v4502_v31, %v4056_v19 }
 0x2b5   : > { %v10756_v16 = vpop.f32.mrf.mxu1  ;;  %v4011_v59 = vpop.f32.mrf.mxu0 }
 0x2b6   : > { %v4057_v43 = vadd.f32 %v4011_v59, %v15085_v3 }
 0x2b7   : > { %v4518_v35 = vpop.f32.mrf.mxu1  ;;  %v10708_v46 = vpop.f32.mrf.mxu0 }
 0x2b8   : > { %v15189_v29 = vadd.f32 %v4505_v25, %v4057_v43 }
 0x2b9   : > { %v10759_v30 = vpop.f32.mrf.mxu1  ;;  %v4016_v61 = vpop.f32.mrf.mxu0 }
 0x2ba   : > { %v4058_v8 = vadd.f32 %v4016_v61, %v15092_v37 }
 0x2bb   : > { %v4521_v15 = vpop.f32.mrf.mxu1  ;;  %v10711_v63 = vpop.f32.mrf.mxu0 }
 0x2bc   : > { %v15192_v26 = vadd.f32 %v4510_v28, %v4058_v8 }
 0x2bd   : > { %v10760_v34 = vpop.f32.mrf.mxu1  ;;  %v4019_v18 = vpop.f32.mrf.mxu0 }
 0x2be   : > { %v4059_v50 = vadd.f32 %v4019_v18, %v15107_v13 }
 0x2bf   : > { %v4526_v1 = vpop.f32.mrf.mxu1  ;;  %v10712_v60 = vpop.f32.mrf.mxu0 }
 0x2c0   : > { %v15195_v6 = vadd.f32 %v4513_v47, %v4059_v50 }
 0x2c1   : > { %v10763_v51 = vpop.f32.mrf.mxu1  ;;  %v4024_v3 = vpop.f32.mrf.mxu0 }
 0x2c2   : > { %v4060_v36 = vadd.f32 %v4024_v3, %v15123_v40 }
 0x2c3   : > { %v4529_v24 = vpop.f32.mrf.mxu1  ;;  %v10715_v7 = vpop.f32.mrf.mxu0 }
 0x2c4   : > { %v15198_v27 = vadd.f32 %v4518_v35, %v4060_v36 }
 0x2c5   : > { %v10764_v54 = vpop.f32.mrf.mxu1  ;;  %v4027_v37 = vpop.f32.mrf.mxu0 }
 0x2c6   : > { %v4061_v58 = vadd.f32 %v4027_v37, %v15135_v17 }
 0x2c7   : > { %v4534_v44 = vpop.f32.mrf.mxu1  ;;  %v10716_v52 = vpop.f32.mrf.mxu0 }
 0x2c8   : > { %v15201_v62 = vadd.f32 %v4521_v15, %v4061_v58 }
 0x2c9   : > { %v10767_v57 = vpop.f32.mrf.mxu1  ;;  %v4032_v13 = vpop.f32.mrf.mxu0 }
 0x2ca   : > { %v4062_v0 = vadd.f32 %v4032_v13, %v15141_v39 }
 0x2cb   : > { %v4537_v22 = vpop.f32.mrf.mxu1  ;;  %v10719_v2 = vpop.f32.mrf.mxu0 }
 0x2cc   : > { %v15204_v31 = vadd.f32 %v4526_v1, %v4062_v0 }
 0x2cd   : > { %v10768_v21 = vpop.f32.mrf.mxu1  ;;  %v4035_v40 = vpop.f32.mrf.mxu0 }
 0x2ce   : > { %v4063_v48 = vadd.f32 %v4035_v40, %v15153_v12 }
 0x2cf   : > { %v4542_v49 = vpop.f32.mrf.mxu1  ;;  %v10720_v41 = vpop.f32.mrf.mxu0 }
 0x2d0   : > { %v15207_v53 = vadd.f32 %v4529_v24, %v4063_v48 }
 0x2d1   : > { %v10771_v25 = vpop.f32.mrf.mxu1  ;;  %v4040_v17 = vpop.f32.mrf.mxu0 }
 0x2d2   : > { %v4064_v38 = vadd.f32 %v4040_v17, %v15159_v56 }
 0x2d3   : > { %v4545_v5 = vpop.f32.mrf.mxu1  ;;  %v10723_v9 = vpop.f32.mrf.mxu0 }
 0x2d4   : > { %v15210_v45 = vadd.f32 %v4534_v44, %v4064_v38 }
 0x2d5   : > { %v10772_v28 = vpop.f32.mrf.mxu1  ;;  %v4043_v39 = vpop.f32.mrf.mxu0 }
 0x2d6   : > { %v4065_v42 = vadd.f32 %v4043_v39, %v15162_v55 }
 0x2d7   : > { %v5430_v14 = vpop.f32.mrf.mxu1  ;;  %v10724_v4 = vpop.f32.mrf.mxu0 }
 0x2d8   : > { %v15213_v19 = vadd.f32 %v4537_v22, %v4065_v42 }
 0x2d9   : > { %v10835_v47 = vpop.f32.mrf.mxu1  ;;  %v4048_v12 = vpop.f32.mrf.mxu0 }
 0x2da   : > { %v4066_v16 = vadd.f32 %v4048_v12, %v15165_v10 }
 0x2db   : > { %v5433_v23 = vpop.f32.mrf.mxu1  ;;  %v10727_v59 = vpop.f32.mrf.mxu0 }
 0x2dc   : > { %v15216_v43 = vadd.f32 %v4542_v49, %v4066_v16 }
 0x2dd   : > { %v10836_v35 = vpop.f32.mrf.mxu1  ;;  %v4051_v56 = vpop.f32.mrf.mxu0 }
 0x2df   : > { %v5438_v46 = vpop.f32.mrf.mxu1  ;;  %v10728_v30 = vpop.f32.mrf.mxu0 }
 0x2e1   : > { %v10839_v61 = vpop.f32.mrf.mxu1  ;;  %v4899_v15 = vpop.f32.mrf.mxu0 }
 0x2e2   : > { %v4953_v55 = vadd.f32 %v4899_v15, %v15180_v11 }
 0x2e3   : > { %v5441_v8 = vpop.f32.mrf.mxu1  ;;  %v10791_v63 = vpop.f32.mrf.mxu0 }
 0x2e4   : > { %v15219_v18 = vadd.f32 %v5430_v14, %v4953_v55 }
 0x2e5   : > { %v10840_v34 = vpop.f32.mrf.mxu1  ;;  %v4902_v1 = vpop.f32.mrf.mxu0 }
 0x2e6   : > { %v4954_v10 = vadd.f32 %v4902_v1, %v15183_v33 }
 0x2e7   : > { %v5446_v50 = vpop.f32.mrf.mxu1  ;;  %v10792_v60 = vpop.f32.mrf.mxu0 }
 0x2e8   : > { %v15222_v3 = vadd.f32 %v5433_v23, %v4954_v10 }
 0x2e9   : > { %v10843_v51 = vpop.f32.mrf.mxu1  ;;  %v4907_v24 = vpop.f32.mrf.mxu0 }
 0x2ea   : > { %v4955_v7 = vadd.f32 %v4907_v24, %v15186_v32 }
 0x2eb   : > { %v5449_v36 = vpop.f32.mrf.mxu1  ;;  %v10795_v54 = vpop.f32.mrf.mxu0 }
 0x2ec   : > { %v15225_v44 = vadd.f32 %v5438_v46, %v4955_v7 }
 0x2ed   : > { %v10844_v37 = vpop.f32.mrf.mxu1  ;;  %v4910_v11 = vpop.f32.mrf.mxu0 }
 0x2ee   : > { %v4956_v52 = vadd.f32 %v4910_v11, %v15189_v29 }
 0x2ef   : > { %v5454_v58 = vpop.f32.mrf.mxu1  ;;  %v10796_v57 = vpop.f32.mrf.mxu0 }
 0x2f0   : > { %v15228_v22 = vadd.f32 %v5441_v8, %v4956_v52  ;;  %v15261_v52 = vld [vmem:[%s16304_s4] ss:$0 sm:$0xff] }
 0x2f1   : > { %v10847_v13 = vpop.f32.mrf.mxu1  ;;  %v4915_v33 = vpop.f32.mrf.mxu0 }
 0x2f2   : > { %v4957_v2 = vadd.f32 %v4915_v33, %v15192_v26 }
 0x2f3   : > { %v5457_v0 = vpop.f32.mrf.mxu1  ;;  %v10799_v21 = vpop.f32.mrf.mxu0 }
 0x2f4   : > { %v15231_v49 = vadd.f32 %v5446_v50, %v4957_v2 }
 0x2f5   : > { %v10848_v40 = vpop.f32.mrf.mxu1  ;;  %v4918_v32 = vpop.f32.mrf.mxu0 }
 0x2f6   : > { %v4958_v41 = vadd.f32 %v4918_v32, %v15195_v6 }
 0x2f7   : > { %v5462_v48 = vpop.f32.mrf.mxu1  ;;  %v10800_v25 = vpop.f32.mrf.mxu0 }
 0x2f8   : > { %v15234_v5 = vadd.f32 %v5449_v36, %v4958_v41 }
 0x2f9   : > { %v10851_v17 = vpop.f32.mrf.mxu1  ;;  %v4923_v29 = vpop.f32.mrf.mxu0 }
 0x2fa   : > { %v4959_v9 = vadd.f32 %v4923_v29, %v15198_v27 }
 0x2fb   : > { %v5465_v38 = vpop.f32.mrf.mxu1  ;;  %v10803_v28 = vpop.f32.mrf.mxu0 }
 0x2fc   : > { %v15237_v14 = vadd.f32 %v5454_v58, %v4959_v9 }
 0x2fd   : > { %v10852_v39 = vpop.f32.mrf.mxu1  ;;  %v4926_v26 = vpop.f32.mrf.mxu0 }
 0x2fe   : > { %v4960_v4 = vadd.f32 %v4926_v26, %v15201_v62 }
 0x2ff   : > { %v5470_v42 = vpop.f32.mrf.mxu1  ;;  %v10804_v47 = vpop.f32.mrf.mxu0 }
 0x300   : > { %v15240_v23 = vadd.f32 %v5457_v0, %v4960_v4 }
 0x301   : > { %v10855_v12 = vpop.f32.mrf.mxu1  ;;  %v4931_v6 = vpop.f32.mrf.mxu0 }
 0x302   : > { %v4961_v59 = vadd.f32 %v4931_v6, %v15204_v31 }
 0x303   : > { %v5473_v16 = vpop.f32.mrf.mxu1  ;;  %v10807_v35 = vpop.f32.mrf.mxu0 }
 0x304   : > { %v15243_v46 = vadd.f32 %v5462_v48, %v4961_v59 }
 0x305   : > { %v10856_v56 = vpop.f32.mrf.mxu1  ;;  %v4934_v27 = vpop.f32.mrf.mxu0 }
 0x306   : > { %v4962_v61 = vadd.f32 %v4934_v27, %v15207_v53 }
 0x307   : > { %v5478_v30 = vpop.f32.mrf.mxu1  ;;  %v10808_v15 = vpop.f32.mrf.mxu0 }
 0x308   : > { %v15246_v55 = vadd.f32 %v5465_v38, %v4962_v61 }
 0x309   : > { %v10859_v8 = vpop.f32.mrf.mxu1  ;;  %v4939_v62 = vpop.f32.mrf.mxu0 }
 0x30a   : > { %v4963_v34 = vadd.f32 %v4939_v62, %v15210_v45 }
 0x30b   : > { %v5481_v63 = vpop.f32.mrf.mxu1  ;;  %v10811_v1 = vpop.f32.mrf.mxu0 }
 0x30c   : > { %v15249_v10 = vadd.f32 %v5470_v42, %v4963_v34 }
 0x30d   : > { %v10860_v50 = vpop.f32.mrf.mxu1  ;;  %v4942_v31 = vpop.f32.mrf.mxu0 }
 0x30e   : > { %v4964_v60 = vadd.f32 %v4942_v31, %v15213_v19 }
 0x30f   : > { %v10812_v51 = vpop.f32.mrf.mxu0 }
 0x310   : > { %v15252_v24 = vadd.f32 %v5473_v16, %v4964_v60 }
 0x311   : > { %v4947_v36 = vpop.f32.mrf.mxu0 }
 0x312   : > { %v4965_v53 = vadd.f32 %v4947_v36, %v15216_v43 }
 0x313   : > { %v10815_v7 = vpop.f32.mrf.mxu0 }
 0x314   : > { %v15255_v54 = vadd.f32 %v5478_v30, %v4965_v53 }
 0x315   : > { %v4950_v37 = vpop.f32.mrf.mxu0 }
 0x317   : > { %v10816_v11 = vpop.f32.mrf.mxu0 }
 0x319   : > { %v5740_v58 = vpop.f32.mrf.mxu0 }
 0x31a   : > { %v5794_v45 = vadd.f32 %v5740_v58, %v15219_v18 }
 0x31b   : > { %v10879_v19 = vpop.f32.mrf.mxu0 }
 0x31c   : > { %v5814_v13 = vadd.f32 %v15261_v52, %v5794_v45 }
 0x31d   : > { %v5743_v57 = vpop.f32.mrf.mxu0 }
 0x31e   : > { %v5795_v33 = vadd.f32 %v5743_v57, %v15222_v3  ;;  %v5827_v21 = vmax.f32 %v5814_v13, 0.0 }
 0x31f   : > { %v10880_v43 = vpop.f32.mrf.mxu0 }
 0x320   : > { %v5815_v0 = vadd.f32 %v15261_v52, %v5795_v33 }
 0x321   : > { %v5748_v2 = vpop.f32.mrf.mxu0 }
 0x322   : > { %v5828_v40 = vmax.f32 %v5815_v0, 0.0  ;;  %v5796_v32 = vadd.f32 %v5748_v2, %v15225_v44 }
 0x323   : > { %v10883_v18 = vpop.f32.mrf.mxu0 }
 0x324   : > { %v5840_v48 = vpack.c.bf16 %v5828_v40, %v5827_v21  ;;  %v5816_v25 = vadd.f32 %v15261_v52, %v5796_v32 }
 0x325   : > { %v5751_v41 = vpop.f32.mrf.mxu0 }
 0x326   : > { %v5797_v17 = vadd.f32 %v5751_v41, %v15228_v22  ;;  %6094 = vmatmul.mubr.bf16.vlgmr.msra.gmra.mxu1 %v5840_v48  ;;  %6195 = vmatmul.mubr.bf16.vlgmr.msra.gmra.mxu0 %v5840_v48  ;;  %v5829_v9 = vmax.f32 %v5816_v25, 0.0  ;;  %v11090_v48 = vld [vmem:[%s11467_s15 + $0x4] ss:$8 sps:$4 sm:$0x77]   ;;  %v11094_v25 = vld [vmem:[%s11467_s15 + $0x20] ss:$8 sps:$4 sm:$0xff]  }
 0x327   : > { %v10884_v29 = vpop.f32.mrf.mxu0  ;;  %6103 = vmatprep.mubr.bf16.mxu1 %v16505_v20  ;;  %6204 = vmatprep.mubr.bf16.mxu0 %v16505_v20  ;;  %v11093_v41 = vld [vmem:[%s11467_s15 + $0x14] ss:$8 sps:$4 sm:$0x77]  }
 0x328   : > { %v5817_v3 = vadd.f32 %v15261_v52, %v5797_v17  ;;  %v11096_v17 = vld [vmem:[%s11467_s15 + $0x30] ss:$8 sps:$4 sm:$0xff]   ;;  %v17011_v29 = vld [vmem:[#allocation7_spill] sm:$0xff] }
 0x329   : > { %v5756_v38 = vpop.f32.mrf.mxu0 }
 0x32a   : > { %v5830_v28 = vmax.f32 %v5817_v3, 0.0  ;;  %v5798_v44 = vadd.f32 %v5756_v38, %v15231_v49 }
 0x32b   : > { %v10887_v39 = vpop.f32.mrf.mxu0 }
 0x32c   : > { %v5841_v26 = vpack.c.bf16 %v5830_v28, %v5829_v9  ;;  %v5818_v4 = vadd.f32 %v15261_v52, %v5798_v44  ;;  %v7404_v9 = vrot.slane %v11093_v41, %v17011_v29  ;;  %v7450_v28 = vrot.slane %v11094_v25, %v17011_v29  ;;  %v11098_v39 = vld [vmem:[%s11467_s15 + $0x24] ss:$8 sps:$4 sm:$0x77]  }
 0x32d   : > { %v5759_v42 = vpop.f32.mrf.mxu0  ;;  %v7464_v44 = vrot.slane %v11096_v17, %v17011_v29 }
 0x32e   : > { %v5799_v22 = vadd.f32 %v5759_v42, %v15234_v5  ;;  %6104 = vmatmul.mubr.bf16.gmra.mxu1 %v5841_v26  ;;  %6205 = vmatmul.mubr.bf16.gmra.mxu0 %v5841_v26  ;;  %v5831_v16 = vmax.f32 %v5818_v4, 0.0  ;;  %v11099_v26 = vld [vmem:[%s11467_s15 + $0x34] ss:$8 sps:$4 sm:$0x77]   ;;  %v11100_v42 = vld [vmem:[%s11467_s15 + $0x40] ss:$8 sps:$4 sm:$0xff]  }
 0x32f   : > { %v10888_v47 = vpop.f32.mrf.mxu0  ;;  %6113 = vmatprep.mubr.bf16.mxu1 %v16505_v20  ;;  %6214 = vmatprep.mubr.bf16.mxu0 %v16505_v20  ;;  %v11102_v4 = vld [vmem:[%s11467_s15 + $0x50] ss:$8 sps:$4 sm:$0xff]  }
 0x330   : > { %v5819_v12 = vadd.f32 %v15261_v52, %v5799_v22  ;;  %v5879_v22 = vld [vmem:[%s16306_s6] sm:$0xf]  ;;  %v17012_v47 = vld [vmem:[#allocation6_spill] sm:$0xff] }
 0x331   : > { %v5764_v6 = vpop.f32.mrf.mxu0 }
 0x332   : > { %v5832_v59 = vmax.f32 %v5819_v12, 0.0  ;;  %v5800_v49 = vadd.f32 %v5764_v6, %v15237_v14  ;;  %v5883_v12 = vsub.s32 0, %v17012_v47 }
 0x333   : > { %v10891_v35 = vpop.f32.mrf.mxu0 }
 0x334   : > { %v5842_v56 = vpack.c.bf16 %v5832_v59, %v5831_v16  ;;  %v5820_v30 = vadd.f32 %v15261_v52, %v5800_v49  ;;  %v7472_v49 = vcombine.low %v7450_v28, %v7464_v44  ;;  %v7473_v35 = vcombine.high %v7450_v28, %v7464_v44  ;;  %v11120_v44 = vld [vmem:[%s11467_s15 + $0xa4] ss:$8 sps:$4 sm:$0x77]  }
 0x335   : > { %v5767_v27 = vpop.f32.mrf.mxu0 }
 0x336   : > { %v5801_v5 = vadd.f32 %v5767_v27, %v15240_v23  ;;  %6114 = vmatmul.mubr.bf16.gmra.mxu1 %v5842_v56  ;;  %6215 = vmatmul.mubr.bf16.gmra.mxu0 %v5842_v56  ;;  %v5833_v62 = vmax.f32 %v5820_v30, 0.0  ;;  %v11104_v56 = vld [vmem:[%s11467_s15 + $0x44] ss:$8 sps:$4 sm:$0x77]   ;;  %v5891_v30 = vsub.s32 2, %v17012_v47 }
 0x337   : > { %v10892_v61 = vpop.f32.mrf.mxu0  ;;  %6123 = vmatprep.mubr.bf16.mxu1 %v16505_v20  ;;  %6224 = vmatprep.mubr.bf16.mxu0 %v16505_v20  ;;  %v11105_v27 = vld [vmem:[%s11467_s15 + $0x54] ss:$8 sps:$4 sm:$0x77]  }
 0x338   : > { %v5821_v15 = vadd.f32 %v15261_v52, %v5801_v5  ;;  %v5887_v5 = vsub.s32 1, %v17012_v47  ;;  %v11106_v61 = vld [vmem:[%s11467_s15 + $0x60] ss:$8 sps:$4 sm:$0xff]  }
 0x339   : > { %v5772_v8 = vpop.f32.mrf.mxu0 }
 0x33a   : > { %v5834_v63 = vmax.f32 %v5821_v15, 0.0  ;;  %v5802_v14 = vadd.f32 %v5772_v8, %v15243_v46  ;;  %v11108_v15 = vld [vmem:[%s11467_s15 + $0x70] ss:$8 sps:$4 sm:$0xff]   ;;  %v7457_v8 = vrot.slane %v11098_v39, %v17011_v29  ;;  %v11123_v39 = vld [vmem:[%s11467_s15 + $0xb4] ss:$8 sps:$4 sm:$0x77]  }
 0x33b   : > { %v10895_v34 = vpop.f32.mrf.mxu0 }
 0x33c   : > { %v5843_v1 = vpack.c.bf16 %v5834_v63, %v5833_v62  ;;  %v5822_v31 = vadd.f32 %v15261_v52, %v5802_v14  ;;  %v7471_v62 = vrot.slane %v11099_v26, %v17011_v29  ;;  %v7517_v63 = vrot.slane %v11100_v42, %v17011_v29 }
 0x33d   : > { %v5775_v50 = vpop.f32.mrf.mxu0  ;;  %v7531_v14 = vrot.slane %v11102_v4, %v17011_v29  ;;  %v15330_v34 = vrot.slane %v5879_v22, %v5883_v12 }
 0x33e   : > { %v5803_v23 = vadd.f32 %v5775_v50, %v15246_v55  ;;  %6124 = vmatmul.mubr.bf16.gmra.mxu1 %v5843_v1  ;;  %6225 = vmatmul.mubr.bf16.gmra.mxu0 %v5843_v1  ;;  %v5835_v53 = vmax.f32 %v5822_v31, 0.0  ;;  %v5895_v1 = vsub.s32 3, %v17012_v47 }
 0x33f   : > { %v10896_v60 = vpop.f32.mrf.mxu0  ;;  %6133 = vmatprep.mubr.bf16.mxu1 %v16505_v20  ;;  %6234 = vmatprep.mubr.bf16.mxu0 %v16505_v20 }
 0x340   : > { %v5823_v51 = vadd.f32 %v15261_v52, %v5803_v23 }
 0x341   : > { %v5780_v36 = vpop.f32.mrf.mxu0 }
 0x342   : > { %v5836_v7 = vmax.f32 %v5823_v51, 0.0  ;;  %v5804_v46 = vadd.f32 %v5780_v36, %v15249_v10  ;;  %v15343_v51 = vrot.slane %v7472_v49, %v17011_v29  ;;  %v15346_v36 = vrot.slane %v7473_v35, %v17011_v29 }
 0x343   : > { %v10899_v37 = vpop.f32.mrf.mxu0 }
 0x344   : > { %v5844_v11 = vpack.c.bf16 %v5836_v7, %v5835_v53  ;;  %v5824_v45 = vadd.f32 %v15261_v52, %v5804_v46  ;;  %v7524_v53 = vrot.slane %v11104_v56, %v17011_v29  ;;  %v7538_v7 = vrot.slane %v11105_v27, %v17011_v29  ;;  %v11150_v27 = vld [vmem:[%s11467_s15 + $0x150] ss:$8 sps:$4 sm:$0xff]  }
 0x345   : > { %v5783_v58 = vpop.f32.mrf.mxu0  ;;  %v7584_v46 = vrot.slane %v11106_v61, %v17011_v29  ;;  %v7598_v37 = vrot.slane %v11108_v15, %v17011_v29  ;;  %v7739_v61 = vrot.slane %v11123_v39, %v17011_v29  ;;  %v11124_v15 = vld [vmem:[%s11467_s15 + $0xc0] ss:$8 sps:$4 sm:$0xff]  }
 0x346   : > { %v5805_v55 = vadd.f32 %v5783_v58, %v15252_v24  ;;  %6134 = vmatmul.mubr.bf16.gmra.mxu1 %v5844_v11  ;;  %6235 = vmatmul.mubr.bf16.gmra.mxu0 %v5844_v11  ;;  %v5837_v33 = vmax.f32 %v5824_v45, 0.0  ;;  %v11110_v11 = vld [vmem:[%s11467_s15 + $0x64] ss:$8 sps:$4 sm:$0x77]   ;;  %v15354_v45 = vrot.slane %v5879_v22, %v5891_v30  ;;  %v7541_v25 = vcombine.low %v7524_v53, %v7538_v7 }
 0x347   : > { %v10900_v19 = vpop.f32.mrf.mxu0  ;;  %6143 = vmatprep.mubr.bf16.mxu1 %v16505_v20  ;;  %6244 = vmatprep.mubr.bf16.mxu0 %v16505_v20  ;;  %v11111_v58 = vld [vmem:[%s11467_s15 + $0x74] ss:$8 sps:$4 sm:$0x77]   ;;  %v7606_v17 = vcombine.low %v7584_v46, %v7598_v37  ;;  %v7542_v42 = vcombine.high %v7524_v53, %v7538_v7 }
 0x348   : > { %v5825_v57 = vadd.f32 %v15261_v52, %v5805_v55  ;;  %v15356_v55 = vrot.slane %v5879_v22, %v5887_v5  ;;  %v7474_v19 = vcombine.low %v7457_v8, %v7471_v62  ;;  %v7605_v28 = vrot.slane %v11111_v58, %v17011_v29  ;;  %v11129_v53 = vld [vmem:[%s11467_s15 + $0xd4] ss:$8 sps:$4 sm:$0x77]   ;;  %v11130_v58 = vld [vmem:[%s11467_s15 + $0xe0] ss:$8 sps:$4 sm:$0xff]  }
 0x349   : > { %v5788_v13 = vpop.f32.mrf.mxu0  ;;  %v15402_v49 = vrot.slane %v7541_v25, %v17011_v29  ;;  %v15405_v35 = vrot.slane %v7606_v17, %v17011_v29  ;;  %v7725_v5 = vrot.slane %v11120_v44, %v17011_v29  ;;  %v15423_v7 = vrot.slane %v7542_v42, %v17011_v29 }
 0x34a   : > { %v5838_v10 = vmax.f32 %v5825_v57, 0.0  ;;  %v5806_v43 = vadd.f32 %v5788_v13, %v15255_v54  ;;  %v11088_v54 = vld [vmem:[%s11467_s15] ss:$8 sps:$4 sm:$0xff]   ;;  %v7539_v57 = vcombine.low %v7517_v63, %v7531_v14 }
 0x34b   : > { %v10903_v0 = vpop.f32.mrf.mxu0  ;;  %v7383_v3 = vrot.slane %v11088_v54, %v17011_v29  ;;  %v11112_v13 = vld [vmem:[%s11467_s15 + $0x80] ss:$8 sps:$4 sm:$0xff]  }
 0x34c   : > { %v5845_v24 = vpack.c.bf16 %v5838_v10, %v5837_v33  ;;  %v5826_v2 = vadd.f32 %v15261_v52, %v5806_v43  ;;  %v11091_v52 = vld [vmem:[%s11467_s15 + $0x10] ss:$8 sps:$4 sm:$0xff]   ;;  %v15360_v10 = vrot.slane %v5879_v22, %v5895_v1  ;;  %v7651_v4 = vrot.slane %v11112_v13, %v17011_v29  ;;  %v11147_v13 = vld [vmem:[%s11467_s15 + $0x134] ss:$8 sps:$4 sm:$0x77]  }
 0x34d   : > { %v5791_v21 = vpop.f32.mrf.mxu0  ;;  %v7397_v38 = vrot.slane %v11091_v52, %v17011_v29  ;;  %v11114_v33 = vld [vmem:[%s11467_s15 + $0x90] ss:$8 sps:$4 sm:$0xff]  }
 0x34e   : > { %6144 = vmatmul.mubr.bf16.gmra.mxu1 %v5845_v24  ;;  %6245 = vmatmul.mubr.bf16.gmra.mxu0 %v5845_v24  ;;  %v5839_v32 = vmax.f32 %v5826_v2, 0.0  ;;  %v7540_v24 = vcombine.high %v7517_v63, %v7531_v14  ;;  %v11116_v2 = vld [vmem:[%s11467_s15 + $0x84] ss:$8 sps:$4 sm:$0x77]   ;;  %v11121_v52 = vld [vmem:[%s11467_s15 + $0xb0] ss:$8 sps:$4 sm:$0xff]   ;;  %v7665_v22 = vrot.slane %v11114_v33, %v17011_v29 }
 0x34f   : > { %v10904_v40 = vpop.f32.mrf.mxu0  ;;  %6153 = vmatprep.mubr.bf16.mxu1 %v16505_v20  ;;  %6254 = vmatprep.mubr.bf16.mxu0 %v16505_v20  ;;  %v7390_v20 = vrot.slane %v11090_v48, %v17011_v29  ;;  %v7405_v6 = vcombine.low %v7383_v3, %v7397_v38  ;;  %v7406_v16 = vcombine.high %v7383_v3, %v7397_v38  ;;  %v11117_v21 = vld [vmem:[%s11467_s15 + $0x94] ss:$8 sps:$4 sm:$0x77]   ;;  %v11118_v48 = vld [vmem:[%s11467_s15 + $0xa0] ss:$8 sps:$4 sm:$0xff]  }
 0x350   : > { %v5846_v18 = vpack.c.bf16 %v5839_v32, %v5839_v32  ;;  %v7607_v3 = vcombine.high %v7584_v46, %v7598_v37  ;;  %v15380_v38 = vrot.slane %v7474_v19, %v17011_v29  ;;  %v15390_v26 = vrot.slane %v7540_v24, %v17011_v29  ;;  %v11132_v19 = vld [vmem:[%s11467_s15 + $0xe4] ss:$8 sps:$4 sm:$0x77]  }
 0x351   : > { %v7407_v59 = vcombine.low %v7390_v20, %v7404_v9  ;;  %v7408_v50 = vcombine.high %v7390_v20, %v7404_v9  ;;  %v15334_v31 = vrot.slane %v7405_v6, %v17011_v29  ;;  %v15340_v60 = vrot.slane %v7406_v16, %v17011_v29 }
 0x352   : > { %v15383_v20 = vrot.slane %v7539_v57, %v17011_v29  ;;  %v7591_v9 = vrot.slane %v11110_v11, %v17011_v29  ;;  %v7658_v47 = vrot.slane %v11116_v2, %v17011_v29  ;;  %v7672_v12 = vrot.slane %v11117_v21, %v17011_v29  ;;  %v11133_v2 = vld [vmem:[%s11467_s15 + $0xf0] ss:$8 sps:$4 sm:$0xff]   ;;  %v11135_v21 = vld [vmem:[%s11467_s15 + $0xf4] ss:$8 sps:$4 sm:$0x77]  }
 0x353   : > { %v15337_v23 = vrot.slane %v7407_v59, %v17011_v29  ;;  %v15363_v43 = vrot.slane %v7408_v50, %v17011_v29  ;;  %v7718_v6 = vrot.slane %v11118_v48, %v17011_v29  ;;  %v7732_v16 = vrot.slane %v11121_v52, %v17011_v29  ;;  %v11126_v50 = vld [vmem:[%s11467_s15 + $0xc4] ss:$8 sps:$4 sm:$0x77]  }
 0x354   : > { %v15408_v56 = vrot.slane %v7607_v3, %v17011_v29  ;;  %v7608_v30 = vcombine.low %v7591_v9, %v7605_v28  ;;  %v7673_v14 = vcombine.low %v7651_v4, %v7665_v22  ;;  %v7674_v1 = vcombine.high %v7651_v4, %v7665_v22 }
 0x355   : > { %v7675_v46 = vcombine.low %v7658_v47, %v7672_v12  ;;  %v7740_v37 = vcombine.low %v7718_v6, %v7732_v16  ;;  %v7741_v11 = vcombine.high %v7718_v6, %v7732_v16  ;;  %v7609_v33 = vcombine.high %v7591_v9, %v7605_v28 }
 0x356   : > { %6154 = vmatmul.mubr.bf16.gmra.mxu1 %v5846_v18  ;;  %6255 = vmatmul.mubr.bf16.gmra.mxu0 %v5846_v18  ;;  %v7475_v18 = vcombine.high %v7457_v8, %v7471_v62  ;;  %v11127_v8 = vld [vmem:[%s11467_s15 + $0xd0] ss:$8 sps:$4 sm:$0xff]   ;;  %v7742_v48 = vcombine.low %v7725_v5, %v7739_v61  ;;  %v7785_v52 = vrot.slane %v11124_v15, %v17011_v29 }
 0x357   : > { %v7799_v25 = vrot.slane %v11127_v8, %v17011_v29  ;;  %v15441_v17 = vrot.slane %v7673_v14, %v17011_v29  ;;  %v15444_v3 = vrot.slane %v7674_v1, %v17011_v29  ;;  %v7792_v9 = vrot.slane %v11126_v50, %v17011_v29 }
 0x358   : > { %v15399_v59 = vrot.slane %v7475_v18, %v17011_v29  ;;  %v15436_v18 = vrot.slane %v7608_v30, %v17011_v29  ;;  %v7806_v28 = vrot.slane %v11129_v53, %v17011_v29  ;;  %v7676_v44 = vcombine.high %v7658_v47, %v7672_v12 }
 0x359   : > { %v15449_v39 = vrot.slane %v7675_v46, %v17011_v29  ;;  %v15452_v42 = vrot.slane %v7740_v37, %v17011_v29  ;;  %v15455_v4 = vrot.slane %v7741_v11, %v17011_v29  ;;  %v7852_v22 = vrot.slane %v11130_v58, %v17011_v29  ;;  %v11141_v11 = vld [vmem:[%s11467_s15 + $0x114] ss:$8 sps:$4 sm:$0x77]   ;;  %v11142_v58 = vld [vmem:[%s11467_s15 + $0x120] ss:$8 sps:$4 sm:$0xff]  }
 0x35a   : > { %v7859_v6 = vrot.slane %v11132_v19, %v17011_v29  ;;  %v7866_v16 = vrot.slane %v11133_v2, %v17011_v29  ;;  %v7873_v30 = vrot.slane %v11135_v21, %v17011_v29  ;;  %v15462_v15 = vrot.slane %v7609_v33, %v17011_v29  ;;  %v11136_v2 = vld [vmem:[%s11467_s15 + $0x100] ss:$8 sps:$4 sm:$0xff]   ;;  %v11138_v21 = vld [vmem:[%s11467_s15 + $0x104] ss:$8 sps:$4 sm:$0x77]  }
 0x35b   : > { %v15465_v47 = vrot.slane %v7742_v48, %v17011_v29  ;;  %v7743_v12 = vcombine.high %v7725_v5, %v7739_v61  ;;  %v7807_v8 = vcombine.low %v7785_v52, %v7799_v25  ;;  %v7808_v50 = vcombine.high %v7785_v52, %v7799_v25  ;;  %v11139_v5 = vld [vmem:[%s11467_s15 + $0x110] ss:$8 sps:$4 sm:$0xff]  }
 0x35c   : > { %v7809_v53 = vcombine.low %v7792_v9, %v7806_v28  ;;  %v15474_v37 = vrot.slane %v7676_v44, %v17011_v29  ;;  %v7874_v61 = vcombine.low %v7852_v22, %v7866_v16  ;;  %v7875_v19 = vcombine.high %v7852_v22, %v7866_v16  ;;  %v11144_v52 = vld [vmem:[%s11467_s15 + $0x130] ss:$8 sps:$4 sm:$0xff]  }
 0x35d   : > { %v7876_v33 = vcombine.low %v7859_v6, %v7873_v30  ;;  %v15485_v48 = vrot.slane %v7743_v12, %v17011_v29  ;;  %v7810_v25 = vcombine.high %v7792_v9, %v7806_v28  ;;  %v15490_v44 = vrot.slane %v7807_v8, %v17011_v29 }
 0x35e   : > { %v15495_v46 = vrot.slane %v7809_v53, %v17011_v29  ;;  %v15498_v22 = vrot.slane %v7808_v50, %v17011_v29  ;;  %v7919_v16 = vrot.slane %v11136_v2, %v17011_v29  ;;  %v7926_v12 = vrot.slane %v11138_v21, %v17011_v29 }
 0x35f   : > { %17013 = vst [vmem:[#allocation14_spill] sm:$0xff] %v15485_v48  ;;  %17014 = vst [vmem:[#allocation38_spill] sm:$0xff] %v15490_v44  ;;  %v7877_v9 = vcombine.high %v7859_v6, %v7873_v30  ;;  %v15505_v28 = vrot.slane %v7874_v61, %v17011_v29  ;;  %v7933_v8 = vrot.slane %v11139_v5, %v17011_v29  ;;  %v11146_v61 = vld [vmem:[%s11467_s15 + $0x124] ss:$8 sps:$4 sm:$0x77]  }
 0x360   : > { %17015 = vst [vmem:[#allocation41_spill] sm:$0xff] %v15495_v46  ;;  %17016 = vst [vmem:[#allocation13_spill] sm:$0xff] %v15498_v22  ;;  %v7940_v53 = vrot.slane %v11141_v11, %v17011_v29  ;;  %v15510_v1 = vrot.slane %v7876_v33, %v17011_v29  ;;  %v15513_v50 = vrot.slane %v7875_v19, %v17011_v29 }
 0x361   : > { %17017 = vst [vmem:[#allocation40_spill] sm:$0xff] %v15505_v28  ;;  %v7986_v2 = vrot.slane %v11142_v58, %v17011_v29  ;;  %v8000_v21 = vrot.slane %v11144_v52, %v17011_v29  ;;  %v7941_v14 = vcombine.low %v7919_v16, %v7933_v8  ;;  %v7942_v24 = vcombine.high %v7919_v16, %v7933_v8 }
 0x362   : > { %17018 = vst [vmem:[#allocation15_spill] sm:$0xff] %v15510_v1  ;;  %17019 = vst [vmem:[#allocation16_spill] sm:$0xff] %v15513_v50  ;;  %v7943_v6 = vcombine.low %v7926_v12, %v7940_v53  ;;  %v7944_v30 = vcombine.high %v7926_v12, %v7940_v53  ;;  %v15520_v5 = vrot.slane %v7810_v25, %v17011_v29  ;;  %v11148_v53 = vld [vmem:[%s11467_s15 + $0x140] ss:$8 sps:$4 sm:$0xff]  }
 0x363   : > { %v8008_v33 = vcombine.low %v7986_v2, %v8000_v21  ;;  %v15529_v52 = vrot.slane %v7877_v9, %v17011_v29  ;;  %v15532_v16 = vrot.slane %v7941_v14, %v17011_v29  ;;  %v15540_v19 = vrot.slane %v7942_v24, %v17011_v29 }
 0x364   : > { %17020 = vst [vmem:[#allocation42_spill] sm:$0xff] %v15520_v5  ;;  %v15535_v25 = vrot.slane %v7943_v6, %v17011_v29  ;;  %v7993_v58 = vrot.slane %v11146_v61, %v17011_v29  ;;  %v8007_v9 = vrot.slane %v11147_v13, %v17011_v29  ;;  %v15549_v11 = vrot.slane %v7944_v30, %v17011_v29 }
 0x365   : > { %17021 = vst [vmem:[#allocation45_spill] sm:$0xff] %v15529_v52  ;;  %17022 = vst [vmem:[#allocation50_spill] sm:$0xff] %v15532_v16  ;;  %v15552_v57 = vrot.slane %v8008_v33, %v17011_v29  ;;  %v8009_v41 = vcombine.high %v7986_v2, %v8000_v21  ;;  %v15570_v13 = vrot.slane %v11148_v53, %v17011_v29 }
 0x366   : > { %17023 = vst [vmem:[#allocation4_spill] sm:$0xff] %v15535_v25  ;;  %17024 = vst [vmem:[#allocation5_spill] sm:$0xff] %v15540_v19  ;;  %v8010_v14 = vcombine.low %v7993_v58, %v8007_v9  ;;  %v17033_v19 = vcombine.high %v15340_v60, %v15340_v60 }
 0x367   : > { %17025 = vst [vmem:[#allocation3_spill] sm:$0xff] %v15549_v11  ;;  %17026 = vst [vmem:[#allocation17_spill] sm:$0xff] %v15552_v57  ;;  %v15575_v25 = vrot.slane %v8009_v41, %v17011_v29 }
 0x368   : > { %v15567_v32 = vrot.slane %v8010_v14, %v17011_v29  ;;  %17028 = vst [vmem:[#allocation20_spill] sm:$0xff] %v15570_v13 }
 0x369   : > { %17029 = vst [vmem:[#allocation22_spill] sm:$0xff] %v15575_v25 }
 0x36a   : > { %17027 = vst [vmem:[#allocation18_spill] sm:$0xff] %v15567_v32 }
 0x3e6   : > { %v6095_v12 = vpop.f32.mrf.mxu1  ;;  %v6196_v8 = vpop.f32.mrf.mxu0 }
 0x3e7   : > { %v6096_v24 = vadd.f32 %v6095_v12, %v15330_v34  ;;  %v6197_v63 = vadd.f32 %v6196_v8, %v15354_v45  ;;  %v8011_v8 = vcombine.high %v7993_v58, %v8007_v9  ;;  %v15578_v58 = vrot.slane %v11150_v27, %v17011_v29 }
 0x3e8   : > { %v6097_v61 = vpop.f32.mrf.mxu1  ;;  %v6198_v62 = vpop.f32.mrf.mxu0 }
 0x3e9   : > { %v6098_v6 = vadd.f32 %v6097_v61, %v15356_v55  ;;  %v6199_v30 = vadd.f32 %v6198_v62, %v15360_v10  ;;  %17030 = vst [vmem:[#allocation51_spill] sm:$0xff] %v15578_v58  ;;  %v15591_v41 = vrot.slane %v8011_v8, %v17011_v29 }
 0x3ea   : > { %v6099_v54 = vpop.f32.mrf.mxu1  ;;  %v6200_v40 = vpop.f32.mrf.mxu0 }
 0x3eb   : > { %v6315_v0 = vcombine.low %v6096_v24, %v6098_v6  ;;  %v6316_v61 = vcombine.high %v6096_v24, %v6098_v6  ;;  %v6317_v11 = vcombine.low %v6197_v63, %v6199_v30  ;;  %v6318_v62 = vcombine.high %v6197_v63, %v6199_v30  ;;  %17031 = vst [vmem:[#allocation23_spill] sm:$0xff] %v15591_v41 }
 0x3ec   : > { %v6100_v16 = vadd.f32 %v6099_v54, %v15330_v34  ;;  %v6201_v2 = vadd.f32 %v6200_v40, %v15354_v45  ;;  %v6101_v21 = vpop.f32.mrf.mxu1  ;;  %v6202_v33 = vpop.f32.mrf.mxu0 }
 0x3ed   : > { %v6325_v9 = vrot.slane %v6315_v0, %v17011_v29  ;;  %v6332_v53 = vrot.slane %v6316_v61, %v17011_v29  ;;  %v6339_v14 = vrot.slane %v6317_v11, %v17011_v29  ;;  %v6346_v63 = vrot.slane %v6318_v62, %v17011_v29 }
 0x3ee   : > { %v6102_v54 = vadd.f32 %v6101_v21, %v15356_v55  ;;  %v6203_v40 = vadd.f32 %v6202_v33, %v15360_v10  ;;  %v15586_v6 = vpop.f32.mrf.mxu1  ;;  %v15588_v24 = vpop.f32.mrf.mxu0 }
 0x3ef   : > { %v6347_v27 = vcombine.low %v6325_v9, %v6339_v14  ;;  %v6348_v30 = vcombine.high %v6325_v9, %v6339_v14  ;;  %v6349_v61 = vcombine.low %v6332_v53, %v6346_v63  ;;  %v6350_v11 = vcombine.high %v6332_v53, %v6346_v63 }
 0x3f0   : > { %v6383_v12 = vcombine.low %v6100_v16, %v6102_v54  ;;  %v6384_v62 = vcombine.high %v6100_v16, %v6102_v54  ;;  %v6385_v13 = vcombine.low %v6201_v2, %v6203_v40  ;;  %v6386_v21 = vcombine.high %v6201_v2, %v6203_v40  ;;  %v15595_v58 = vpop.f32.mrf.mxu1  ;;  %v15597_v33 = vpop.f32.mrf.mxu0 }
 0x3f1   : > { %v6357_v25 = vrot.slane %v6347_v27, %v17011_v29  ;;  %v6364_v8 = vrot.slane %v6349_v61, %v17011_v29  ;;  %v6371_v41 = vrot.slane %v6348_v30, %v17011_v29  ;;  %v6378_v0 = vrot.slane %v6350_v11, %v17011_v29 }
 0x3f2   : > { %v6393_v9 = vrot.slane %v6383_v12, %v17011_v29  ;;  %v6400_v53 = vrot.slane %v6384_v62, %v17011_v29  ;;  %v6407_v16 = vrot.slane %v6385_v13, %v17011_v29  ;;  %v6414_v2 = vrot.slane %v6386_v21, %v17011_v29  ;;  %v15607_v14 = vpop.f32.mrf.mxu1  ;;  %v15609_v63 = vpop.f32.mrf.mxu0 }
 0x3f3   : > { %v6379_v54 = vcombine.high %v6357_v25, %v6357_v25  ;;  %v6380_v40 = vcombine.high %v6364_v8, %v6364_v8  ;;  %v6381_v27 = vcombine.high %v6371_v41, %v6371_v41  ;;  %v6382_v61 = vcombine.high %v6378_v0, %v6378_v0 }
 0x3f4   : > { %v8409_v30 = vadd.f32 %v15334_v31, %v6357_v25  ;;  %v8410_v11 = vadd.f32 %v15340_v60, %v6371_v41  ;;  %v8413_v12 = vadd.f32 %v15337_v23, %v6364_v8  ;;  %v8414_v62 = vadd.f32 %v15363_v43, %v6378_v0  ;;  %v15615_v57 = vpop.f32.mrf.mxu1  ;;  %v15617_v13 = vpop.f32.mrf.mxu0 }
 0x3f5   : > { %v17032_v21 = vcombine.high %v15334_v31, %v15334_v31  ;;  %v8412_v52 = vadd.f32 %v17033_v19, %v6381_v27  ;;  %v17034_v25 = vcombine.high %v15337_v23, %v15337_v23  ;;  %v15629_v8 = vadd.f32 %v15343_v51, %v6382_v61 }
 0x3f6   : > { %v8507_v43 = vmax.f32 %v8409_v30, 0.0  ;;  %v8508_v0 = vmax.f32 %v8410_v11, 0.0  ;;  %v8511_v1 = vmax.f32 %v8413_v12, 0.0  ;;  %v8512_v50 = vmax.f32 %v8414_v62, 0.0  ;;  %v15631_v28 = vpop.f32.mrf.mxu1  ;;  %v15633_v5 = vpop.f32.mrf.mxu0 }
 0x3f7   : > { %v8411_v32 = vadd.f32 %v17032_v21, %v6379_v54  ;;  %v8415_v41 = vadd.f32 %v17034_v25, %v6380_v40  ;;  %v8510_v54 = vmax.f32 %v8412_v52, 0.0  ;;  %v6415_v23 = vcombine.low %v6393_v9, %v6407_v16 }
 0x3f8   : > { %v8703_v19 = vcombine.low %v8507_v43, %v8508_v0  ;;  %v8705_v27 = vcombine.low %v8511_v1, %v8512_v50  ;;  %v6416_v40 = vcombine.high %v6393_v9, %v6407_v16  ;;  %v15636_v25 = vpop.f32.mrf.mxu1  ;;  %v15638_v61 = vpop.f32.mrf.mxu0  ;;  %v6417_v12 = vcombine.low %v6400_v53, %v6414_v2 }
 0x3f9   : > { %v8509_v31 = vmax.f32 %v8411_v32, 0.0  ;;  %v8513_v21 = vmax.f32 %v8415_v41, 0.0  ;;  %v6418_v62 = vcombine.high %v6400_v53, %v6414_v2  ;;  %v6425_v52 = vrot.slane %v6415_v23, %v17011_v29 }
 0x3fa   : > { %v8712_v46 = vrot.slane %v8703_v19, %v17011_v29  ;;  %v8726_v32 = vrot.slane %v8705_v27, %v17011_v29  ;;  %v6439_v41 = vrot.slane %v6416_v40, %v17011_v29  ;;  %v15645_v1 = vpop.f32.mrf.mxu1  ;;  %v15647_v50 = vpop.f32.mrf.mxu0  ;;  %v6432_v16 = vrot.slane %v6417_v12, %v17011_v29 }
 0x3fb   : > { %v8704_v30 = vcombine.low %v8509_v31, %v8510_v54  ;;  %v8733_v11 = vrot.slane %v8513_v21, %v17011_v29  ;;  %v6446_v43 = vrot.slane %v6418_v62, %v17011_v29  ;;  %v15654_v53 = vadd.f32 %v15586_v6, %v15330_v34 }
 0x3fc   : > { %v6447_v31 = vcombine.high %v6425_v52, %v6425_v52  ;;  %v6449_v54 = vcombine.high %v6439_v41, %v6439_v41  ;;  %v15656_v21 = vpop.f32.mrf.mxu1  ;;  %v15658_v19 = vpop.f32.mrf.mxu0  ;;  %v6448_v40 = vcombine.high %v6432_v16, %v6432_v16  ;;  %v8417_v6 = vadd.f32 %v15346_v36, %v6425_v52 }
 0x3fd   : > { %v8719_v9 = vrot.slane %v8704_v30, %v17011_v29  ;;  %v8736_v2 = vcombine.low %v8726_v32, %v8733_v11  ;;  %v8737_v0 = vcombine.high %v8726_v32, %v8733_v11  ;;  %v6450_v30 = vcombine.high %v6446_v43, %v6446_v43 }
 0x3fe   : > { %v17035_v11 = vcombine.high %v15343_v51, %v15343_v51  ;;  %v15666_v60 = vpop.f32.mrf.mxu1  ;;  %v15668_v22 = vpop.f32.mrf.mxu0  ;;  %v8421_v51 = vadd.f32 %v15399_v59, %v6432_v16  ;;  %v17038_v52 = vcombine.high %v15380_v38, %v15380_v38  ;;  %v8515_v16 = vmax.f32 %v8417_v6, 0.0 }
 0x3ff   : > { %v8734_v27 = vcombine.low %v8712_v46, %v8719_v9  ;;  %v8735_v23 = vcombine.high %v8712_v46, %v8719_v9  ;;  %v8758_v12 = vrot.slane %v8736_v2, %v17011_v29  ;;  %v8765_v62 = vrot.slane %v8737_v0, %v17011_v29  ;;  %17036 = vst [vmem:[#allocation54_spill] sm:$0xff] %v15668_v22 }
 0x400   : > { %v8418_v32 = vadd.f32 %v17035_v11, %v6439_v41  ;;  %v17037_v9 = vcombine.high %v15346_v36, %v15346_v36  ;;  %v8420_v0 = vadd.f32 %v15380_v38, %v6449_v54  ;;  %v8422_v41 = vadd.f32 %v17038_v52, %v6446_v43  ;;  %v15691_v54 = vpop.f32.mrf.mxu0 }
 0x401   : > { %v8744_v44 = vrot.slane %v8734_v27, %v17011_v29  ;;  %v8751_v46 = vrot.slane %v8735_v23, %v17011_v29  ;;  %v8423_v27 = vadd.f32 %v15383_v20, %v6448_v40  ;;  %v8424_v36 = vadd.f32 %v15390_v26, %v6450_v30  ;;  %17040 = vst [vmem:[#allocation21_spill] sm:$0xff] %v15691_v54 }
 0x402   : > { %v8419_v2 = vadd.f32 %v17037_v9, %v6447_v31  ;;  %v15689_v31 = vpop.f32.mrf.mxu1  ;;  %v8516_v22 = vmax.f32 %v8418_v32, 0.0  ;;  %v8518_v48 = vmax.f32 %v8420_v0, 0.0  ;;  %v15695_v52 = vpop.f32.mrf.mxu0  ;;  %v8519_v40 = vmax.f32 %v8421_v51, 0.0 }
 0x403   : > { %17039 = vst [vmem:[#allocation46_spill] sm:$0xff] %v15689_v31  ;;  %v8766_v23 = vcombine.low %v8744_v44, %v8758_v12  ;;  %v8767_v11 = vcombine.high %v8744_v44, %v8758_v12  ;;  %v8768_v9 = vcombine.low %v8751_v46, %v8765_v62  ;;  %v8769_v59 = vcombine.high %v8751_v46, %v8765_v62 }
 0x404   : > { %v8517_v38 = vmax.f32 %v8419_v2, 0.0  ;;  %v15693_v43 = vpop.f32.mrf.mxu1  ;;  %v8520_v30 = vmax.f32 %v8422_v41, 0.0  ;;  %v8521_v31 = vmax.f32 %v8423_v27, 0.0  ;;  %v8522_v54 = vmax.f32 %v8424_v36, 0.0  ;;  %v15709_v2 = vpop.f32.mrf.mxu0 }
 0x405   : > { %9697 = vst [vmem:[%s15681_s21] sm:$0x7f] %v8766_v23  ;;  %9698 = vst [vmem:[%s15681_s21 + $0x8] sm:$0x7f] %v8768_v9  ;;  %v17041_v44 = vmax.f32 %v15629_v8, 0.0  ;;  %v6207_v6 = vadd.f32 %v15588_v24, %v15354_v45  ;;  %v6108_v32 = vadd.f32 %v15595_v58, %v15356_v55  ;;  %v8772_v0 = vcombine.low %v8518_v48, %v8519_v40 }
 0x406   : > { %9699 = vst [vmem:[%s15681_s21 + $0x10] sm:$0x7f] %v8767_v11  ;;  %9700 = vst [vmem:[%s15681_s21 + $0x18] sm:$0x7f] %v8769_v59  ;;  %v8771_v62 = vcombine.low %v8516_v22, %v8517_v38  ;;  %v15707_v46 = vpop.f32.mrf.mxu1  ;;  %v8800_v51 = vrot.slane %v8520_v30, %v17011_v29  ;;  %v8837_v41 = vcombine.low %v8521_v31, %v8522_v54  ;;  %v15720_v23 = vpop.f32.mrf.mxu0 }
 0x407   : > { %v8770_v12 = vcombine.low %v17041_v44, %v8515_v16  ;;  %v6209_v27 = vadd.f32 %v15597_v33, %v15360_v10  ;;  %v6451_v24 = vcombine.low %v15654_v53, %v6108_v32  ;;  %v6452_v36 = vcombine.high %v15654_v53, %v6108_v32 }
 0x408   : > { %v8786_v22 = vrot.slane %v8771_v62, %v17011_v29  ;;  %v15718_v58 = vpop.f32.mrf.mxu1  ;;  %v8793_v48 = vrot.slane %v8772_v0, %v17011_v29  ;;  %v15724_v11 = vrot.slane %v8837_v41, %v17011_v29  ;;  %v6211_v32 = vadd.f32 %v15609_v63, %v15354_v45  ;;  %v15738_v0 = vpop.f32.mrf.mxu0 }
 0x409   : > { %v8779_v8 = vrot.slane %v8770_v12, %v17011_v29  ;;  %v6453_v31 = vcombine.low %v6207_v6, %v6209_v27  ;;  %v6454_v54 = vcombine.high %v6207_v6, %v6209_v27  ;;  %v6461_v59 = vrot.slane %v6451_v24, %v17011_v29 }
 0x40a   : > { %v6468_v16 = vrot.slane %v6452_v36, %v17011_v29  ;;  %v15728_v38 = vpop.f32.mrf.mxu1  ;;  %v8803_v53 = vcombine.low %v8793_v48, %v8800_v51  ;;  %v8804_v40 = vcombine.high %v8793_v48, %v8800_v51  ;;  %v6110_v6 = vadd.f32 %v15607_v14, %v15330_v34 }
 0x40b   : > { %v8801_v33 = vcombine.low %v8779_v8, %v8786_v22  ;;  %v8802_v9 = vcombine.high %v8779_v8, %v8786_v22  ;;  %v6475_v30 = vrot.slane %v6453_v31, %v17011_v29  ;;  %v6482_v44 = vrot.slane %v6454_v54, %v17011_v29 }
 0x40c   : > { %v8825_v41 = vrot.slane %v8803_v53, %v17011_v29  ;;  %v8832_v51 = vrot.slane %v8804_v40, %v17011_v29  ;;  %v6112_v14 = vadd.f32 %v15615_v57, %v15356_v55  ;;  %v6213_v63 = vadd.f32 %v15617_v13, %v15360_v10  ;;  %v15746_v36 = vpop.f32.mrf.mxu1  ;;  %v15752_v40 = vpop.f32.mrf.mxu0 }
 0x40d   : > { %v8811_v12 = vrot.slane %v8801_v33, %v17011_v29  ;;  %v8818_v62 = vrot.slane %v8802_v9, %v17011_v29  ;;  %v6483_v27 = vcombine.low %v6461_v59, %v6475_v30  ;;  %v6484_v8 = vcombine.high %v6461_v59, %v6475_v30 }
 0x40e   : > { %v6485_v22 = vcombine.low %v6468_v16, %v6482_v44  ;;  %v6486_v24 = vcombine.high %v6468_v16, %v6482_v44  ;;  %v6519_v57 = vcombine.low %v6110_v6, %v6112_v14  ;;  %v6520_v13 = vcombine.high %v6110_v6, %v6112_v14 }
 0x40f   : > { %v8833_v48 = vcombine.low %v8811_v12, %v8825_v41  ;;  %v8834_v31 = vcombine.high %v8811_v12, %v8825_v41  ;;  %v8835_v54 = vcombine.low %v8818_v62, %v8832_v51  ;;  %v8836_v33 = vcombine.high %v8818_v62, %v8832_v51 }
 0x410   : > { %v6493_v9 = vrot.slane %v6483_v27, %v17011_v29  ;;  %v6500_v59 = vrot.slane %v6485_v22, %v17011_v29  ;;  %v6507_v53 = vrot.slane %v6484_v8, %v17011_v29  ;;  %v6514_v16 = vrot.slane %v6486_v24, %v17011_v29  ;;  %v15758_v27 = vpop.f32.mrf.mxu1 }
 0x411   : > { %9701 = vst [vmem:[%s15681_s21 + $0x20] sm:$0x7f] %v8833_v48  ;;  %9702 = vst [vmem:[%s15681_s21 + $0x28] sm:$0x7f] %v8835_v54  ;;  %v6521_v30 = vcombine.low %v6211_v32, %v6213_v63  ;;  %v6522_v44 = vcombine.high %v6211_v32, %v6213_v63  ;;  %v17042_v8 = vcombine.high %v15383_v20, %v15383_v20 }
 0x412   : > { %9703 = vst [vmem:[%s15681_s21 + $0x30] sm:$0x7f] %v8834_v31  ;;  %9704 = vst [vmem:[%s15681_s21 + $0x38] sm:$0x7f] %v8836_v33  ;;  %v6515_v12 = vcombine.high %v6493_v9, %v6493_v9  ;;  %v6516_v62 = vcombine.high %v6500_v59, %v6500_v59  ;;  %v6517_v41 = vcombine.high %v6507_v53, %v6507_v53 }
 0x413   : > { %v6518_v51 = vcombine.high %v6514_v16, %v6514_v16  ;;  %v8425_v22 = vadd.f32 %v17042_v8, %v6493_v9  ;;  %v17043_v24 = vcombine.high %v15390_v26, %v15390_v26  ;;  %v17044_v31 = vcombine.high %v15402_v49, %v15402_v49  ;;  %v15778_v9 = vpop.f32.mrf.mxu0 }
 0x414   : > { %v8430_v32 = vadd.f32 %v15405_v35, %v6514_v16  ;;  %v8427_v14 = vadd.f32 %v15402_v49, %v6515_v12  ;;  %v8428_v63 = vadd.f32 %v15423_v7, %v6517_v41  ;;  %v8431_v54 = vadd.f32 %v15408_v56, %v6516_v62  ;;  %v15781_v12 = vpop.f32.mrf.mxu1 }
 0x415   : > { %v8426_v48 = vadd.f32 %v17043_v24, %v6507_v53  ;;  %v8429_v6 = vadd.f32 %v17044_v31, %v6500_v59  ;;  %v17045_v20 = vcombine.high %v15405_v35, %v15405_v35  ;;  %v8523_v26 = vmax.f32 %v8425_v22, 0.0 }
 0x416   : > { %v8528_v24 = vmax.f32 %v8430_v32, 0.0  ;;  %v8525_v59 = vmax.f32 %v8427_v14, 0.0  ;;  %v8526_v31 = vmax.f32 %v8428_v63, 0.0  ;;  %v8529_v16 = vmax.f32 %v8431_v54, 0.0 }
 0x417   : > { %v15776_v33 = vadd.f32 %v17045_v20, %v6518_v51  ;;  %v8524_v53 = vmax.f32 %v8426_v48, 0.0  ;;  %v8527_v8 = vmax.f32 %v8429_v6, 0.0  ;;  %v6529_v35 = vrot.slane %v6519_v57, %v17011_v29  ;;  %v15788_v6 = vpop.f32.mrf.mxu0 }
 0x418   : > { %v6536_v41 = vrot.slane %v6520_v13, %v17011_v29  ;;  %v8839_v51 = vcombine.low %v8525_v59, %v8526_v31  ;;  %v8904_v20 = vcombine.low %v8528_v24, %v8529_v16  ;;  %v6543_v22 = vrot.slane %v6521_v30, %v17011_v29  ;;  %17046 = vst [vmem:[#allocation29_spill] sm:$0xff] %v15788_v6 }
 0x419   : > { %v8838_v7 = vcombine.low %v8523_v26, %v8524_v53  ;;  %v8867_v62 = vrot.slane %v8527_v8, %v17011_v29  ;;  %v6550_v48 = vrot.slane %v6522_v44, %v17011_v29  ;;  %v15793_v14 = vadd.f32 %v15631_v28, %v15330_v34  ;;  %v15807_v26 = vpop.f32.mrf.mxu1  ;;  %v15813_v16 = vpop.f32.mrf.mxu0 }
 0x41a   : > { %v15797_v63 = vadd.f32 %v15633_v5, %v15354_v45  ;;  %v15801_v57 = vadd.f32 %v15636_v25, %v15356_v55  ;;  %v8860_v13 = vrot.slane %v8839_v51, %v17011_v29  ;;  %v15805_v30 = vrot.slane %v8904_v20, %v17011_v29  ;;  %17047 = vst [vmem:[#allocation55_spill] sm:$0xff] %v15807_v26 }
 0x41b   : > { %v8853_v32 = vrot.slane %v8838_v7, %v17011_v29  ;;  %v6551_v44 = vcombine.low %v6529_v35, %v6543_v22  ;;  %v6552_v54 = vcombine.high %v6529_v35, %v6543_v22  ;;  %v6553_v8 = vcombine.low %v6536_v41, %v6550_v48  ;;  %17048 = vst [vmem:[#allocation8_spill] sm:$0xff] %v15813_v16 }
 0x41c   : > { %v6554_v5 = vcombine.high %v6536_v41, %v6550_v48  ;;  %v8870_v24 = vcombine.low %v8860_v13, %v8867_v62  ;;  %v8871_v59 = vcombine.high %v8860_v13, %v8867_v62  ;;  %v15821_v48 = vpop.f32.mrf.mxu1 }
 0x41d   : > { %v8868_v28 = vcombine.low %v15724_v11, %v8853_v32  ;;  %v8869_v53 = vcombine.high %v15724_v11, %v8853_v32  ;;  %v6561_v25 = vrot.slane %v6551_v44, %v17011_v29  ;;  %v6575_v31 = vrot.slane %v6552_v54, %v17011_v29  ;;  %17049 = vst [vmem:[#allocation58_spill] sm:$0xff] %v15821_v48 }
 0x41e   : > { %v6568_v51 = vrot.slane %v6553_v8, %v17011_v29  ;;  %v6582_v20 = vrot.slane %v6554_v5, %v17011_v29  ;;  %v8892_v11 = vrot.slane %v8870_v24, %v17011_v29  ;;  %v8899_v41 = vrot.slane %v8871_v59, %v17011_v29  ;;  %v15827_v59 = vpop.f32.mrf.mxu0 }
 0x41f   : > { %v8878_v7 = vrot.slane %v8868_v28, %v17011_v29  ;;  %v8885_v35 = vrot.slane %v8869_v53, %v17011_v29  ;;  %v6583_v22 = vcombine.high %v6561_v25, %v6561_v25  ;;  %v6585_v62 = vcombine.high %v6575_v31, %v6575_v31 }
 0x420   : > { %v6584_v32 = vcombine.high %v6568_v51, %v6568_v51  ;;  %v6586_v13 = vcombine.high %v6582_v20, %v6582_v20  ;;  %v17050_v44 = vcombine.high %v15408_v56, %v15408_v56  ;;  %v8434_v28 = vadd.f32 %v15436_v18, %v6575_v31 }
 0x421   : > { %v8900_v53 = vcombine.low %v8878_v7, %v8892_v11  ;;  %v8901_v8 = vcombine.high %v8878_v7, %v8892_v11  ;;  %v8902_v5 = vcombine.low %v8885_v35, %v8899_v41  ;;  %v8903_v24 = vcombine.high %v8885_v35, %v8899_v41 }
 0x422   : > { %v8433_v54 = vadd.f32 %v17050_v44, %v6561_v25  ;;  %v8435_v49 = vadd.f32 %v15462_v15, %v6583_v22  ;;  %v17051_v48 = vcombine.high %v15436_v18, %v15436_v18  ;;  %v8437_v6 = vadd.f32 %v15441_v17, %v6568_v51  ;;  %v15845_v18 = vpop.f32.mrf.mxu1 }
 0x423   : > { %v8438_v26 = vadd.f32 %v15444_v3, %v6582_v20  ;;  %9705 = vst [vmem:[%s15681_s21 + $0x40] sm:$0x7f] %v8900_v53  ;;  %9706 = vst [vmem:[%s15681_s21 + $0x48] sm:$0x7f] %v8902_v5  ;;  %v17052_v56 = vcombine.high %v15441_v17, %v15441_v17  ;;  %v17053_v31 = vcombine.high %v15444_v3, %v15444_v3  ;;  %v8532_v35 = vmax.f32 %v8434_v28, 0.0 }
 0x424   : > { %v8436_v16 = vadd.f32 %v17051_v48, %v6585_v62  ;;  %9707 = vst [vmem:[%s15681_s21 + $0x50] sm:$0x7f] %v8901_v8  ;;  %9708 = vst [vmem:[%s15681_s21 + $0x58] sm:$0x7f] %v8903_v24  ;;  %v8531_v7 = vmax.f32 %v8433_v54, 0.0  ;;  %v8533_v11 = vmax.f32 %v8435_v49, 0.0  ;;  %v6587_v17 = vcombine.low %v15793_v14, %v15801_v57  ;;  %v15860_v28 = vpop.f32.mrf.mxu1 }
 0x425   : > { %v8439_v25 = vadd.f32 %v17052_v56, %v6584_v32  ;;  %v8440_v15 = vadd.f32 %v17053_v31, %v6586_v13  ;;  %v8535_v41 = vmax.f32 %v8437_v6, 0.0  ;;  %v8536_v20 = vmax.f32 %v8438_v26, 0.0  ;;  %v15851_v32 = vpop.f32.mrf.mxu0 }
 0x426   : > { %v8534_v51 = vmax.f32 %v8436_v16, 0.0  ;;  %v17054_v48 = vmax.f32 %v15776_v33, 0.0  ;;  %v8906_v3 = vcombine.low %v8532_v35, %v8533_v11  ;;  %v6588_v49 = vcombine.high %v15793_v14, %v15801_v57 }
 0x427   : > { %v8537_v22 = vmax.f32 %v8439_v25, 0.0  ;;  %v8538_v62 = vmax.f32 %v8440_v15, 0.0  ;;  %v8971_v54 = vcombine.low %v8535_v41, %v8536_v20  ;;  %v6597_v16 = vrot.slane %v6587_v17, %v17011_v29 }
 0x428   : > { %v8905_v44 = vcombine.low %v17054_v48, %v8531_v7  ;;  %v8934_v13 = vrot.slane %v8534_v51, %v17011_v29  ;;  %v6219_v33 = vadd.f32 %v15638_v61, %v15360_v10  ;;  %v8927_v53 = vrot.slane %v8906_v3, %v17011_v29  ;;  %v15871_v61 = vpop.f32.mrf.mxu0 }
 0x429   : > { %v8972_v26 = vcombine.low %v8537_v22, %v8538_v62  ;;  %v8980_v8 = vrot.slane %v8971_v54, %v17011_v29  ;;  %v6604_v5 = vrot.slane %v6588_v49, %v17011_v29  ;;  %v6120_v24 = vadd.f32 %v15645_v1, %v15330_v34 }
 0x42a   : > { %v8920_v6 = vrot.slane %v8905_v44, %v17011_v29  ;;  %v6589_v25 = vcombine.low %v15797_v63, %v6219_v33  ;;  %v8937_v31 = vcombine.low %v8927_v53, %v8934_v13  ;;  %v8938_v15 = vcombine.high %v8927_v53, %v8934_v13  ;;  %v15880_v20 = vpop.f32.mrf.mxu0 }
 0x42b   : > { %v8987_v56 = vrot.slane %v8972_v26, %v17011_v29  ;;  %v6590_v7 = vcombine.high %v15797_v63, %v6219_v33  ;;  %v6221_v35 = vadd.f32 %v15647_v50, %v15354_v45  ;;  %v6122_v17 = vadd.f32 %v15656_v21, %v15356_v55 }
 0x42c   : > { %v8935_v14 = vcombine.low %v15805_v30, %v8920_v6  ;;  %v8936_v57 = vcombine.high %v15805_v30, %v8920_v6  ;;  %v15878_v30 = vpop.f32.mrf.mxu1  ;;  %v8959_v22 = vrot.slane %v8937_v31, %v17011_v29  ;;  %v8966_v62 = vrot.slane %v8938_v15, %v17011_v29  ;;  %v6260_v54 = vpop.f32.mrf.mxu0 }
 0x42d   : > { %v9002_v51 = vcombine.low %v8980_v8, %v8987_v56  ;;  %v9003_v41 = vcombine.high %v8980_v8, %v8987_v56  ;;  %v6611_v48 = vrot.slane %v6589_v25, %v17011_v29  ;;  %v6618_v63 = vrot.slane %v6590_v7, %v17011_v29 }
 0x42e   : > { %v8945_v11 = vrot.slane %v8935_v14, %v17011_v29  ;;  %v8952_v1 = vrot.slane %v8936_v57, %v17011_v29  ;;  %v6223_v3 = vadd.f32 %v15658_v19, %v15360_v10  ;;  %v6159_v13 = vpop.f32.mrf.mxu1  ;;  %v6261_v25 = vpop.f32.mrf.mxu0  ;;  %v6655_v21 = vcombine.low %v6120_v24, %v6122_v17 }
 0x42f   : > { %v15887_v50 = vrot.slane %v9002_v51, %v17011_v29  ;;  %v15890_v44 = vrot.slane %v9003_v41, %v17011_v29  ;;  %v6619_v53 = vcombine.low %v6597_v16, %v6611_v48  ;;  %v6620_v8 = vcombine.high %v6597_v16, %v6611_v48 }
 0x430   : > { %v8967_v49 = vcombine.low %v8945_v11, %v8959_v22  ;;  %v8968_v6 = vcombine.high %v8945_v11, %v8959_v22  ;;  %v8969_v26 = vcombine.low %v8952_v1, %v8966_v62  ;;  %v8970_v33 = vcombine.high %v8952_v1, %v8966_v62  ;;  %v6160_v56 = vpop.f32.mrf.mxu1 }
 0x431   : > { %v6621_v14 = vcombine.low %v6604_v5, %v6618_v63  ;;  %v6622_v57 = vcombine.high %v6604_v5, %v6618_v63  ;;  %v6656_v31 = vcombine.high %v6120_v24, %v6122_v17  ;;  %v6657_v19 = vcombine.low %v6221_v35, %v6223_v3 }
 0x432   : > { %9709 = vst [vmem:[%s15681_s21 + $0x60] sm:$0x7f] %v8967_v49  ;;  %9710 = vst [vmem:[%s15681_s21 + $0x68] sm:$0x7f] %v8969_v26  ;;  %v6658_v15 = vcombine.high %v6221_v35, %v6223_v3  ;;  %v6629_v7 = vrot.slane %v6619_v53, %v17011_v29  ;;  %v6643_v1 = vrot.slane %v6620_v8, %v17011_v29 }
 0x433   : > { %9711 = vst [vmem:[%s15681_s21 + $0x70] sm:$0x7f] %v8968_v6  ;;  %9712 = vst [vmem:[%s15681_s21 + $0x78] sm:$0x7f] %v8970_v33  ;;  %v6636_v11 = vrot.slane %v6621_v14, %v17011_v29  ;;  %v6650_v16 = vrot.slane %v6622_v57, %v17011_v29  ;;  %v6665_v5 = vrot.slane %v6655_v21, %v17011_v29 }
 0x434   : > { %v6672_v51 = vrot.slane %v6656_v31, %v17011_v29  ;;  %v6679_v41 = vrot.slane %v6657_v19, %v17011_v29  ;;  %v6686_v22 = vrot.slane %v6658_v15, %v17011_v29  ;;  %v6651_v62 = vcombine.high %v6629_v7, %v6629_v7 }
 0x435   : > { %v6652_v24 = vcombine.high %v6636_v11, %v6636_v11  ;;  %v6653_v48 = vcombine.high %v6643_v1, %v6643_v1  ;;  %v6654_v35 = vcombine.high %v6650_v16, %v6650_v16  ;;  %v8441_v63 = vadd.f32 %v15449_v39, %v6629_v7 }
 0x436   : > { %v8442_v17 = vadd.f32 %v15474_v37, %v6643_v1  ;;  %v8445_v3 = vadd.f32 %v15455_v4, %v6636_v11  ;;  %v17055_v13 = vcombine.high %v15452_v42, %v15452_v42  ;;  %v17056_v49 = vcombine.high %v15449_v39, %v15449_v39 }
 0x437   : > { %v8444_v26 = vadd.f32 %v15452_v42, %v6653_v48  ;;  %v17057_v33 = vcombine.high %v15455_v4, %v15455_v4  ;;  %v8448_v8 = vadd.f32 %v15465_v47, %v6654_v35  ;;  %v8539_v14 = vmax.f32 %v8441_v63, 0.0 }
 0x438   : > { %v8446_v54 = vadd.f32 %v17055_v13, %v6650_v16  ;;  %v8443_v6 = vadd.f32 %v17056_v49, %v6651_v62  ;;  %v8540_v37 = vmax.f32 %v8442_v17, 0.0  ;;  %v8543_v57 = vmax.f32 %v8445_v3, 0.0 }
 0x439   : > { %v8447_v53 = vadd.f32 %v17057_v33, %v6652_v24  ;;  %v8542_v21 = vmax.f32 %v8444_v26, 0.0  ;;  %v8546_v19 = vmax.f32 %v8448_v8, 0.0  ;;  %v6687_v7 = vcombine.low %v6665_v5, %v6679_v41  ;;  %v17058_v8 = vld [vmem:[#allocation14_spill] sm:$0xff] }
 0x43a   : > { %v8544_v56 = vmax.f32 %v8446_v54, 0.0  ;;  %v8541_v25 = vmax.f32 %v8443_v6, 0.0  ;;  %v8973_v15 = vcombine.low %v8539_v14, %v8540_v37  ;;  %v6688_v39 = vcombine.high %v6665_v5, %v6679_v41 }
 0x43b   : > { %v8545_v31 = vmax.f32 %v8447_v53, 0.0  ;;  %v6689_v11 = vcombine.low %v6672_v51, %v6686_v22  ;;  %v9038_v1 = vcombine.low %v8542_v21, %v8543_v57  ;;  %v6690_v4 = vcombine.high %v6672_v51, %v6686_v22 }
 0x43c   : > { %v9001_v42 = vrot.slane %v8541_v25, %v17011_v29  ;;  %v8994_v62 = vrot.slane %v8973_v15, %v17011_v29  ;;  %v6697_v24 = vrot.slane %v6687_v7, %v17011_v29  ;;  %v6711_v35 = vrot.slane %v6688_v39, %v17011_v29  ;;  %v17060_v25 = vld [vmem:[#allocation38_spill] sm:$0xff] }
 0x43d   : > { %v9039_v16 = vcombine.low %v8544_v56, %v8545_v31  ;;  %v6704_v48 = vrot.slane %v6689_v11, %v17011_v29  ;;  %v9047_v63 = vrot.slane %v9038_v1, %v17011_v29  ;;  %v6718_v5 = vrot.slane %v6690_v4, %v17011_v29  ;;  %v17061_v31 = vld [vmem:[#allocation13_spill] sm:$0xff] }
 0x43e   : > { %v6126_v41 = vadd.f32 %v15666_v60, %v15330_v34  ;;  %v9004_v3 = vcombine.low %v8994_v62, %v9001_v42  ;;  %v9005_v13 = vcombine.high %v8994_v62, %v9001_v42  ;;  %v6719_v51 = vcombine.high %v6697_v24, %v6697_v24  ;;  %v17064_v62 = vld [vmem:[#allocation41_spill] sm:$0xff] }
 0x43f   : > { %v9054_v17 = vrot.slane %v9039_v16, %v17011_v29  ;;  %v6720_v22 = vcombine.high %v6704_v48, %v6704_v48  ;;  %v6721_v6 = vcombine.high %v6711_v35, %v6711_v35  ;;  %v6722_v26 = vcombine.high %v6718_v5, %v6718_v5 }
 0x440   : > { %v9026_v33 = vrot.slane %v9004_v3, %v17011_v29  ;;  %v9033_v53 = vrot.slane %v9005_v13, %v17011_v29  ;;  %v8449_v14 = vadd.f32 %v17058_v8, %v6697_v24  ;;  %v17059_v37 = vcombine.high %v15465_v47, %v15465_v47  ;;  %v17067_v8 = vld [vmem:[#allocation46_spill] sm:$0xff] }
 0x441   : > { %v9069_v54 = vcombine.low %v9047_v63, %v9054_v17  ;;  %v9070_v49 = vcombine.high %v9047_v63, %v9054_v17  ;;  %v8451_v21 = vadd.f32 %v17060_v25, %v6719_v51  ;;  %v8452_v15 = vadd.f32 %v17061_v31, %v6721_v6 }
 0x442   : > { %v8450_v60 = vadd.f32 %v17059_v37, %v6711_v35  ;;  %v9034_v7 = vcombine.low %v15887_v50, %v9026_v33  ;;  %v9035_v39 = vcombine.high %v15887_v50, %v9026_v33  ;;  %v9036_v11 = vcombine.low %v15890_v44, %v9033_v53  ;;  %v17065_v35 = vld [vmem:[#allocation42_spill] sm:$0xff] }
 0x443   : > { %v15939_v57 = vrot.slane %v9069_v54, %v17011_v29  ;;  %v15942_v56 = vrot.slane %v9070_v49, %v17011_v29  ;;  %v9037_v47 = vcombine.high %v15890_v44, %v9033_v53  ;;  %v17062_v42 = vcombine.high %v17060_v25, %v17060_v25 }
 0x444   : > { %v17063_v16 = vcombine.high %v17061_v31, %v17061_v31  ;;  %v8455_v24 = vadd.f32 %v17064_v62, %v6720_v22  ;;  %v8456_v63 = vadd.f32 %v17065_v35, %v6722_v26  ;;  %9713 = vst [vmem:[%s15681_s21 + $0x80] sm:$0x7f] %v9034_v7  ;;  %9714 = vst [vmem:[%s15681_s21 + $0x88] sm:$0x7f] %v9036_v11  ;;  %v8547_v50 = vmax.f32 %v8449_v14, 0.0  ;;  %v17066_v22 = vld [vmem:[#allocation54_spill] sm:$0xff] }
 0x445   : > { %v8453_v1 = vadd.f32 %v17062_v42, %v6704_v48  ;;  %9715 = vst [vmem:[%s15681_s21 + $0x90] sm:$0x7f] %v9035_v39  ;;  %9716 = vst [vmem:[%s15681_s21 + $0x98] sm:$0x7f] %v9037_v47  ;;  %v8548_v17 = vmax.f32 %v8450_v60, 0.0  ;;  %v8549_v3 = vmax.f32 %v8451_v21, 0.0  ;;  %v6227_v33 = vadd.f32 %v17066_v22, %v15354_v45 }
 0x446   : > { %v8454_v4 = vadd.f32 %v17063_v16, %v6718_v5  ;;  %v8550_v44 = vmax.f32 %v8452_v15, 0.0  ;;  %v8553_v54 = vmax.f32 %v8455_v24, 0.0  ;;  %v8554_v48 = vmax.f32 %v8456_v63, 0.0  ;;  %v17068_v14 = vld [vmem:[#allocation21_spill] sm:$0xff] }
 0x447   : > { %v8551_v13 = vmax.f32 %v8453_v1, 0.0  ;;  %v9040_v49 = vcombine.low %v8546_v19, %v8547_v50  ;;  %v9068_v6 = vrot.slane %v8548_v17, %v17011_v29  ;;  %v6128_v37 = vadd.f32 %v17067_v8, %v15356_v55 }
 0x448   : > { %v8552_v51 = vmax.f32 %v8454_v4, 0.0  ;;  %v9105_v5 = vcombine.low %v8549_v3, %v8550_v44  ;;  %v9107_v53 = vcombine.low %v8553_v54, %v8554_v48  ;;  %v6229_v60 = vadd.f32 %v17068_v14, %v15360_v10 }
 0x449   : > { %v9061_v25 = vrot.slane %v9040_v49, %v17011_v29  ;;  %v6130_v19 = vadd.f32 %v15693_v43, %v15330_v34  ;;  %v6231_v31 = vadd.f32 %v15695_v52, %v15354_v45  ;;  %v6723_v7 = vcombine.low %v6126_v41, %v6128_v37 }
 0x44a   : > { %v9106_v26 = vcombine.low %v8551_v13, %v8552_v51  ;;  %v9114_v21 = vrot.slane %v9105_v5, %v17011_v29  ;;  %v6724_v39 = vcombine.high %v6126_v41, %v6128_v37  ;;  %v6725_v11 = vcombine.low %v6227_v33, %v6229_v60 }
 0x44b   : > { %v9071_v47 = vcombine.low %v9061_v25, %v9068_v6  ;;  %v9072_v42 = vcombine.high %v9061_v25, %v9068_v6  ;;  %v6726_v1 = vcombine.high %v6227_v33, %v6229_v60  ;;  %v15977_v16 = vrot.slane %v9107_v53, %v17011_v29 }
 0x44c   : > { %v9121_v15 = vrot.slane %v9106_v26, %v17011_v29  ;;  %v6733_v35 = vrot.slane %v6723_v7, %v17011_v29  ;;  %v6740_v43 = vrot.slane %v6724_v39, %v17011_v29  ;;  %v6747_v41 = vrot.slane %v6725_v11, %v17011_v29 }
 0x44d   : > { %v9093_v63 = vrot.slane %v9071_v47, %v17011_v29  ;;  %v9100_v52 = vrot.slane %v9072_v42, %v17011_v29  ;;  %v6754_v50 = vrot.slane %v6726_v1, %v17011_v29  ;;  %v6132_v44 = vadd.f32 %v15707_v46, %v15356_v55  ;;  %v17070_v47 = vld [vmem:[#allocation40_spill] sm:$0xff] }
 0x44e   : > { %v9136_v4 = vcombine.low %v9114_v21, %v9121_v15  ;;  %v9137_v24 = vcombine.high %v9114_v21, %v9121_v15  ;;  %v6233_v13 = vadd.f32 %v15709_v2, %v15360_v10  ;;  %v6755_v6 = vcombine.low %v6733_v35, %v6747_v41  ;;  %v17071_v1 = vld [vmem:[#allocation16_spill] sm:$0xff] }
 0x44f   : > { %v9101_v51 = vcombine.low %v15939_v57, %v9093_v63  ;;  %v9102_v54 = vcombine.high %v15939_v57, %v9093_v63  ;;  %v9103_v48 = vcombine.low %v15942_v56, %v9100_v52  ;;  %v9104_v49 = vcombine.high %v15942_v56, %v9100_v52 }
 0x450   : > { %v15986_v17 = vrot.slane %v9136_v4, %v17011_v29  ;;  %v15989_v3 = vrot.slane %v9137_v24, %v17011_v29  ;;  %v6756_v5 = vcombine.high %v6733_v35, %v6747_v41  ;;  %v6757_v22 = vcombine.low %v6740_v43, %v6754_v50  ;;  %v17073_v35 = vld [vmem:[#allocation15_spill] sm:$0xff] }
 0x451   : > { %v6758_v33 = vcombine.high %v6740_v43, %v6754_v50  ;;  %9717 = vst [vmem:[%s15681_s21 + $0xa0] sm:$0x7f] %v9101_v51  ;;  %9718 = vst [vmem:[%s15681_s21 + $0xa8] sm:$0x7f] %v9103_v48  ;;  %v6791_v46 = vcombine.low %v6130_v19, %v6132_v44  ;;  %v6792_v26 = vcombine.high %v6130_v19, %v6132_v44  ;;  %v17075_v50 = vld [vmem:[#allocation45_spill] sm:$0xff] }
 0x452   : > { %9719 = vst [vmem:[%s15681_s21 + $0xb0] sm:$0x7f] %v9102_v54  ;;  %9720 = vst [vmem:[%s15681_s21 + $0xb8] sm:$0x7f] %v9104_v49  ;;  %v6793_v53 = vcombine.low %v6231_v31, %v6233_v13  ;;  %v6794_v2 = vcombine.high %v6231_v31, %v6233_v13  ;;  %v6765_v8 = vrot.slane %v6755_v6, %v17011_v29 }
 0x453   : > { %v6772_v57 = vrot.slane %v6757_v22, %v17011_v29  ;;  %v6779_v37 = vrot.slane %v6756_v5, %v17011_v29  ;;  %v6786_v56 = vrot.slane %v6758_v33, %v17011_v29  ;;  %v6801_v14 = vrot.slane %v6791_v46, %v17011_v29 }
 0x454   : > { %v6808_v60 = vrot.slane %v6792_v26, %v17011_v29  ;;  %v6815_v25 = vrot.slane %v6793_v53, %v17011_v29  ;;  %v6822_v21 = vrot.slane %v6794_v2, %v17011_v29  ;;  %v6787_v15 = vcombine.high %v6765_v8, %v6765_v8 }
 0x455   : > { %v6788_v19 = vcombine.high %v6772_v57, %v6772_v57  ;;  %v6789_v7 = vcombine.high %v6779_v37, %v6779_v37  ;;  %v6790_v31 = vcombine.high %v6786_v56, %v6786_v56  ;;  %v17069_v39 = vcombine.high %v17064_v62, %v17064_v62 }
 0x456   : > { %v8458_v42 = vadd.f32 %v17070_v47, %v6779_v37  ;;  %v17072_v4 = vcombine.high %v17071_v1, %v17071_v1  ;;  %v8462_v43 = vadd.f32 %v17073_v35, %v6786_v56  ;;  %v8459_v63 = vadd.f32 %v17071_v1, %v6787_v15 }
 0x457   : > { %v8457_v11 = vadd.f32 %v17069_v39, %v6765_v8  ;;  %v17074_v52 = vcombine.high %v17070_v47, %v17070_v47  ;;  %v8463_v44 = vadd.f32 %v17075_v50, %v6788_v19  ;;  %v17076_v62 = vcombine.high %v17073_v35, %v17073_v35 }
 0x458   : > { %v8461_v24 = vadd.f32 %v17072_v4, %v6772_v57  ;;  %v8556_v54 = vmax.f32 %v8458_v42, 0.0  ;;  %v8560_v49 = vmax.f32 %v8462_v43, 0.0  ;;  %v8557_v6 = vmax.f32 %v8459_v63, 0.0 }
 0x459   : > { %v8460_v41 = vadd.f32 %v17074_v52, %v6789_v7  ;;  %v8464_v13 = vadd.f32 %v17076_v62, %v6790_v31  ;;  %v8555_v51 = vmax.f32 %v8457_v11, 0.0  ;;  %v8561_v22 = vmax.f32 %v8463_v44, 0.0 }
 0x45a   : > { %v8559_v48 = vmax.f32 %v8461_v24, 0.0  ;;  %v6823_v26 = vcombine.low %v6801_v14, %v6815_v25  ;;  %v6824_v53 = vcombine.high %v6801_v14, %v6815_v25  ;;  %v6825_v2 = vcombine.low %v6808_v60, %v6822_v21 }
 0x45b   : > { %v8558_v5 = vmax.f32 %v8460_v41, 0.0  ;;  %v8562_v33 = vmax.f32 %v8464_v13, 0.0  ;;  %v9135_v46 = vrot.slane %v8555_v51, %v17011_v29  ;;  %v9172_v8 = vcombine.low %v8556_v54, %v8557_v6 }
 0x45c   : > { %v9174_v37 = vcombine.low %v8560_v49, %v8561_v22  ;;  %v6826_v7 = vcombine.high %v6808_v60, %v6822_v21  ;;  %v6833_v31 = vrot.slane %v6823_v26, %v17011_v29  ;;  %v6840_v14 = vrot.slane %v6825_v2, %v17011_v29 }
 0x45d   : > { %v9173_v57 = vcombine.low %v8558_v5, %v8559_v48  ;;  %v9202_v56 = vrot.slane %v8562_v33, %v17011_v29  ;;  %v9138_v15 = vcombine.low %v15977_v16, %v9135_v46  ;;  %v9139_v19 = vcombine.high %v15977_v16, %v9135_v46  ;;  %v17077_v5 = vld [vmem:[#allocation50_spill] sm:$0xff]  ;;  %v17078_v33 = vld [vmem:[#allocation5_spill] sm:$0xff] }
 0x45e   : > { %v9181_v39 = vrot.slane %v9172_v8, %v17011_v29  ;;  %v9195_v47 = vrot.slane %v9174_v37, %v17011_v29  ;;  %v6847_v1 = vrot.slane %v6824_v53, %v17011_v29  ;;  %v6854_v16 = vrot.slane %v6826_v7, %v17011_v29 }
 0x45f   : > { %v9188_v11 = vrot.slane %v9173_v57, %v17011_v29  ;;  %v9160_v25 = vrot.slane %v9138_v15, %v17011_v29  ;;  %v9167_v42 = vrot.slane %v9139_v19, %v17011_v29  ;;  %v6856_v13 = vcombine.high %v6840_v14, %v6840_v14  ;;  %v17081_v57 = vld [vmem:[#allocation4_spill] sm:$0xff] }
 0x460   : > { %v9205_v4 = vcombine.low %v9195_v47, %v9202_v56  ;;  %v9206_v24 = vcombine.high %v9195_v47, %v9202_v56  ;;  %v6857_v51 = vcombine.high %v6847_v1, %v6847_v1  ;;  %v8465_v22 = vadd.f32 %v17077_v5, %v6833_v31  ;;  %v17082_v56 = vld [vmem:[#allocation3_spill] sm:$0xff] }
 0x461   : > { %v9203_v60 = vcombine.low %v9181_v39, %v9188_v11  ;;  %v9204_v21 = vcombine.high %v9181_v39, %v9188_v11  ;;  %v9168_v35 = vcombine.low %v15986_v17, %v9160_v25  ;;  %v9169_v43 = vcombine.high %v15986_v17, %v9160_v25 }
 0x462   : > { %v9170_v63 = vcombine.low %v15989_v3, %v9167_v42  ;;  %v9171_v52 = vcombine.high %v15989_v3, %v9167_v42  ;;  %v9227_v44 = vrot.slane %v9205_v4, %v17011_v29  ;;  %v9234_v62 = vrot.slane %v9206_v24, %v17011_v29 }
 0x463   : > { %v9213_v41 = vrot.slane %v9203_v60, %v17011_v29  ;;  %v9220_v50 = vrot.slane %v9204_v21, %v17011_v29  ;;  %9721 = vst [vmem:[%s15681_s21 + $0xc0] sm:$0x7f] %v9168_v35  ;;  %9723 = vst [vmem:[%s15681_s21 + $0xd0] sm:$0x7f] %v9169_v43  ;;  %v6855_v17 = vcombine.high %v6833_v31, %v6833_v31  ;;  %v17084_v31 = vld [vmem:[#allocation18_spill] sm:$0xff]  ;;  %v8563_v11 = vmax.f32 %v8465_v22, 0.0 }
 0x464   : > { %9722 = vst [vmem:[%s15681_s21 + $0xc8] sm:$0x7f] %v9170_v63  ;;  %9724 = vst [vmem:[%s15681_s21 + $0xd8] sm:$0x7f] %v9171_v52  ;;  %v6858_v3 = vcombine.high %v6854_v16, %v6854_v16  ;;  %v8466_v46 = vadd.f32 %v17078_v33, %v6847_v1  ;;  %v17079_v26 = vcombine.high %v17077_v5, %v17077_v5  ;;  %v17085_v1 = vld [vmem:[#allocation17_spill] sm:$0xff] }
 0x465   : > { %v9235_v54 = vcombine.low %v9213_v41, %v9227_v44  ;;  %v9236_v48 = vcombine.high %v9213_v41, %v9227_v44  ;;  %v9237_v49 = vcombine.low %v9220_v50, %v9234_v62  ;;  %v9238_v6 = vcombine.high %v9220_v50, %v9234_v62 }
 0x466   : > { %v8467_v53 = vadd.f32 %v17079_v26, %v6855_v17  ;;  %v17080_v2 = vcombine.high %v17078_v33, %v17078_v33  ;;  %v8469_v37 = vadd.f32 %v17081_v57, %v6840_v14  ;;  %v8470_v15 = vadd.f32 %v17082_v56, %v6854_v16  ;;  %v17086_v17 = vld [vmem:[#allocation22_spill] sm:$0xff] }
 0x467   : > { %9725 = vst [vmem:[%s15681_s21 + $0xe0] sm:$0x7f] %v9235_v54  ;;  %9726 = vst [vmem:[%s15681_s21 + $0xe8] sm:$0x7f] %v9237_v49  ;;  %v17083_v19 = vcombine.high %v17081_v57, %v17081_v57  ;;  %v8041_v39 = vcombine.high %v17084_v31, %v17084_v31  ;;  %v8564_v47 = vmax.f32 %v8466_v46, 0.0  ;;  %v16072_v60 = vadd.f32 %v17085_v1, %v6858_v3 }
 0x468   : > { %v8468_v8 = vadd.f32 %v17080_v2, %v6857_v51  ;;  %9727 = vst [vmem:[%s15681_s21 + $0xf0] sm:$0x7f] %v9236_v48  ;;  %9728 = vst [vmem:[%s15681_s21 + $0xf8] sm:$0x7f] %v9238_v6  ;;  %v8565_v25 = vmax.f32 %v8467_v53, 0.0  ;;  %v8567_v21 = vmax.f32 %v8469_v37, 0.0  ;;  %v6136_v16 = vadd.f32 %v15718_v58, %v15330_v34 }
 0x469   : > { %v8471_v7 = vadd.f32 %v17083_v19, %v6856_v13  ;;  %v8568_v4 = vmax.f32 %v8470_v15, 0.0  ;;  %v9239_v14 = vcombine.low %v8563_v11, %v8564_v47  ;;  %v6237_v43 = vadd.f32 %v15720_v23, %v15354_v45  ;;  %v17087_v58 = vld [vmem:[#allocation51_spill] sm:$0xff]  ;;  %v17088_v51 = vld [vmem:[#allocation20_spill] sm:$0xff] }
 0x46a   : > { %v8566_v42 = vmax.f32 %v8468_v8, 0.0  ;;  %v6138_v41 = vadd.f32 %v15728_v38, %v15356_v55  ;;  %v6239_v50 = vadd.f32 %v15738_v0, %v15360_v10  ;;  %v8042_v13 = vcombine.high %v17086_v17, %v17086_v17 }
 0x46b   : > { %v8569_v24 = vmax.f32 %v8471_v7, 0.0  ;;  %v9241_v63 = vcombine.low %v8567_v21, %v8568_v4  ;;  %v9248_v44 = vrot.slane %v9239_v14, %v17011_v29  ;;  %v8075_v3 = vcombine.low %v17088_v51, %v17087_v58 }
 0x46c   : > { %v9240_v35 = vcombine.low %v8565_v25, %v8566_v42  ;;  %v6859_v54 = vcombine.low %v6136_v16, %v6138_v41  ;;  %v6860_v48 = vcombine.high %v6136_v16, %v6138_v41  ;;  %v6861_v49 = vcombine.low %v6237_v43, %v6239_v50 }
 0x46d   : > { %v9269_v52 = vrot.slane %v8569_v24, %v17011_v29  ;;  %v9262_v23 = vrot.slane %v9241_v63, %v17011_v29  ;;  %v6862_v5 = vcombine.high %v6237_v43, %v6239_v50  ;;  %v8076_v0 = vcombine.high %v17088_v51, %v17087_v58 }
 0x46e   : > { %v9255_v62 = vrot.slane %v9240_v35, %v17011_v29  ;;  %v6869_v46 = vrot.slane %v6859_v54, %v17011_v29  ;;  %v6876_v26 = vrot.slane %v6860_v48, %v17011_v29  ;;  %v6883_v8 = vrot.slane %v6861_v49, %v17011_v29 }
 0x46f   : > { %v9272_v22 = vcombine.low %v9262_v23, %v9269_v52  ;;  %v9273_v33 = vcombine.high %v9262_v23, %v9269_v52  ;;  %v6890_v57 = vrot.slane %v6862_v5, %v17011_v29  ;;  %v16101_v15 = vrot.slane %v8075_v3, %v17011_v29  ;;  %v17090_v23 = vld [vmem:[#allocation23_spill] sm:$0xff] }
 0x470   : > { %v9270_v6 = vcombine.low %v9248_v44, %v9255_v62  ;;  %v9271_v38 = vcombine.high %v9248_v44, %v9255_v62  ;;  %v16104_v19 = vrot.slane %v8076_v0, %v17011_v29  ;;  %v6891_v7 = vcombine.low %v6869_v46, %v6883_v8  ;;  %v11152_v0 = vld [vmem:[%s11467_s15 + $0x144] ss:$8 sps:$4 sm:$0x77]  }
 0x471   : > { %v9294_v37 = vrot.slane %v9272_v22, %v17011_v29  ;;  %v9301_v56 = vrot.slane %v9273_v33, %v17011_v29  ;;  %v6892_v11 = vcombine.high %v6869_v46, %v6883_v8  ;;  %v6893_v47 = vcombine.low %v6876_v26, %v6890_v57 }
 0x472   : > { %v9280_v53 = vrot.slane %v9270_v6, %v17011_v29  ;;  %v9287_v2 = vrot.slane %v9271_v38, %v17011_v29  ;;  %v6894_v25 = vcombine.high %v6876_v26, %v6890_v57  ;;  %v6901_v14 = vrot.slane %v6891_v7, %v17011_v29 }
 0x473   : > { %v6908_v35 = vrot.slane %v6893_v47, %v17011_v29  ;;  %v6915_v16 = vrot.slane %v6892_v11, %v17011_v29  ;;  %v8570_v63 = vmax.f32 %v16072_v60, 0.0  ;;  %v6142_v52 = vadd.f32 %v15758_v27, %v15356_v55 }
 0x474   : > { %v9302_v42 = vcombine.low %v9280_v53, %v9294_v37  ;;  %v9303_v21 = vcombine.high %v9280_v53, %v9294_v37  ;;  %v9304_v4 = vcombine.low %v9287_v2, %v9301_v56  ;;  %v9305_v24 = vcombine.high %v9287_v2, %v9301_v56  ;;  %v11153_v2 = vld [vmem:[%s11467_s15 + $0x154] ss:$8 sps:$4 sm:$0x77]  }
 0x475   : > { %v6922_v43 = vrot.slane %v6894_v25, %v17011_v29  ;;  %v6243_v41 = vadd.f32 %v15778_v9, %v15360_v10  ;;  %v6923_v50 = vcombine.high %v6901_v14, %v6901_v14  ;;  %v6924_v44 = vcombine.high %v6908_v35, %v6908_v35 }
 0x476   : > { %9729 = vst [vmem:[%s15681_s21 + $0x100] sm:$0x7f] %v9302_v42  ;;  %9730 = vst [vmem:[%s15681_s21 + $0x108] sm:$0x7f] %v9304_v4  ;;  %v6925_v62 = vcombine.high %v6915_v16, %v6915_v16  ;;  %v8473_v51 = vadd.f32 %v17086_v17, %v6901_v14  ;;  %v17089_v60 = vcombine.high %v17085_v1, %v17085_v1 }
 0x477   : > { %9731 = vst [vmem:[%s15681_s21 + $0x110] sm:$0x7f] %v9303_v21  ;;  %9732 = vst [vmem:[%s15681_s21 + $0x118] sm:$0x7f] %v9305_v24  ;;  %v6926_v58 = vcombine.high %v6922_v43, %v6922_v43  ;;  %v8477_v54 = vadd.f32 %v17090_v23, %v6908_v35  ;;  %v8478_v27 = vadd.f32 %v8041_v39, %v6922_v43 }
 0x478   : > { %v8474_v3 = vadd.f32 %v17089_v60, %v6915_v16  ;;  %v8475_v48 = vadd.f32 %v8042_v13, %v6923_v50  ;;  %v8476_v9 = vadd.f32 %v17084_v31, %v6925_v62  ;;  %v8479_v49 = vadd.f32 %v16101_v15, %v6924_v44 }
 0x479   : > { %v8480_v6 = vadd.f32 %v16104_v19, %v6926_v58  ;;  %v8571_v38 = vmax.f32 %v8473_v51, 0.0  ;;  %v8576_v17 = vmax.f32 %v8478_v27, 0.0  ;;  %v6140_v1 = vadd.f32 %v15746_v36, %v15330_v34 }
 0x47a   : > { %v6241_v5 = vadd.f32 %v15752_v40, %v15354_v45  ;;  %v8572_v22 = vmax.f32 %v8474_v3, 0.0  ;;  %v8573_v33 = vmax.f32 %v8475_v48, 0.0  ;;  %v8574_v39 = vmax.f32 %v8476_v9, 0.0  ;;  %v11156_v9 = vld [vmem:[%s11467_s15 + $0x170] ss:$8 sps:$4 sm:$0xff]  }
 0x47b   : > { %v8575_v13 = vmax.f32 %v8477_v54, 0.0  ;;  %v8577_v46 = vmax.f32 %v8479_v49, 0.0  ;;  %v9306_v31 = vcombine.low %v8570_v63, %v8571_v38  ;;  %v6927_v26 = vcombine.low %v6140_v1, %v6142_v52 }
 0x47c   : > { %v6928_v53 = vcombine.high %v6140_v1, %v6142_v52  ;;  %v8578_v8 = vmax.f32 %v8480_v6, 0.0  ;;  %v9307_v57 = vcombine.low %v8572_v22, %v8573_v33  ;;  %v6929_v56 = vcombine.low %v6241_v5, %v6243_v41 }
 0x47d   : > { %v9308_v37 = vcombine.low %v8574_v39, %v8575_v13  ;;  %v9336_v7 = vrot.slane %v8576_v17, %v17011_v29  ;;  %v6937_v36 = vrot.slane %v6927_v26, %v17011_v29  ;;  %v6930_v11 = vcombine.high %v6241_v5, %v6243_v41 }
 0x47e   : > { %v6944_v40 = vrot.slane %v6928_v53, %v17011_v29  ;;  %v9315_v47 = vrot.slane %v9306_v31, %v17011_v29  ;;  %v9322_v25 = vrot.slane %v9307_v57, %v17011_v29  ;;  %v6951_v21 = vrot.slane %v6929_v56, %v17011_v29  ;;  %v17091_v56 = vld [vmem:[#allocation55_spill] sm:$0xff] }
 0x47f   : > { %v9329_v42 = vrot.slane %v9308_v37, %v17011_v29  ;;  %v6958_v4 = vrot.slane %v6930_v11, %v17011_v29  ;;  %v8060_v24 = vrot.slane %v11152_v0, %v17011_v29  ;;  %v8074_v14 = vrot.slane %v11153_v2, %v17011_v29  ;;  %v17092_v11 = vld [vmem:[#allocation29_spill] sm:$0xff] }
 0x480   : > { %v8107_v35 = vcombine.high %v16101_v15, %v16101_v15  ;;  %v9337_v16 = vcombine.low %v9315_v47, %v9322_v25  ;;  %v9338_v43 = vcombine.high %v9315_v47, %v9322_v25  ;;  %v6959_v41 = vcombine.low %v6937_v36, %v6951_v21  ;;  %v11154_v15 = vld [vmem:[%s11467_s15 + $0x160] ss:$8 sps:$4 sm:$0xff]  }
 0x481   : > { %v9339_v63 = vcombine.low %v9329_v42, %v9336_v7  ;;  %v9340_v52 = vcombine.high %v9329_v42, %v9336_v7  ;;  %v6960_v50 = vcombine.high %v6937_v36, %v6951_v21  ;;  %v6961_v44 = vcombine.low %v6944_v40, %v6958_v4 }
 0x482   : > { %v6962_v62 = vcombine.high %v6944_v40, %v6958_v4  ;;  %v9347_v58 = vrot.slane %v9337_v16, %v17011_v29  ;;  %v9354_v51 = vrot.slane %v9338_v43, %v17011_v29  ;;  %v6969_v23 = vrot.slane %v6959_v41, %v17011_v29 }
 0x483   : > { %v9361_v60 = vrot.slane %v9339_v63, %v17011_v29  ;;  %v9368_v3 = vrot.slane %v9340_v52, %v17011_v29  ;;  %v6976_v54 = vrot.slane %v6961_v44, %v17011_v29  ;;  %v6983_v27 = vrot.slane %v6960_v50, %v17011_v29 }
 0x484   : > { %v6990_v48 = vrot.slane %v6962_v62, %v17011_v29  ;;  %v9373_v1 = vcombine.low %v8577_v46, %v8578_v8  ;;  %v6991_v5 = vcombine.high %v6969_v23, %v6969_v23  ;;  %v8077_v33 = vcombine.low %v8060_v24, %v8074_v14 }
 0x485   : > { %v9369_v49 = vcombine.low %v9347_v58, %v9361_v60  ;;  %v9370_v6 = vcombine.high %v9347_v58, %v9361_v60  ;;  %v9371_v38 = vcombine.low %v9354_v51, %v9368_v3  ;;  %v9372_v17 = vcombine.high %v9354_v51, %v9368_v3 }
 0x486   : > { %v6992_v0 = vcombine.high %v6976_v54, %v6976_v54  ;;  %v6993_v22 = vcombine.high %v6983_v27, %v6983_v27  ;;  %v8078_v39 = vcombine.high %v8060_v24, %v8074_v14  ;;  %v8109_v13 = vcombine.high %v16104_v19, %v16104_v19 }
 0x487   : > { %9733 = vst [vmem:[%s15681_s21 + $0x120] sm:$0x7f] %v9369_v49  ;;  %9734 = vst [vmem:[%s15681_s21 + $0x128] sm:$0x7f] %v9371_v38  ;;  %v8120_v31 = vrot.slane %v11154_v15, %v17011_v29  ;;  %v6994_v26 = vcombine.high %v6990_v48, %v6990_v48  ;;  %v8134_v53 = vrot.slane %v11156_v9, %v17011_v29 }
 0x488   : > { %9735 = vst [vmem:[%s15681_s21 + $0x130] sm:$0x7f] %v9370_v6  ;;  %9736 = vst [vmem:[%s15681_s21 + $0x138] sm:$0x7f] %v9372_v17  ;;  %v8481_v2 = vadd.f32 %v8107_v35, %v6969_v23  ;;  %v6146_v46 = vadd.f32 %v15781_v12, %v15330_v34  ;;  %v8092_v8 = vrot.slane %v8077_v33, %v17011_v29  ;;  %v17093_v35 = vld [vmem:[#allocation8_spill] sm:$0xff] }
 0x489   : > { %v8106_v57 = vrot.slane %v8078_v39, %v17011_v29  ;;  %v8482_v37 = vadd.f32 %v8109_v13, %v6983_v27  ;;  %v6148_v7 = vadd.f32 %v17091_v56, %v15356_v55  ;;  %v8142_v36 = vcombine.low %v8120_v31, %v8134_v53  ;;  %v11158_v17 = vld [vmem:[%s11467_s15 + $0x164] ss:$8 sps:$4 sm:$0x77]  }
 0x48a   : > { %v8143_v40 = vcombine.high %v8120_v31, %v8134_v53  ;;  %v8579_v19 = vmax.f32 %v8481_v2, 0.0  ;;  %v6247_v47 = vadd.f32 %v17092_v11, %v15354_v45  ;;  %v8108_v25 = vcombine.high %v8092_v8, %v8092_v8 }
 0x48b   : > { %v8483_v42 = vadd.f32 %v8092_v8, %v6991_v5  ;;  %v8484_v21 = vadd.f32 %v8106_v57, %v6993_v22  ;;  %v8580_v4 = vmax.f32 %v8482_v37, 0.0  ;;  %v8152_v12 = vrot.slane %v8142_v36, %v17011_v29  ;;  %v11159_v5 = vld [vmem:[%s11467_s15 + $0x174] ss:$8 sps:$4 sm:$0x77]   ;;  %v11160_v36 = vld [vmem:[%s11467_s15 + $0x180] ss:$8 sps:$4 sm:$0xff]  }
 0x48c   : > { %v16176_v24 = vrot.slane %v8143_v40, %v17011_v29  ;;  %v6995_v14 = vcombine.low %v6146_v46, %v6148_v7  ;;  %v6249_v16 = vadd.f32 %v17093_v35, %v15360_v10  ;;  %v8485_v43 = vadd.f32 %v8108_v25, %v6976_v54  ;;  %v11162_v25 = vld [vmem:[%s11467_s15 + $0x190] ss:$8 sps:$4 sm:$0xff]  }
 0x48d   : > { %v8581_v63 = vmax.f32 %v8483_v42, 0.0  ;;  %v8582_v52 = vmax.f32 %v8484_v21, 0.0  ;;  %v9374_v41 = vcombine.low %v8579_v19, %v8580_v4  ;;  %v8174_v50 = vcombine.high %v8152_v12, %v8152_v12 }
 0x48e   : > { %v8486_v44 = vadd.f32 %v8152_v12, %v6990_v48  ;;  %v8487_v62 = vadd.f32 %v16176_v24, %v6992_v0  ;;  %v6996_v58 = vcombine.high %v6146_v46, %v6148_v7  ;;  %v9382_v51 = vrot.slane %v9373_v1, %v17011_v29 }
 0x48f   : > { %v8583_v60 = vmax.f32 %v8485_v43, 0.0  ;;  %v9375_v3 = vcombine.low %v8581_v63, %v8582_v52  ;;  %v9389_v15 = vrot.slane %v9374_v41, %v17011_v29  ;;  %v7005_v54 = vrot.slane %v6995_v14, %v17011_v29 }
 0x490   : > { %v8584_v23 = vmax.f32 %v8486_v44, 0.0  ;;  %v8585_v27 = vmax.f32 %v8487_v62, 0.0  ;;  %v6997_v9 = vcombine.low %v6247_v47, %v6249_v16  ;;  %v8488_v0 = vadd.f32 %v8174_v50, %v6994_v26 }
 0x491   : > { %v9396_v49 = vrot.slane %v9375_v3, %v17011_v29  ;;  %v9403_v6 = vrot.slane %v8583_v60, %v17011_v29  ;;  %v9404_v48 = vcombine.low %v9382_v51, %v9389_v15  ;;  %v9405_v38 = vcombine.high %v9382_v51, %v9389_v15 }
 0x492   : > { %v7012_v1 = vrot.slane %v6996_v58, %v17011_v29  ;;  %v6998_v22 = vcombine.high %v6247_v47, %v6249_v16  ;;  %v7019_v33 = vrot.slane %v6997_v9, %v17011_v29  ;;  %v9440_v53 = vcombine.low %v8584_v23, %v8585_v27 }
 0x493   : > { %v9406_v39 = vcombine.low %v9396_v49, %v9403_v6  ;;  %v9407_v13 = vcombine.high %v9396_v49, %v9403_v6  ;;  %v9414_v31 = vrot.slane %v9404_v48, %v17011_v29  ;;  %v9421_v2 = vrot.slane %v9405_v38, %v17011_v29 }
 0x494   : > { %v7026_v46 = vrot.slane %v6998_v22, %v17011_v29  ;;  %v7027_v8 = vcombine.low %v7005_v54, %v7019_v33  ;;  %v7028_v57 = vcombine.high %v7005_v54, %v7019_v33  ;;  %v8127_v56 = vrot.slane %v11158_v17, %v17011_v29  ;;  %v17094_v54 = vld [vmem:[#allocation58_spill] sm:$0xff] }
 0x495   : > { %v9428_v26 = vrot.slane %v9406_v39, %v17011_v29  ;;  %v9435_v37 = vrot.slane %v9407_v13, %v17011_v29  ;;  %v8141_v7 = vrot.slane %v11159_v5, %v17011_v29  ;;  %v8586_v14 = vmax.f32 %v8488_v0, 0.0 }
 0x496   : > { %v7029_v40 = vcombine.low %v7012_v1, %v7026_v46  ;;  %v7030_v19 = vcombine.high %v7012_v1, %v7026_v46  ;;  %v7037_v11 = vrot.slane %v7027_v8, %v17011_v29  ;;  %v7051_v47 = vrot.slane %v7028_v57, %v17011_v29 }
 0x497   : > { %v9436_v42 = vcombine.low %v9414_v31, %v9428_v26  ;;  %v9437_v21 = vcombine.high %v9414_v31, %v9428_v26  ;;  %v9438_v4 = vcombine.low %v9421_v2, %v9435_v37  ;;  %v9439_v12 = vcombine.high %v9421_v2, %v9435_v37 }
 0x498   : > { %v7044_v35 = vrot.slane %v7029_v40, %v17011_v29  ;;  %v7059_v16 = vcombine.high %v7037_v11, %v7037_v11  ;;  %v8144_v43 = vcombine.low %v8127_v56, %v8141_v7  ;;  %v8145_v63 = vcombine.high %v8127_v56, %v8141_v7 }
 0x499   : > { %9737 = vst [vmem:[%s15681_s21 + $0x140] sm:$0x7f] %v9436_v42  ;;  %9738 = vst [vmem:[%s15681_s21 + $0x148] sm:$0x7f] %v9438_v4  ;;  %v8176_v52 = vcombine.high %v16176_v24, %v16176_v24  ;;  %v8187_v41 = vrot.slane %v11160_v36, %v17011_v29  ;;  %v9449_v50 = vrot.slane %v9440_v53, %v17011_v29 }
 0x49a   : > { %9739 = vst [vmem:[%s15681_s21 + $0x150] sm:$0x7f] %v9437_v21  ;;  %9740 = vst [vmem:[%s15681_s21 + $0x158] sm:$0x7f] %v9439_v12  ;;  %v7058_v44 = vrot.slane %v7030_v19, %v17011_v29  ;;  %v7061_v62 = vcombine.high %v7051_v47, %v7051_v47  ;;  %v8201_v58 = vrot.slane %v11162_v25, %v17011_v29 }
 0x49b   : > { %v7060_v51 = vcombine.high %v7044_v35, %v7044_v35  ;;  %v8159_v60 = vrot.slane %v8144_v43, %v17011_v29  ;;  %v8173_v3 = vrot.slane %v8145_v63, %v17011_v29  ;;  %v8489_v15 = vadd.f32 %v8176_v52, %v7037_v11  ;;  %v11164_v25 = vld [vmem:[%s11467_s15 + $0x184] ss:$8 sps:$4 sm:$0x77]   ;;  %v11165_v42 = vld [vmem:[%s11467_s15 + $0x194] ss:$8 sps:$4 sm:$0x77]  }
 0x49c   : > { %v8209_v23 = vcombine.low %v8187_v41, %v8201_v58  ;;  %v8210_v27 = vcombine.high %v8187_v41, %v8201_v58  ;;  %v6150_v24 = vadd.f32 %v17094_v54, %v15330_v34  ;;  %v6152_v9 = vadd.f32 %v15845_v18, %v15356_v55 }
 0x49d   : > { %v8175_v49 = vcombine.high %v8159_v60, %v8159_v60  ;;  %v8490_v6 = vadd.f32 %v8159_v60, %v7051_v47  ;;  %v8491_v48 = vadd.f32 %v8173_v3, %v7059_v16  ;;  %v8587_v38 = vmax.f32 %v8489_v15, 0.0  ;;  %v11166_v3 = vld [vmem:[%s11467_s15 + $0x1a0] ss:$8 sps:$4 sm:$0xff]  }
 0x49e   : > { %v7062_v17 = vcombine.high %v7058_v44, %v7058_v44  ;;  %v8219_v5 = vrot.slane %v8209_v23, %v17011_v29  ;;  %v8233_v0 = vrot.slane %v8210_v27, %v17011_v29  ;;  %v7063_v1 = vcombine.low %v6150_v24, %v6152_v9 }
 0x49f   : > { %v8492_v22 = vadd.f32 %v8175_v49, %v7061_v62  ;;  %v8588_v33 = vmax.f32 %v8490_v6, 0.0  ;;  %v8589_v39 = vmax.f32 %v8491_v48, 0.0  ;;  %v9441_v13 = vcombine.low %v8586_v14, %v8587_v38  ;;  %v11168_v48 = vld [vmem:[%s11467_s15 + $0x1a4] ss:$8 sps:$4 sm:$0x77]  }
 0x4a0   : > { %v8241_v31 = vcombine.high %v8219_v5, %v8219_v5  ;;  %v8243_v53 = vcombine.high %v8233_v0, %v8233_v0  ;;  %v8493_v2 = vadd.f32 %v8219_v5, %v7044_v35  ;;  %v8494_v18 = vadd.f32 %v8233_v0, %v7058_v44  ;;  %v11169_v38 = vld [vmem:[%s11467_s15 + $0x1b0] ss:$8 sps:$4 sm:$0xff]  }
 0x4a1   : > { %v8590_v46 = vmax.f32 %v8492_v22, 0.0  ;;  %v9442_v8 = vcombine.low %v8588_v33, %v8589_v39  ;;  %v9456_v57 = vrot.slane %v9441_v13, %v17011_v29  ;;  %v7064_v26 = vcombine.high %v6150_v24, %v6152_v9  ;;  %v11171_v22 = vld [vmem:[%s11467_s15 + $0x1b4] ss:$8 sps:$4 sm:$0x77]  }
 0x4a2   : > { %v8495_v37 = vadd.f32 %v8241_v31, %v7060_v51  ;;  %v8496_v56 = vadd.f32 %v8243_v53, %v7062_v17  ;;  %v6251_v7 = vadd.f32 %v15827_v59, %v15354_v45  ;;  %v6253_v36 = vadd.f32 %v15851_v32, %v15360_v10 }
 0x4a3   : > { %v9463_v40 = vrot.slane %v9442_v8, %v17011_v29  ;;  %v9470_v19 = vrot.slane %v8590_v46, %v17011_v29  ;;  %v9471_v11 = vcombine.low %v9449_v50, %v9456_v57  ;;  %v9472_v47 = vcombine.high %v9449_v50, %v9456_v57 }
 0x4a4   : > { %v8591_v21 = vmax.f32 %v8493_v2, 0.0  ;;  %v8592_v4 = vmax.f32 %v8494_v18, 0.0  ;;  %v8593_v12 = vmax.f32 %v8495_v37, 0.0  ;;  %v7073_v14 = vrot.slane %v7063_v1, %v17011_v29 }
 0x4a5   : > { %v8594_v35 = vmax.f32 %v8496_v56, 0.0  ;;  %v9473_v16 = vcombine.low %v9463_v40, %v9470_v19  ;;  %v9474_v59 = vcombine.high %v9463_v40, %v9470_v19  ;;  %v7080_v43 = vrot.slane %v7064_v26, %v17011_v29 }
 0x4a6   : > { %v9481_v32 = vrot.slane %v9471_v11, %v17011_v29  ;;  %v9488_v63 = vrot.slane %v9472_v47, %v17011_v29  ;;  %v7065_v52 = vcombine.low %v6251_v7, %v6253_v36  ;;  %v7066_v41 = vcombine.high %v6251_v7, %v6253_v36 }
 0x4a7   : > { %v9495_v50 = vrot.slane %v9473_v16, %v17011_v29  ;;  %v9502_v44 = vrot.slane %v9474_v59, %v17011_v29  ;;  %v8194_v62 = vrot.slane %v11164_v25, %v17011_v29  ;;  %v8208_v58 = vrot.slane %v11165_v42, %v17011_v29 }
 0x4a8   : > { %v7087_v51 = vrot.slane %v7065_v52, %v17011_v29  ;;  %v7094_v60 = vrot.slane %v7066_v41, %v17011_v29  ;;  %v9507_v24 = vcombine.low %v8591_v21, %v8592_v4  ;;  %v9508_v9 = vcombine.low %v8593_v12, %v8594_v35 }
 0x4a9   : > { %v9503_v15 = vcombine.low %v9481_v32, %v9495_v50  ;;  %v9504_v23 = vcombine.high %v9481_v32, %v9495_v50  ;;  %v9505_v27 = vcombine.low %v9488_v63, %v9502_v44  ;;  %v9506_v54 = vcombine.high %v9488_v63, %v9502_v44 }
 0x4aa   : > { %v7095_v49 = vcombine.low %v7073_v14, %v7087_v51  ;;  %v7096_v6 = vcombine.high %v7073_v14, %v7087_v51  ;;  %v7097_v17 = vcombine.low %v7080_v43, %v7094_v60  ;;  %v7098_v5 = vcombine.high %v7080_v43, %v7094_v60 }
 0x4ab   : > { %9741 = vst [vmem:[%s15681_s21 + $0x160] sm:$0x7f] %v9503_v15  ;;  %9742 = vst [vmem:[%s15681_s21 + $0x168] sm:$0x7f] %v9505_v27  ;;  %v8211_v0 = vcombine.low %v8194_v62, %v8208_v58  ;;  %v8212_v1 = vcombine.high %v8194_v62, %v8208_v58  ;;  %v8254_v13 = vrot.slane %v11166_v3, %v17011_v29 }
 0x4ac   : > { %9743 = vst [vmem:[%s15681_s21 + $0x170] sm:$0x7f] %v9504_v23  ;;  %9744 = vst [vmem:[%s15681_s21 + $0x178] sm:$0x7f] %v9506_v54  ;;  %v7105_v33 = vrot.slane %v7095_v49, %v17011_v29  ;;  %v7119_v39 = vrot.slane %v7096_v6, %v17011_v29  ;;  %v7112_v31 = vrot.slane %v7097_v17, %v17011_v29 }
 0x4ad   : > { %v8226_v53 = vrot.slane %v8211_v0, %v17011_v29  ;;  %v8240_v2 = vrot.slane %v8212_v1, %v17011_v29  ;;  %v9516_v18 = vrot.slane %v9507_v24, %v17011_v29  ;;  %v8261_v8 = vrot.slane %v11168_v48, %v17011_v29 }
 0x4ae   : > { %v7127_v46 = vcombine.high %v7105_v33, %v7105_v33  ;;  %v8268_v57 = vrot.slane %v11169_v38, %v17011_v29  ;;  %v9523_v26 = vrot.slane %v9508_v9, %v17011_v29  ;;  %v7126_v37 = vrot.slane %v7098_v5, %v17011_v29 }
 0x4af   : > { %v8242_v56 = vcombine.high %v8226_v53, %v8226_v53  ;;  %v8275_v7 = vrot.slane %v11171_v22, %v17011_v29  ;;  %v8497_v19 = vadd.f32 %v8226_v53, %v7105_v33  ;;  %v8498_v11 = vadd.f32 %v8240_v2, %v7119_v39 }
 0x4b0   : > { %v8276_v36 = vcombine.low %v8254_v13, %v8268_v57  ;;  %v8277_v40 = vcombine.high %v8254_v13, %v8268_v57  ;;  %v7128_v47 = vcombine.high %v7112_v31, %v7112_v31  ;;  %v7129_v25 = vcombine.high %v7119_v39, %v7119_v39 }
 0x4b1   : > { %v8278_v42 = vcombine.low %v8261_v8, %v8275_v7  ;;  %v8499_v21 = vadd.f32 %v8242_v56, %v7127_v46  ;;  %v8595_v14 = vmax.f32 %v8497_v19, 0.0  ;;  %v8596_v35 = vmax.f32 %v8498_v11, 0.0 }
 0x4b2   : > { %v8286_v4 = vrot.slane %v8276_v36, %v17011_v29  ;;  %v8300_v12 = vrot.slane %v8277_v40, %v17011_v29  ;;  %v6156_v59 = vadd.f32 %v15860_v28, %v15330_v34  ;;  %v6158_v43 = vadd.f32 %v15878_v30, %v15356_v55 }
 0x4b3   : > { %v8597_v16 = vmax.f32 %v8499_v21, 0.0  ;;  %v6259_v32 = vadd.f32 %v15880_v20, %v15360_v10  ;;  %v9538_v63 = vcombine.low %v9516_v18, %v9523_v26  ;;  %v9539_v52 = vcombine.high %v9516_v18, %v9523_v26 }
 0x4b4   : > { %v8308_v41 = vcombine.high %v8286_v4, %v8286_v4  ;;  %v8310_v50 = vcombine.high %v8300_v12, %v8300_v12  ;;  %v9509_v44 = vcombine.low %v8595_v14, %v8596_v35  ;;  %v6257_v58 = vadd.f32 %v15871_v61, %v15354_v45 }
 0x4b5   : > { %v9537_v62 = vrot.slane %v8597_v16, %v17011_v29  ;;  %v7131_v51 = vcombine.low %v6156_v59, %v6158_v43  ;;  %v7130_v60 = vcombine.high %v7126_v37, %v7126_v37  ;;  %v8293_v34 = vrot.slane %v8278_v42, %v17011_v29 }
 0x4b6   : > { %v8500_v28 = vadd.f32 %v8286_v4, %v7129_v25  ;;  %v8503_v3 = vadd.f32 %v8310_v50, %v7128_v47  ;;  %v9530_v55 = vrot.slane %v9509_v44, %v17011_v29  ;;  %v7132_v30 = vcombine.low %v6257_v58, %v6259_v32 }
 0x4b7   : > { %v7139_v10 = vrot.slane %v7131_v51, %v17011_v29  ;;  %v8501_v20 = vadd.f32 %v8300_v12, %v7112_v31  ;;  %v8502_v15 = vadd.f32 %v8308_v41, %v7126_v37  ;;  %v8279_v23 = vcombine.high %v8261_v8, %v8275_v7 }
 0x4b8   : > { %v9548_v27 = vrot.slane %v9538_v63, %v17011_v29  ;;  %v9540_v54 = vcombine.low %v9530_v55, %v9537_v62  ;;  %v9541_v24 = vcombine.high %v9530_v55, %v9537_v62  ;;  %v7146_v45 = vrot.slane %v7132_v30, %v17011_v29 }
 0x4b9   : > { %v9555_v61 = vrot.slane %v9539_v52, %v17011_v29  ;;  %v8504_v9 = vadd.f32 %v8293_v34, %v7130_v60  ;;  %v8598_v49 = vmax.f32 %v8500_v28, 0.0  ;;  %v8601_v6 = vmax.f32 %v8503_v3, 0.0 }
 0x4ba   : > { %v9562_v48 = vrot.slane %v9540_v54, %v17011_v29  ;;  %v9569_v38 = vrot.slane %v9541_v24, %v17011_v29  ;;  %v7147_v17 = vcombine.low %v7139_v10, %v7146_v45  ;;  %v7148_v5 = vcombine.high %v7139_v10, %v7146_v45 }
 0x4bb   : > { %v8599_v0 = vmax.f32 %v8501_v20, 0.0  ;;  %v8600_v1 = vmax.f32 %v8502_v15, 0.0  ;;  %v8307_v22 = vrot.slane %v8279_v23, %v17011_v29  ;;  %v8309_v33 = vcombine.high %v8293_v34, %v8293_v34 }
 0x4bc   : > { %v9570_v39 = vcombine.low %v9548_v27, %v9562_v48  ;;  %v9571_v13 = vcombine.high %v9548_v27, %v9562_v48  ;;  %v9572_v31 = vcombine.low %v9555_v61, %v9569_v38  ;;  %v9573_v53 = vcombine.high %v9555_v61, %v9569_v38 }
 0x4bd   : > { %v9574_v2 = vcombine.low %v8598_v49, %v8599_v0  ;;  %v9575_v18 = vcombine.low %v8600_v1, %v8601_v6  ;;  %v7155_v46 = vrot.slane %v7147_v17, %v17011_v29  ;;  %v7162_v8 = vrot.slane %v7148_v5, %v17011_v29 }
 0x4be   : > { %9745 = vst [vmem:[%s15681_s21 + $0x180] sm:$0x7f] %v9570_v39  ;;  %9746 = vst [vmem:[%s15681_s21 + $0x188] sm:$0x7f] %v9572_v31  ;;  %v8602_v37 = vmax.f32 %v8504_v9, 0.0 }
 0x4bf   : > { %9747 = vst [vmem:[%s15681_s21 + $0x190] sm:$0x7f] %v9571_v13  ;;  %9748 = vst [vmem:[%s15681_s21 + $0x198] sm:$0x7f] %v9573_v53  ;;  %v8505_v57 = vadd.f32 %v8307_v22, %v7155_v46  ;;  %v8506_v26 = vadd.f32 %v8309_v33, %v7162_v8  ;;  %v9583_v56 = vrot.slane %v9574_v2, %v17011_v29 }
 0x4c0   : > { %v9590_v7 = vrot.slane %v9575_v18, %v17011_v29 }
 0x4c1   : > { %v8603_v36 = vmax.f32 %v8505_v57, 0.0  ;;  %v8604_v40 = vmax.f32 %v8506_v26, 0.0 }
 0x4c2   : > { %v9605_v11 = vcombine.low %v9583_v56, %v9590_v7  ;;  %v9606_v47 = vcombine.high %v9583_v56, %v9590_v7 }
 0x4c3   : > { %v9576_v19 = vcombine.low %v8602_v37, %v8603_v36  ;;  %v9604_v42 = vrot.slane %v8604_v40, %v17011_v29 }
 0x4c4   : > { %v9615_v12 = vrot.slane %v9605_v11, %v17011_v29  ;;  %v9622_v14 = vrot.slane %v9606_v47, %v17011_v29 }
 0x4c5   : > { %v9597_v25 = vrot.slane %v9576_v19, %v17011_v29 }
 0x4c7   : > { %v9607_v21 = vcombine.low %v9597_v25, %v9604_v42  ;;  %v9608_v4 = vcombine.high %v9597_v25, %v9604_v42 }
 0x4c9   : > { %v9629_v35 = vrot.slane %v9607_v21, %v17011_v29  ;;  %v9636_v16 = vrot.slane %v9608_v4, %v17011_v29 }
 0x4cb   : > { %v9637_v59 = vcombine.low %v9615_v12, %v9629_v35  ;;  %v9638_v43 = vcombine.high %v9615_v12, %v9629_v35  ;;  %v9639_v32 = vcombine.low %v9622_v14, %v9636_v16  ;;  %v9640_v63 = vcombine.high %v9622_v14, %v9636_v16 }
 0x4cd   : > { %9749 = vst [vmem:[%s15681_s21 + $0x1a0] sm:$0x7f] %v9637_v59  ;;  %9750 = vst [vmem:[%s15681_s21 + $0x1a8] sm:$0x7f] %v9639_v32 }
 0x4ce   : > { %9751 = vst [vmem:[%s15681_s21 + $0x1b0] sm:$0x7f] %v9638_v43  ;;  %9752 = vst [vmem:[%s15681_s21 + $0x1b8] sm:$0x7f] %v9640_v63 }
 0x4cf PF: > { %s19_s30 = sadd.s32 1, %s11201_s30  }
 0x4d0   : > { %p16_p4 = scmp.ge.s32.totalorder %s19_s30, 4  }
 0x4d2   :  { %18 = sbr.rel (!%p16_p4) target bundleno = 1 (0x1), region = 94 }

</bundles_post_ra>
